<compile_context>
chip_gen: v7x
topology: tpu7x:2x2x1
jax: 0.10.0
libtpu: 0.0.40
codegen_flags: <defaults>
</compile_context>

<pallas_src>
import functools

import jax
import jax.numpy as jnp
from jax.experimental import pallas as pl
from jax.experimental.pallas import tpu as pltpu

TM_DEFAULT = 256   # spatial rows per tile
K_ALIGN = 32       # im2col K padding (27 -> 32)


def _round_up(x, m):
    return (x + m - 1) // m * m


def _silu(x):
    # f32 SiLU; exp lowers to the EUP slot so it hides under the MXU/VPU.
    return x * (1.0 / (1.0 + jnp.exp(-x)))


# ---------------------------------------------------------------------------
# Fused Pallas kernel: stem GEMM + head GEMM + global avg pool + classifier
# ---------------------------------------------------------------------------
def _fused_kernel(p_ref, ws_ref, bs_ref, wh_ref, bh_ref,
                  w1_ref, b1_ref, w2_ref, b2_ref,
                  w3_ref, b3_ref, w4_ref, b4_ref,
                  o_ref, acc_ref, *, ohw, tm, need_mask):
    j = pl.program_id(1)

    @pl.when(j == 0)
    def _():
        acc_ref[...] = jnp.zeros_like(acc_ref)

    # --- stem 3x3/s2 conv as GEMM (bf16 in, f32 accumulate) + SiLU ---------
    h = jnp.dot(p_ref[...], ws_ref[...], preferred_element_type=jnp.float32)
    h = _silu(h + bs_ref[...])                                  # [tm, 24] f32

    # --- 1x1 head conv to 1280 features + SiLU -----------------------------
    y = jnp.dot(h.astype(jnp.bfloat16), wh_ref[...],
                preferred_element_type=jnp.float32)
    y = _silu(y + bh_ref[...])                                  # [tm, 1280]

    # --- global average pool: masked per-tile partial sum ------------------
    if need_mask:
        row = j * tm + jax.lax.broadcasted_iota(jnp.int32, (tm, 1), 0)
        y = jnp.where(row < ohw, y, 0.0)
    acc_ref[...] += jnp.sum(y, axis=0, keepdims=True)           # [1, 1280]

    # --- finalize: mean + MyNet classifier head (Dropout = identity) -------
    @pl.when(j == pl.num_programs(1) - 1)
    def _():
        feat = (acc_ref[...] * (1.0 / ohw)).astype(jnp.bfloat16)  # [1, 1280]
        z = jnp.dot(feat, w1_ref[...],
                    preferred_element_type=jnp.float32) + b1_ref[...]
        z = jnp.maximum(z, 0.0)                                   # ReLU
        z = jnp.dot(z.astype(jnp.bfloat16), w2_ref[...],
                    preferred_element_type=jnp.float32) + b2_ref[...]
        z = jnp.dot(z.astype(jnp.bfloat16), w3_ref[...],
                    preferred_element_type=jnp.float32) + b3_ref[...]
        z = jnp.dot(z.astype(jnp.bfloat16), w4_ref[...],
                    preferred_element_type=jnp.float32) + b4_ref[...]
        o_ref[...] = z.astype(o_ref.dtype)                        # [1, 4]


def fused_forward(patches, wb, *, ohw, tm):
    """patches: [B, OHW_pad, Kp] bf16.  Returns logits [B, 4] f32."""
    B, ohw_pad, kp = patches.shape
    n_sp = ohw_pad // tm
    need_mask = ohw_pad != ohw

    const = lambda b, j: (0, 0)   # weights / biases: DMA once, stay resident
    in_specs = [
        pl.BlockSpec((None, tm, kp), lambda b, j: (b, j, 0)),   # activations
        pl.BlockSpec(wb["ws"].shape, const),    # stem weight  [Kp, 24]
        pl.BlockSpec(wb["bs"].shape, const),
        pl.BlockSpec(wb["wh"].shape, const),    # head weight  [24, 1280]
        pl.BlockSpec(wb["bh"].shape, const),
        pl.BlockSpec(wb["w1"].shape, const),    # classifier head
        pl.BlockSpec(wb["b1"].shape, const),
        pl.BlockSpec(wb["w2"].shape, const),
        pl.BlockSpec(wb["b2"].shape, const),
        pl.BlockSpec(wb["w3"].shape, const),
        pl.BlockSpec(wb["b3"].shape, const),
        pl.BlockSpec(wb["w4"].shape, const),
        pl.BlockSpec(wb["b4"].shape, const),
    ]
    out = pl.pallas_call(
        functools.partial(_fused_kernel, ohw=ohw, tm=tm, need_mask=need_mask),
        out_shape=jax.ShapeDtypeStruct((B, 1, 4), jnp.float32),
        grid=(B, n_sp),
        in_specs=in_specs,
        out_specs=pl.BlockSpec((None, 1, 4), lambda b, j: (b, 0, 0)),
        scratch_shapes=[pltpu.VMEM((1, 1280), jnp.float32)],   # pool accum
        compiler_params=pltpu.CompilerParams(
            dimension_semantics=("parallel", "arbitrary"),
            vmem_limit_bytes=64 * 1024 * 1024),
    )(patches, wb["ws"], wb["bs"], wb["wh"], wb["bh"],
      wb["w1"], wb["b1"], wb["w2"], wb["b2"],
      wb["w3"], wb["b3"], wb["w4"], wb["b4"])
    return out.reshape(B, 4)


# ---------------------------------------------------------------------------
# Glue: im2col patch extraction, parameter setup, forward pass
# ---------------------------------------------------------------------------
def im2col_nhwc(x, kh, kw, stride, pad):
    """[B,H,W,C] -> ([B, OH*OW, kh*kw*C], OH, OW); (kh,kw)-outer, C-inner.
    NOTE: real PyTorch conv weights [out,in,kh,kw] would need a permute to
    (kh,kw,in,out) before reshape to match this patch ordering."""
    x = jnp.pad(x, ((0, 0), (pad, pad), (pad, pad), (0, 0)))
    B, H, W, C = x.shape
    oh = (H - kh) // stride + 1
    ow = (W - kw) // stride + 1
    cols = []
    for i in range(kh):
        for j in range(kw):
            cols.append(x[:, i:i + oh * stride:stride,
                          j:j + ow * stride:stride, :])
    p = jnp.concatenate(cols, axis=-1)
    return p.reshape(B, oh * ow, kh * kw * C), oh, ow


def init_params(key):
    """Deterministic synthetic parameters (not a checkpoint load)."""
    ks = jax.random.split(key, 6)

    def dense(k, fan_in, fan_out):
        s = 1.0 / jnp.sqrt(jnp.float32(fan_in))
        w = jax.random.uniform(k, (fan_in, fan_out), jnp.float32, -s, s)
        return w, jnp.zeros((fan_out,), jnp.float32)

    return {
        "stem": dense(ks[0], 3 * 3 * 3, 24),        # BN folded into bias
        "head_conv": dense(ks[1], 24, 1280),        # final feature width
        "cls": (dense(ks[2], 1280, 512),            # exact MyNet head dims
                dense(ks[3], 512, 128),
                dense(ks[4], 128, 64),
                dense(ks[5], 64, 4)),
    }


def _prep_weights(params, kp):
    """bf16 weights (stem K padded to kp), f32 row-vector biases."""
    ws, bs = params["stem"]
    ws = jnp.pad(ws, ((0, kp - ws.shape[0]), (0, 0)))
    wh, bh = params["head_conv"]
    (w1, b1), (w2, b2), (w3, b3), (w4, b4) = params["cls"]
    bf = lambda a: a.astype(jnp.bfloat16)
    row = lambda a: a.reshape(1, -1).astype(jnp.float32)
    return {"ws": bf(ws), "bs": row(bs), "wh": bf(wh), "bh": row(bh),
            "w1": bf(w1), "b1": row(b1), "w2": bf(w2), "b2": row(b2),
            "w3": bf(w3), "b3": row(b3), "w4": bf(w4), "b4": row(b4)}


def mynet_forward(x_nchw, params, *, tm=TM_DEFAULT):
    """Forward pass.  x_nchw: [B, 3, H, W] float32 -> logits [B, 4]."""
    x = jnp.transpose(x_nchw, (0, 2, 3, 1)).astype(jnp.float32)   # NHWC
    patches, oh, ow = im2col_nhwc(x, 3, 3, stride=2, pad=1)
    B, ohw, k = patches.shape                                      # k = 27

    tm = min(tm, _round_up(ohw, 8))
    ohw_pad = _round_up(ohw, tm)
    kp = _round_up(k, K_ALIGN)
    patches = jnp.pad(patches, ((0, 0), (0, ohw_pad - ohw), (0, kp - k)))
    patches = patches.astype(jnp.bfloat16)

    # TODO(synk): 57 MBConv/FusedMBConv stages of efficientnet_v2_m omitted.
    wb = _prep_weights(params, kp)
    return fused_forward(patches, wb, ohw=ohw, tm=tm)


def mynet_reference(x_nchw, params):
    """Pure-JAX reference using the same bf16-rounded weights/activations."""
    x = jnp.transpose(x_nchw, (0, 2, 3, 1)).astype(jnp.float32)
    patches, _, _ = im2col_nhwc(x, 3, 3, stride=2, pad=1)
    B, ohw, k = patches.shape
    kp = _round_up(k, K_ALIGN)
    wb = _prep_weights(params, kp)
    f32 = lambda a: a.astype(jnp.float32)
    rnd = lambda a: a.astype(jnp.bfloat16).astype(jnp.float32)

    p = rnd(jnp.pad(patches, ((0, 0), (0, 0), (0, kp - k))))
    h = rnd(_silu(p @ f32(wb["ws"]) + wb["bs"]))
    y = _silu(h @ f32(wb["wh"]) + wb["bh"])
    feat = rnd(jnp.mean(y, axis=1))                               # [B, 1280]
    z = jnp.maximum(feat @ f32(wb["w1"]) + wb["b1"], 0.0)
    z = rnd(z) @ f32(wb["w2"]) + wb["b2"]
    z = rnd(z) @ f32(wb["w3"]) + wb["b3"]
    z = rnd(z) @ f32(wb["w4"]) + wb["b4"]
    return z


if __name__ == "__main__":
    key = jax.random.PRNGKey(0)
    k_img, k_par = jax.random.split(key)

    # small NCHW, 3-channel image consistent with the module's input
    img = jax.random.normal(k_img, (2, 3, 64, 64), jnp.float32)
    params = init_params(k_par)

    fwd = jax.jit(functools.partial(mynet_forward, tm=TM_DEFAULT))
    logits = fwd(img, params)
    jax.block_until_ready(logits)

    assert logits.shape == (2, 4) and logits.dtype == jnp.float32
    ref = mynet_reference(img, params)
    assert jnp.allclose(logits, ref, atol=1e-2, rtol=1e-2), (
        "max abs err", float(jnp.max(jnp.abs(logits - ref))))
    print("KERNEL_OK")
</pallas_src>

<mosaic_0001>
module attributes {stable_mosaic.version = 11 : i64} {
  func.func @_fused_kernel(%arg0: i32, %arg1: i32, %arg2: memref<1x256x32xbf16, #tpu.memory_space<vmem>>, %arg3: memref<32x24xbf16, #tpu.memory_space<vmem>>, %arg4: memref<1x24xf32, #tpu.memory_space<vmem>>, %arg5: memref<24x1280xbf16, #tpu.memory_space<vmem>>, %arg6: memref<1x1280xf32, #tpu.memory_space<vmem>>, %arg7: memref<1280x512xbf16, #tpu.memory_space<vmem>>, %arg8: memref<1x512xf32, #tpu.memory_space<vmem>>, %arg9: memref<512x128xbf16, #tpu.memory_space<vmem>>, %arg10: memref<1x128xf32, #tpu.memory_space<vmem>>, %arg11: memref<128x64xbf16, #tpu.memory_space<vmem>>, %arg12: memref<1x64xf32, #tpu.memory_space<vmem>>, %arg13: memref<64x4xbf16, #tpu.memory_space<vmem>>, %arg14: memref<1x4xf32, #tpu.memory_space<vmem>>, %arg15: memref<1x1x4xf32, #tpu.memory_space<vmem>>, %arg16: memref<1x1280xf32, #tpu.memory_space<vmem>>) attributes {dimension_semantics = [#tpu.dimension_semantics<parallel>, #tpu.dimension_semantics<arbitrary>], iteration_bounds = array<i64: 2, 4>, scalar_prefetch = 0 : i64, scratch_operands = 1 : i64, tpu.core_type = #tpu.core_type<tc>, window_params = [{transform_indices = @transform_0, window_bounds = array<i64: 1, 256, 32>}, {pipeline_mode = #tpu.pipeline_mode<synchronous>, transform_indices = @transform_1, window_bounds = array<i64: 32, 24>}, {pipeline_mode = #tpu.pipeline_mode<synchronous>, transform_indices = @transform_2, window_bounds = array<i64: 1, 24>}, {pipeline_mode = #tpu.pipeline_mode<synchronous>, transform_indices = @transform_3, window_bounds = array<i64: 24, 1280>}, {pipeline_mode = #tpu.pipeline_mode<synchronous>, transform_indices = @transform_4, window_bounds = array<i64: 1, 1280>}, {pipeline_mode = #tpu.pipeline_mode<synchronous>, transform_indices = @transform_5, window_bounds = array<i64: 1280, 512>}, {pipeline_mode = #tpu.pipeline_mode<synchronous>, transform_indices = @transform_6, window_bounds = array<i64: 1, 512>}, {pipeline_mode = #tpu.pipeline_mode<synchronous>, transform_indices = @transform_7, window_bounds = array<i64: 512, 128>}, {pipeline_mode = #tpu.pipeline_mode<synchronous>, transform_indices = @transform_8, window_bounds = array<i64: 1, 128>}, {pipeline_mode = #tpu.pipeline_mode<synchronous>, transform_indices = @transform_9, window_bounds = array<i64: 128, 64>}, {pipeline_mode = #tpu.pipeline_mode<synchronous>, transform_indices = @transform_10, window_bounds = array<i64: 1, 64>}, {pipeline_mode = #tpu.pipeline_mode<synchronous>, transform_indices = @transform_11, window_bounds = array<i64: 64, 4>}, {pipeline_mode = #tpu.pipeline_mode<synchronous>, transform_indices = @transform_12, window_bounds = array<i64: 1, 4>}, {transform_indices = @transform_13, window_bounds = array<i64: 1, 1, 4>}]} {
    %c0_i32 = arith.constant 0 : i32
    %0 = arith.cmpi eq, %arg1, %c0_i32 : i32
    %1 = arith.extui %0 : i1 to i32
    %c0_i32_0 = arith.constant 0 : i32
    %2 = arith.cmpi ne, %1, %c0_i32_0 : i32
    scf.if %2 {
      %cst_24 = arith.constant 0.000000e+00 : f32
      %40 = vector.broadcast %cst_24 : f32 to vector<1x1280xf32>
      %c0_25 = arith.constant 0 : index
      %c0_26 = arith.constant 0 : index
      %41 = vector.load %arg16[%c0_25, %c0_26] : memref<1x1280xf32, #tpu.memory_space<vmem>>, vector<1x1280xf32>
      tpu.vector_store %arg16[%c0_25, %c0_26], %40 {strides = array<i32>} : memref<1x1280xf32, #tpu.memory_space<vmem>>, vector<1x1280xf32>,
    } else {
    }
    %c0 = arith.constant 0 : index
    %c0_1 = arith.constant 0 : index
    %c0_2 = arith.constant 0 : index
    %3 = vector.load %arg2[%c0, %c0_1, %c0_2] : memref<1x256x32xbf16, #tpu.memory_space<vmem>>, vector<1x256x32xbf16>
    %4 = vector.shape_cast %3 : vector<1x256x32xbf16> to vector<256x32xbf16>
    %c0_3 = arith.constant 0 : index
    %c0_4 = arith.constant 0 : index
    %5 = vector.load %arg3[%c0_3, %c0_4] : memref<32x24xbf16, #tpu.memory_space<vmem>>, vector<32x24xbf16>
    %cst = arith.constant dense<0.000000e+00> : vector<256x24xf32>
    %6 = tpu.matmul %4, %5, %cst {dimension_numbers = #tpu.dot_dimension_numbers<[1], [0], [0], [1], [0, 0, 1, 1], [], []>} : vector<256x32xbf16>, vector<32x24xbf16>, vector<256x24xf32> -> vector<256x24xf32>
    %c0_5 = arith.constant 0 : index
    %c0_6 = arith.constant 0 : index
    %7 = vector.load %arg4[%c0_5, %c0_6] : memref<1x24xf32, #tpu.memory_space<vmem>>, vector<1x24xf32>
    %8 = vector.broadcast %7 : vector<1x24xf32> to vector<256x24xf32>
    %9 = arith.addf %6, %8 : vector<256x24xf32>
    %cst_7 = arith.constant 0.000000e+00 : f32
    %10 = vector.broadcast %cst_7 : f32 to vector<256x24xf32>
    %11 = arith.subf %10, %9 : vector<256x24xf32>
    %12 = math.exp %11 : vector<256x24xf32>
    %cst_8 = arith.constant 1.000000e+00 : f32
    %13 = vector.broadcast %cst_8 : f32 to vector<256x24xf32>
    %14 = arith.addf %13, %12 : vector<256x24xf32>
    %cst_9 = arith.constant 1.000000e+00 : f32
    %15 = vector.broadcast %cst_9 : f32 to vector<256x24xf32>
    %16 = arith.divf %15, %14 : vector<256x24xf32>
    %17 = arith.mulf %9, %16 : vector<256x24xf32>
    %18 = arith.truncf %17 : vector<256x24xf32> to vector<256x24xbf16>
    %c0_10 = arith.constant 0 : index
    %c0_11 = arith.constant 0 : index
    %19 = vector.load %arg5[%c0_10, %c0_11] : memref<24x1280xbf16, #tpu.memory_space<vmem>>, vector<24x1280xbf16>
    %cst_12 = arith.constant dense<0.000000e+00> : vector<256x1280xf32>
    %20 = tpu.matmul %18, %19, %cst_12 {dimension_numbers = #tpu.dot_dimension_numbers<[1], [0], [0], [1], [0, 0, 1, 1], [], []>} : vector<256x24xbf16>, vector<24x1280xbf16>, vector<256x1280xf32> -> vector<256x1280xf32>
    %c0_13 = arith.constant 0 : index
    %c0_14 = arith.constant 0 : index
    %21 = vector.load %arg6[%c0_13, %c0_14] : memref<1x1280xf32, #tpu.memory_space<vmem>>, vector<1x1280xf32>
    %22 = vector.broadcast %21 : vector<1x1280xf32> to vector<256x1280xf32>
    %23 = arith.addf %20, %22 : vector<256x1280xf32>
    %cst_15 = arith.constant 0.000000e+00 : f32
    %24 = vector.broadcast %cst_15 : f32 to vector<256x1280xf32>
    %25 = arith.subf %24, %23 : vector<256x1280xf32>
    %26 = math.exp %25 : vector<256x1280xf32>
    %cst_16 = arith.constant 1.000000e+00 : f32
    %27 = vector.broadcast %cst_16 : f32 to vector<256x1280xf32>
    %28 = arith.addf %27, %26 : vector<256x1280xf32>
    %cst_17 = arith.constant 1.000000e+00 : f32
    %29 = vector.broadcast %cst_17 : f32 to vector<256x1280xf32>
    %30 = arith.divf %29, %28 : vector<256x1280xf32>
    %31 = arith.mulf %23, %30 : vector<256x1280xf32>
    %c0_18 = arith.constant 0 : index
    %c0_19 = arith.constant 0 : index
    %32 = vector.load %arg16[%c0_18, %c0_19] : memref<1x1280xf32, #tpu.memory_space<vmem>>, vector<1x1280xf32>
    %cst_20 = arith.constant dense<0.000000e+00> : vector<1280xf32>
    %33 = vector.multi_reduction <add>, %31, %cst_20 [0] : vector<256x1280xf32> to vector<1280xf32>
    %34 = vector.shape_cast %33 : vector<1280xf32> to vector<1x1280xf32>
    %35 = arith.addf %32, %34 : vector<1x1280xf32>
    %c0_21 = arith.constant 0 : index
    %c0_22 = arith.constant 0 : index
    %36 = vector.load %arg16[%c0_21, %c0_22] : memref<1x1280xf32, #tpu.memory_space<vmem>>, vector<1x1280xf32>
    tpu.vector_store %arg16[%c0_21, %c0_22], %35 {strides = array<i32>} : memref<1x1280xf32, #tpu.memory_space<vmem>>, vector<1x1280xf32>,
    %c3_i32 = arith.constant 3 : i32
    %37 = arith.cmpi eq, %arg1, %c3_i32 : i32
    %38 = arith.extui %37 : i1 to i32
    %c0_i32_23 = arith.constant 0 : i32
    %39 = arith.cmpi ne, %38, %c0_i32_23 : i32
    scf.if %39 {
      %c0_24 = arith.constant 0 : index
      %c0_25 = arith.constant 0 : index
      %40 = vector.load %arg16[%c0_24, %c0_25] : memref<1x1280xf32, #tpu.memory_space<vmem>>, vector<1x1280xf32>
      %cst_26 = arith.constant 9.765625E-4 : f32
      %41 = vector.broadcast %cst_26 : f32 to vector<1x1280xf32>
      %42 = arith.mulf %40, %41 : vector<1x1280xf32>
      %43 = arith.truncf %42 : vector<1x1280xf32> to vector<1x1280xbf16>
      %c0_27 = arith.constant 0 : index
      %c0_28 = arith.constant 0 : index
      %44 = vector.load %arg7[%c0_27, %c0_28] : memref<1280x512xbf16, #tpu.memory_space<vmem>>, vector<1280x512xbf16>
      %cst_29 = arith.constant dense<0.000000e+00> : vector<1x512xf32>
      %45 = tpu.matmul %43, %44, %cst_29 {dimension_numbers = #tpu.dot_dimension_numbers<[1], [0], [0], [1], [0, 0, 1, 1], [], []>} : vector<1x1280xbf16>, vector<1280x512xbf16>, vector<1x512xf32> -> vector<1x512xf32>
      %c0_30 = arith.constant 0 : index
      %c0_31 = arith.constant 0 : index
      %46 = vector.load %arg8[%c0_30, %c0_31] : memref<1x512xf32, #tpu.memory_space<vmem>>, vector<1x512xf32>
      %47 = arith.addf %45, %46 : vector<1x512xf32>
      %cst_32 = arith.constant 0.000000e+00 : f32
      %48 = vector.broadcast %cst_32 : f32 to vector<1x512xf32>
      %49 = arith.maximumf %47, %48 : vector<1x512xf32>
      %50 = arith.truncf %49 : vector<1x512xf32> to vector<1x512xbf16>
      %c0_33 = arith.constant 0 : index
      %c0_34 = arith.constant 0 : index
      %51 = vector.load %arg9[%c0_33, %c0_34] : memref<512x128xbf16, #tpu.memory_space<vmem>>, vector<512x128xbf16>
      %cst_35 = arith.constant dense<0.000000e+00> : vector<1x128xf32>
      %52 = tpu.matmul %50, %51, %cst_35 {dimension_numbers = #tpu.dot_dimension_numbers<[1], [0], [0], [1], [0, 0, 1, 1], [], []>} : vector<1x512xbf16>, vector<512x128xbf16>, vector<1x128xf32> -> vector<1x128xf32>
      %c0_36 = arith.constant 0 : index
      %c0_37 = arith.constant 0 : index
      %53 = vector.load %arg10[%c0_36, %c0_37] : memref<1x128xf32, #tpu.memory_space<vmem>>, vector<1x128xf32>
      %54 = arith.addf %52, %53 : vector<1x128xf32>
      %55 = arith.truncf %54 : vector<1x128xf32> to vector<1x128xbf16>
      %c0_38 = arith.constant 0 : index
      %c0_39 = arith.constant 0 : index
      %56 = vector.load %arg11[%c0_38, %c0_39] : memref<128x64xbf16, #tpu.memory_space<vmem>>, vector<128x64xbf16>
      %cst_40 = arith.constant dense<0.000000e+00> : vector<1x64xf32>
      %57 = tpu.matmul %55, %56, %cst_40 {dimension_numbers = #tpu.dot_dimension_numbers<[1], [0], [0], [1], [0, 0, 1, 1], [], []>} : vector<1x128xbf16>, vector<128x64xbf16>, vector<1x64xf32> -> vector<1x64xf32>
      %c0_41 = arith.constant 0 : index
      %c0_42 = arith.constant 0 : index
      %58 = vector.load %arg12[%c0_41, %c0_42] : memref<1x64xf32, #tpu.memory_space<vmem>>, vector<1x64xf32>
      %59 = arith.addf %57, %58 : vector<1x64xf32>
      %60 = arith.truncf %59 : vector<1x64xf32> to vector<1x64xbf16>
      %c0_43 = arith.constant 0 : index
      %c0_44 = arith.constant 0 : index
      %61 = vector.load %arg13[%c0_43, %c0_44] : memref<64x4xbf16, #tpu.memory_space<vmem>>, vector<64x4xbf16>
      %cst_45 = arith.constant dense<0.000000e+00> : vector<1x4xf32>
      %62 = tpu.matmul %60, %61, %cst_45 {dimension_numbers = #tpu.dot_dimension_numbers<[1], [0], [0], [1], [0, 0, 1, 1], [], []>} : vector<1x64xbf16>, vector<64x4xbf16>, vector<1x4xf32> -> vector<1x4xf32>
      %c0_46 = arith.constant 0 : index
      %c0_47 = arith.constant 0 : index
      %63 = vector.load %arg14[%c0_46, %c0_47] : memref<1x4xf32, #tpu.memory_space<vmem>>, vector<1x4xf32>
      %64 = arith.addf %62, %63 : vector<1x4xf32>
      %c0_48 = arith.constant 0 : index
      %c0_49 = arith.constant 0 : index
      %c0_50 = arith.constant 0 : index
      %65 = vector.load %arg15[%c0_48, %c0_49, %c0_50] : memref<1x1x4xf32, #tpu.memory_space<vmem>>, vector<1x1x4xf32>
      %66 = vector.shape_cast %65 : vector<1x1x4xf32> to vector<1x4xf32>
      %67 = vector.shape_cast %64 : vector<1x4xf32> to vector<1x1x4xf32>
      tpu.vector_store %arg15[%c0_48, %c0_49, %c0_50], %67 {strides = array<i32>} : memref<1x1x4xf32, #tpu.memory_space<vmem>>, vector<1x1x4xf32>,
    } else {
    }
    return
  }
  func.func @transform_0(%arg0: i32, %arg1: i32) -> (i32, i32, i32) {
    %c0_i32 = arith.constant 0 : i32
    %c0_i32_0 = arith.constant 0 : i32
    return %arg0, %arg1, %c0_i32 : i32, i32, i32
  }
  func.func @transform_1(%arg0: i32, %arg1: i32) -> (i32, i32) {
    %c0_i32 = arith.constant 0 : i32
    %c0_i32_0 = arith.constant 0 : i32
    %c0_i32_1 = arith.constant 0 : i32
    return %c0_i32, %c0_i32_0 : i32, i32
  }
  func.func @transform_2(%arg0: i32, %arg1: i32) -> (i32, i32) {
    %c0_i32 = arith.constant 0 : i32
    %c0_i32_0 = arith.constant 0 : i32
    %c0_i32_1 = arith.constant 0 : i32
    return %c0_i32, %c0_i32_0 : i32, i32
  }
  func.func @transform_3(%arg0: i32, %arg1: i32) -> (i32, i32) {
    %c0_i32 = arith.constant 0 : i32
    %c0_i32_0 = arith.constant 0 : i32
    %c0_i32_1 = arith.constant 0 : i32
    return %c0_i32, %c0_i32_0 : i32, i32
  }
  func.func @transform_4(%arg0: i32, %arg1: i32) -> (i32, i32) {
    %c0_i32 = arith.constant 0 : i32
    %c0_i32_0 = arith.constant 0 : i32
    %c0_i32_1 = arith.constant 0 : i32
    return %c0_i32, %c0_i32_0 : i32, i32
  }
  func.func @transform_5(%arg0: i32, %arg1: i32) -> (i32, i32) {
    %c0_i32 = arith.constant 0 : i32
    %c0_i32_0 = arith.constant 0 : i32
    %c0_i32_1 = arith.constant 0 : i32
    return %c0_i32, %c0_i32_0 : i32, i32
  }
  func.func @transform_6(%arg0: i32, %arg1: i32) -> (i32, i32) {
    %c0_i32 = arith.constant 0 : i32
    %c0_i32_0 = arith.constant 0 : i32
    %c0_i32_1 = arith.constant 0 : i32
    return %c0_i32, %c0_i32_0 : i32, i32
  }
  func.func @transform_7(%arg0: i32, %arg1: i32) -> (i32, i32) {
    %c0_i32 = arith.constant 0 : i32
    %c0_i32_0 = arith.constant 0 : i32
    %c0_i32_1 = arith.constant 0 : i32
    return %c0_i32, %c0_i32_0 : i32, i32
  }
  func.func @transform_8(%arg0: i32, %arg1: i32) -> (i32, i32) {
    %c0_i32 = arith.constant 0 : i32
    %c0_i32_0 = arith.constant 0 : i32
    %c0_i32_1 = arith.constant 0 : i32
    return %c0_i32, %c0_i32_0 : i32, i32
  }
  func.func @transform_9(%arg0: i32, %arg1: i32) -> (i32, i32) {
    %c0_i32 = arith.constant 0 : i32
    %c0_i32_0 = arith.constant 0 : i32
    %c0_i32_1 = arith.constant 0 : i32
    return %c0_i32, %c0_i32_0 : i32, i32
  }
  func.func @transform_10(%arg0: i32, %arg1: i32) -> (i32, i32) {
    %c0_i32 = arith.constant 0 : i32
    %c0_i32_0 = arith.constant 0 : i32
    %c0_i32_1 = arith.constant 0 : i32
    return %c0_i32, %c0_i32_0 : i32, i32
  }
  func.func @transform_11(%arg0: i32, %arg1: i32) -> (i32, i32) {
    %c0_i32 = arith.constant 0 : i32
    %c0_i32_0 = arith.constant 0 : i32
    %c0_i32_1 = arith.constant 0 : i32
    return %c0_i32, %c0_i32_0 : i32, i32
  }
  func.func @transform_12(%arg0: i32, %arg1: i32) -> (i32, i32) {
    %c0_i32 = arith.constant 0 : i32
    %c0_i32_0 = arith.constant 0 : i32
    %c0_i32_1 = arith.constant 0 : i32
    return %c0_i32, %c0_i32_0 : i32, i32
  }
  func.func @transform_13(%arg0: i32, %arg1: i32) -> (i32, i32, i32) {
    %c0_i32 = arith.constant 0 : i32
    %c0_i32_0 = arith.constant 0 : i32
    %c0_i32_1 = arith.constant 0 : i32
    return %arg0, %c0_i32, %c0_i32_0 : i32, i32, i32
  }
}

</mosaic_0001>

<bundles_post_ra>
// kernel: mynet_forward.1
= control target key start
LH: loop header
LB: loop body
LE: loop exit
PB: predicated region body
PF: predicated region fallthrough
CT: control target
= control target key end

     0   :  { %s15765_s0 = inlined_call_operand.hbm [shape: bf16[2,1024,32], index: 0, kind: input, shape index: {}]   ;;  %s15766_s1 = inlined_call_operand.hbm [shape: bf16[32,24], index: 1, kind: input, shape index: {}]   ;;  %s15767_s2 = inlined_call_operand.hbm [shape: f32[1,24], index: 2, kind: input, shape index: {}]   ;;  %s15768_s3 = inlined_call_operand.hbm [shape: bf16[24,1280], index: 3, kind: input, shape index: {}]   ;;  %s15769_s4 = inlined_call_operand.hbm [shape: f32[1,1280], index: 4, kind: input, shape index: {}]   ;;  %s15770_s5 = inlined_call_operand.hbm [shape: bf16[1280,512], index: 5, kind: input, shape index: {}]   ;;  %s15771_s6 = inlined_call_operand.hbm [shape: f32[1,512], index: 6, kind: input, shape index: {}]   ;;  %s15772_s7 = inlined_call_operand.hbm [shape: bf16[512,128], index: 7, kind: input, shape index: {}]   ;;  %s15773_s8 = inlined_call_operand.hbm [shape: f32[1,128], index: 8, kind: input, shape index: {}]   ;;  %s15774_s9 = inlined_call_operand.hbm [shape: bf16[128,64], index: 9, kind: input, shape index: {}]   ;;  %s15775_s10 = inlined_call_operand.hbm [shape: f32[1,64], index: 10, kind: input, shape index: {}]   ;;  %s15776_s11 = inlined_call_operand.hbm [shape: bf16[64,4], index: 11, kind: input, shape index: {}]   ;;  %s15777_s12 = inlined_call_operand.hbm [shape: f32[1,4], index: 12, kind: input, shape index: {}]   ;;  %s15778_s13 = inlined_call_operand.hbm [shape: f32[2,1,4], index: 13, kind: output, shape index: {}]  }
   0x1   :  { %15838 = sst [smem:[#allocation101_spill]] %s15765_s0 }
   0x2   :  { %15839 = sst [smem:[#allocation102_spill]] %s15766_s1 }
   0x3   :  { %15840 = sst [smem:[#allocation103_spill]] %s15767_s2 }
   0x4   :  { %15841 = sst [smem:[#allocation104_spill]] %s15768_s3 }
   0x5   :  { %15842 = sst [smem:[#allocation105_spill]] %s15769_s4 }
   0x6   :  { %15843 = sst [smem:[#allocation106_spill]] %s15770_s5 }
   0x7   :  { %15844 = sst [smem:[#allocation107_spill]] %s15771_s6 }
   0x8   :  { %15845 = sst [smem:[#allocation108_spill]] %s15772_s7 }
   0x9   :  { %15846 = sst [smem:[#allocation109_spill]] %s15773_s8 }
   0xa   :  { %15847 = sst [smem:[#allocation110_spill]] %s15774_s9 }
   0xb   :  { %15848 = sst [smem:[#allocation111_spill]] %s15778_s13 }
   0xc   :  { %18 = vsyncpa [#allocation4], 0 }
   0xd   :  { %20 = vsyncpa [#allocation4 + $0x1], 0 }
   0xe   :  { %21 = vsyncpa [#allocation7], 0 }
   0xf   :  { %22 = vsyncpa [#allocation10], 0 }
  0x10   :  { %23 = vsyncpa [#allocation13], 0 }
  0x11   :  { %24 = vsyncpa [#allocation16], 0 }
  0x12   :  { %25 = vsyncpa [#allocation19], 0 }
  0x13   :  { %26 = vsyncpa [#allocation22], 0 }
  0x14   :  { %27 = vsyncpa [#allocation5], 0 }
  0x15   :  { %29 = vsyncpa [#allocation5 + $0x1], 0  ;;  %s11826_s25 = smov 0   ;;  %s11828_s26 = smov 0  }
  0x16   :  { %s11830_s27 = smov 0   ;;  %s11832_s28 = smov 0  }
  0x17   :  { %s11834_s29 = smov 0   ;;  %s11836_s30 = smov 0  }
  0x18   :  { %s11838_s14 = smov 0   ;;  %s11840_s15 = smov 0  }
  0x19   :  { %s11842_s16 = smov 0   ;;  %s11844_s17 = smov 0  }
  0x1a   :  { %s11846_s18 = smov 0  }
  0x1b LB: > { %15849 = sst [smem:[#allocation33_spill]] %s11689_s25  ;;  %s15779_s19 = sadd.s32 4294967295, %s11729_s18   ;;  %s11729_s18 = sphi %s11846_s18, %s35_s18   ;;  %s11725_s17 = sphi %s11844_s17, %s16382_s17   ;;  %s11721_s16 = sphi %s11842_s16, %s16381_s16   ;;  %s11717_s15 = sphi %s11840_s15, %s16380_s15   ;;  %s11713_s14 = sphi %s11838_s14, %s16379_s14   ;;  %s11709_s30 = sphi %s11836_s30, %s16378_s30   ;;  %s11705_s29 = sphi %s11834_s29, %s16376_s29   ;;  %s11701_s28 = sphi %s11832_s28, %s16375_s28   ;;  %s11697_s27 = sphi %s11830_s27, %s16377_s27   ;;  %s11693_s26 = sphi %s11828_s26, %s16374_s26   ;;  %s11689_s25 = sphi %s11826_s25, %s16373_s25  }
  0x1c   : > { %15850 = sst [smem:[#allocation34_spill]] %s11693_s26  ;;  %p8280_p0 = scmp.ge.s32.totalorder %s11729_s18, 1 }
  0x1d   : > { %15851 = sst [smem:[#allocation35_spill]] %s11697_s27  ;;  %p11885_p1 = scmp.eq.s32.totalorder %s15779_s19, 0 }
  0x1e   : > { %15852 = sst [smem:[#allocation36_spill]] %s11701_s28  ;;  %p358_p2 = scmp.lt.s32.totalorder %s11729_s18, 9 }
  0x1f   : > { %15853 = sst [smem:[#allocation37_spill]] %s11705_s29  ;;  %s11731_s22 = smov [#allocation6]  }
  0x20   : > { %15854 = sst [smem:[#allocation38_spill]] %s11709_s30  ;;  %p11890_p3 = pnand %p8280_p0, %p358_p2 }
  0x21   : > { %15855 = sst [smem:[#allocation39_spill]] %s11713_s14  ;;  %s370_s23 = sshll.u32 %s11731_s22, 4  ;;  %s371_s23 = int_to_ptr.vmem [resolvable:$true] %s370_s23 }
  0x22   : > { %15856 = sst [smem:[#allocation40_spill]] %s11717_s15  ;;  %p9058_p4 = pneg %p11890_p3 }
  0x23   : > { %s15857_s20 = scalar_select %p11885_p1, 1, 0 }
  0x24   : > { %s15859_s21 = scalar_select %p11890_p3, 1, 0 }
  0x25   : > { %15858 = sst [smem:[#allocation41_spill]] %s15857_s20  ;;  %p11898_p5 = pnand %p9058_p4, %p11885_p1 }
  0x26   : > { %15860 = sst [smem:[#allocation42_spill]] %s15859_s21  ;;  %s11732_s19 = smov [#allocation9]  }
  0x27   : > { %s394_s13 = sshll.u32 %s11732_s19, 4  ;;  %s15862_s1 = sld [smem:[#allocation102_spill]]  ;;  %s11902_s13 = int_to_ptr.vmem [resolvable:$true] %s394_s13 }
  0x28   : > { %p11912_p7 = pneg %p11898_p5 }
  0x2d   : > { %s11217_s0 = scalar_lea.hbm %s15862_s1, 256 }
  0x2e   : > { %p11218_p6 = scmp.ne.s32.totalorder %s15862_s1, %s11217_s0  ;;  %p11224_p10 = scmp.lt.u32.totalorder %s11217_s0, %s15862_s1 }
  0x30   : > { %p11220_p8 = pnand %p11912_p7, %p11218_p6 }
  0x32   : > { %p11221_p9 = pneg %p11220_p8 }
  0x34   : > { %p11226_p11 = pnand %p11224_p10, %p11221_p9 }
  0x36   : > { %11229 = shalt.err (!%p11226_p11)
}
  0x37   : > { %s11230_s14 = scalar_lea.vmem %s371_s23, 256  ;;  %p11238_p2 = scmp.lt.s32.totalorder %s371_s23, %s371_s23 }
  0x38   : > { %p11231_p12 = scmp.ne.s32.totalorder %s371_s23, %s11230_s14  ;;  %p11239_p4 = scmp.lt.s32.totalorder %s11230_s14, %s11230_s14 }
  0x3a   : > { %p11233_p13 = pnand %p11231_p12, %p11912_p7  ;;  %p11240_p3 = por %p11239_p4, %p11238_p2 }
  0x3c   : > { %p11234_p0 = pneg %p11233_p13 }
  0x3e   : > { %p11241_p1 = pnand %p11240_p3, %p11234_p0 }
  0x40   : > { %11244 = shalt.err (!%p11241_p1)
}
  0x41   : > { %s15792_s25 = smov 64   ;;  %s15794_s26 = smov 4  }
  0x42   : > { %9061 = dma.hbm_to_vmem [thread:$0]  (!%p11898_p5), %s15862_s1, 256, %s371_s23, [#allocation7], %s15792_s25, %s15792_s25, %s15794_s26  }
  0x43   : > { %s15864_s3 = sld [smem:[#allocation104_spill]] }
  0x49   : > { %s11245_s20 = scalar_lea.hbm %s15864_s3, 1920 }
  0x4a   : > { %p11246_p1 = scmp.ne.s32.totalorder %s15864_s3, %s11245_s20  ;;  %p11252_p8 = scmp.lt.u32.totalorder %s11245_s20, %s15864_s3 }
  0x4c   : > { %p11248_p3 = pnand %p11246_p1, %p11912_p7 }
  0x4e   : > { %p11249_p6 = pneg %p11248_p3 }
  0x50   : > { %p11254_p9 = pnand %p11252_p8, %p11249_p6 }
  0x52   : > { %11257 = shalt.err (!%p11254_p9)
}
  0x53   : > { %s11258_s23 = scalar_lea.vmem %s11902_s13, 1920  ;;  %p11266_p13 = scmp.lt.s32.totalorder %s11902_s13, %s11902_s13 }
  0x54   : > { %p11259_p10 = scmp.ne.s32.totalorder %s11902_s13, %s11258_s23  ;;  %p11267_p0 = scmp.lt.s32.totalorder %s11258_s23, %s11258_s23 }
  0x56   : > { %p11261_p11 = pnand %p11259_p10, %p11912_p7  ;;  %p11268_p2 = por %p11267_p0, %p11266_p13 }
  0x58   : > { %p11262_p12 = pneg %p11261_p11 }
  0x5a   : > { %p11269_p4 = pnand %p11268_p2, %p11262_p12 }
  0x5c   : > { %11272 = shalt.err (!%p11269_p4)
}
  0x5d   : > { %s11735_s27 = smov 640   ;;  %s11736_s28 = smov 40  }
  0x5e   : > { %9067 = dma.hbm_to_vmem [thread:$0]  (!%p11898_p5), %s15864_s3, 1920, %s11902_s13, [#allocation10], %s11735_s27, %s11735_s27, %s11736_s28  }
  0x5f   : > { %s11737_s0 = smov [#allocation12]   ;;  %s15865_s5 = sld [smem:[#allocation106_spill]] }
  0x60   : > { %s418_s15 = sshll.u32 %s11737_s0, 4  ;;  %s419_s15 = int_to_ptr.vmem [resolvable:$true] %s418_s15 }
  0x65   : > { %s11273_s14 = scalar_lea.hbm %s15865_s5, 40960 }
  0x66   : > { %p11274_p1 = scmp.ne.s32.totalorder %s15865_s5, %s11273_s14  ;;  %p11280_p8 = scmp.lt.u32.totalorder %s11273_s14, %s15865_s5 }
  0x68   : > { %p11276_p3 = pnand %p11274_p1, %p11912_p7 }
  0x6a   : > { %p11277_p6 = pneg %p11276_p3 }
  0x6c   : > { %p11282_p9 = pnand %p11280_p8, %p11277_p6 }
  0x6e   : > { %11285 = shalt.err (!%p11282_p9)
}
  0x6f   : > { %s11286_s13 = scalar_lea.vmem %s419_s15, 40960  ;;  %p11294_p13 = scmp.lt.s32.totalorder %s419_s15, %s419_s15 }
  0x70   : > { %p11287_p10 = scmp.ne.s32.totalorder %s419_s15, %s11286_s13  ;;  %p11295_p0 = scmp.lt.s32.totalorder %s11286_s13, %s11286_s13 }
  0x72   : > { %p11289_p11 = pnand %p11287_p10, %p11912_p7  ;;  %p11296_p2 = por %p11295_p0, %p11294_p13 }
  0x74   : > { %p11290_p12 = pneg %p11289_p11 }
  0x76   : > { %p11297_p4 = pnand %p11296_p2, %p11290_p12 }
  0x78   : > { %11300 = shalt.err (!%p11297_p4)
}
  0x79   : > { %s11738_s25 = smov 256   ;;  %s11739_s27 = smov 16  }
  0x7a   : > { %9073 = dma.hbm_to_vmem [thread:$0]  (!%p11898_p5), %s15865_s5, 40960, %s419_s15, [#allocation13], %s11738_s25, %s11738_s25, %s11739_s27  }
  0x7b   : > { %s11740_s28 = smov [#allocation15]   ;;  %s11741_s20 = smov [#allocation18]  }
  0x7c   : > { %s442_s29 = sshll.u32 %s11740_s28, 4  ;;  %s466_s0 = sshll.u32 %s11741_s20, 4  ;;  %s443_s29 = int_to_ptr.vmem [resolvable:$true] %s442_s29  ;;  %s467_s0 = int_to_ptr.vmem [resolvable:$true] %s466_s0 }
  0x7d   : > { %s15866_s7 = sld [smem:[#allocation108_spill]] }
  0x83   : > { %s11301_s14 = scalar_lea.hbm %s15866_s7, 4096 }
  0x84   : > { %p11302_p1 = scmp.ne.s32.totalorder %s15866_s7, %s11301_s14  ;;  %p11308_p8 = scmp.lt.u32.totalorder %s11301_s14, %s15866_s7 }
  0x86   : > { %p11304_p3 = pnand %p11302_p1, %p11912_p7 }
  0x88   : > { %p11305_p6 = pneg %p11304_p3 }
  0x8a   : > { %p11310_p9 = pnand %p11308_p8, %p11305_p6 }
  0x8c   : > { %11313 = shalt.err (!%p11310_p9)
}
  0x8d   : > { %s11314_s15 = scalar_lea.vmem %s443_s29, 4096  ;;  %p11322_p13 = scmp.lt.s32.totalorder %s443_s29, %s443_s29 }
  0x8e   : > { %p11315_p10 = scmp.ne.s32.totalorder %s443_s29, %s11314_s15  ;;  %p11323_p0 = scmp.lt.s32.totalorder %s11314_s15, %s11314_s15 }
  0x90   : > { %p11317_p11 = pnand %p11315_p10, %p11912_p7  ;;  %p11324_p2 = por %p11323_p0, %p11322_p13 }
  0x92   : > { %p11318_p12 = pneg %p11317_p11 }
  0x94   : > { %p11325_p4 = pnand %p11324_p2, %p11318_p12 }
  0x96   : > { %11328 = shalt.err (!%p11325_p4)
}
  0x97   : > { %s15867_s25 = smov 4   ;;  %s15868_s27 = smov 64  }
  0x98   : > { %9079 = dma.hbm_to_vmem [thread:$0]  (!%p11898_p5), %s15866_s7, 4096, %s443_s29, [#allocation16], %s15868_s27, %s15868_s27, %s15867_s25  }
  0x99   : > { %s15869_s9 = sld [smem:[#allocation110_spill]] }
  0x9f   : > { %s11329_s28 = scalar_lea.hbm %s15869_s9, 1024 }
  0xa0   : > { %p11330_p1 = scmp.ne.s32.totalorder %s15869_s9, %s11329_s28  ;;  %p11336_p8 = scmp.lt.u32.totalorder %s11329_s28, %s15869_s9 }
  0xa2   : > { %p11332_p3 = pnand %p11330_p1, %p11912_p7 }
  0xa4   : > { %p11333_p6 = pneg %p11332_p3 }
  0xa6   : > { %p11338_p9 = pnand %p11336_p8, %p11333_p6 }
  0xa8   : > { %11341 = shalt.err (!%p11338_p9)
}
  0xa9   : > { %s11342_s23 = scalar_lea.vmem %s467_s0, 1024  ;;  %p11350_p13 = scmp.lt.s32.totalorder %s467_s0, %s467_s0 }
  0xaa   : > { %p11343_p10 = scmp.ne.s32.totalorder %s467_s0, %s11342_s23  ;;  %p11351_p0 = scmp.lt.s32.totalorder %s11342_s23, %s11342_s23 }
  0xac   : > { %p11345_p11 = pnand %p11343_p10, %p11912_p7  ;;  %p11352_p2 = por %p11351_p0, %p11350_p13 }
  0xae   : > { %p11346_p12 = pneg %p11345_p11 }
  0xb0   : > { %p11353_p4 = pnand %p11352_p2, %p11346_p12 }
  0xb2   : > { %11356 = shalt.err (!%p11353_p4)
}
  0xb3   : > { %9085 = dma.hbm_to_vmem [thread:$0]  (!%p11898_p5), %s15869_s9, 1024, %s467_s0, [#allocation19], %s15868_s27, %s15868_s27, %s15867_s25  }
  0xb4   : > { %s11742_s15 = smov [#allocation21]   ;;  %s11743_s30 = smov [#allocation8]  }
  0xb5   : > { %s490_s3 = sshll.u32 %s11742_s15, 4  ;;  %s384_s1 = sshll.u32 %s11743_s30, 4  ;;  %s491_s3 = int_to_ptr.vmem [resolvable:$true] %s490_s3  ;;  %s385_s1 = int_to_ptr.vmem [resolvable:$true] %s384_s1 }
  0xb6   : > { %s11357_s20 = scalar_lea.hbm %s15776_s11, 512 }
  0xb7   : > { %p11358_p1 = scmp.ne.s32.totalorder %s15776_s11, %s11357_s20  ;;  %p11364_p8 = scmp.lt.u32.totalorder %s11357_s20, %s15776_s11 }
  0xb9   : > { %p11360_p3 = pnand %p11358_p1, %p11912_p7 }
  0xbb   : > { %p11361_p6 = pneg %p11360_p3 }
  0xbd   : > { %p11366_p9 = pnand %p11364_p8, %p11361_p6 }
  0xbf   : > { %11369 = shalt.err (!%p11366_p9)
}
  0xc0   : > { %s11370_s0 = scalar_lea.vmem %s491_s3, 512  ;;  %p11378_p13 = scmp.lt.s32.totalorder %s491_s3, %s491_s3 }
  0xc1   : > { %p11371_p10 = scmp.ne.s32.totalorder %s491_s3, %s11370_s0  ;;  %p11379_p0 = scmp.lt.s32.totalorder %s11370_s0, %s11370_s0 }
  0xc3   : > { %p11373_p11 = pnand %p11371_p10, %p11912_p7  ;;  %p11380_p2 = por %p11379_p0, %p11378_p13 }
  0xc5   : > { %p11374_p12 = pneg %p11373_p11 }
  0xc7   : > { %p11381_p4 = pnand %p11380_p2, %p11374_p12 }
  0xc9   : > { %11384 = shalt.err (!%p11381_p4)
}
  0xca   : > { %9091 = dma.hbm_to_vmem [thread:$0]  (!%p11898_p5), %s15776_s11, 512, %s491_s3, [#allocation22], %s15868_s27, %s15868_s27, %s15867_s25  }
  0xcb   : > { %s15870_s2 = sld [smem:[#allocation103_spill]] }
  0xd1   : > { %s11385_s26 = scalar_lea.hbm %s15870_s2, 16 }
  0xd2   : > { %p11386_p1 = scmp.ne.s32.totalorder %s15870_s2, %s11385_s26  ;;  %p11392_p8 = scmp.lt.u32.totalorder %s11385_s26, %s15870_s2 }
  0xd4   : > { %p11388_p3 = pnand %p11386_p1, %p11912_p7 }
  0xd6   : > { %p11389_p6 = pneg %p11388_p3 }
  0xd8   : > { %p11394_p9 = pnand %p11392_p8, %p11389_p6 }
  0xda   : > { %11397 = shalt.err (!%p11394_p9)
}
  0xdb   : > { %s11398_s14 = scalar_lea.vmem %s385_s1, 16  ;;  %s11405_s3 = scalar_lea.vmem %s385_s1, 32 }
  0xdc   : > { %p11399_p10 = scmp.ne.s32.totalorder %s385_s1, %s11398_s14  ;;  %p11406_p13 = scmp.lt.s32.totalorder %s385_s1, %s385_s1 }
  0xdd   : > { %p11407_p0 = scmp.lt.s32.totalorder %s11405_s3, %s11398_s14 }
  0xde   : > { %p11401_p11 = pnand %p11399_p10, %p11912_p7 }
  0xdf   : > { %p11408_p2 = por %p11407_p0, %p11406_p13 }
  0xe0   : > { %p11402_p12 = pneg %p11401_p11 }
  0xe2   : > { %p11409_p4 = pnand %p11408_p2, %p11402_p12 }
  0xe4   : > { %11412 = shalt.err (!%p11409_p4)
}
  0xe5   : > { %9064 = dma.hbm_to_vmem [thread:$0]  (!%p11898_p5), %s15870_s2, 16, %s385_s1, [#allocation7]  }
  0xe6   : > { %s11744_s29 = smov [#allocation11]   ;;  %s11745_s15 = smov [#allocation14]  }
  0xe7   : > { %s408_s13 = sshll.u32 %s11744_s29, 4  ;;  %s432_s30 = sshll.u32 %s11745_s15, 4  ;;  %s409_s13 = int_to_ptr.vmem [resolvable:$true] %s408_s13  ;;  %s433_s30 = int_to_ptr.vmem [resolvable:$true] %s432_s30 }
  0xe8   : > { %s15871_s4 = sld [smem:[#allocation105_spill]] }
  0xee   : > { %s11413_s20 = scalar_lea.hbm %s15871_s4, 160 }
  0xef   : > { %p11414_p1 = scmp.ne.s32.totalorder %s15871_s4, %s11413_s20  ;;  %p11420_p8 = scmp.lt.u32.totalorder %s11413_s20, %s15871_s4 }
  0xf1   : > { %p11416_p3 = pnand %p11414_p1, %p11912_p7 }
  0xf3   : > { %p11417_p6 = pneg %p11416_p3 }
  0xf5   : > { %p11422_p9 = pnand %p11420_p8, %p11417_p6 }
  0xf7   : > { %11425 = shalt.err (!%p11422_p9)
}
  0xf8   : > { %s11426_s1 = scalar_lea.vmem %s409_s13, 160  ;;  %p11434_p13 = scmp.lt.s32.totalorder %s409_s13, %s409_s13 }
  0xf9   : > { %p11427_p10 = scmp.ne.s32.totalorder %s409_s13, %s11426_s1  ;;  %p11435_p0 = scmp.lt.s32.totalorder %s11426_s1, %s11426_s1 }
  0xfb   : > { %p11429_p11 = pnand %p11427_p10, %p11912_p7  ;;  %p11436_p2 = por %p11435_p0, %p11434_p13 }
  0xfd   : > { %p11430_p12 = pneg %p11429_p11 }
  0xff   : > { %p11437_p4 = pnand %p11436_p2, %p11430_p12 }
 0x101   : > { %11440 = shalt.err (!%p11437_p4)
}
 0x102   : > { %9070 = dma.hbm_to_vmem [thread:$0]  (!%p11898_p5), %s15871_s4, 160, %s409_s13, [#allocation10]  }
 0x103   : > { %s15872_s6 = sld [smem:[#allocation107_spill]] }
 0x109   : > { %s11441_s26 = scalar_lea.hbm %s15872_s6, 64 }
 0x10a   : > { %p11442_p1 = scmp.ne.s32.totalorder %s15872_s6, %s11441_s26  ;;  %p11448_p8 = scmp.lt.u32.totalorder %s11441_s26, %s15872_s6 }
 0x10c   : > { %p11444_p3 = pnand %p11442_p1, %p11912_p7 }
 0x10e   : > { %p11445_p6 = pneg %p11444_p3 }
 0x110   : > { %p11450_p9 = pnand %p11448_p8, %p11445_p6 }
 0x112   : > { %11453 = shalt.err (!%p11450_p9)
}
 0x113   : > { %s11454_s14 = scalar_lea.vmem %s433_s30, 64  ;;  %p11462_p13 = scmp.lt.s32.totalorder %s433_s30, %s433_s30 }
 0x114   : > { %p11455_p10 = scmp.ne.s32.totalorder %s433_s30, %s11454_s14  ;;  %p11463_p0 = scmp.lt.s32.totalorder %s11454_s14, %s11454_s14 }
 0x116   : > { %p11457_p11 = pnand %p11455_p10, %p11912_p7  ;;  %p11464_p2 = por %p11463_p0, %p11462_p13 }
 0x118   : > { %p11458_p12 = pneg %p11457_p11 }
 0x11a   : > { %p11465_p4 = pnand %p11464_p2, %p11458_p12 }
 0x11c   : > { %11468 = shalt.err (!%p11465_p4)
}
 0x11d   : > { %9076 = dma.hbm_to_vmem [thread:$0]  (!%p11898_p5), %s15872_s6, 64, %s433_s30, [#allocation13]  }
 0x11e   : > { %s11746_s1 = smov [#allocation17]   ;;  %s11747_s0 = smov [#allocation20]  }
 0x11f   : > { %s456_s23 = sshll.u32 %s11746_s1, 4  ;;  %s480_s29 = sshll.u32 %s11747_s0, 4  ;;  %s457_s23 = int_to_ptr.vmem [resolvable:$true] %s456_s23  ;;  %s481_s29 = int_to_ptr.vmem [resolvable:$true] %s480_s29 }
 0x120   : > { %s15873_s8 = sld [smem:[#allocation109_spill]] }
 0x126   : > { %s11469_s28 = scalar_lea.hbm %s15873_s8, 16 }
 0x127   : > { %p11470_p1 = scmp.ne.s32.totalorder %s15873_s8, %s11469_s28  ;;  %p11476_p8 = scmp.lt.u32.totalorder %s11469_s28, %s15873_s8 }
 0x129   : > { %p11472_p3 = pnand %p11470_p1, %p11912_p7 }
 0x12b   : > { %p11473_p6 = pneg %p11472_p3 }
 0x12d   : > { %p11478_p9 = pnand %p11476_p8, %p11473_p6 }
 0x12f   : > { %11481 = shalt.err (!%p11478_p9)
}
 0x130   : > { %s11482_s30 = scalar_lea.vmem %s457_s23, 16  ;;  %s11489_s13 = scalar_lea.vmem %s457_s23, 32 }
 0x131   : > { %p11483_p10 = scmp.ne.s32.totalorder %s457_s23, %s11482_s30  ;;  %p11490_p13 = scmp.lt.s32.totalorder %s457_s23, %s457_s23 }
 0x132   : > { %p11491_p0 = scmp.lt.s32.totalorder %s11489_s13, %s11482_s30 }
 0x133   : > { %p11485_p11 = pnand %p11483_p10, %p11912_p7 }
 0x134   : > { %p11492_p2 = por %p11491_p0, %p11490_p13 }
 0x135   : > { %p11486_p12 = pneg %p11485_p11 }
 0x137   : > { %p11493_p4 = pnand %p11492_p2, %p11486_p12 }
 0x139   : > { %11496 = shalt.err (!%p11493_p4)
}
 0x13a   : > { %9082 = dma.hbm_to_vmem [thread:$0]  (!%p11898_p5), %s15873_s8, 16, %s457_s23, [#allocation16]  }
 0x13b   : > { %s11497_s26 = scalar_lea.hbm %s15775_s10, 16 }
 0x13c   : > { %p11498_p1 = scmp.ne.s32.totalorder %s15775_s10, %s11497_s26  ;;  %p11504_p8 = scmp.lt.u32.totalorder %s11497_s26, %s15775_s10 }
 0x13e   : > { %p11500_p3 = pnand %p11498_p1, %p11912_p7 }
 0x140   : > { %p11501_p6 = pneg %p11500_p3 }
 0x142   : > { %p11506_p9 = pnand %p11504_p8, %p11501_p6 }
 0x144   : > { %11509 = shalt.err (!%p11506_p9)
}
 0x145   : > { %s11510_s14 = scalar_lea.vmem %s481_s29, 16  ;;  %s11517_s23 = scalar_lea.vmem %s481_s29, 32 }
 0x146   : > { %p11511_p10 = scmp.ne.s32.totalorder %s481_s29, %s11510_s14  ;;  %p11518_p13 = scmp.lt.s32.totalorder %s481_s29, %s481_s29 }
 0x147   : > { %p11519_p0 = scmp.lt.s32.totalorder %s11517_s23, %s11510_s14 }
 0x148   : > { %p11513_p11 = pnand %p11511_p10, %p11912_p7 }
 0x149   : > { %p11520_p2 = por %p11519_p0, %p11518_p13 }
 0x14a   : > { %p11514_p12 = pneg %p11513_p11 }
 0x14c   : > { %p11521_p4 = pnand %p11520_p2, %p11514_p12 }
 0x14e   : > { %11524 = shalt.err (!%p11521_p4)
}
 0x14f   : > { %9088 = dma.hbm_to_vmem [thread:$0]  (!%p11898_p5), %s15775_s10, 16, %s481_s29, [#allocation19]  }
 0x150   : > { %s11748_s3 = smov [#allocation23]   ;;  %s11525_s26 = scalar_lea.hbm %s15777_s12, 16 }
 0x151   : > { %s504_s1 = sshll.u32 %s11748_s3, 4  ;;  %p11526_p1 = scmp.ne.s32.totalorder %s15777_s12, %s11525_s26  ;;  %s505_s1 = int_to_ptr.vmem [resolvable:$true] %s504_s1 }
 0x152   : > { %p11532_p8 = scmp.lt.u32.totalorder %s11525_s26, %s15777_s12 }
 0x153   : > { %p11528_p3 = pnand %p11526_p1, %p11912_p7 }
 0x155   : > { %p11529_p6 = pneg %p11528_p3 }
 0x157   : > { %p11534_p9 = pnand %p11532_p8, %p11529_p6 }
 0x159   : > { %11537 = shalt.err (!%p11534_p9)
}
 0x15a   : > { %s11538_s29 = scalar_lea.vmem %s505_s1, 16  ;;  %s11545_s14 = scalar_lea.vmem %s505_s1, 32 }
 0x15b   : > { %p11539_p10 = scmp.ne.s32.totalorder %s505_s1, %s11538_s29  ;;  %p11546_p13 = scmp.lt.s32.totalorder %s505_s1, %s505_s1 }
 0x15c   : > { %p11547_p0 = scmp.lt.s32.totalorder %s11545_s14, %s11538_s29 }
 0x15d   : > { %p11541_p11 = pnand %p11539_p10, %p11912_p7 }
 0x15e   : > { %p11548_p2 = por %p11547_p0, %p11546_p13 }
 0x15f   : > { %p11542_p12 = pneg %p11541_p11 }
 0x161   : > { %p11549_p4 = pnand %p11548_p2, %p11542_p12 }
 0x163   : > { %11552 = shalt.err (!%p11549_p4)
}
 0x164   : > { %s15874_s13 = sld [smem:[#allocation38_spill]]  ;;  %s15875_s3 = sld [smem:[#allocation37_spill]] }
 0x165   : > { %s15876_s22 = sld [smem:[#allocation36_spill]]  ;;  %s15877_s0 = sld [smem:[#allocation35_spill]] }
 0x166   : > { %9094 = dma.hbm_to_vmem [thread:$0]  (!%p11898_p5), %s15777_s12, 16, %s505_s1, [#allocation22]  }
 0x167   : > { %s15878_s15 = sld [smem:[#allocation41_spill]]  ;;  %s8279_s26 = sadd.s32 4294967294, %s11729_s18  }
 0x168   : > { %s15879_s28 = sld [smem:[#allocation34_spill]]  ;;  %s44_s24 = sadd.s32 1, %s11721_s16 }
 0x169   : > { %p45_p7 = scmp.ge.s32.totalorder %s44_s24, 4  ;;  %s47_s20 = sadd.s32 1, %s11725_s17 }
 0x16a   : > { %s56_s21 = sadd.s32 1, %s15874_s13  ;;  %p63_p1 = scmp.ne.s32.totalorder %s15874_s13, %s15875_s3 }
 0x16b   : > { %s16384_s24 = smov (%p45_p7, %s44_s24), 0  ;;  %s16386_s20 = smov (!%p45_p7, %s47_s20), %s11725_s17 }
 0x16c   : > { %s52_s19 = ssub.s32 %s11721_s16, %s16384_s24  ;;  %p64_p3 = scmp.eq.s32.totalorder %s11729_s18, 0 }
 0x16d   : > { %s15880_s1 = sld [smem:[#allocation33_spill]]  ;;  %p49_p5 = scmp.ge.s32.totalorder %s16386_s20, 2 }
 0x16e   : > { %p69_p6 = scmp.ne.s32.totalorder %s15875_s3, %s15876_s22  ;;  %p12157_p8 = por %p64_p3, %p63_p1 }
 0x16f   : > { %s334_s14 = sadd.s32 1, %s15877_s0  ;;  %s16388_s20 = smov (%p49_p5, %s16386_s20), 0 }
 0x170   : > { %p15882_p9 = scmp.ne.s32.totalorder %s15878_s15, 0  ;;  %p344_p11 = scmp.ne.s32.totalorder %s15877_s0, %s15879_s28 }
 0x171   : > { %s51_s30 = ssub.s32 %s11725_s17, %s16388_s20  ;;  %s15884_s3 = sadd.s32 4294967295, %s11729_s18  }
 0x172   : > { %p12166_p10 = por %p15882_p9, %p69_p6  ;;  %p345_p12 = scmp.eq.s32.totalorder %s15884_s3, 7 }
 0x173   : > { %s53_s22 = sor.u32 %s52_s19, %s51_s30  ;;  %p332_p13 = scmp.eq.s32.totalorder %s51_s30, 0 }
 0x174   : > { %p54_p0 = scmp.eq.s32.totalorder %s53_s22, 0  ;;  %p12176_p2 = por %p345_p12, %p344_p11 }
 0x175   : > { %s16390_s0 = smov (!%p332_p13, %s15877_s0), %s334_s14  ;;  %p350_p4 = scmp.ne.s32.totalorder %s15879_s28, %s15880_s1 }
 0x176   : > { %s15885_s2 = scalar_select %p12176_p2, 1, 0 }
 0x177   : > { %s12184_s15 = scalar_select %p54_p0, %s15874_s13, %s56_s21  }
 0x178   : > { %p351_p7 = scmp.eq.s32.totalorder %s8279_s26, 7  ;;  %p9115_p1 = scmp.lt.s32.totalorder %s11729_s18, 8 }
 0x179   : > { %s515_s4 = sand.u32 1, %s15874_s13   ;;  %s8295_s30 = sshll.u32 %s11721_s16, 5 }
 0x17a   : > { %p12190_p3 = por %p351_p7, %p350_p4  ;;  %s8294_s19 = sshll.u32 %s515_s4, 7 }
 0x17b   : > { %s8296_s3 = sshll.u32 %s11725_s17, 7  ;;  %s519_s6 = scalar_lea.vmem [#allocation3], %s8294_s19 }
 0x17c   : > { %s15886_s5 = scalar_select %p12190_p3, 1, 0 }
 0x17d   : > { %s525_s22 = sadd.s32 %s8296_s3, %s8295_s30  ;;  %s528_s7 = sshll.u32 %s519_s6, 4  ;;  %s12196_s7 = int_to_ptr.vmem [resolvable:$true] %s528_s7 }
 0x17e   : > { %s8297_s8 = sshll.u32 %s525_s22, 6  ;;  %s15887_s9 = sld [smem:[#allocation101_spill]] }
 0x17f   : > { %p12205_p5 = pnand %p9115_p1, %p12157_p8  ;;  %s12209_s6 = scalar_lea.sflag [#allocation4], %s515_s4 }
 0x181   : > { %p11555_p9 = pneg %p12205_p5 }
 0x184   : > { %s12201_s28 = scalar_lea.hbm %s15887_s9, %s8297_s8  ;;  %s11558_s29 = scalar_lea.hbm %s15887_s9, 16384 }
 0x185   : > { %s11553_s26 = scalar_lea.hbm %s12201_s28, 2048  ;;  %p11559_p8 = scmp.lt.u32.totalorder %s12201_s28, %s15887_s9 }
 0x186   : > { %p11554_p6 = scmp.ne.s32.totalorder %s12201_s28, %s11553_s26  ;;  %p11560_p13 = scmp.lt.u32.totalorder %s11558_s29, %s11553_s26 }
 0x187   : > { %p11562_p4 = scmp.lt.u32.totalorder %s11553_s26, %s12201_s28 }
 0x188   : > { %p11556_p11 = pnand %p11555_p9, %p11554_p6  ;;  %p11561_p0 = por %p11560_p13, %p11559_p8 }
 0x18a   : > { %p11557_p12 = pneg %p11556_p11  ;;  %p11563_p7 = por %p11562_p4, %p11561_p0 }
 0x18c   : > { %p11564_p1 = pnand %p11563_p7, %p11557_p12 }
 0x18e   : > { %11567 = shalt.err (!%p11564_p1)
}
 0x18f   : > { %s11568_s4 = scalar_lea.vmem %s12196_s7, 2048  ;;  %s11749_s3 = smov [#allocation3]  }
 0x190   : > { %p11569_p6 = scmp.ne.s32.totalorder %s12196_s7, %s11568_s4  ;;  %s11573_s22 = sshll.u32 %s11749_s3, 4  ;;  %s11574_s22 = int_to_ptr.vmem [resolvable:$false] %s11573_s22 }
 0x191   : > { %s11575_s14 = scalar_lea.vmem %s11574_s22, 4096  ;;  %p11576_p2 = scmp.lt.s32.totalorder %s12196_s7, %s11574_s22 }
 0x192   : > { %p11571_p11 = pnand %p11569_p6, %p11555_p9  ;;  %p11577_p8 = scmp.lt.s32.totalorder %s11575_s14, %s11568_s4 }
 0x194   : > { %p11572_p3 = pneg %p11571_p11  ;;  %p11578_p13 = por %p11577_p8, %p11576_p2 }
 0x196   : > { %p11579_p0 = pnand %p11578_p13, %p11572_p3 }
 0x198   : > { %11582 = shalt.err (!%p11579_p0)
}
 0x199   : > { %9098 = dma.hbm_to_vmem [thread:$0]  (!%p12205_p5), %s12201_s28, 2048, %s12196_s7, %s12209_s6, %s15868_s27, %s15868_s27, %s15867_s25  }
 0x19a   : > { %s15889_s21 = sld [smem:[#allocation42_spill]] }
 0x1a0   : > { %p15890_p9 = scmp.ne.s32.totalorder %s15889_s21, 0 }
 0x1a2   : > { %540 = sbr.rel (%p15890_p9) target bundleno = 2858 (0xb2a), region = 72 }
 0x1a9   : > { %s15891_s26 = sld [smem:[#allocation37_spill]] }
 0x1af   : > { %s542_s8 = sand.u32 1, %s15891_s26  }
 0x1b0   : > { %s8299_s1 = sshll.u32 %s542_s8, 7  ;;  %s543_s29 = scalar_lea.sflag [#allocation4], %s542_s8 }
 0x1b1   : > { %s12243_s19 = scalar_lea.vmem [#allocation3], %s8299_s1 }
 0x1b2   : > { %11656 = dma.done.wait (%p12166_p10), %s543_s29, 2048  }
 0x1b3   : > { %11658 = vsyncadd (%p12166_p10), %s543_s29, 4294965248  ;;  %s15892_s13 = sld [smem:[#allocation41_spill]] }
 0x1b9   : > { %p15893_p2 = scmp.ne.s32.totalorder %s15892_s13, 0 }
 0x1bb   : > { %11660 = dma.done.wait (%p15893_p2), [#allocation7], 272  }
 0x1bc   : > { %11662 = vsyncadd (%p15893_p2), [#allocation7], 4294967024 }
 0x1bd   : > { %11664 = dma.done.wait (%p15893_p2), [#allocation10], 2080  }
 0x1be   : > { %11666 = vsyncadd (%p15893_p2), [#allocation10], 4294965216 }
 0x1bf   : > { %11668 = dma.done.wait (%p15893_p2), [#allocation13], 41024  }
 0x1c0   : > { %11670 = vsyncadd (%p15893_p2), [#allocation13], 4294926272 }
 0x1c1   : > { %11672 = dma.done.wait (%p15893_p2), [#allocation16], 4112  }
 0x1c2   : > { %11674 = vsyncadd (%p15893_p2), [#allocation16], 4294963184 }
 0x1c3   : > { %11676 = dma.done.wait (%p15893_p2), [#allocation19], 1040  }
 0x1c4   : > { %11678 = vsyncadd (%p15893_p2), [#allocation19], 4294966256 }
 0x1c5   : > { %11680 = dma.done.wait (%p15893_p2), [#allocation22], 528  }
 0x1c6   : > { %11682 = vsyncadd (%p15893_p2), [#allocation22], 4294966768  ;;  %s15894_s7 = sld [smem:[#allocation34_spill]]  ;;  %s15895_s23 = sld [smem:[#allocation39_spill]] }
 0x1cc   : > { %s634_s25 = sand.u32 1, %s15894_s7   ;;  %p8312_p10 = scmp.ne.s32.totalorder %s15895_s23, 0 }
 0x1cd   : > { %s12276_s27 = scalar_lea.vmem [#allocation24], %s634_s25  ;;  %v643_v0 = vlaneseq (!%p8312_p10)  ;;  %v11750_v1 = vmov (!%p8312_p10), 0.0  }
 0x1ce   : > { %641 = sbr.rel (%p8312_p10) target bundleno = 469 (0x1d5), region = 128  ;;  %642 = vst [vmem:[#allocation2] sm:$0xff] (!%p8312_p10), %v11750_v1 }
 0x1cf   : > { %vm645_vm0 = vcmp.lt.s32.totalorder (!%p8312_p10), %v643_v0, 256 }
 0x1d0   : > { %647 = vst.msk [vmem:[#allocation2 + $0x8] sm:$0x3] (!%p8312_p10), %vm645_vm0, %v11750_v1 }
 0x1d5 PF: > { %v9240_v2 = vld [vmem:[#allocation6] sm:$0xff]   ;;  %v9241_v3 = vld [vmem:[#allocation6 + $0x8] sm:$0xff]   ;;  %vm783_vm1 = vcmask 261120   ;;  %v9244_v6 = vld [vmem:[%s12243_s19 + $0x10] sm:$0xff]   ;;  %vm1426_vm2 = vcmask 1043456   ;;  %v15799_v26 = vmov 0  }
 0x1d6   : > { %8898 = vmatprep.subr.bf16.mxu0 %v9240_v2  ;;  %v9242_v4 = vld [vmem:[%s12243_s19] sm:$0xff]   ;;  %v9243_v5 = vld [vmem:[%s12243_s19 + $0x8] sm:$0xff]   ;;  %v9245_v7 = vld [vmem:[%s12243_s19 + $0x18] sm:$0xff]   ;;  %1529 = vmatprep.mubr.bf16.mxu1 %v15799_v26  ;;  %vm1377_vm3 = vcmask 195584   ;;  %s16356_s28 = sld [smem:[#allocation39_spill]] }
 0x1d7   : > { %8899 = vmatpush3.bf16.msra.mxu0 %v9240_v2  ;;  %8902 = vmatprep.mubr.msk.bf16.mxu0 %vm783_vm1, %v9242_v4  ;;  %v9246_v8 = vld [vmem:[%s12243_s19 + $0x20] sm:$0xff]   ;;  %v9247_v9 = vld [vmem:[%s12243_s19 + $0x28] sm:$0xff]   ;;  %v9248_v10 = vld [vmem:[%s12243_s19 + $0x30] sm:$0xff]  }
 0x1d8   : > { %8900 = vmatprep.subr.bf16.mxu0 %v9241_v3  ;;  %v9249_v11 = vld [vmem:[%s12243_s19 + $0x38] sm:$0xff]   ;;  %v9250_v12 = vld [vmem:[%s12243_s19 + $0x40] sm:$0xff]   ;;  %v9251_v13 = vld [vmem:[%s12243_s19 + $0x48] sm:$0xff]  }
 0x1d9   : > { %v9252_v14 = vld [vmem:[%s12243_s19 + $0x50] sm:$0xff]   ;;  %v9253_v15 = vld [vmem:[%s12243_s19 + $0x58] sm:$0xff]   ;;  %v9254_v16 = vld [vmem:[%s12243_s19 + $0x60] sm:$0xff]  }
 0x1da   : > { %v9255_v17 = vld [vmem:[%s12243_s19 + $0x68] sm:$0xff]   ;;  %v9256_v18 = vld [vmem:[%s12243_s19 + $0x70] sm:$0xff]   ;;  %v9257_v19 = vld [vmem:[%s12243_s19 + $0x78] sm:$0xff]  }
 0x1db   : > { %8901 = vmatpush3.bf16.msra.mxu0 %v9241_v3  ;;  %v9260_v20 = vld [vmem:[#allocation9 + $0x4] ss:$40 sps:$4 sm:$0xff]   ;;  %v9258_v21 = vld [vmem:[#allocation9] ss:$40 sps:$4 sm:$0xff]   ;;  %v1243_v22 = vld [vmem:[#allocation9 + $0x50] sm:$0xff] }
 0x1dc   : > { %1457 = vmatprep.subr.bf16.mxu0 %v9260_v20  ;;  %8966 = vmatprep.subr.bf16.mxu1 %v9260_v20  ;;  %v8359_v23 = vcombine.high %v1243_v22, %v1243_v22  ;;  %v8358_v24 = vcombine.low %v1243_v22, %v1243_v22  ;;  %v9268_v27 = vld [vmem:[#allocation9 + $0xc] ss:$40 sps:$4 sm:$0xff]   ;;  %v12316_v29 = vld [vmem:[#allocation8] ss:$0 sm:$0xff]  ;;  %p8453_p3 = scmp.ne.s32.totalorder %s16356_s28, 3 }
 0x1dd   : > { %8968 = vmatpush1.bf16.msra.mxu1 %v9258_v21  ;;  %v9265_v28 = vld [vmem:[#allocation9 + $0x14] ss:$40 sps:$4 sm:$0xff]   ;;  %vm11754_vm5 = vmmov (!%p8453_p3), 0   ;;  %vm8025_vm6 = vcmask (!%p8453_p3), 523264   ;;  %vm8069_vm7 = vcmask (!%p8453_p3), 24576  }
 0x1de   : > { %8903 = vmatmul.mubr.msk.bf16.vlgmr.msra.gmra.mrb[0].mxu0 %vm783_vm1, %v9243_v5  ;;  %v1428_v25 = vsel %vm1426_vm2, %v8358_v24, 0  ;;  %8967 = vmatprep.subr.msk.bf16.mxu1 %vm1426_vm2, %v8359_v23 }
 0x1df   : > { %8906 = vmatprep.mubr.msk.bf16.mxu0 %vm783_vm1, %v9244_v6  ;;  %1458 = vmatpush1.bf16.msra.mxu0 %v9258_v21 }
 0x1e0   : > { %8368 = vmatprep.subr.msk.bf16.mxu0 %vm1426_vm2, %v8359_v23 }
 0x1e1   : > { %8969 = vmatpush1.bf16.msra.mxu1 %v1428_v25 }
 0x1e2   : > { %1843 = vmatprep.subr.bf16.mxu1 %v9265_v28 }
 0x1e3   : > { %1460 = vmatpush1.bf16.msra.mxu0 %v1428_v25 }
 0x1e4   : > { %1650 = vmatprep.subr.bf16.mxu0 %v9268_v27 }
 0x1e6   : > { %8907 = vmatmul.mubr.msk.bf16.gmra.mrb[4].mxu0 %vm783_vm1, %v9245_v7 }
 0x1e7   : > { %8910 = vmatprep.mubr.msk.bf16.mxu0 %vm783_vm1, %v9246_v8 }
 0x1ee   : > { %8911 = vmatmul.mubr.msk.bf16.gmra.mrb[8].mxu0 %vm783_vm1, %v9247_v9 }
 0x1ef   : > { %8914 = vmatprep.mubr.msk.bf16.mxu0 %vm783_vm1, %v9248_v10 }
 0x1f6   : > { %8915 = vmatmul.mubr.msk.bf16.gmra.mrb[12].mxu0 %vm783_vm1, %v9249_v11 }
 0x1f7   : > { %8918 = vmatprep.mubr.msk.bf16.mxu0 %vm783_vm1, %v9250_v12 }
 0x1fe   : > { %8919 = vmatmul.mubr.msk.bf16.gmra.mrb[16].mxu0 %vm783_vm1, %v9251_v13 }
 0x1ff   : > { %8922 = vmatprep.mubr.msk.bf16.mxu0 %vm783_vm1, %v9252_v14 }
 0x206   : > { %8923 = vmatmul.mubr.msk.bf16.gmra.mrb[20].mxu0 %vm783_vm1, %v9253_v15 }
 0x207   : > { %8926 = vmatprep.mubr.msk.bf16.mxu0 %vm783_vm1, %v9254_v16 }
 0x20e   : > { %8927 = vmatmul.mubr.msk.bf16.gmra.mrb[24].mxu0 %vm783_vm1, %v9255_v17 }
 0x20f   : > { %8930 = vmatprep.mubr.msk.bf16.mxu0 %vm783_vm1, %v9256_v18 }
 0x216   : > { %8931 = vmatmul.mubr.msk.bf16.gmra.mrb[28].mxu0 %vm783_vm1, %v9257_v19 }
 0x217   : > { %1489 = vmatprep.mubr.bf16.mxu0 %v15799_v26 }
 0x2b1   : > { %v8904_v30 = vpop.f32.mrb[0].mxu0 }
 0x2b2   : > { %v12319_v31 = vadd.f32 %v8904_v30, %v12316_v29  ;;  %v866_v32 = vpop.f32.mrb[1].mxu0 }
 0x2b3   : > { %v12322_v33 = vadd.f32 %v12316_v29, %v866_v32  ;;  %v8905_v34 = vpop.f32.mrb[2].mxu0 }
 0x2b4   : > { %v995_v35 = vsub.f32 0.0, %v12319_v31  ;;  %v12326_v36 = vadd.f32 %v8905_v34, %v12316_v29  ;;  %v869_v37 = vpop.f32.mrb[3].mxu0 }
 0x2b5   : > { %v993_v38 = vsub.f32 0.0, %v12322_v33  ;;  %v12330_v39 = vadd.f32 %v12316_v29, %v869_v37 }
 0x2b6   : > { %v1029_v40 = vmul.f32 1.442695, %v995_v35  ;;  %v996_v41 = vsub.f32 0.0, %v12326_v36 }
 0x2b7   : > { %v1025_v42 = vmul.f32 1.442695, %v993_v38  ;;  %v994_v43 = vsub.f32 0.0, %v12330_v39 }
 0x2b8   : > { %9283 = vpow2.f32 %v1029_v40  ;;  %v1031_v44 = vmul.f32 1.442695, %v996_v41 }
 0x2b9   : > { %9285 = vpow2.f32 %v1025_v42  ;;  %v1027_v45 = vmul.f32 1.442695, %v994_v43  ;;  %v8908_v46 = vpop.f32.mrb[4].mxu0 }
 0x2ba   : > { %9287 = vpow2.f32 %v1031_v44  ;;  %v12335_v47 = vadd.f32 %v8908_v46, %v12316_v29  ;;  %v882_v48 = vpop.f32.mrb[5].mxu0 }
 0x2bb   : > { %9289 = vpow2.f32 %v1027_v45  ;;  %v12338_v49 = vadd.f32 %v12316_v29, %v882_v48  ;;  %v8909_v50 = vpop.f32.mrb[6].mxu0 }
 0x2bc   : > { %v999_v51 = vsub.f32 0.0, %v12335_v47  ;;  %v12342_v52 = vadd.f32 %v8909_v50, %v12316_v29  ;;  %v885_v53 = vpop.f32.mrb[7].mxu0  ;;  %v1244_v50 = vld [vmem:[#allocation9 + $0x58] sm:$0xff] }
 0x2bd   : > { %v997_v54 = vsub.f32 0.0, %v12338_v49  ;;  %v12346_v55 = vadd.f32 %v12316_v29, %v885_v53 }
 0x2be   : > { %v1037_v56 = vmul.f32 1.442695, %v999_v51  ;;  %v1000_v57 = vsub.f32 0.0, %v12342_v52 }
 0x2bf   : > { %v1033_v58 = vmul.f32 1.442695, %v997_v54  ;;  %v998_v59 = vsub.f32 0.0, %v12346_v55 }
 0x2c0   : > { %9291 = vpow2.f32 %v1037_v56  ;;  %v1039_v60 = vmul.f32 1.442695, %v1000_v57 }
 0x2c1   : > { %9293 = vpow2.f32 %v1033_v58  ;;  %v1035_v61 = vmul.f32 1.442695, %v998_v59  ;;  %v8912_v62 = vpop.f32.mrb[8].mxu0 }
 0x2c2   : > { %v9284_v63 = vpop.eup %9283  ;;  %9295 = vpow2.f32 %v1039_v60  ;;  %v12351_v0 = vadd.f32 %v8912_v62, %v12316_v29  ;;  %v898_v1 = vpop.f32.mrb[9].mxu0  ;;  %v8360_v62 = vcombine.low %v1244_v50, %v1244_v50 }
 0x2c3   : > { %v9286_v2 = vpop.eup %9285  ;;  %v1091_v3 = vadd.f32 1.0, %v9284_v63  ;;  %9297 = vpow2.f32 %v1035_v61  ;;  %v12354_v4 = vadd.f32 %v12316_v29, %v898_v1  ;;  %v8913_v5 = vpop.f32.mrb[10].mxu0  ;;  %v8361_v61 = vcombine.high %v1244_v50, %v1244_v50 }
 0x2c4   : > { %v9288_v6 = vpop.eup %9287  ;;  %v1089_v7 = vadd.f32 1.0, %v9286_v2  ;;  %v1003_v8 = vsub.f32 0.0, %v12351_v0  ;;  %v12358_v9 = vadd.f32 %v8913_v5, %v12316_v29  ;;  %v901_v10 = vpop.f32.mrb[11].mxu0 }
 0x2c5   : > { %v9290_v11 = vpop.eup %9289  ;;  %9299 = vrcp.f32 %v1091_v3  ;;  %v1092_v12 = vadd.f32 1.0, %v9288_v6  ;;  %v1001_v13 = vsub.f32 0.0, %v12354_v4  ;;  %v12362_v14 = vadd.f32 %v12316_v29, %v901_v10 }
 0x2c6   : > { %9301 = vrcp.f32 %v1089_v7  ;;  %v1090_v15 = vadd.f32 1.0, %v9290_v11  ;;  %v1045_v16 = vmul.f32 1.442695, %v1003_v8  ;;  %v1004_v17 = vsub.f32 0.0, %v12358_v9 }
 0x2c7   : > { %9303 = vrcp.f32 %v1092_v12  ;;  %v1041_v18 = vmul.f32 1.442695, %v1001_v13  ;;  %v1002_v19 = vsub.f32 0.0, %v12362_v14 }
 0x2c8   : > { %9305 = vrcp.f32 %v1090_v15  ;;  %v1047_v20 = vmul.f32 1.442695, %v1004_v17 }
 0x2c9   : > { %9307 = vpow2.f32 %v1045_v16  ;;  %v1043_v21 = vmul.f32 1.442695, %v1002_v19  ;;  %v8916_v22 = vpop.f32.mrb[12].mxu0  ;;  %v9266_v16 = vld [vmem:[#allocation9 + $0x8] ss:$40 sps:$4 sm:$0xff]  }
 0x2ca   : > { %v9292_v23 = vpop.eup %9291  ;;  %9309 = vpow2.f32 %v1041_v18  ;;  %v12367_v24 = vadd.f32 %v8916_v22, %v12316_v29  ;;  %v914_v25 = vpop.f32.mrb[13].mxu0 }
 0x2cb   : > { %v9294_v27 = vpop.eup %9293  ;;  %v1095_v28 = vadd.f32 1.0, %v9292_v23  ;;  %9311 = vpow2.f32 %v1047_v20  ;;  %v12370_v30 = vadd.f32 %v12316_v29, %v914_v25  ;;  %v8917_v32 = vpop.f32.mrb[14].mxu0 }
 0x2cc   : > { %v9296_v34 = vpop.eup %9295  ;;  %v1093_v35 = vadd.f32 1.0, %v9294_v27  ;;  %9313 = vpow2.f32 %v1043_v21  ;;  %v1007_v37 = vsub.f32 0.0, %v12367_v24  ;;  %v12374_v38 = vadd.f32 %v8917_v32, %v12316_v29  ;;  %v917_v40 = vpop.f32.mrb[15].mxu0 }
 0x2cd   : > { %v9298_v41 = vpop.eup %9297  ;;  %9315 = vrcp.f32 %v1095_v28  ;;  %v1096_v42 = vadd.f32 1.0, %v9296_v34  ;;  %v1005_v43 = vsub.f32 0.0, %v12370_v30  ;;  %v12378_v44 = vadd.f32 %v12316_v29, %v917_v40 }
 0x2ce   : > { %9317 = vrcp.f32 %v1093_v35  ;;  %v1094_v45 = vadd.f32 1.0, %v9298_v41  ;;  %v1053_v46 = vmul.f32 1.442695, %v1007_v37  ;;  %v1008_v48 = vsub.f32 0.0, %v12374_v38 }
 0x2cf   : > { %v9300_v51 = vpop.eup %9299  ;;  %9319 = vrcp.f32 %v1096_v42  ;;  %v1049_v53 = vmul.f32 1.442695, %v1005_v43  ;;  %v1006_v54 = vsub.f32 0.0, %v12378_v44  ;;  %v1434_v43 = vsel %vm1426_vm2, %v8360_v62, 0 }
 0x2d0   : > { %v9302_v56 = vpop.eup %9301  ;;  %9321 = vrcp.f32 %v1094_v45  ;;  %v1055_v57 = vmul.f32 1.442695, %v1008_v48  ;;  %v1187_v1 = vmul.f32 %v9300_v51, %v12319_v31  ;;  %v9275_v45 = vld [vmem:[#allocation9 + $0x1c] ss:$40 sps:$4 sm:$0xff]  }
 0x2d1   : > { %v9304_v58 = vpop.eup %9303  ;;  %9323 = vpow2.f32 %v1053_v46  ;;  %v1051_v59 = vmul.f32 1.442695, %v1006_v54  ;;  %v8920_v60 = vpop.f32.mrb[16].mxu0  ;;  %v1185_v7 = vmul.f32 %v9302_v56, %v12322_v33 }
 0x2d2   : > { %v9306_v63 = vpop.eup %9305  ;;  %v1188_v2 = vmul.f32 %v9304_v58, %v12326_v36  ;;  %9325 = vpow2.f32 %v1049_v53  ;;  %v12385_v3 = vadd.f32 %v8920_v60, %v12316_v29  ;;  %v930_v5 = vpop.f32.mrb[17].mxu0 }
 0x2d3   : > { %v9308_v6 = vpop.eup %9307  ;;  %v1186_v8 = vmul.f32 %v9306_v63, %v12330_v39  ;;  %9327 = vpow2.f32 %v1055_v57  ;;  %v12390_v10 = vadd.f32 %v12316_v29, %v930_v5  ;;  %v8921_v11 = vpop.f32.mrb[18].mxu0 }
 0x2d4   : > { %v9310_v12 = vpop.eup %9309  ;;  %v12392_v13 = vpack.c.bf16 %v1188_v2, %v1187_v1  ;;  %v1099_v31 = vadd.f32 1.0, %v9308_v6  ;;  %9329 = vpow2.f32 %v1051_v59  ;;  %v1011_v36 = vsub.f32 0.0, %v12385_v3  ;;  %v933_v15 = vpop.f32.mrb[19].mxu0 }
 0x2d5   : > { %v9312_v17 = vpop.eup %9311  ;;  %v12395_v18 = vpack.c.bf16 %v1186_v8, %v1185_v7  ;;  %v1097_v33 = vadd.f32 1.0, %v9310_v12  ;;  %v1009_v39 = vsub.f32 0.0, %v12390_v10  ;;  %v12399_v19 = vadd.f32 %v8921_v11, %v12316_v29  ;;  %v12430_v8 = vld [vmem:[#allocation9 + $0x60] sm:$0xff] }
 0x2d6   : > { %v9314_v20 = vpop.eup %9313  ;;  %9331 = vrcp.f32 %v1099_v31  ;;  %v1100_v21 = vadd.f32 1.0, %v9312_v17  ;;  %v1061_v22 = vmul.f32 1.442695, %v1011_v36  ;;  %v12402_v23 = vadd.f32 %v12316_v29, %v933_v15 }
 0x2d7   : > { %v9316_v25 = vpop.eup %9315  ;;  %9333 = vrcp.f32 %v1097_v33  ;;  %v1098_v27 = vadd.f32 1.0, %v9314_v20  ;;  %v1057_v28 = vmul.f32 1.442695, %v1009_v39  ;;  %v1012_v32 = vsub.f32 0.0, %v12399_v19  ;;  %8369 = vmatmul.mubr.msk.bf16.vlgmr.msra.gmra.mrb[32].mxu0 %vm1377_vm3, %v12395_v18 }
 0x2d8   : > { %v9318_v34 = vpop.eup %9317  ;;  %9335 = vrcp.f32 %v1100_v21  ;;  %v1010_v35 = vsub.f32 0.0, %v12402_v23  ;;  %1499 = vmatprep.mubr.bf16.mxu0 %v15799_v26  ;;  %1651 = vmatpush1.bf16.msra.mxu0 %v9266_v16  ;;  %v1191_v40 = vmul.f32 %v9316_v25, %v12335_v47  ;;  %v8362_v20 = vcombine.low %v12430_v8, %v12430_v8 }
 0x2d9   : > { %v9320_v37 = vpop.eup %9319  ;;  %9337 = vrcp.f32 %v1098_v27  ;;  %v1063_v41 = vmul.f32 1.442695, %v1012_v32  ;;  %v8924_v42 = vpop.f32.mrb[20].mxu0  ;;  %8385 = vmatprep.subr.msk.bf16.mxu0 %vm1426_vm2, %v8361_v61  ;;  %v1189_v47 = vmul.f32 %v9318_v34, %v12338_v49 }
 0x2da   : > { %v9322_v46 = vpop.eup %9321  ;;  %v1192_v48 = vmul.f32 %v9320_v37, %v12342_v52  ;;  %9339 = vpow2.f32 %v1061_v22  ;;  %v1059_v50 = vmul.f32 1.442695, %v1010_v35  ;;  %v12414_v51 = vadd.f32 %v8924_v42, %v12316_v29  ;;  %v946_v53 = vpop.f32.mrb[21].mxu0 }
 0x2db   : > { %v9324_v54 = vpop.eup %9323  ;;  %v1190_v56 = vmul.f32 %v9322_v46, %v12346_v55  ;;  %9341 = vpow2.f32 %v1057_v28  ;;  %v12419_v57 = vadd.f32 %v12316_v29, %v946_v53  ;;  %v8925_v58 = vpop.f32.mrb[22].mxu0 }
 0x2dc   : > { %v9326_v59 = vpop.eup %9325  ;;  %v12421_v60 = vpack.c.bf16 %v1192_v48, %v1191_v40  ;;  %v1103_v52 = vadd.f32 1.0, %v9324_v54  ;;  %9343 = vpow2.f32 %v1063_v41  ;;  %v1015_v61 = vsub.f32 0.0, %v12414_v51  ;;  %v949_v62 = vpop.f32.mrb[23].mxu0  ;;  %1653 = vmatpush1.bf16.msra.mxu0 %v1434_v43 }
 0x2dd   : > { %v9328_v63 = vpop.eup %9327  ;;  %v12424_v1 = vpack.c.bf16 %v1190_v56, %v1189_v47  ;;  %v1101_v49 = vadd.f32 1.0, %v9326_v59  ;;  %9345 = vpow2.f32 %v1059_v50  ;;  %v1013_v55 = vsub.f32 0.0, %v12419_v57  ;;  %2036 = vmatprep.subr.bf16.mxu0 %v9275_v45  ;;  %v9263_v50 = vld [vmem:[#allocation9 + $0x10] ss:$40 sps:$4 sm:$0xff]  }
 0x2de   : > { %v9330_v2 = vpop.eup %9329  ;;  %9347 = vrcp.f32 %v1103_v52  ;;  %v1104_v5 = vadd.f32 1.0, %v9328_v63  ;;  %v1069_v6 = vmul.f32 1.442695, %v1015_v61  ;;  %v12428_v7 = vadd.f32 %v8925_v58, %v12316_v29 }
 0x2df   : > { %9349 = vrcp.f32 %v1101_v49  ;;  %v1102_v11 = vadd.f32 1.0, %v9330_v2  ;;  %v1065_v12 = vmul.f32 1.442695, %v1013_v55  ;;  %v12433_v31 = vadd.f32 %v12316_v29, %v949_v62  ;;  %8370 = vmatmul.mubr.msk.bf16.gmra.mrb[36].mxu0 %vm1377_vm3, %v12392_v13 }
 0x2e0   : > { %v9332_v36 = vpop.eup %9331  ;;  %9351 = vrcp.f32 %v1104_v5  ;;  %v1016_v15 = vsub.f32 0.0, %v12428_v7  ;;  %1509 = vmatprep.mubr.bf16.mxu0 %v15799_v26  ;;  %v8363_v56 = vcombine.high %v12430_v8, %v12430_v8  ;;  %v1440_v8 = vsel %vm1426_vm2, %v8362_v20, 0 }
 0x2e1   : > { %v9334_v16 = vpop.eup %9333  ;;  %v1195_v17 = vmul.f32 %v9332_v36, %v12351_v0  ;;  %9353 = vrcp.f32 %v1102_v11  ;;  %v1014_v33 = vsub.f32 0.0, %v12433_v31  ;;  %v8928_v39 = vpop.f32.mrb[24].mxu0 }
 0x2e2   : > { %v9336_v21 = vpop.eup %9335  ;;  %v1193_v22 = vmul.f32 %v9334_v16, %v12354_v4  ;;  %9355 = vpow2.f32 %v1069_v6  ;;  %v1071_v25 = vmul.f32 1.442695, %v1016_v15  ;;  %v12445_v27 = vadd.f32 %v8928_v39, %v12316_v29  ;;  %v962_v28 = vpop.f32.mrb[25].mxu0 }
 0x2e3   : > { %v9338_v32 = vpop.eup %9337  ;;  %v1196_v34 = vmul.f32 %v9336_v21, %v12358_v9  ;;  %9357 = vpow2.f32 %v1065_v12  ;;  %v1067_v0 = vmul.f32 1.442695, %v1014_v33  ;;  %v12449_v35 = vadd.f32 %v12316_v29, %v962_v28  ;;  %v8929_v37 = vpop.f32.mrb[26].mxu0 }
 0x2e4   : > { %v9340_v40 = vpop.eup %9339  ;;  %v1194_v41 = vmul.f32 %v9338_v32, %v12362_v14  ;;  %9359 = vpow2.f32 %v1071_v25  ;;  %v1019_v4 = vsub.f32 0.0, %v12445_v27  ;;  %v12454_v42 = vadd.f32 %v8929_v37, %v12316_v29  ;;  %v965_v43 = vpop.f32.mrb[27].mxu0 }
 0x2e5   : > { %v9342_v45 = vpop.eup %9341  ;;  %v12456_v46 = vpack.c.bf16 %v1196_v34, %v1195_v17  ;;  %v1107_v9 = vadd.f32 1.0, %v9340_v40  ;;  %9361 = vpow2.f32 %v1067_v0  ;;  %v1017_v48 = vsub.f32 0.0, %v12449_v35  ;;  %v9278_v17 = vld [vmem:[#allocation9 + $0x24] ss:$40 sps:$4 sm:$0xff]  }
 0x2e6   : > { %v9344_v53 = vpop.eup %9343  ;;  %v12459_v54 = vpack.c.bf16 %v1194_v41, %v1193_v22  ;;  %v1105_v47 = vadd.f32 1.0, %v9342_v45  ;;  %v1020_v14 = vsub.f32 0.0, %v12454_v42  ;;  %v1077_v52 = vmul.f32 1.442695, %v1019_v4 }
 0x2e7   : > { %v9346_v58 = vpop.eup %9345  ;;  %9363 = vrcp.f32 %v1107_v9  ;;  %v1108_v59 = vadd.f32 1.0, %v9344_v53  ;;  %v12465_v61 = vadd.f32 %v12316_v29, %v965_v43  ;;  %8371 = vmatmul.mubr.msk.bf16.gmra.mrb[40].mxu0 %vm1377_vm3, %v12424_v1  ;;  %v1073_v49 = vmul.f32 1.442695, %v1017_v48 }
 0x2e8   : > { %v9348_v62 = vpop.eup %9347  ;;  %9365 = vrcp.f32 %v1105_v47  ;;  %v1106_v63 = vadd.f32 1.0, %v9346_v58  ;;  %8373 = vmatmul.mubr.msk.bf16.vlgmr.msra.gmra.mrb[0].mxu1 %vm1377_vm3, %v12459_v54  ;;  %1519 = vmatprep.mubr.bf16.mxu0 %v15799_v26  ;;  %v1079_v2 = vmul.f32 1.442695, %v1020_v14 }
 0x2e9   : > { %v9350_v55 = vpop.eup %9349  ;;  %9367 = vrcp.f32 %v1108_v59  ;;  %v1018_v5 = vsub.f32 0.0, %v12465_v61  ;;  %1844 = vmatpush1.bf16.msra.mxu1 %v9263_v50  ;;  %1539 = vmatprep.mubr.bf16.mxu1 %v15799_v26  ;;  %v8932_v6 = vpop.f32.mrb[28].mxu0  ;;  %v1199_v12 = vmul.f32 %v9348_v62, %v12367_v24  ;;  %v1246_v59 = vld [vmem:[#allocation9 + $0x68] sm:$0xff] }
 0x2ea   : > { %v9352_v11 = vpop.eup %9351  ;;  %v1197_v36 = vmul.f32 %v9350_v55, %v12370_v30  ;;  %9369 = vrcp.f32 %v1106_v63  ;;  %v12478_v15 = vadd.f32 %v8932_v6, %v12316_v29  ;;  %v978_v16 = vpop.f32.mrb[29].mxu0  ;;  %8402 = vmatprep.subr.msk.bf16.mxu1 %vm1426_vm2, %v8363_v56  ;;  %v9273_v6 = vld [vmem:[#allocation9 + $0x18] ss:$40 sps:$4 sm:$0xff]  }
 0x2eb   : > { %v9354_v33 = vpop.eup %9353  ;;  %v1200_v39 = vmul.f32 %v9352_v11, %v12374_v38  ;;  %9371 = vpow2.f32 %v1077_v52  ;;  %v1075_v21 = vmul.f32 1.442695, %v1018_v5  ;;  %v12483_v20 = vadd.f32 %v12316_v29, %v978_v16  ;;  %v8933_v22 = vpop.f32.mrb[30].mxu0 }
 0x2ec   : > { %v9356_v24 = vpop.eup %9355  ;;  %v1198_v30 = vmul.f32 %v9354_v33, %v12378_v44  ;;  %9373 = vpow2.f32 %v1073_v49  ;;  %v1023_v25 = vsub.f32 0.0, %v12478_v15  ;;  %v12488_v28 = vadd.f32 %v8933_v22, %v12316_v29  ;;  %v981_v32 = vpop.f32.mrb[31].mxu0 }
 0x2ed   : > { %v9358_v34 = vpop.eup %9357  ;;  %v12490_v0 = vpack.c.bf16 %v1200_v39, %v1199_v12  ;;  %v1111_v38 = vadd.f32 1.0, %v9356_v24  ;;  %9375 = vpow2.f32 %v1079_v2  ;;  %v1021_v37 = vsub.f32 0.0, %v12483_v20  ;;  %1846 = vmatpush1.bf16.msra.mxu1 %v1440_v8 }
 0x2ee   : > { %v9360_v40 = vpop.eup %9359  ;;  %v12493_v41 = vpack.c.bf16 %v1198_v30, %v1197_v36  ;;  %v1109_v4 = vadd.f32 1.0, %v9358_v34  ;;  %9377 = vpow2.f32 %v1075_v21  ;;  %2229 = vmatprep.subr.bf16.mxu1 %v9278_v17  ;;  %v1085_v45 = vmul.f32 1.442695, %v1023_v25 }
 0x2ef   : > { %15896 = vst [vmem:[#allocation43_spill] sm:$0xff] %v12490_v0  ;;  %v9362_v44 = vpop.eup %9361  ;;  %9379 = vrcp.f32 %v1111_v38  ;;  %v1112_v43 = vadd.f32 1.0, %v9360_v40  ;;  %8372 = vmatmul.mubr.msk.bf16.gmra.mrb[44].mxu0 %vm1377_vm3, %v12421_v60  ;;  %v1024_v9 = vsub.f32 0.0, %v12488_v28  ;;  %v1081_v50 = vmul.f32 1.442695, %v1021_v37 }
 0x2f0   : > { %15897 = vst [vmem:[#allocation44_spill] sm:$0xff] %v12493_v41  ;;  %9381 = vrcp.f32 %v1109_v4  ;;  %v1110_v48 = vadd.f32 1.0, %v9362_v44  ;;  %8374 = vmatmul.mubr.msk.bf16.gmra.mrb[4].mxu1 %vm1377_vm3, %v12456_v46  ;;  %v12501_v53 = vadd.f32 %v12316_v29, %v981_v32  ;;  %1682 = vmatprep.mubr.bf16.mxu0 %v15799_v26  ;;  %v8365_v8 = vcombine.high %v1246_v59, %v1246_v59 }
 0x2f1   : > { %v9364_v47 = vpop.eup %9363  ;;  %9383 = vrcp.f32 %v1112_v43  ;;  %v1087_v14 = vmul.f32 1.442695, %v1024_v9  ;;  %1549 = vmatprep.mubr.bf16.mxu1 %v15799_v26  ;;  %v8364_v16 = vcombine.low %v1246_v59, %v1246_v59 }
 0x2f2   : > { %v9366_v56 = vpop.eup %9365  ;;  %9385 = vrcp.f32 %v1110_v48  ;;  %v1022_v58 = vsub.f32 0.0, %v12501_v53  ;;  %v1203_v63 = vmul.f32 %v9364_v47, %v12385_v3 }
 0x2f3   : > { %v9368_v52 = vpop.eup %9367  ;;  %9387 = vpow2.f32 %v1085_v45  ;;  %v1201_v2 = vmul.f32 %v9366_v56, %v12390_v10  ;;  %v1446_v22 = vsel %vm1426_vm2, %v8364_v16, 0  ;;  %v12680_v16 = vld [vmem:[#allocation11] sm:$0xff] }
 0x2f4   : > { %v9370_v62 = vpop.eup %9369  ;;  %v1204_v29 = vmul.f32 %v9368_v52, %v12399_v19  ;;  %9389 = vpow2.f32 %v1081_v50  ;;  %v1083_v49 = vmul.f32 1.442695, %v1022_v58 }
 0x2f5   : > { %v9372_v55 = vpop.eup %9371  ;;  %v1202_v5 = vmul.f32 %v9370_v62, %v12402_v23  ;;  %9391 = vpow2.f32 %v1087_v14 }
 0x2f6   : > { %v9374_v11 = vpop.eup %9373  ;;  %v12510_v12 = vpack.c.bf16 %v1204_v29, %v1203_v63  ;;  %v1115_v36 = vadd.f32 1.0, %v9372_v55  ;;  %9393 = vpow2.f32 %v1083_v49 }
 0x2f7   : > { %v9376_v17 = vpop.eup %9375  ;;  %v12512_v3 = vpack.c.bf16 %v1202_v5, %v1201_v2  ;;  %v1113_v19 = vadd.f32 1.0, %v9374_v11  ;;  %8386 = vmatmul.mubr.msk.bf16.vlgmr.msra.gmra.mrb[48].mxu0 %vm1377_vm3, %v12395_v18 }
 0x2f8   : > { %15898 = vst [vmem:[#allocation45_spill] sm:$0xff] %v12510_v12  ;;  %v9378_v33 = vpop.eup %9377  ;;  %9395 = vrcp.f32 %v1115_v36  ;;  %v1116_v10 = vadd.f32 1.0, %v9376_v17  ;;  %8375 = vmatmul.mubr.msk.bf16.gmra.mrb[8].mxu1 %vm1377_vm3, %v12493_v41  ;;  %1692 = vmatprep.mubr.bf16.mxu0 %v15799_v26 }
 0x2f9   : > { %15899 = vst [vmem:[#allocation46_spill] sm:$0xff] %v12512_v3  ;;  %v9380_v23 = vpop.eup %9379  ;;  %9397 = vrcp.f32 %v1113_v19  ;;  %v1114_v39 = vadd.f32 1.0, %v9378_v33  ;;  %1559 = vmatprep.mubr.bf16.mxu1 %v15799_v26  ;;  %2037 = vmatpush1.bf16.msra.mxu0 %v9273_v6 }
 0x2fa   : > { %v9382_v21 = vpop.eup %9381  ;;  %9399 = vrcp.f32 %v1116_v10  ;;  %8419 = vmatprep.subr.msk.bf16.mxu0 %vm1426_vm2, %v8365_v8  ;;  %v1207_v25 = vmul.f32 %v9380_v23, %v12414_v51  ;;  %v15798_v8 = vlaneseq }
 0x2fb   : > { %v9384_v24 = vpop.eup %9383  ;;  %9401 = vrcp.f32 %v1114_v39  ;;  %v1205_v38 = vmul.f32 %v9382_v21, %v12419_v57 }
 0x2fc   : > { %v9386_v30 = vpop.eup %9385  ;;  %v1208_v32 = vmul.f32 %v9384_v24, %v12428_v7  ;;  %v12671_v11 = vshrl.u32 %v15798_v8, 7 }
 0x2fd   : > { %v9388_v34 = vpop.eup %9387  ;;  %v1206_v37 = vmul.f32 %v9386_v30, %v12433_v31  ;;  %2039 = vmatpush1.bf16.msra.mxu0 %v1446_v22 }
 0x2fe   : > { %v9390_v40 = vpop.eup %9389  ;;  %v12526_v4 = vpack.c.bf16 %v1208_v32, %v1207_v25  ;;  %v1119_v44 = vadd.f32 1.0, %v9388_v34  ;;  %15906 = vst [vmem:[#allocation53_spill] sm:$0xff] %v12671_v11  ;;  %v12678_v36 = vsub.s32 0, %v12671_v11  ;;  %v12683_v17 = vsub.s32 1, %v12671_v11 }
 0x2ff   : > { %v9392_v43 = vpop.eup %9391  ;;  %v12528_v45 = vpack.c.bf16 %v1206_v37, %v1205_v38  ;;  %v1117_v9 = vadd.f32 1.0, %v9390_v40  ;;  %8387 = vmatmul.mubr.msk.bf16.gmra.mrb[52].mxu0 %vm1377_vm3, %v12392_v13 }
 0x300   : > { %15900 = vst [vmem:[#allocation47_spill] sm:$0xff] %v12526_v4  ;;  %v9394_v51 = vpop.eup %9393  ;;  %9403 = vrcp.f32 %v1119_v44  ;;  %v1120_v7 = vadd.f32 1.0, %v9392_v43  ;;  %8376 = vmatmul.mubr.msk.bf16.gmra.mrb[12].mxu1 %vm1377_vm3, %v12490_v0  ;;  %1702 = vmatprep.mubr.bf16.mxu0 %v15799_v26  ;;  %15907 = vst [vmem:[#allocation54_spill] sm:$0xff] %v12678_v36  ;;  %v12689_v19 = vrot.slane %v12680_v16, %v12678_v36 }
 0x301   : > { %15901 = vst [vmem:[#allocation48_spill] sm:$0xff] %v12528_v45  ;;  %9405 = vrcp.f32 %v1117_v9  ;;  %v1118_v57 = vadd.f32 1.0, %v9394_v51  ;;  %1569 = vmatprep.mubr.bf16.mxu1 %v15799_v26  ;;  %15908 = vst [vmem:[#allocation55_spill] sm:$0xff] %v12683_v17  ;;  %v12695_v33 = vrot.slane %v12680_v16, %v12683_v17 }
 0x302   : > { %v9396_v31 = vpop.eup %9395  ;;  %9407 = vrcp.f32 %v1120_v7 }
 0x303   : > { %v9398_v48 = vpop.eup %9397  ;;  %v1211_v50 = vmul.f32 %v9396_v31, %v12445_v27  ;;  %9409 = vrcp.f32 %v1118_v57 }
 0x304   : > { %v9400_v47 = vpop.eup %9399  ;;  %v1209_v14 = vmul.f32 %v9398_v48, %v12449_v35 }
 0x305   : > { %v9402_v56 = vpop.eup %9401  ;;  %v1212_v58 = vmul.f32 %v9400_v47, %v12454_v42 }
 0x306   : > { %v1210_v59 = vmul.f32 %v9402_v56, %v12465_v61 }
 0x307   : > { %v12540_v52 = vpack.c.bf16 %v1212_v58, %v1211_v50  ;;  %8388 = vmatmul.mubr.msk.bf16.gmra.mrb[56].mxu0 %vm1377_vm3, %v12424_v1 }
 0x308   : > { %v12544_v62 = vpack.c.bf16 %v1210_v59, %v1209_v14  ;;  %8377 = vmatmul.mubr.msk.bf16.gmra.mrb[16].mxu1 %vm1377_vm3, %v12512_v3  ;;  %1712 = vmatprep.mubr.bf16.mxu0 %v15799_v26 }
 0x309   : > { %15902 = vst [vmem:[#allocation49_spill] sm:$0xff] %v12540_v52  ;;  %1579 = vmatprep.mubr.bf16.mxu1 %v15799_v26 }
 0x30a   : > { %15903 = vst [vmem:[#allocation50_spill] sm:$0xff] %v12544_v62  ;;  %v9404_v27 = vpop.eup %9403 }
 0x30b   : > { %v9406_v35 = vpop.eup %9405  ;;  %v1215_v42 = vmul.f32 %v9404_v27, %v12478_v15  ;;  %v1247_v15 = vld [vmem:[#allocation9 + $0x70] sm:$0xff] }
 0x30c   : > { %v9408_v63 = vpop.eup %9407  ;;  %v1213_v61 = vmul.f32 %v9406_v35, %v12483_v20  ;;  %v9276_v20 = vld [vmem:[#allocation9 + $0x20] ss:$40 sps:$4 sm:$0xff]   ;;  %v12739_v35 = vsub.s32 2, %v12671_v11 }
 0x30d   : > { %v9410_v29 = vpop.eup %9409  ;;  %v1216_v49 = vmul.f32 %v9408_v63, %v12488_v28  ;;  %v8367_v28 = vcombine.high %v1247_v15, %v1247_v15 }
 0x30e   : > { %v1214_v55 = vmul.f32 %v9410_v29, %v12501_v53  ;;  %v8366_v53 = vcombine.low %v1247_v15, %v1247_v15  ;;  %15909 = vst [vmem:[#allocation56_spill] sm:$0xff] %v12739_v35 }
 0x30f   : > { %v12554_v2 = vpack.c.bf16 %v1216_v49, %v1215_v42  ;;  %8389 = vmatmul.mubr.msk.bf16.gmra.mrb[60].mxu0 %vm1377_vm3, %v12421_v60 }
 0x310   : > { %v12558_v5 = vpack.c.bf16 %v1214_v55, %v1213_v61  ;;  %8378 = vmatmul.mubr.msk.bf16.gmra.mrb[20].mxu1 %vm1377_vm3, %v12510_v12  ;;  %1722 = vmatprep.mubr.bf16.mxu0 %v15799_v26  ;;  %v1452_v6 = vsel %vm1426_vm2, %v8366_v53, 0  ;;  %v12751_v53 = vrot.slane %v12680_v16, %v12739_v35 }
 0x311   : > { %15904 = vst [vmem:[#allocation51_spill] sm:$0xff] %v12554_v2  ;;  %1589 = vmatprep.mubr.bf16.mxu1 %v15799_v26 }
 0x312   : > { %15905 = vst [vmem:[#allocation52_spill] sm:$0xff] %v12558_v5 }
 0x317   : > { %8390 = vmatmul.mubr.msk.bf16.gmra.mrb[64].mxu0 %vm1377_vm3, %v12459_v54 }
 0x318   : > { %8379 = vmatmul.mubr.msk.bf16.gmra.mrb[24].mxu1 %vm1377_vm3, %v12528_v45  ;;  %1732 = vmatprep.mubr.bf16.mxu0 %v15799_v26 }
 0x319   : > { %1599 = vmatprep.mubr.bf16.mxu1 %v15799_v26 }
 0x31f   : > { %8391 = vmatmul.mubr.msk.bf16.gmra.mrb[68].mxu0 %vm1377_vm3, %v12456_v46 }
 0x320   : > { %8380 = vmatmul.mubr.msk.bf16.gmra.mrb[28].mxu1 %vm1377_vm3, %v12526_v4  ;;  %1742 = vmatprep.mubr.bf16.mxu0 %v15799_v26 }
 0x321   : > { %1609 = vmatprep.mubr.bf16.mxu1 %v15799_v26 }
 0x327   : > { %8392 = vmatmul.mubr.msk.bf16.gmra.mrb[72].mxu0 %vm1377_vm3, %v12493_v41 }
 0x328   : > { %8381 = vmatmul.mubr.msk.bf16.gmra.mrb[32].mxu1 %vm1377_vm3, %v12544_v62  ;;  %1752 = vmatprep.mubr.bf16.mxu0 %v15799_v26 }
 0x329   : > { %1619 = vmatprep.mubr.bf16.mxu1 %v15799_v26 }
 0x32f   : > { %8393 = vmatmul.mubr.msk.bf16.gmra.mrb[76].mxu0 %vm1377_vm3, %v12490_v0 }
 0x330   : > { %8382 = vmatmul.mubr.msk.bf16.gmra.mrb[36].mxu1 %vm1377_vm3, %v12540_v52  ;;  %1762 = vmatprep.mubr.bf16.mxu0 %v15799_v26 }
 0x331   : > { %1629 = vmatprep.mubr.bf16.mxu1 %v15799_v26 }
 0x337   : > { %8394 = vmatmul.mubr.msk.bf16.gmra.mrb[80].mxu0 %vm1377_vm3, %v12512_v3 }
 0x338   : > { %8383 = vmatmul.mubr.msk.bf16.gmra.mrb[40].mxu1 %vm1377_vm3, %v12558_v5  ;;  %1772 = vmatprep.mubr.bf16.mxu0 %v15799_v26 }
 0x339   : > { %1639 = vmatprep.mubr.bf16.mxu1 %v15799_v26 }
 0x33f   : > { %8395 = vmatmul.mubr.msk.bf16.gmra.mrb[84].mxu0 %vm1377_vm3, %v12510_v12 }
 0x340   : > { %8384 = vmatmul.mubr.msk.bf16.gmra.mrb[44].mxu1 %vm1377_vm3, %v12554_v2  ;;  %1782 = vmatprep.mubr.bf16.mxu0 %v15799_v26 }
 0x341   : > { %1875 = vmatprep.mubr.bf16.mxu1 %v15799_v26 }
 0x347   : > { %8396 = vmatmul.mubr.msk.bf16.gmra.mrb[88].mxu0 %vm1377_vm3, %v12528_v45 }
 0x348   : > { %8403 = vmatmul.mubr.msk.bf16.vlgmr.msra.gmra.mrb[48].mxu1 %vm1377_vm3, %v12395_v18  ;;  %1792 = vmatprep.mubr.bf16.mxu0 %v15799_v26 }
 0x349   : > { %2230 = vmatpush1.bf16.msra.mxu1 %v9276_v20  ;;  %1885 = vmatprep.mubr.bf16.mxu1 %v15799_v26 }
 0x34a   : > { %8436 = vmatprep.subr.msk.bf16.mxu1 %vm1426_vm2, %v8367_v28 }
 0x34d   : > { %2232 = vmatpush1.bf16.msra.mxu1 %v1452_v6  ;;  %v12754_v6 = vsub.s32 3, %v12671_v11 }
 0x34f   : > { %8397 = vmatmul.mubr.msk.bf16.gmra.mrb[92].mxu0 %vm1377_vm3, %v12526_v4  ;;  %15910 = vst [vmem:[#allocation57_spill] sm:$0xff] %v12754_v6 }
 0x350   : > { %8404 = vmatmul.mubr.msk.bf16.gmra.mrb[52].mxu1 %vm1377_vm3, %v12392_v13  ;;  %1802 = vmatprep.mubr.bf16.mxu0 %v15799_v26 }
 0x351   : > { %1895 = vmatprep.mubr.bf16.mxu1 %v15799_v26 }
 0x357   : > { %8398 = vmatmul.mubr.msk.bf16.gmra.mrb[96].mxu0 %vm1377_vm3, %v12544_v62 }
 0x358   : > { %8405 = vmatmul.mubr.msk.bf16.gmra.mrb[56].mxu1 %vm1377_vm3, %v12424_v1  ;;  %1812 = vmatprep.mubr.bf16.mxu0 %v15799_v26 }
 0x359   : > { %1905 = vmatprep.mubr.bf16.mxu1 %v15799_v26 }
 0x35f   : > { %8399 = vmatmul.mubr.msk.bf16.gmra.mrb[100].mxu0 %vm1377_vm3, %v12540_v52 }
 0x360   : > { %8406 = vmatmul.mubr.msk.bf16.gmra.mrb[60].mxu1 %vm1377_vm3, %v12421_v60  ;;  %1822 = vmatprep.mubr.bf16.mxu0 %v15799_v26 }
 0x361   : > { %1915 = vmatprep.mubr.bf16.mxu1 %v15799_v26 }
 0x367   : > { %8400 = vmatmul.mubr.msk.bf16.gmra.mrb[104].mxu0 %vm1377_vm3, %v12558_v5 }
 0x368   : > { %8407 = vmatmul.mubr.msk.bf16.gmra.mrb[64].mxu1 %vm1377_vm3, %v12459_v54  ;;  %1832 = vmatprep.mubr.bf16.mxu0 %v15799_v26 }
 0x369   : > { %1925 = vmatprep.mubr.bf16.mxu1 %v15799_v26 }
 0x36f   : > { %8401 = vmatmul.mubr.msk.bf16.gmra.mrb[108].mxu0 %vm1377_vm3, %v12554_v2 }
 0x370   : > { %8408 = vmatmul.mubr.msk.bf16.gmra.mrb[68].mxu1 %vm1377_vm3, %v12456_v46  ;;  %2068 = vmatprep.mubr.bf16.mxu0 %v15799_v26 }
 0x371   : > { %1935 = vmatprep.mubr.bf16.mxu1 %v15799_v26 }
 0x377   : > { %8420 = vmatmul.mubr.msk.bf16.vlgmr.msra.gmra.mrb[112].mxu0 %vm1377_vm3, %v12395_v18 }
 0x378   : > { %8409 = vmatmul.mubr.msk.bf16.gmra.mrb[72].mxu1 %vm1377_vm3, %v12493_v41  ;;  %2078 = vmatprep.mubr.bf16.mxu0 %v15799_v26 }
 0x379   : > { %1945 = vmatprep.mubr.bf16.mxu1 %v15799_v26 }
 0x37f   : > { %8421 = vmatmul.mubr.msk.bf16.gmra.mrb[116].mxu0 %vm1377_vm3, %v12392_v13 }
 0x380   : > { %8410 = vmatmul.mubr.msk.bf16.gmra.mrb[76].mxu1 %vm1377_vm3, %v12490_v0  ;;  %2088 = vmatprep.mubr.bf16.mxu0 %v15799_v26 }
 0x381   : > { %1955 = vmatprep.mubr.bf16.mxu1 %v15799_v26 }
 0x387   : > { %8422 = vmatmul.mubr.msk.bf16.gmra.mrb[120].mxu0 %vm1377_vm3, %v12424_v1 }
 0x388   : > { %8411 = vmatmul.mubr.msk.bf16.gmra.mrb[80].mxu1 %vm1377_vm3, %v12512_v3  ;;  %2098 = vmatprep.mubr.bf16.mxu0 %v15799_v26 }
 0x389   : > { %1965 = vmatprep.mubr.bf16.mxu1 %v15799_v26 }
 0x38f   : > { %8423 = vmatmul.mubr.msk.bf16.gmra.mrb[124].mxu0 %vm1377_vm3, %v12421_v60 }
 0x390   : > { %8412 = vmatmul.mubr.msk.bf16.gmra.mrb[84].mxu1 %vm1377_vm3, %v12510_v12  ;;  %2108 = vmatprep.mubr.bf16.mxu0 %v15799_v26 }
 0x391   : > { %1975 = vmatprep.mubr.bf16.mxu1 %v15799_v26 }
 0x397   : > { %8424 = vmatmul.mubr.msk.bf16.gmra.mrb[128].mxu0 %vm1377_vm3, %v12459_v54 }
 0x398   : > { %8413 = vmatmul.mubr.msk.bf16.gmra.mrb[88].mxu1 %vm1377_vm3, %v12528_v45  ;;  %2118 = vmatprep.mubr.bf16.mxu0 %v15799_v26 }
 0x399   : > { %1985 = vmatprep.mubr.bf16.mxu1 %v15799_v26 }
 0x39f   : > { %8425 = vmatmul.mubr.msk.bf16.gmra.mrb[132].mxu0 %vm1377_vm3, %v12456_v46 }
 0x3a0   : > { %8414 = vmatmul.mubr.msk.bf16.gmra.mrb[92].mxu1 %vm1377_vm3, %v12526_v4  ;;  %2128 = vmatprep.mubr.bf16.mxu0 %v15799_v26 }
 0x3a1   : > { %1995 = vmatprep.mubr.bf16.mxu1 %v15799_v26 }
 0x3a7   : > { %8426 = vmatmul.mubr.msk.bf16.gmra.mrb[136].mxu0 %vm1377_vm3, %v12493_v41 }
 0x3a8   : > { %8415 = vmatmul.mubr.msk.bf16.gmra.mrb[96].mxu1 %vm1377_vm3, %v12544_v62  ;;  %2138 = vmatprep.mubr.bf16.mxu0 %v15799_v26 }
 0x3a9   : > { %2005 = vmatprep.mubr.bf16.mxu1 %v15799_v26 }
 0x3aa   : > { %v1491_v10 = vpop.f32.mrb[32].mxu0 }
 0x3ab   : > { %v12700_v23 = vadd.f32 %v1491_v10, %v12689_v19  ;;  %v1493_v39 = vpop.f32.mrb[33].mxu0 }
 0x3ac   : > { %v12703_v21 = vadd.f32 %v1493_v39, %v12695_v33  ;;  %v1495_v22 = vpop.f32.mrb[34].mxu0 }
 0x3ad   : > { %v2422_v24 = vsub.f32 0.0, %v12700_v23  ;;  %v12707_v30 = vadd.f32 %v1495_v22, %v12689_v19  ;;  %v1497_v25 = vpop.f32.mrb[35].mxu0 }
 0x3ae   : > { %v2423_v32 = vsub.f32 0.0, %v12703_v21  ;;  %v12711_v34 = vadd.f32 %v1497_v25, %v12695_v33 }
 0x3af   : > { %v2742_v38 = vmul.f32 1.442695, %v2422_v24  ;;  %v2432_v37 = vsub.f32 0.0, %v12707_v30  ;;  %8427 = vmatmul.mubr.msk.bf16.gmra.mrb[140].mxu0 %vm1377_vm3, %v12490_v0 }
 0x3b0   : > { %v2744_v40 = vmul.f32 1.442695, %v2423_v32  ;;  %v2433_v44 = vsub.f32 0.0, %v12711_v34  ;;  %8416 = vmatmul.mubr.msk.bf16.gmra.mrb[100].mxu1 %vm1377_vm3, %v12540_v52  ;;  %2148 = vmatprep.mubr.bf16.mxu0 %v15799_v26 }
 0x3b1   : > { %9411 = vpow2.f32 %v2742_v38  ;;  %v2762_v43 = vmul.f32 1.442695, %v2432_v37  ;;  %2015 = vmatprep.mubr.bf16.mxu1 %v15799_v26 }
 0x3b2   : > { %9413 = vpow2.f32 %v2744_v40  ;;  %v2764_v9 = vmul.f32 1.442695, %v2433_v44  ;;  %v1501_v51 = vpop.f32.mrb[36].mxu0 }
 0x3b3   : > { %9415 = vpow2.f32 %v2762_v43  ;;  %v12722_v7 = vadd.f32 %v1501_v51, %v12689_v19  ;;  %v1503_v57 = vpop.f32.mrb[37].mxu0 }
 0x3b4   : > { %9417 = vpow2.f32 %v2764_v9  ;;  %v12725_v31 = vadd.f32 %v1503_v57, %v12695_v33  ;;  %v1505_v48 = vpop.f32.mrb[38].mxu0 }
 0x3b5   : > { %v2442_v50 = vsub.f32 0.0, %v12722_v7  ;;  %v12729_v47 = vadd.f32 %v1505_v48, %v12689_v19  ;;  %v1507_v14 = vpop.f32.mrb[39].mxu0 }
 0x3b6   : > { %v2443_v56 = vsub.f32 0.0, %v12725_v31  ;;  %v12733_v58 = vadd.f32 %v1507_v14, %v12695_v33 }
 0x3b7   : > { %v2782_v59 = vmul.f32 1.442695, %v2442_v50  ;;  %v2452_v27 = vsub.f32 0.0, %v12729_v47  ;;  %8428 = vmatmul.mubr.msk.bf16.gmra.mrb[144].mxu0 %vm1377_vm3, %v12512_v3 }
 0x3b8   : > { %v2784_v42 = vmul.f32 1.442695, %v2443_v56  ;;  %v2453_v63 = vsub.f32 0.0, %v12733_v58  ;;  %8417 = vmatmul.mubr.msk.bf16.gmra.mrb[104].mxu1 %vm1377_vm3, %v12558_v5  ;;  %2158 = vmatprep.mubr.bf16.mxu0 %v15799_v26 }
 0x3b9   : > { %9419 = vpow2.f32 %v2782_v59  ;;  %v2802_v61 = vmul.f32 1.442695, %v2452_v27  ;;  %2025 = vmatprep.mubr.bf16.mxu1 %v15799_v26 }
 0x3ba   : > { %9421 = vpow2.f32 %v2784_v42  ;;  %v2804_v29 = vmul.f32 1.442695, %v2453_v63  ;;  %v1511_v49 = vpop.f32.mrb[40].mxu0 }
 0x3bb   : > { %v9412_v55 = vpop.eup %9411  ;;  %9423 = vpow2.f32 %v2802_v61  ;;  %v12747_v15 = vadd.f32 %v1511_v49, %v12689_v19  ;;  %v1531_v20 = vpop.f32.mrb[0].mxu1 }
 0x3bc   : > { %v1513_v28 = vpop.f32.mrb[41].mxu0  ;;  %v9414_v10 = vpop.eup %9413  ;;  %v3382_v39 = vadd.f32 1.0, %v9412_v55  ;;  %9425 = vpow2.f32 %v2804_v29  ;;  %v12757_v22 = vadd.f32 %v1531_v20, %v12689_v19 }
 0x3bd   : > { %v12760_v24 = vadd.f32 %v1513_v28, %v12695_v33  ;;  %v1533_v25 = vpop.f32.mrb[1].mxu1  ;;  %v1515_v32 = vpop.f32.mrb[42].mxu0  ;;  %v3383_v37 = vadd.f32 1.0, %v9414_v10  ;;  %v2462_v40 = vsub.f32 0.0, %v12747_v15 }
 0x3be   : > { %v9416_v38 = vpop.eup %9415  ;;  %v12764_v44 = vadd.f32 %v1533_v25, %v12695_v33  ;;  %v12767_v43 = vadd.f32 %v1515_v32, %v12689_v19  ;;  %v1535_v9 = vpop.f32.mrb[2].mxu1  ;;  %9427 = vrcp.f32 %v3382_v39  ;;  %v2502_v50 = vsub.f32 0.0, %v12757_v22 }
 0x3bf   : > { %v1517_v51 = vpop.f32.mrb[43].mxu0  ;;  %v9418_v57 = vpop.eup %9417  ;;  %v3392_v48 = vadd.f32 1.0, %v9416_v38  ;;  %v2463_v14 = vsub.f32 0.0, %v12760_v24  ;;  %9429 = vrcp.f32 %v3383_v37  ;;  %v2822_v27 = vmul.f32 1.442695, %v2462_v40  ;;  %8429 = vmatmul.mubr.msk.bf16.gmra.mrb[148].mxu0 %vm1377_vm3, %v12510_v12 }
 0x3c0   : > { %v1537_v56 = vpop.f32.mrb[3].mxu1  ;;  %v3393_v59 = vadd.f32 1.0, %v9418_v57  ;;  %v2503_v42 = vsub.f32 0.0, %v12764_v44  ;;  %v2902_v63 = vmul.f32 1.442695, %v2502_v50  ;;  %v2472_v29 = vsub.f32 0.0, %v12767_v43  ;;  %8418 = vmatmul.mubr.msk.bf16.gmra.mrb[108].mxu1 %vm1377_vm3, %v12554_v2  ;;  %2168 = vmatprep.mubr.bf16.mxu0 %v15799_v26 }
 0x3c1   : > { %9431 = vrcp.f32 %v3392_v48  ;;  %v2824_v61 = vmul.f32 1.442695, %v2463_v14  ;;  %v12779_v55 = vadd.f32 %v1535_v9, %v12689_v19  ;;  %v12782_v20 = vadd.f32 %v1517_v51, %v12695_v33  ;;  %2261 = vmatprep.mubr.bf16.mxu1 %v15799_v26 }
 0x3c2   : > { %9433 = vrcp.f32 %v3393_v59  ;;  %v2904_v49 = vmul.f32 1.442695, %v2503_v42  ;;  %v2842_v28 = vmul.f32 1.442695, %v2472_v29  ;;  %v12786_v10 = vadd.f32 %v1537_v56, %v12695_v33  ;;  %v1521_v39 = vpop.f32.mrb[44].mxu0 }
 0x3c3   : > { %9435 = vpow2.f32 %v2822_v27  ;;  %v12790_v25 = vrot.slane %v12680_v16, %v12754_v6  ;;  %v9420_v32 = vpop.eup %9419  ;;  %v2512_v38 = vsub.f32 0.0, %v12779_v55  ;;  %v2473_v37 = vsub.f32 0.0, %v12782_v20  ;;  %v1541_v9 = vpop.f32.mrb[4].mxu1 }
 0x3c4   : > { %9437 = vpow2.f32 %v2902_v63  ;;  %v12795_v40 = vadd.f32 %v1521_v39, %v12689_v19  ;;  %v1523_v51 = vpop.f32.mrb[45].mxu0  ;;  %v9422_v57 = vpop.eup %9421  ;;  %v3402_v48 = vadd.f32 1.0, %v9420_v32  ;;  %v2513_v50 = vsub.f32 0.0, %v12786_v10 }
 0x3c5   : > { %9439 = vpow2.f32 %v2824_v61  ;;  %v12799_v14 = vadd.f32 %v1541_v9, %v12689_v19  ;;  %v1543_v16 = vpop.f32.mrb[5].mxu1  ;;  %v1525_v56 = vpop.f32.mrb[46].mxu0  ;;  %v3403_v27 = vadd.f32 1.0, %v9422_v57  ;;  %v2922_v42 = vmul.f32 1.442695, %v2512_v38 }
 0x3c6   : > { %v9424_v59 = vpop.eup %9423  ;;  %9441 = vpow2.f32 %v2904_v49  ;;  %v2844_v63 = vmul.f32 1.442695, %v2473_v37  ;;  %v1545_v29 = vpop.f32.mrb[6].mxu1  ;;  %v2924_v26 = vmul.f32 1.442695, %v2513_v50  ;;  %v2482_v32 = vsub.f32 0.0, %v12795_v40 }
 0x3c7   : > { %v9426_v39 = vpop.eup %9425  ;;  %9443 = vrcp.f32 %v3402_v48  ;;  %v3412_v8 = vadd.f32 1.0, %v9424_v59  ;;  %v1527_v61 = vpop.f32.mrb[47].mxu0  ;;  %v2522_v9 = vsub.f32 0.0, %v12799_v14  ;;  %v12804_v17 = vadd.f32 %v1523_v51, %v12695_v33  ;;  %8430 = vmatmul.mubr.msk.bf16.gmra.mrb[152].mxu0 %vm1377_vm3, %v12528_v45 }
 0x3c8   : > { %v1547_v35 = vpop.f32.mrb[7].mxu1  ;;  %9445 = vrcp.f32 %v3403_v27  ;;  %v3413_v6 = vadd.f32 1.0, %v9426_v39  ;;  %v9428_v49 = vpop.eup %9427  ;;  %v2862_v38 = vmul.f32 1.442695, %v2482_v32  ;;  %v12809_v37 = vadd.f32 %v1543_v16, %v12695_v33  ;;  %8437 = vmatmul.mubr.msk.bf16.vlgmr.msra.gmra.mrb[112].mxu1 %vm1377_vm3, %v12395_v18 }
 0x3c9   : > { %9447 = vrcp.f32 %v3412_v8  ;;  %v12812_v57 = vadd.f32 %v1525_v56, %v12689_v19  ;;  %v15911_v48 = vmov 0   ;;  %v9430_v50 = vpop.eup %9429  ;;  %v4342_v51 = vmul.f32 %v9428_v49, %v12700_v23 }
 0x3ca   : > { %2178 = vmatprep.mubr.bf16.mxu0 %v15911_v48  ;;  %9449 = vrcp.f32 %v3413_v6  ;;  %v12818_v59 = vmul.f32 1.442695, %v2522_v9  ;;  %v2483_v8 = vsub.f32 0.0, %v12804_v17  ;;  %2271 = vmatprep.mubr.bf16.mxu1 %v15911_v48  ;;  %v4343_v27 = vmul.f32 %v9430_v50, %v12703_v21  ;;  %v1684_v39 = vpop.f32.mrb[48].mxu0 }
 0x3cb   : > { %v9432_v16 = vpop.eup %9431  ;;  %9451 = vpow2.f32 %v2842_v28  ;;  %v2523_v56 = vsub.f32 0.0, %v12809_v37  ;;  %v2492_v18 = vsub.f32 0.0, %v12812_v57  ;;  %v12827_v6 = vadd.f32 %v1545_v29, %v12689_v19  ;;  %v1551_v9 = vpop.f32.mrb[8].mxu1 }
 0x3cc   : > { %v9434_v32 = vpop.eup %9433  ;;  %v4352_v36 = vmul.f32 %v9432_v16, %v12707_v30  ;;  %9453 = vpow2.f32 %v2922_v42  ;;  %v2864_v23 = vmul.f32 1.442695, %v2483_v8  ;;  %v12829_v49 = vpop.f32.mrb[49].mxu0 }
 0x3cd   : > { %v9436_v11 = vpop.eup %9435  ;;  %v4353_v21 = vmul.f32 %v9434_v32, %v12711_v34  ;;  %9455 = vpow2.f32 %v2844_v63  ;;  %v2944_v28 = vmul.f32 1.442695, %v2523_v56  ;;  %v12832_v50 = vmul.f32 1.442695, %v2492_v18  ;;  %v12834_v45 = vpop.f32.mrb[9].mxu1 }
 0x3ce   : > { %v12836_v12 = vpop.f32.mrb[50].mxu0  ;;  %v9438_v30 = vpop.eup %9437  ;;  %v4664_v42 = vadd.f32 %v4352_v36, %v4342_v51  ;;  %v3422_v8 = vadd.f32 1.0, %v9436_v11  ;;  %9457 = vpow2.f32 %v2924_v26  ;;  %v2532_v29 = vsub.f32 0.0, %v12827_v6 }
 0x3cf   : > { %v12839_v16 = vpop.f32.mrb[10].mxu1  ;;  %v12841_v3 = vpop.f32.mrb[51].mxu0  ;;  %v4701_v34 = vadd.f32 %v4353_v21, %v4343_v27  ;;  %v3462_v63 = vadd.f32 1.0, %v9438_v30  ;;  %9459 = vpow2.f32 %v2862_v38  ;;  %v12844_v56 = vadd.f32 %v1527_v61, %v12695_v33  ;;  %8431 = vmatmul.mubr.msk.bf16.gmra.mrb[156].mxu0 %vm1377_vm3, %v12526_v4 }
 0x3d0   : > { %v9440_v0 = vpop.eup %9439  ;;  %v12846_v18 = vpop.f32.mrb[11].mxu1  ;;  %9461 = vrcp.f32 %v3422_v8  ;;  %v12848_v11 = vmul.f32 1.442695, %v2532_v29  ;;  %v12851_v26 = vadd.f32 %v1547_v35, %v12695_v33  ;;  %v12857_v61 = vadd.f32 %v1551_v9, %v12689_v19  ;;  %8438 = vmatmul.mubr.msk.bf16.gmra.mrb[116].mxu1 %vm1377_vm3, %v12392_v13  ;;  %2188 = vmatprep.mubr.bf16.mxu0 %v15911_v48 }
 0x3d1   : > { %v9442_v32 = vpop.eup %9441  ;;  %v3423_v36 = vadd.f32 1.0, %v9440_v0  ;;  %9463 = vrcp.f32 %v3462_v63  ;;  %v2493_v38 = vsub.f32 0.0, %v12844_v56  ;;  %v12865_v30 = vadd.f32 %v1684_v39, %v12751_v53  ;;  %2281 = vmatprep.mubr.bf16.mxu1 %v15911_v48 }
 0x3d2   : > { %v9444_v51 = vpop.eup %9443  ;;  %v3463_v27 = vadd.f32 1.0, %v9442_v32  ;;  %15912 = vst [vmem:[#allocation58_spill] sm:$0xff] %v12857_v61  ;;  %v2533_v21 = vsub.f32 0.0, %v12851_v26  ;;  %v2542_v13 = vsub.f32 0.0, %v12857_v61  ;;  %v12872_v63 = vpop.f32.mrb[52].mxu0 }
 0x3d3   : > { %v9446_v0 = vpop.eup %9445  ;;  %v4362_v35 = vmul.f32 %v9444_v51, %v12722_v7  ;;  %9465 = vrcp.f32 %v3423_v36  ;;  %v12869_v29 = vmul.f32 1.442695, %v2493_v38  ;;  %v12878_v51 = vpop.f32.mrb[12].mxu1 }
 0x3d4   : > { %v9448_v8 = vpop.eup %9447  ;;  %v4363_v9 = vmul.f32 %v9446_v0, %v12725_v31  ;;  %9467 = vrcp.f32 %v3463_v27  ;;  %v12876_v39 = vmul.f32 1.442695, %v2533_v21  ;;  %v12880_v4 = vpop.f32.mrb[53].mxu0  ;;  %v12883_v0 = vmul.f32 1.442695, %v2542_v13 }
 0x3d5   : > { %v9450_v32 = vpop.eup %9449  ;;  %v4665_v7 = vadd.f32 %v4664_v42, %v4362_v35  ;;  %v4372_v36 = vmul.f32 %v9448_v8, %v12729_v47  ;;  %9469 = vpow2.f32 %v12818_v59  ;;  %v12885_v41 = vpop.f32.mrb[13].mxu1  ;;  %v2424_v21 = vsub.f32 0.0, %v12865_v30 }
 0x3d6   : > { %v9452_v31 = vpop.eup %9451  ;;  %v4702_v27 = vadd.f32 %v4701_v34, %v4363_v9  ;;  %v4373_v38 = vmul.f32 %v9450_v32, %v12733_v58  ;;  %9471 = vpow2.f32 %v2864_v23  ;;  %v12887_v42 = vpop.f32.mrb[54].mxu0  ;;  %v12897_v23 = vadd.f32 %v12834_v45, %v12695_v33 }
 0x3d7   : > { %v9454_v47 = vpop.eup %9453  ;;  %v4666_v35 = vadd.f32 %v4665_v7, %v4372_v36  ;;  %v3432_v59 = vadd.f32 1.0, %v9452_v31  ;;  %9473 = vpow2.f32 %v2944_v28  ;;  %v12890_v8 = vpop.f32.mrb[14].mxu1  ;;  %v12901_v7 = vmul.f32 1.442695, %v2424_v21  ;;  %8432 = vmatmul.mubr.msk.bf16.gmra.mrb[160].mxu0 %vm1377_vm3, %v12544_v62 }
 0x3d8   : > { %v12892_v61 = vpop.f32.mrb[55].mxu0  ;;  %v9456_v34 = vpop.eup %9455  ;;  %v4703_v9 = vadd.f32 %v4702_v27, %v4373_v38  ;;  %v3472_v58 = vadd.f32 1.0, %v9454_v47  ;;  %9475 = vpow2.f32 %v12832_v50  ;;  %v12905_v36 = vadd.f32 %v12829_v49, %v12790_v25  ;;  %8439 = vmatmul.mubr.msk.bf16.gmra.mrb[120].mxu1 %vm1377_vm3, %v12424_v1  ;;  %2198 = vmatprep.mubr.bf16.mxu0 %v15911_v48 }
 0x3d9   : > { %v12899_v13 = vpop.f32.mrb[15].mxu1  ;;  %v9458_v32 = vpop.eup %9457  ;;  %9477 = vrcp.f32 %v3432_v59  ;;  %v3433_v28 = vadd.f32 1.0, %v9456_v34  ;;  %v2543_v45 = vsub.f32 0.0, %v12897_v23  ;;  %v12912_v27 = vadd.f32 %v12839_v16, %v12689_v19  ;;  %2291 = vmatprep.mubr.bf16.mxu1 %v15911_v48 }
 0x3da   : > { %15913 = vst [vmem:[#allocation59_spill] sm:$0xff] %v12905_v36  ;;  %v9460_v31 = vpop.eup %9459  ;;  %9479 = vrcp.f32 %v3472_v58  ;;  %v3473_v50 = vadd.f32 1.0, %v9458_v32  ;;  %v2425_v47 = vsub.f32 0.0, %v12905_v36  ;;  %v12920_v59 = vadd.f32 %v12836_v12, %v12751_v53  ;;  %v12927_v58 = vpop.f32.mrb[56].mxu0 }
 0x3db   : > { %15914 = vst [vmem:[#allocation60_spill] sm:$0xff] %v12912_v27  ;;  %v9462_v38 = vpop.eup %9461  ;;  %9481 = vrcp.f32 %v3433_v28  ;;  %v3442_v49 = vadd.f32 1.0, %v9460_v31  ;;  %v12924_v34 = vmul.f32 1.442695, %v2543_v45  ;;  %v2552_v1 = vsub.f32 0.0, %v12912_v27  ;;  %v12935_v62 = vpop.f32.mrb[16].mxu1 }
 0x3dc   : > { %15915 = vst [vmem:[#allocation61_spill] sm:$0xff] %v12920_v59  ;;  %v9464_v21 = vpop.eup %9463  ;;  %v4382_v16 = vmul.f32 %v9462_v38, %v12747_v15  ;;  %9483 = vrcp.f32 %v3473_v50  ;;  %v12932_v31 = vmul.f32 1.442695, %v2425_v47  ;;  %v2434_v12 = vsub.f32 0.0, %v12920_v59  ;;  %v12937_v36 = vpop.f32.mrb[57].mxu0 }
 0x3dd   : > { %v9466_v32 = vpop.eup %9465  ;;  %v12930_v28 = vmul.f32 %v9464_v21, %v12757_v22  ;;  %9485 = vrcp.f32 %v3442_v49  ;;  %v12941_v38 = vmul.f32 1.442695, %v2552_v1  ;;  %v12943_v27 = vpop.f32.mrb[17].mxu1  ;;  %v12972_v59 = vadd.f32 %v12878_v51, %v12689_v19 }
 0x3de   : > { %v9468_v15 = vpop.eup %9467  ;;  %v4667_v50 = vadd.f32 %v4666_v35, %v4382_v16  ;;  %v4383_v45 = vmul.f32 %v9466_v32, %v12760_v24  ;;  %9487 = vpow2.f32 %v12848_v11  ;;  %v12945_v22 = vpop.f32.mrb[58].mxu0  ;;  %v12951_v21 = vmul.f32 1.442695, %v2434_v12 }
 0x3df   : > { %v9470_v49 = vpop.eup %9469  ;;  %v12948_v47 = vmul.f32 %v9468_v15, %v12764_v44  ;;  %9489 = vpow2.f32 %v12869_v29  ;;  %v12955_v35 = vadd.f32 %v12846_v18, %v12695_v33  ;;  %v12957_v24 = vpop.f32.mrb[18].mxu1  ;;  %v12964_v44 = vadd.f32 %v12841_v3, %v12790_v25  ;;  %15917 = vst [vmem:[#allocation63_spill] sm:$0xff] %v12972_v59  ;;  %8433 = vmatmul.mubr.msk.bf16.gmra.mrb[164].mxu0 %vm1377_vm3, %v12540_v52 }
 0x3e0   : > { %v12959_v11 = vpop.f32.mrb[59].mxu0  ;;  %v9472_v16 = vpop.eup %9471  ;;  %v4704_v1 = vadd.f32 %v4703_v9, %v4383_v45  ;;  %v3482_v32 = vadd.f32 1.0, %v9470_v49  ;;  %9491 = vpow2.f32 %v12876_v39  ;;  %v12979_v45 = vadd.f32 %v12872_v63, %v12751_v53  ;;  %8440 = vmatmul.mubr.msk.bf16.gmra.mrb[124].mxu1 %vm1377_vm3, %v12421_v60  ;;  %2208 = vmatprep.mubr.bf16.mxu0 %v15911_v48 }
 0x3e1   : > { %15916 = vst [vmem:[#allocation62_spill] sm:$0xff] %v12964_v44  ;;  %v12966_v29 = vpop.f32.mrb[19].mxu1  ;;  %v9474_v12 = vpop.eup %9473  ;;  %v3443_v15 = vadd.f32 1.0, %v9472_v16  ;;  %9493 = vpow2.f32 %v12883_v0  ;;  %v2553_v18 = vsub.f32 0.0, %v12955_v35  ;;  %v2435_v3 = vsub.f32 0.0, %v12964_v44  ;;  %2301 = vmatprep.mubr.bf16.mxu1 %v15911_v48 }
 0x3e2   : > { %v9476_v39 = vpop.eup %9475  ;;  %9495 = vrcp.f32 %v3482_v32  ;;  %v3483_v9 = vadd.f32 1.0, %v9474_v12  ;;  %15918 = vst [vmem:[#allocation64_spill] sm:$0xff] %v12979_v45  ;;  %v2562_v16 = vsub.f32 0.0, %v12972_v59  ;;  %v2444_v52 = vsub.f32 0.0, %v12979_v45  ;;  %v12992_v60 = vpop.f32.mrb[60].mxu0 }
 0x3e3   : > { %v9478_v0 = vpop.eup %9477  ;;  %9497 = vrcp.f32 %v3443_v15  ;;  %v3452_v51 = vadd.f32 1.0, %v9476_v39  ;;  %v12984_v49 = vmul.f32 1.442695, %v2553_v18  ;;  %v12989_v63 = vmul.f32 1.442695, %v2435_v3  ;;  %v13003_v59 = vpop.f32.mrb[20].mxu1 }
 0x3e4   : > { %v9480_v32 = vpop.eup %9479  ;;  %v4392_v12 = vmul.f32 %v9478_v0, %v12767_v43  ;;  %9499 = vrcp.f32 %v3483_v9  ;;  %v12997_v18 = vmul.f32 1.442695, %v2562_v16  ;;  %v13001_v39 = vadd.f32 %v12885_v41, %v12695_v33  ;;  %v13005_v43 = vpop.f32.mrb[61].mxu0 }
 0x3e5   : > { %v9482_v44 = vpop.eup %9481  ;;  %v12995_v15 = vmul.f32 %v9480_v32, %v12779_v55  ;;  %9501 = vrcp.f32 %v3452_v51  ;;  %v13009_v45 = vmul.f32 1.442695, %v2444_v52  ;;  %v13011_v55 = vpop.f32.mrb[21].mxu1 }
 0x3e6   : > { %15919 = vst [vmem:[#allocation65_spill] sm:$0xff] %v13001_v39  ;;  %v9484_v9 = vpop.eup %9483  ;;  %v4668_v3 = vadd.f32 %v4667_v50, %v4392_v12  ;;  %v4393_v0 = vmul.f32 %v9482_v44, %v12782_v20  ;;  %9503 = vpow2.f32 %v12901_v7  ;;  %v13013_v51 = vpop.f32.mrb[62].mxu0  ;;  %v2563_v32 = vsub.f32 0.0, %v13001_v39 }
 0x3e7   : > { %v9486_v16 = vpop.eup %9485  ;;  %v13016_v41 = vmul.f32 %v9484_v9, %v12786_v10  ;;  %9505 = vpow2.f32 %v12924_v34  ;;  %v13022_v50 = vadd.f32 %v12880_v4, %v12790_v25  ;;  %v13024_v20 = vpop.f32.mrb[22].mxu1  ;;  %v13032_v10 = vadd.f32 %v12890_v8, %v12689_v19  ;;  %8434 = vmatmul.mubr.msk.bf16.gmra.mrb[168].mxu0 %vm1377_vm3, %v12558_v5 }
 0x3e8   : > { %v13026_v52 = vpop.f32.mrb[63].mxu0  ;;  %v9488_v7 = vpop.eup %9487  ;;  %v4705_v44 = vadd.f32 %v4704_v1, %v4393_v0  ;;  %v4402_v12 = vmul.f32 %v9486_v16, %v12795_v40  ;;  %9507 = vpow2.f32 %v12932_v31  ;;  %v13037_v4 = vmul.f32 1.442695, %v2563_v32  ;;  %8441 = vmatmul.mubr.msk.bf16.gmra.mrb[128].mxu1 %vm1377_vm3, %v12459_v54  ;;  %2218 = vmatprep.mubr.bf16.mxu0 %v15911_v48 }
 0x3e9   : > { %15920 = vst [vmem:[#allocation66_spill] sm:$0xff] %v13026_v52  ;;  %v13034_v34 = vpop.f32.mrb[23].mxu1  ;;  %v9490_v9 = vpop.eup %9489  ;;  %v3492_v39 = vadd.f32 1.0, %v9488_v7  ;;  %9509 = vpow2.f32 %v12941_v38  ;;  %v2445_v52 = vsub.f32 0.0, %v13022_v50  ;;  %v2572_v8 = vsub.f32 0.0, %v13032_v10  ;;  %2311 = vmatprep.mubr.bf16.mxu1 %v15911_v48 }
 0x3ea   : > { %v9492_v40 = vpop.eup %9491  ;;  %v4669_v1 = vadd.f32 %v4668_v3, %v4402_v12  ;;  %v3453_v31 = vadd.f32 1.0, %v9490_v9  ;;  %9511 = vpow2.f32 %v12951_v21  ;;  %v13051_v32 = vadd.f32 %v12887_v42, %v12751_v53  ;;  %v13060_v12 = vpop.f32.mrb[64].mxu0 }
 0x3eb   : > { %v9494_v38 = vpop.eup %9493  ;;  %9513 = vrcp.f32 %v3492_v39  ;;  %v3493_v0 = vadd.f32 1.0, %v9492_v40  ;;  %v13047_v16 = vmul.f32 1.442695, %v2445_v52  ;;  %v13054_v7 = vmul.f32 1.442695, %v2572_v8  ;;  %v13070_v40 = vpop.f32.mrb[24].mxu1 }
 0x3ec   : > { %v9496_v3 = vpop.eup %9495  ;;  %9515 = vrcp.f32 %v3453_v31  ;;  %v3502_v21 = vadd.f32 1.0, %v9494_v38  ;;  %v13058_v54 = vadd.f32 %v12899_v13, %v12695_v33  ;;  %v2454_v42 = vsub.f32 0.0, %v13051_v32  ;;  %v13072_v31 = vpop.f32.mrb[65].mxu0 }
 0x3ed   : > { %v9498_v39 = vpop.eup %9497  ;;  %v13063_v52 = vmul.f32 %v9496_v3, %v12799_v14  ;;  %9517 = vrcp.f32 %v3493_v0  ;;  %v13068_v9 = vadd.f32 %v12892_v61, %v12790_v25  ;;  %15923 = vst [vmem:[#allocation69_spill] sm:$0xff] %v13072_v31  ;;  %v13078_v14 = vadd.f32 %v12935_v62, %v12689_v19  ;;  %v13080_v0 = vpop.f32.mrb[25].mxu1 }
 0x3ee   : > { %15921 = vst [vmem:[#allocation67_spill] sm:$0xff] %v13058_v54  ;;  %v9500_v8 = vpop.eup %9499  ;;  %v4403_v13 = vmul.f32 %v9498_v39, %v12804_v17  ;;  %9519 = vrcp.f32 %v3502_v21  ;;  %v2573_v38 = vsub.f32 0.0, %v13058_v54  ;;  %15924 = vst [vmem:[#allocation70_spill] sm:$0xff] %v13080_v0  ;;  %v13082_v3 = vpop.f32.mrb[66].mxu0  ;;  %v13088_v31 = vmul.f32 1.442695, %v2454_v42 }
 0x3ef   : > { %15922 = vst [vmem:[#allocation68_spill] sm:$0xff] %v13068_v9  ;;  %15925 = vst [vmem:[#allocation71_spill] sm:$0xff] %v13082_v3  ;;  %v9502_v61 = vpop.eup %9501  ;;  %v13085_v5 = vmul.f32 %v9500_v8, %v12809_v37  ;;  %9521 = vpow2.f32 %v12984_v49  ;;  %v2455_v17 = vsub.f32 0.0, %v13068_v9  ;;  %v13091_v21 = vpop.f32.mrb[26].mxu1  ;;  %v2582_v9 = vsub.f32 0.0, %v13078_v14  ;;  %8435 = vmatmul.mubr.msk.bf16.gmra.mrb[172].mxu0 %vm1377_vm3, %v12554_v2 }
 0x3f0   : > { %v13093_v39 = vpop.f32.mrb[67].mxu0  ;;  %v9504_v62 = vpop.eup %9503  ;;  %v4706_v54 = vadd.f32 %v4705_v44, %v4403_v13  ;;  %v4412_v0 = vmul.f32 %v9502_v61, %v12812_v57  ;;  %9523 = vpow2.f32 %v12989_v63  ;;  %v13097_v3 = vmul.f32 1.442695, %v2573_v38  ;;  %8442 = vmatmul.mubr.msk.bf16.gmra.mrb[132].mxu1 %vm1377_vm3, %v12456_v46 }
 0x3f1   : > { %v13099_v37 = vpop.f32.mrb[27].mxu1  ;;  %v9506_v8 = vpop.eup %9505  ;;  %v3384_v49 = vadd.f32 1.0, %v9504_v62  ;;  %9525 = vpow2.f32 %v12997_v18  ;;  %v13102_v42 = vmul.f32 1.442695, %v2455_v17  ;;  %v13110_v63 = vadd.f32 %v12927_v58, %v12751_v53  ;;  %2321 = vmatprep.mubr.bf16.mxu1 %v15911_v48 }
 0x3f2   : > { %v9508_v44 = vpop.eup %9507  ;;  %v4670_v13 = vadd.f32 %v4669_v1, %v4412_v0  ;;  %v3503_v57 = vadd.f32 1.0, %v9506_v8  ;;  %9527 = vpow2.f32 %v13009_v45  ;;  %v13114_v61 = vmul.f32 1.442695, %v2582_v9  ;;  %v13123_v62 = vpop.f32.mrb[68].mxu0 }
 0x3f3   : > { %v9510_v18 = vpop.eup %9509  ;;  %9529 = vrcp.f32 %v3384_v49  ;;  %v3385_v38 = vadd.f32 1.0, %v9508_v44  ;;  %v13118_v17 = vadd.f32 %v12943_v27, %v12695_v33  ;;  %v2464_v0 = vsub.f32 0.0, %v13110_v63  ;;  %15926 = vst [vmem:[#allocation72_spill] sm:$0xff] %v13123_v62  ;;  %v13130_v49 = vpop.f32.mrb[28].mxu1 }
 0x3f4   : > { %v9512_v1 = vpop.eup %9511  ;;  %v4671_v45 = vadd.f32 %v4670_v13, %v12930_v28  ;;  %9531 = vrcp.f32 %v3503_v57  ;;  %v3512_v58 = vadd.f32 1.0, %v9510_v18  ;;  %v13128_v27 = vadd.f32 %v12937_v36, %v12790_v25  ;;  %15927 = vst [vmem:[#allocation73_spill] sm:$0xff] %v13130_v49  ;;  %v13132_v44 = vpop.f32.mrb[69].mxu0 }
 0x3f5   : > { %v9514_v46 = vpop.eup %9513  ;;  %9533 = vrcp.f32 %v3385_v38  ;;  %v3394_v8 = vadd.f32 1.0, %v9512_v1  ;;  %v2583_v9 = vsub.f32 0.0, %v13118_v17  ;;  %15928 = vst [vmem:[#allocation74_spill] sm:$0xff] %v13132_v44  ;;  %v13136_v18 = vmul.f32 1.442695, %v2464_v0  ;;  %v13138_v38 = vpop.f32.mrb[29].mxu1 }
 0x3f6   : > { %v9516_v28 = vpop.eup %9515  ;;  %v4452_v13 = vmul.f32 %v9514_v46, %v12827_v6  ;;  %v4672_v57 = vadd.f32 %v4671_v45, %v12995_v15  ;;  %9535 = vrcp.f32 %v3512_v58  ;;  %v13140_v1 = vpop.f32.mrb[70].mxu0  ;;  %v2465_v44 = vsub.f32 0.0, %v13128_v27 }
 0x3f7   : > { %15929 = vst [vmem:[#allocation75_spill] sm:$0xff] %v13140_v1  ;;  %v9518_v2 = vpop.eup %9517  ;;  %v4413_v36 = vmul.f32 %v9516_v28, %v12844_v56  ;;  %9537 = vrcp.f32 %v3394_v8  ;;  %v13143_v62 = vmul.f32 1.442695, %v2583_v9  ;;  %v13146_v49 = vpop.f32.mrb[30].mxu1  ;;  %v13155_v0 = vadd.f32 %v12957_v24, %v12689_v19  ;;  %v15931_v9 = vld [vmem:[#allocation58_spill] sm:$0xff] }
 0x3f8   : > { %v13148_v6 = vpop.f32.mrb[71].mxu0  ;;  %v9520_v15 = vpop.eup %9519  ;;  %v4673_v45 = vadd.f32 %v4672_v57, %v13063_v52  ;;  %v4453_v58 = vmul.f32 %v9518_v2, %v12851_v26  ;;  %9539 = vpow2.f32 %v13037_v4  ;;  %v15932_v26 = vld [vmem:[#allocation44_spill] sm:$0xff] }
 0x3f9   : > { %15930 = vst [vmem:[#allocation76_spill] sm:$0xff] %v13148_v6  ;;  %v13157_v56 = vpop.f32.mrb[31].mxu1  ;;  %v9522_v46 = vpop.eup %9521  ;;  %v4707_v8 = vadd.f32 %v4706_v54, %v4413_v36  ;;  %v4462_v28 = vmul.f32 %v9520_v15, %v15931_v9  ;;  %9541 = vpow2.f32 %v13047_v16  ;;  %v13161_v6 = vmul.f32 1.442695, %v2465_v44  ;;  %8443 = vmatmul.mubr.msk.bf16.gmra.mrb[136].mxu1 %vm1377_vm3, %v15932_v26 }
 0x3fa   : > { %v9524_v1 = vpop.eup %9523  ;;  %v4674_v52 = vadd.f32 %v4673_v45, %v4452_v13  ;;  %v3513_v57 = vadd.f32 1.0, %v9522_v46  ;;  %9543 = vpow2.f32 %v13054_v7  ;;  %v2592_v2 = vsub.f32 0.0, %v13155_v0  ;;  %2331 = vmatprep.mubr.bf16.mxu1 %v15911_v48  ;;  %v13176_v15 = vpop.f32.mrb[72].mxu0 }
 0x3fb   : > { %v9526_v24 = vpop.eup %9525  ;;  %v4708_v4 = vadd.f32 %v4707_v8, %v12948_v47  ;;  %v3395_v54 = vadd.f32 1.0, %v9524_v1  ;;  %9545 = vpow2.f32 %v13088_v31  ;;  %v13171_v16 = vadd.f32 %v12945_v22, %v12751_v53  ;;  %v13180_v46 = vpop.f32.mrb[32].mxu1 }
 0x3fc   : > { %v9528_v44 = vpop.eup %9527  ;;  %v4675_v13 = vadd.f32 %v4674_v52, %v4462_v28  ;;  %9547 = vrcp.f32 %v3513_v57  ;;  %v3522_v7 = vadd.f32 1.0, %v9526_v24  ;;  %v13174_v36 = vmul.f32 1.442695, %v2592_v2  ;;  %v13182_v22 = vpop.f32.mrb[73].mxu0 }
 0x3fd   : > { %v9530_v45 = vpop.eup %9529  ;;  %v4709_v47 = vadd.f32 %v4708_v4, %v13016_v41  ;;  %9549 = vrcp.f32 %v3395_v54  ;;  %v3404_v1 = vadd.f32 1.0, %v9528_v44  ;;  %v2474_v31 = vsub.f32 0.0, %v13171_v16  ;;  %v13193_v41 = vpop.f32.mrb[33].mxu1  ;;  %v15936_v44 = vld [vmem:[#allocation59_spill] sm:$0xff] }
 0x3fe   : > { %v9532_v8 = vpop.eup %9531  ;;  %v4344_v9 = vmul.f32 %v9530_v45, %v12865_v30  ;;  %9551 = vrcp.f32 %v3522_v7  ;;  %v13187_v28 = vadd.f32 %v12966_v29, %v12695_v33  ;;  %v13191_v52 = vadd.f32 %v12959_v11, %v12790_v25  ;;  %v13195_v57 = vpop.f32.mrb[74].mxu0 }
 0x3ff   : > { %15933 = vst [vmem:[#allocation58_spill] sm:$0xff] %v13195_v57  ;;  %v9534_v2 = vpop.eup %9533  ;;  %v4710_v26 = vadd.f32 %v4709_v47, %v13085_v5  ;;  %v4463_v24 = vmul.f32 %v9532_v8, %v12897_v23  ;;  %9553 = vrcp.f32 %v3404_v1  ;;  %v13199_v30 = vmul.f32 1.442695, %v2474_v31  ;;  %v13201_v4 = vpop.f32.mrb[34].mxu1  ;;  %v15938_v47 = vld [vmem:[#allocation60_spill] sm:$0xff] }
 0x400   : > { %15934 = vst [vmem:[#allocation44_spill] sm:$0xff] %v13201_v4  ;;  %v13203_v29 = vpop.f32.mrb[75].mxu0  ;;  %v9536_v54 = vpop.eup %9535  ;;  %v4345_v11 = vmul.f32 %v9534_v2, %v15936_v44  ;;  %9555 = vpow2.f32 %v13097_v3  ;;  %v2593_v7 = vsub.f32 0.0, %v13187_v28  ;;  %v2475_v45 = vsub.f32 0.0, %v13191_v52  ;;  %v15939_v2 = vld [vmem:[#allocation61_spill] sm:$0xff]  ;;  %v15940_v4 = vld [vmem:[#allocation43_spill] sm:$0xff] }
 0x401   : > { %15935 = vst [vmem:[#allocation77_spill] sm:$0xff] %v13203_v29  ;;  %v13209_v57 = vpop.f32.mrb[35].mxu1  ;;  %v9538_v5 = vpop.eup %9537  ;;  %v4711_v23 = vadd.f32 %v4710_v26, %v4453_v58  ;;  %v4472_v1 = vmul.f32 %v9536_v54, %v15938_v47  ;;  %9557 = vpow2.f32 %v13102_v42  ;;  %v13215_v31 = vadd.f32 %v13003_v59, %v12689_v19  ;;  %8444 = vmatmul.mubr.msk.bf16.gmra.mrb[140].mxu1 %vm1377_vm3, %v15940_v4 }
 0x402   : > { %15937 = vst [vmem:[#allocation59_spill] sm:$0xff] %v13209_v57  ;;  %v9540_v8 = vpop.eup %9539  ;;  %v4354_v44 = vmul.f32 %v9538_v5, %v15939_v2  ;;  %9559 = vpow2.f32 %v13114_v61  ;;  %v3084_v3 = vmul.f32 1.442695, %v2593_v7  ;;  %v13219_v29 = vmul.f32 1.442695, %v2475_v45  ;;  %2341 = vmatprep.mubr.bf16.mxu1 %v15911_v48  ;;  %v13227_v7 = vpop.f32.mrb[76].mxu0 }
 0x403   : > { %v9542_v58 = vpop.eup %9541  ;;  %v4712_v26 = vadd.f32 %v4711_v23, %v4463_v24  ;;  %v4676_v54 = vadd.f32 %v4675_v13, %v4472_v1  ;;  %v3523_v47 = vadd.f32 1.0, %v9540_v8  ;;  %9561 = vpow2.f32 %v13136_v18  ;;  %15941 = vst [vmem:[#allocation60_spill] sm:$0xff] %v13227_v7  ;;  %v13237_v24 = vpop.f32.mrb[36].mxu1 }
 0x404   : > { %v9544_v59 = vpop.eup %9543  ;;  %v4738_v42 = vadd.f32 %v4354_v44, %v4344_v9  ;;  %v3405_v57 = vadd.f32 1.0, %v9542_v58  ;;  %9563 = vpow2.f32 %v13143_v62  ;;  %v2602_v61 = vsub.f32 0.0, %v13215_v31  ;;  %15942 = vst [vmem:[#allocation61_spill] sm:$0xff] %v13237_v24  ;;  %v13239_v9 = vpop.f32.mrb[77].mxu0 }
 0x405   : > { %v9546_v45 = vpop.eup %9545  ;;  %9565 = vrcp.f32 %v3523_v47  ;;  %v3532_v4 = vadd.f32 1.0, %v9544_v59  ;;  %v13231_v13 = vadd.f32 %v12992_v60, %v12751_v53  ;;  %v13235_v18 = vadd.f32 %v13011_v55, %v12695_v33  ;;  %15943 = vst [vmem:[#allocation43_spill] sm:$0xff] %v13239_v9  ;;  %v13247_v8 = vpop.f32.mrb[37].mxu1  ;;  %v15950_v9 = vld [vmem:[#allocation63_spill] sm:$0xff] }
 0x406   : > { %v9548_v62 = vpop.eup %9547  ;;  %9567 = vrcp.f32 %v3405_v57  ;;  %v3414_v5 = vadd.f32 1.0, %v9546_v45  ;;  %v13241_v23 = vmul.f32 1.442695, %v2602_v61  ;;  %v13245_v1 = vadd.f32 %v13005_v43, %v12790_v25  ;;  %15944 = vst [vmem:[#allocation78_spill] sm:$0xff] %v13247_v8  ;;  %v13249_v60 = vpop.f32.mrb[78].mxu0  ;;  %v15948_v61 = vld [vmem:[#allocation62_spill] sm:$0xff] }
 0x407   : > { %15945 = vst [vmem:[#allocation79_spill] sm:$0xff] %v13249_v60  ;;  %v9550_v2 = vpop.eup %9549  ;;  %v4473_v55 = vmul.f32 %v9548_v62, %v12955_v35  ;;  %9569 = vrcp.f32 %v3532_v4  ;;  %v2484_v44 = vsub.f32 0.0, %v13231_v13  ;;  %v2603_v58 = vsub.f32 0.0, %v13235_v18  ;;  %v13254_v57 = vpop.f32.mrb[38].mxu1 }
 0x408   : > { %15946 = vst [vmem:[#allocation80_spill] sm:$0xff] %v13254_v57  ;;  %v13256_v47 = vpop.f32.mrb[79].mxu0  ;;  %v9552_v59 = vpop.eup %9551  ;;  %v4355_v43 = vmul.f32 %v9550_v2, %v15948_v61  ;;  %9571 = vrcp.f32 %v3414_v5  ;;  %v2485_v45 = vsub.f32 0.0, %v13245_v1  ;;  %v13262_v60 = vadd.f32 %v13024_v20, %v12689_v19  ;;  %v15951_v2 = vld [vmem:[#allocation64_spill] sm:$0xff]  ;;  %v15952_v20 = vld [vmem:[#allocation46_spill] sm:$0xff] }
 0x409   : > { %15947 = vst [vmem:[#allocation81_spill] sm:$0xff] %v13256_v47  ;;  %v13264_v35 = vpop.f32.mrb[39].mxu1  ;;  %v9554_v4 = vpop.eup %9553  ;;  %v4713_v62 = vadd.f32 %v4712_v26, %v4473_v55  ;;  %v4482_v8 = vmul.f32 %v9552_v59, %v15950_v9  ;;  %9573 = vpow2.f32 %v13161_v6  ;;  %v13268_v57 = vmul.f32 1.442695, %v2484_v44  ;;  %8445 = vmatmul.mubr.msk.bf16.gmra.mrb[144].mxu1 %vm1377_vm3, %v15952_v20 }
 0x40a   : > { %15949 = vst [vmem:[#allocation62_spill] sm:$0xff] %v13264_v35  ;;  %v9556_v47 = vpop.eup %9555  ;;  %v4775_v7 = vadd.f32 %v4355_v43, %v4345_v11  ;;  %v4364_v5 = vmul.f32 %v9554_v4, %v15951_v2  ;;  %9575 = vpow2.f32 %v13174_v36  ;;  %v13272_v61 = vmul.f32 1.442695, %v2603_v58  ;;  %2351 = vmatprep.mubr.bf16.mxu1 %v15911_v48  ;;  %v13281_v44 = vpop.f32.mrb[80].mxu0 }
 0x40b   : > { %v9558_v35 = vpop.eup %9557  ;;  %v4677_v24 = vadd.f32 %v4676_v54, %v4482_v8  ;;  %v3533_v26 = vadd.f32 1.0, %v9556_v47  ;;  %9577 = vpow2.f32 %v13199_v30  ;;  %v13277_v9 = vmul.f32 1.442695, %v2485_v45  ;;  %15953 = vst [vmem:[#allocation63_spill] sm:$0xff] %v13281_v44  ;;  %v13291_v8 = vpop.f32.mrb[40].mxu1  ;;  %v15955_v45 = vld [vmem:[#allocation66_spill] sm:$0xff] }
 0x40c   : > { %v9560_v6 = vpop.eup %9559  ;;  %v4739_v11 = vadd.f32 %v4738_v42, %v4364_v5  ;;  %v3415_v55 = vadd.f32 1.0, %v9558_v35  ;;  %9579 = vpow2.f32 %v3084_v3  ;;  %v2612_v36 = vsub.f32 0.0, %v13262_v60  ;;  %v13293_v42 = vpop.f32.mrb[81].mxu0 }
 0x40d   : > { %v9562_v58 = vpop.eup %9561  ;;  %9581 = vrcp.f32 %v3533_v26  ;;  %v3542_v59 = vadd.f32 1.0, %v9560_v6  ;;  %v13285_v54 = vadd.f32 %v13013_v51, %v12751_v53  ;;  %v13289_v30 = vadd.f32 %v13034_v34, %v12695_v33  ;;  %15954 = vst [vmem:[#allocation64_spill] sm:$0xff] %v13293_v42  ;;  %v13301_v4 = vpop.f32.mrb[41].mxu1 }
 0x40e   : > { %v9564_v3 = vpop.eup %9563  ;;  %9583 = vrcp.f32 %v3415_v55  ;;  %v3424_v47 = vadd.f32 1.0, %v9562_v58  ;;  %v13295_v43 = vmul.f32 1.442695, %v2612_v36  ;;  %v13299_v35 = vadd.f32 %v15955_v45, %v12790_v25  ;;  %15956 = vst [vmem:[#allocation46_spill] sm:$0xff] %v13301_v4  ;;  %v13303_v51 = vpop.f32.mrb[82].mxu0  ;;  %v15960_v36 = vld [vmem:[#allocation65_spill] sm:$0xff] }
 0x40f   : > { %15957 = vst [vmem:[#allocation66_spill] sm:$0xff] %v13303_v51  ;;  %v9566_v2 = vpop.eup %9565  ;;  %9585 = vrcp.f32 %v3542_v59  ;;  %v3543_v34 = vadd.f32 1.0, %v9564_v3  ;;  %v2494_v5 = vsub.f32 0.0, %v13285_v54  ;;  %v2613_v20 = vsub.f32 0.0, %v13289_v30  ;;  %v13307_v26 = vpop.f32.mrb[42].mxu1 }
 0x410   : > { %15958 = vst [vmem:[#allocation82_spill] sm:$0xff] %v13307_v26  ;;  %v13309_v6 = vpop.f32.mrb[83].mxu0  ;;  %v9568_v55 = vpop.eup %9567  ;;  %v4483_v58 = vmul.f32 %v9566_v2, %v15960_v36  ;;  %9587 = vrcp.f32 %v3424_v47  ;;  %v2495_v45 = vsub.f32 0.0, %v13299_v35  ;;  %v13315_v51 = vadd.f32 %v13070_v40, %v12689_v19  ;;  %v15962_v40 = vld [vmem:[#allocation45_spill] sm:$0xff] }
 0x411   : > { %15959 = vst [vmem:[#allocation83_spill] sm:$0xff] %v13309_v6  ;;  %v13317_v59 = vpop.f32.mrb[43].mxu1  ;;  %v9570_v3 = vpop.eup %9569  ;;  %v4365_v42 = vmul.f32 %v9568_v55, %v13022_v50  ;;  %9589 = vrcp.f32 %v3543_v34  ;;  %v13320_v4 = vmul.f32 1.442695, %v2494_v5  ;;  %v13322_v26 = vmul.f32 1.442695, %v2613_v20  ;;  %8446 = vmatmul.mubr.msk.bf16.gmra.mrb[148].mxu1 %vm1377_vm3, %v15962_v40 }
 0x412   : > { %15961 = vst [vmem:[#allocation65_spill] sm:$0xff] %v13317_v59  ;;  %v9572_v6 = vpop.eup %9571  ;;  %v4714_v44 = vadd.f32 %v4713_v62, %v4483_v58  ;;  %v4492_v47 = vmul.f32 %v9570_v3, %v13032_v10  ;;  %9591 = vpow2.f32 %v13219_v29  ;;  %v13326_v2 = vmul.f32 1.442695, %v2495_v45  ;;  %2361 = vmatprep.mubr.bf16.mxu1 %v15911_v48  ;;  %v13339_v20 = vpop.f32.mrb[84].mxu0  ;;  %v15969_v40 = vld [vmem:[#allocation69_spill] sm:$0xff] }
 0x413   : > { %v9574_v36 = vpop.eup %9573  ;;  %v4776_v59 = vadd.f32 %v4775_v7, %v4365_v42  ;;  %v4374_v50 = vmul.f32 %v9572_v6, %v13051_v32  ;;  %9593 = vpow2.f32 %v13241_v23  ;;  %v2622_v34 = vsub.f32 0.0, %v13315_v51  ;;  %15963 = vst [vmem:[#allocation45_spill] sm:$0xff] %v13339_v20  ;;  %v13344_v6 = vpop.f32.mrb[44].mxu1 }
 0x414   : > { %v9576_v62 = vpop.eup %9575  ;;  %v4678_v5 = vadd.f32 %v4677_v24, %v4492_v47  ;;  %v3425_v10 = vadd.f32 1.0, %v9574_v36  ;;  %9595 = vpow2.f32 %v13268_v57  ;;  %v13337_v29 = vadd.f32 %v13060_v12, %v12751_v53  ;;  %15964 = vst [vmem:[#allocation84_spill] sm:$0xff] %v13344_v6  ;;  %v13346_v55 = vpop.f32.mrb[85].mxu0  ;;  %v15966_v12 = vld [vmem:[#allocation70_spill] sm:$0xff] }
 0x415   : > { %v9578_v7 = vpop.eup %9577  ;;  %v4740_v42 = vadd.f32 %v4739_v11, %v4374_v50  ;;  %v3552_v32 = vadd.f32 1.0, %v9576_v62  ;;  %9597 = vpow2.f32 %v13272_v61  ;;  %v13342_v23 = vmul.f32 1.442695, %v2622_v34  ;;  %15965 = vst [vmem:[#allocation85_spill] sm:$0xff] %v13346_v55  ;;  %v13353_v3 = vpop.f32.mrb[45].mxu1  ;;  %v15973_v55 = vld [vmem:[#allocation68_spill] sm:$0xff] }
 0x416   : > { %v9580_v24 = vpop.eup %9579  ;;  %9599 = vrcp.f32 %v3425_v10  ;;  %v3434_v57 = vadd.f32 1.0, %v9578_v7  ;;  %v2504_v58 = vsub.f32 0.0, %v13337_v29  ;;  %v13351_v45 = vadd.f32 %v15966_v12, %v12695_v33  ;;  %15967 = vst [vmem:[#allocation70_spill] sm:$0xff] %v13353_v3  ;;  %v13355_v11 = vpop.f32.mrb[86].mxu0  ;;  %v15972_v7 = vld [vmem:[#allocation67_spill] sm:$0xff] }
 0x417   : > { %15968 = vst [vmem:[#allocation86_spill] sm:$0xff] %v13355_v11  ;;  %v9582_v61 = vpop.eup %9581  ;;  %9601 = vrcp.f32 %v3552_v32  ;;  %v3553_v47 = vadd.f32 1.0, %v9580_v24  ;;  %v13359_v36 = vadd.f32 %v15969_v40, %v12790_v25  ;;  %v13363_v50 = vadd.f32 %v13091_v21, %v12689_v19  ;;  %v13365_v34 = vpop.f32.mrb[46].mxu1 }
 0x418   : > { %15970 = vst [vmem:[#allocation69_spill] sm:$0xff] %v13365_v34  ;;  %v13367_v62 = vpop.f32.mrb[87].mxu0  ;;  %v9584_v10 = vpop.eup %9583  ;;  %v4493_v12 = vmul.f32 %v9582_v61, %v15972_v7  ;;  %9603 = vrcp.f32 %v3434_v57  ;;  %v13370_v11 = vmul.f32 1.442695, %v2504_v58  ;;  %v2623_v32 = vsub.f32 0.0, %v13351_v45  ;;  %v15974_v58 = vld [vmem:[#allocation48_spill] sm:$0xff] }
 0x419   : > { %15971 = vst [vmem:[#allocation87_spill] sm:$0xff] %v13367_v62  ;;  %v13373_v24 = vpop.f32.mrb[47].mxu1  ;;  %v9586_v40 = vpop.eup %9585  ;;  %v4375_v3 = vmul.f32 %v9584_v10, %v15973_v55  ;;  %9605 = vrcp.f32 %v3553_v47  ;;  %v2505_v21 = vsub.f32 0.0, %v13359_v36  ;;  %v2632_v34 = vsub.f32 0.0, %v13363_v50  ;;  %8447 = vmatmul.mubr.msk.bf16.gmra.mrb[152].mxu1 %vm1377_vm3, %v15974_v58 }
 0x41a   : > { %v9588_v20 = vpop.eup %9587  ;;  %v4715_v62 = vadd.f32 %v4714_v44, %v4493_v12  ;;  %v4502_v6 = vmul.f32 %v9586_v40, %v13078_v14  ;;  %9607 = vpow2.f32 %v13277_v9  ;;  %v13380_v57 = vmul.f32 1.442695, %v2623_v32  ;;  %2371 = vmatprep.mubr.bf16.mxu1 %v15911_v48  ;;  %v13393_v12 = vpop.f32.mrb[88].mxu0 }
 0x41b   : > { %v9590_v61 = vpop.eup %9589  ;;  %v4777_v7 = vadd.f32 %v4776_v59, %v4375_v3  ;;  %v4384_v55 = vmul.f32 %v9588_v20, %v13110_v63  ;;  %9609 = vpow2.f32 %v13295_v43  ;;  %v13386_v47 = vmul.f32 1.442695, %v2505_v21  ;;  %v15975_v63 = vld [vmem:[#allocation71_spill] sm:$0xff]  ;;  %v13400_v20 = vpop.f32.mrb[48].mxu1 }
 0x41c   : > { %v9592_v44 = vpop.eup %9591  ;;  %v4679_v10 = vadd.f32 %v4678_v5, %v4502_v6  ;;  %v4503_v14 = vmul.f32 %v9590_v61, %v13118_v17  ;;  %9611 = vpow2.f32 %v13320_v4  ;;  %v13391_v9 = vmul.f32 1.442695, %v2632_v34  ;;  %v13402_v5 = vpop.f32.mrb[89].mxu0 }
 0x41d   : > { %v9594_v32 = vpop.eup %9593  ;;  %v4741_v59 = vadd.f32 %v4740_v42, %v4384_v55  ;;  %v3435_v3 = vadd.f32 1.0, %v9592_v44  ;;  %9613 = vpow2.f32 %v13322_v26  ;;  %v13398_v43 = vadd.f32 %v15975_v63, %v12751_v53  ;;  %v13409_v42 = vpop.f32.mrb[49].mxu1 }
 0x41e   : > { %v9596_v17 = vpop.eup %9595  ;;  %v4716_v6 = vadd.f32 %v4715_v62, %v4503_v14  ;;  %v3562_v4 = vadd.f32 1.0, %v9594_v32  ;;  %9615 = vpow2.f32 %v13326_v2  ;;  %v13407_v34 = vadd.f32 %v13099_v37, %v12695_v33  ;;  %15976 = vst [vmem:[#allocation67_spill] sm:$0xff] %v13409_v42  ;;  %v13411_v26 = vpop.f32.mrb[90].mxu0  ;;  %v15980_v14 = vld [vmem:[#allocation73_spill] sm:$0xff] }
 0x41f   : > { %15977 = vst [vmem:[#allocation68_spill] sm:$0xff] %v13411_v26  ;;  %v9598_v40 = vpop.eup %9597  ;;  %9617 = vrcp.f32 %v3435_v3  ;;  %v3444_v21 = vadd.f32 1.0, %v9596_v17  ;;  %v2514_v58 = vsub.f32 0.0, %v13398_v43  ;;  %v13416_v61 = vadd.f32 %v13093_v39, %v12790_v25  ;;  %v13418_v62 = vpop.f32.mrb[50].mxu1 }
 0x420   : > { %15978 = vst [vmem:[#allocation48_spill] sm:$0xff] %v13418_v62  ;;  %v13420_v2 = vpop.f32.mrb[91].mxu0  ;;  %v9600_v55 = vpop.eup %9599  ;;  %9619 = vrcp.f32 %v3562_v4  ;;  %v3563_v37 = vadd.f32 1.0, %v9598_v40  ;;  %v2633_v44 = vsub.f32 0.0, %v13407_v34  ;;  %v13425_v32 = vadd.f32 %v15980_v14, %v12689_v19  ;;  %v15982_v14 = vld [vmem:[#allocation47_spill] sm:$0xff] }
 0x421   : > { %15979 = vst [vmem:[#allocation71_spill] sm:$0xff] %v13420_v2  ;;  %v13427_v3 = vpop.f32.mrb[51].mxu1  ;;  %v9602_v63 = vpop.eup %9601  ;;  %v4385_v17 = vmul.f32 %v9600_v55, %v13128_v27  ;;  %9621 = vrcp.f32 %v3444_v21  ;;  %v13430_v39 = vmul.f32 1.442695, %v2514_v58  ;;  %v2515_v62 = vsub.f32 0.0, %v13416_v61  ;;  %8448 = vmatmul.mubr.msk.bf16.gmra.mrb[156].mxu1 %vm1377_vm3, %v15982_v14 }
 0x422   : > { %15981 = vst [vmem:[#allocation73_spill] sm:$0xff] %v13427_v3  ;;  %v9604_v2 = vpop.eup %9603  ;;  %v4512_v4 = vmul.f32 %v9602_v63, %v13155_v0  ;;  %9623 = vrcp.f32 %v3563_v37  ;;  %v13434_v40 = vmul.f32 1.442695, %v2633_v44  ;;  %v2642_v42 = vsub.f32 0.0, %v13425_v32  ;;  %2381 = vmatprep.mubr.bf16.mxu1 %v15911_v48  ;;  %v13448_v44 = vpop.f32.mrb[92].mxu0 }
 0x423   : > { %v9606_v3 = vpop.eup %9605  ;;  %v4778_v26 = vadd.f32 %v4777_v7, %v4385_v17  ;;  %v4394_v27 = vmul.f32 %v9604_v2, %v13171_v16  ;;  %9625 = vpow2.f32 %v13342_v23  ;;  %v13441_v21 = vmul.f32 1.442695, %v2515_v62  ;;  %v15983_v16 = vld [vmem:[#allocation72_spill] sm:$0xff]  ;;  %v13455_v62 = vpop.f32.mrb[52].mxu1 }
 0x424   : > { %v9608_v58 = vpop.eup %9607  ;;  %v4680_v0 = vadd.f32 %v4679_v10, %v4512_v4  ;;  %v4513_v55 = vmul.f32 %v9606_v3, %v13187_v28  ;;  %9627 = vpow2.f32 %v13370_v11  ;;  %v13446_v37 = vmul.f32 1.442695, %v2642_v42  ;;  %15984 = vst [vmem:[#allocation47_spill] sm:$0xff] %v13455_v62  ;;  %v13457_v10 = vpop.f32.mrb[93].mxu0 }
 0x425   : > { %v9610_v63 = vpop.eup %9609  ;;  %v4742_v7 = vadd.f32 %v4741_v59, %v4394_v27  ;;  %v3445_v17 = vadd.f32 1.0, %v9608_v58  ;;  %9629 = vpow2.f32 %v13380_v57  ;;  %v13453_v23 = vadd.f32 %v15983_v16, %v12751_v53  ;;  %15985 = vst [vmem:[#allocation72_spill] sm:$0xff] %v13457_v10  ;;  %v13464_v59 = vpop.f32.mrb[53].mxu1  ;;  %v15988_v27 = vld [vmem:[#allocation74_spill] sm:$0xff] }
 0x426   : > { %v9612_v28 = vpop.eup %9611  ;;  %v4717_v2 = vadd.f32 %v4716_v6, %v4513_v55  ;;  %v3572_v11 = vadd.f32 1.0, %v9610_v63  ;;  %9631 = vpow2.f32 %v13386_v47  ;;  %v13462_v42 = vadd.f32 %v13138_v38, %v12695_v33  ;;  %15986 = vst [vmem:[#allocation88_spill] sm:$0xff] %v13464_v59  ;;  %v13466_v57 = vpop.f32.mrb[94].mxu0  ;;  %v15992_v10 = vld [vmem:[#allocation50_spill] sm:$0xff] }
 0x427   : > { %15987 = vst [vmem:[#allocation89_spill] sm:$0xff] %v13466_v57  ;;  %v9614_v3 = vpop.eup %9613  ;;  %9633 = vrcp.f32 %v3445_v17  ;;  %v3454_v4 = vadd.f32 1.0, %v9612_v28  ;;  %v2524_v14 = vsub.f32 0.0, %v13453_v23  ;;  %v13471_v58 = vadd.f32 %v15988_v27, %v12790_v25  ;;  %v13473_v6 = vpop.f32.mrb[54].mxu1 }
 0x428   : > { %15989 = vst [vmem:[#allocation74_spill] sm:$0xff] %v13473_v6  ;;  %v13475_v47 = vpop.f32.mrb[95].mxu0  ;;  %v9616_v55 = vpop.eup %9615  ;;  %9635 = vrcp.f32 %v3572_v11  ;;  %v3573_v38 = vadd.f32 1.0, %v9614_v3  ;;  %v2643_v63 = vsub.f32 0.0, %v13462_v42  ;;  %v13480_v16 = vadd.f32 %v13146_v49, %v12689_v19 }
 0x429   : > { %15990 = vst [vmem:[#allocation90_spill] sm:$0xff] %v13475_v47  ;;  %v13482_v17 = vpop.f32.mrb[55].mxu1  ;;  %v9618_v28 = vpop.eup %9617  ;;  %9637 = vrcp.f32 %v3454_v4  ;;  %v3455_v57 = vadd.f32 1.0, %v9616_v55  ;;  %v13484_v27 = vmul.f32 1.442695, %v2524_v14  ;;  %v2525_v6 = vsub.f32 0.0, %v13471_v58  ;;  %8449 = vmatmul.mubr.msk.bf16.gmra.mrb[160].mxu1 %vm1377_vm3, %v15992_v10 }
 0x42a   : > { %15991 = vst [vmem:[#allocation91_spill] sm:$0xff] %v13482_v17  ;;  %v9620_v59 = vpop.eup %9619  ;;  %v4395_v47 = vmul.f32 %v9618_v28, %v13191_v52  ;;  %9639 = vrcp.f32 %v3573_v38  ;;  %v13488_v11 = vmul.f32 1.442695, %v2643_v63  ;;  %v2652_v3 = vsub.f32 0.0, %v13480_v16  ;;  %v15993_v14 = vld [vmem:[#allocation75_spill] sm:$0xff]  ;;  %2391 = vmatprep.mubr.bf16.mxu1 %v15911_v48  ;;  %v13505_v10 = vpop.f32.mrb[96].mxu0 }
 0x42b   : > { %v9622_v49 = vpop.eup %9621  ;;  %v4522_v17 = vmul.f32 %v9620_v59, %v13215_v31  ;;  %9641 = vrcp.f32 %v3455_v57  ;;  %v13494_v4 = vmul.f32 1.442695, %v2525_v6  ;;  %v13498_v55 = vadd.f32 %v15993_v14, %v12751_v53  ;;  %v13510_v14 = vpop.f32.mrb[56].mxu1 }
 0x42c   : > { %v9624_v52 = vpop.eup %9623  ;;  %v4779_v38 = vadd.f32 %v4778_v26, %v4395_v47  ;;  %v4404_v63 = vmul.f32 %v9622_v49, %v13231_v13  ;;  %9643 = vpow2.f32 %v13391_v9  ;;  %v13503_v28 = vmul.f32 1.442695, %v2652_v3  ;;  %v13512_v62 = vpop.f32.mrb[97].mxu0 }
 0x42d   : > { %v9626_v31 = vpop.eup %9625  ;;  %v4681_v59 = vadd.f32 %v4680_v0, %v4522_v17  ;;  %v4523_v57 = vmul.f32 %v9624_v52, %v13235_v18  ;;  %9645 = vpow2.f32 %v13430_v39  ;;  %v2534_v6 = vsub.f32 0.0, %v13498_v55  ;;  %15994 = vst [vmem:[#allocation50_spill] sm:$0xff] %v13512_v62  ;;  %v13519_v0 = vpop.f32.mrb[57].mxu1 }
 0x42e   : > { %v9628_v26 = vpop.eup %9627  ;;  %v4743_v13 = vadd.f32 %v4742_v7, %v4404_v63  ;;  %v3582_v47 = vadd.f32 1.0, %v9626_v31  ;;  %9647 = vpow2.f32 %v13434_v40  ;;  %v13517_v9 = vadd.f32 %v13157_v56, %v12695_v33  ;;  %15995 = vst [vmem:[#allocation75_spill] sm:$0xff] %v13519_v0  ;;  %v13521_v18 = vpop.f32.mrb[98].mxu0  ;;  %v15999_v31 = vld [vmem:[#allocation76_spill] sm:$0xff] }
 0x42f   : > { %15996 = vst [vmem:[#allocation92_spill] sm:$0xff] %v13521_v18  ;;  %v9630_v39 = vpop.eup %9629  ;;  %v4718_v17 = vadd.f32 %v4717_v2, %v4523_v57  ;;  %v3464_v3 = vadd.f32 1.0, %v9628_v26  ;;  %9649 = vpow2.f32 %v13441_v21  ;;  %v13524_v49 = vmul.f32 1.442695, %v2534_v6  ;;  %v13526_v52 = vpop.f32.mrb[58].mxu1 }
 0x430   : > { %15997 = vst [vmem:[#allocation93_spill] sm:$0xff] %v13526_v52  ;;  %v13528_v7 = vpop.f32.mrb[99].mxu0  ;;  %v9632_v40 = vpop.eup %9631  ;;  %9651 = vrcp.f32 %v3582_v47  ;;  %v3583_v63 = vadd.f32 1.0, %v9630_v39  ;;  %v2653_v56 = vsub.f32 0.0, %v13517_v9  ;;  %v13533_v0 = vadd.f32 %v15999_v31, %v12790_v25 }
 0x431   : > { %15998 = vst [vmem:[#allocation94_spill] sm:$0xff] %v13528_v7  ;;  %v13535_v18 = vpop.f32.mrb[59].mxu1  ;;  %v9634_v2 = vpop.eup %9633  ;;  %9653 = vrcp.f32 %v3464_v3  ;;  %v3465_v21 = vadd.f32 1.0, %v9632_v40  ;;  %v13539_v57 = vadd.f32 %v13180_v46, %v12689_v19  ;;  %v13543_v6 = vadd.f32 %v13176_v15, %v12751_v53 }
 0x432   : > { %16000 = vst [vmem:[#allocation76_spill] sm:$0xff] %v13535_v18  ;;  %v9636_v26 = vpop.eup %9635  ;;  %v4405_v47 = vmul.f32 %v9634_v2, %v13245_v1  ;;  %9655 = vrcp.f32 %v3583_v63  ;;  %v13546_v39 = vmul.f32 1.442695, %v2653_v56  ;;  %v2535_v31 = vsub.f32 0.0, %v13533_v0  ;;  %v16001_v18 = vld [vmem:[#allocation49_spill] sm:$0xff]  ;;  %v13559_v2 = vpop.f32.mrb[100].mxu0 }
 0x433   : > { %8450 = vmatmul.mubr.msk.bf16.gmra.mrb[164].mxu1 %vm1377_vm3, %v16001_v18  ;;  %v9638_v3 = vpop.eup %9637  ;;  %v4532_v40 = vmul.f32 %v9636_v26, %v13262_v60  ;;  %9657 = vrcp.f32 %v3465_v21  ;;  %v2662_v46 = vsub.f32 0.0, %v13539_v57  ;;  %v2544_v15 = vsub.f32 0.0, %v13543_v6  ;;  %v13563_v26 = vpop.f32.mrb[60].mxu1 }
 0x434   : > { %2401 = vmatprep.mubr.bf16.mxu1 %v15911_v48  ;;  %v9640_v7 = vpop.eup %9639  ;;  %v4780_v1 = vadd.f32 %v4779_v38, %v4405_v47  ;;  %v4414_v63 = vmul.f32 %v9638_v3, %v13285_v54  ;;  %9659 = vpow2.f32 %v13446_v37  ;;  %v13557_v56 = vmul.f32 1.442695, %v2535_v31  ;;  %v13565_v62 = vpop.f32.mrb[101].mxu0 }
 0x435   : > { %v9642_v18 = vpop.eup %9641  ;;  %v4682_v52 = vadd.f32 %v4681_v59, %v4532_v40  ;;  %v4533_v60 = vmul.f32 %v9640_v7, %v13289_v30  ;;  %9661 = vpow2.f32 %v13484_v27  ;;  %v3222_v21 = vmul.f32 1.442695, %v2662_v46  ;;  %16002 = vst [vmem:[#allocation49_spill] sm:$0xff] %v13565_v62  ;;  %v13571_v31 = vpop.f32.mrb[61].mxu1 }
 0x436   : > { %v9644_v38 = vpop.eup %9643  ;;  %v4744_v47 = vadd.f32 %v4743_v13, %v4414_v63  ;;  %v4415_v54 = vmul.f32 %v9642_v18, %v13299_v35  ;;  %9663 = vpow2.f32 %v13488_v11  ;;  %v13569_v37 = vmul.f32 1.442695, %v2544_v15  ;;  %16003 = vst [vmem:[#allocation95_spill] sm:$0xff] %v13571_v31  ;;  %v13573_v59 = vpop.f32.mrb[102].mxu0  ;;  %v16006_v63 = vld [vmem:[#allocation44_spill] sm:$0xff] }
 0x437   : > { %16004 = vst [vmem:[#allocation96_spill] sm:$0xff] %v13573_v59  ;;  %v9646_v30 = vpop.eup %9645  ;;  %v4719_v7 = vadd.f32 %v4718_v17, %v4533_v60  ;;  %v3592_v27 = vadd.f32 1.0, %v9644_v38  ;;  %9665 = vpow2.f32 %v13494_v4  ;;  %v13578_v3 = vadd.f32 %v13193_v41, %v12695_v33  ;;  %v13585_v46 = vpop.f32.mrb[62].mxu1  ;;  %v16007_v60 = vld [vmem:[#allocation58_spill] sm:$0xff] }
 0x438   : > { %v9648_v13 = vpop.eup %9647  ;;  %v4781_v40 = vadd.f32 %v4780_v1, %v4415_v54  ;;  %v3474_v35 = vadd.f32 1.0, %v9646_v30  ;;  %9667 = vpow2.f32 %v13503_v28  ;;  %v13583_v11 = vadd.f32 %v13182_v22, %v12790_v25  ;;  %16005 = vst [vmem:[#allocation97_spill] sm:$0xff] %v13585_v46  ;;  %v13597_v38 = vpop.f32.mrb[103].mxu0  ;;  %v16010_v30 = vld [vmem:[#allocation52_spill] sm:$0xff] }
 0x439   : > { %v9650_v15 = vpop.eup %9649  ;;  %9669 = vrcp.f32 %v3592_v27  ;;  %v3593_v17 = vadd.f32 1.0, %v9648_v13  ;;  %v2663_v4 = vsub.f32 0.0, %v13578_v3  ;;  %v13590_v41 = vadd.f32 %v16006_v63, %v12689_v19  ;;  %16008 = vst [vmem:[#allocation44_spill] sm:$0xff] %v13597_v38  ;;  %v13599_v54 = vpop.f32.mrb[63].mxu1 }
 0x43a   : > { %v9652_v18 = vpop.eup %9651  ;;  %9671 = vrcp.f32 %v3474_v35  ;;  %v3475_v1 = vadd.f32 1.0, %v9650_v15  ;;  %v2545_v28 = vsub.f32 0.0, %v13583_v11  ;;  %v13595_v22 = vadd.f32 %v16007_v60, %v12751_v53  ;;  %16009 = vst [vmem:[#allocation58_spill] sm:$0xff] %v13599_v54 }
 0x43b   : > { %8451 = vmatmul.mubr.msk.bf16.gmra.mrb[168].mxu1 %vm1377_vm3, %v16010_v30  ;;  %v9654_v27 = vpop.eup %9653  ;;  %v4542_v13 = vmul.f32 %v9652_v18, %v13315_v51  ;;  %9673 = vrcp.f32 %v3593_v17  ;;  %v13604_v63 = vmul.f32 1.442695, %v2663_v4  ;;  %v2672_v35 = vsub.f32 0.0, %v13590_v41 }
 0x43c   : > { %2411 = vmatprep.mubr.bf16.mxu1 %v15911_v48  ;;  %v9656_v15 = vpop.eup %9655  ;;  %v4424_v60 = vmul.f32 %v9654_v27, %v13337_v29  ;;  %9675 = vrcp.f32 %v3475_v1  ;;  %v13609_v38 = vmul.f32 1.442695, %v2545_v28  ;;  %v2554_v54 = vsub.f32 0.0, %v13595_v22 }
 0x43d   : > { %v9658_v46 = vpop.eup %9657  ;;  %v4683_v30 = vadd.f32 %v4682_v52, %v4542_v13  ;;  %v4543_v59 = vmul.f32 %v9656_v15, %v13351_v45  ;;  %9677 = vpow2.f32 %v13524_v49  ;;  %v13614_v51 = vmul.f32 1.442695, %v2672_v35  ;;  %v16011_v52 = vld [vmem:[#allocation59_spill] sm:$0xff] }
 0x43e   : > { %v9660_v17 = vpop.eup %9659  ;;  %v4745_v4 = vadd.f32 %v4744_v47, %v4424_v60  ;;  %v4425_v48 = vmul.f32 %v9658_v46, %v13359_v36  ;;  %9679 = vpow2.f32 %v13546_v39  ;;  %v13618_v29 = vmul.f32 1.442695, %v2554_v54  ;;  %v16012_v47 = vld [vmem:[#allocation77_spill] sm:$0xff]  ;;  %v13629_v39 = vpop.f32.mrb[104].mxu0 }
 0x43f   : > { %v9662_v18 = vpop.eup %9661  ;;  %v4720_v1 = vadd.f32 %v4719_v7, %v4543_v59  ;;  %v3602_v28 = vadd.f32 1.0, %v9660_v17  ;;  %9681 = vpow2.f32 %v13557_v56  ;;  %v13623_v45 = vadd.f32 %v16011_v52, %v12695_v33  ;;  %16013 = vst [vmem:[#allocation52_spill] sm:$0xff] %v13629_v39  ;;  %v13631_v46 = vpop.f32.mrb[64].mxu1  ;;  %v16015_v54 = vld [vmem:[#allocation61_spill] sm:$0xff] }
 0x440   : > { %v9664_v49 = vpop.eup %9663  ;;  %v4782_v27 = vadd.f32 %v4781_v40, %v4425_v48  ;;  %v3484_v13 = vadd.f32 1.0, %v9662_v18  ;;  %9683 = vpow2.f32 %v3222_v21  ;;  %v13627_v36 = vadd.f32 %v16012_v47, %v12790_v25  ;;  %16014 = vst [vmem:[#allocation59_spill] sm:$0xff] %v13631_v46  ;;  %v13638_v40 = vpop.f32.mrb[105].mxu0  ;;  %v16018_v48 = vld [vmem:[#allocation60_spill] sm:$0xff] }
 0x441   : > { %v9666_v59 = vpop.eup %9665  ;;  %9685 = vrcp.f32 %v3602_v28  ;;  %v3603_v7 = vadd.f32 1.0, %v9664_v49  ;;  %v2673_v56 = vsub.f32 0.0, %v13623_v45  ;;  %v13636_v35 = vadd.f32 %v16015_v54, %v12689_v19  ;;  %16016 = vst [vmem:[#allocation77_spill] sm:$0xff] %v13638_v40  ;;  %v13640_v21 = vpop.f32.mrb[65].mxu1  ;;  %v16019_v28 = vld [vmem:[#allocation51_spill] sm:$0xff] }
 0x442   : > { %16017 = vst [vmem:[#allocation61_spill] sm:$0xff] %v13640_v21  ;;  %v9668_v15 = vpop.eup %9667  ;;  %9687 = vrcp.f32 %v3484_v13  ;;  %v3485_v60 = vadd.f32 1.0, %v9666_v59  ;;  %v2555_v17 = vsub.f32 0.0, %v13627_v36  ;;  %v13645_v18 = vadd.f32 %v16018_v48, %v12751_v53  ;;  %v13652_v21 = vpop.f32.mrb[106].mxu0 }
 0x443   : > { %8452 = vmatmul.mubr.msk.bf16.gmra.mrb[172].mxu1 %vm1377_vm3, %v16019_v28  ;;  %v9670_v52 = vpop.eup %9669  ;;  %9689 = vrcp.f32 %v3603_v7  ;;  %v3612_v49 = vadd.f32 1.0, %v9668_v15  ;;  %v13649_v47 = vmul.f32 1.442695, %v2673_v56  ;;  %v2682_v54 = vsub.f32 0.0, %v13636_v35  ;;  %16020 = vst [vmem:[#allocation60_spill] sm:$0xff] %v13652_v21  ;;  %v13654_v13 = vpop.f32.mrb[66].mxu1 }
 0x444   : > { %16021 = vst [vmem:[#allocation51_spill] sm:$0xff] %v13654_v13  ;;  %v9672_v59 = vpop.eup %9671  ;;  %v4552_v40 = vmul.f32 %v9670_v52, %v13363_v50  ;;  %9691 = vrcp.f32 %v3485_v60  ;;  %v3008_v48 = vmul.f32 1.442695, %v2555_v17  ;;  %v2564_v46 = vsub.f32 0.0, %v13645_v18  ;;  %v16022_v56 = vld [vmem:[#allocation78_spill] sm:$0xff]  ;;  %v13665_v21 = vpop.f32.mrb[107].mxu0 }
 0x445   : > { %v9674_v39 = vpop.eup %9673  ;;  %v4434_v28 = vmul.f32 %v9672_v59, %v13398_v43  ;;  %9693 = vrcp.f32 %v3612_v49  ;;  %v13659_v7 = vmul.f32 1.442695, %v2682_v54  ;;  %v13663_v15 = vadd.f32 %v16022_v56, %v12695_v33  ;;  %16023 = vst [vmem:[#allocation78_spill] sm:$0xff] %v13665_v21 }
 0x446   : > { %v9676_v13 = vpop.eup %9675  ;;  %v4684_v31 = vadd.f32 %v4683_v30, %v4552_v40  ;;  %v4553_v50 = vmul.f32 %v9674_v39, %v13407_v34  ;;  %9695 = vpow2.f32 %v13569_v37  ;;  %v3026_v60 = vmul.f32 1.442695, %v2564_v46  ;;  %v16024_v30 = vld [vmem:[#allocation43_spill] sm:$0xff] }
 0x447   : > { %v9678_v17 = vpop.eup %9677  ;;  %v4746_v52 = vadd.f32 %v4745_v4, %v4434_v28  ;;  %v4435_v43 = vmul.f32 %v9676_v13, %v13416_v61  ;;  %9697 = vpow2.f32 %v13604_v63  ;;  %v2683_v49 = vsub.f32 0.0, %v13663_v15  ;;  %v13680_v61 = vpop.f32.mrb[67].mxu1 }
 0x448   : > { %v9680_v54 = vpop.eup %9679  ;;  %v4721_v59 = vadd.f32 %v4720_v1, %v4553_v50  ;;  %v3494_v56 = vadd.f32 1.0, %v9678_v17  ;;  %9699 = vpow2.f32 %v13609_v38  ;;  %v13675_v40 = vadd.f32 %v16024_v30, %v12790_v25  ;;  %16025 = vst [vmem:[#allocation43_spill] sm:$0xff] %v13680_v61  ;;  %v16026_v38 = vld [vmem:[#allocation80_spill] sm:$0xff] }
 0x449   : > { %v9682_v34 = vpop.eup %9681  ;;  %v4783_v37 = vadd.f32 %v4782_v27, %v4435_v43  ;;  %v3613_v39 = vadd.f32 1.0, %v9680_v54  ;;  %9701 = vpow2.f32 %v13614_v51  ;;  %v13678_v4 = vmul.f32 1.442695, %v2683_v49  ;;  %v16027_v27 = vld [vmem:[#allocation79_spill] sm:$0xff]  ;;  %v16028_v51 = vld [vmem:[#allocation62_spill] sm:$0xff] }
 0x44a   : > { %v9684_v63 = vpop.eup %9683  ;;  %9703 = vrcp.f32 %v3494_v56  ;;  %v3495_v46 = vadd.f32 1.0, %v9682_v34  ;;  %v2565_v1 = vsub.f32 0.0, %v13675_v40  ;;  %v13685_v13 = vadd.f32 %v16026_v38, %v12689_v19 }
 0x44b   : > { %v9686_v28 = vpop.eup %9685  ;;  %9705 = vrcp.f32 %v3613_v39  ;;  %v3622_v50 = vadd.f32 1.0, %v9684_v63  ;;  %v13689_v17 = vadd.f32 %v16027_v27, %v12751_v53  ;;  %v13693_v43 = vadd.f32 %v16028_v51, %v12695_v33 }
 0x44c   : > { %v9688_v49 = vpop.eup %9687  ;;  %v4562_v54 = vmul.f32 %v9686_v28, %v13425_v32  ;;  %9707 = vrcp.f32 %v3495_v46  ;;  %v13696_v56 = vmul.f32 1.442695, %v2565_v1  ;;  %v2692_v30 = vsub.f32 0.0, %v13685_v13 }
 0x44d   : > { %v9690_v34 = vpop.eup %9689  ;;  %v4444_v39 = vmul.f32 %v9688_v49, %v13453_v23  ;;  %9709 = vrcp.f32 %v3622_v50  ;;  %v2574_v63 = vsub.f32 0.0, %v13689_v17  ;;  %v2693_v38 = vsub.f32 0.0, %v13693_v43 }
 0x44e   : > { %v9692_v27 = vpop.eup %9691  ;;  %v4685_v61 = vadd.f32 %v4684_v31, %v4562_v54  ;;  %v4563_v51 = vmul.f32 %v9690_v34, %v13462_v42  ;;  %9711 = vpow2.f32 %v13618_v29  ;;  %v3282_v32 = vmul.f32 1.442695, %v2692_v30  ;;  %v13709_v31 = vpop.f32.mrb[108].mxu0 }
 0x44f   : > { %v9694_v46 = vpop.eup %9693  ;;  %v4747_v1 = vadd.f32 %v4746_v52, %v4444_v39  ;;  %v4445_v28 = vmul.f32 %v9692_v27, %v13471_v58  ;;  %9713 = vpow2.f32 %v13649_v47  ;;  %v3046_v21 = vmul.f32 1.442695, %v2574_v63  ;;  %v13711_v42 = vpop.f32.mrb[68].mxu1  ;;  %v16030_v58 = vld [vmem:[#allocation81_spill] sm:$0xff]  ;;  %v16031_v63 = vld [vmem:[#allocation63_spill] sm:$0xff] }
 0x450   : > { %v9696_v23 = vpop.eup %9695  ;;  %v4722_v50 = vadd.f32 %v4721_v59, %v4563_v51  ;;  %v4572_v49 = vmul.f32 %v9694_v46, %v13480_v16  ;;  %9715 = vpow2.f32 %v3008_v48  ;;  %v13707_v62 = vmul.f32 1.442695, %v2693_v38  ;;  %16029 = vst [vmem:[#allocation80_spill] sm:$0xff] %v13711_v42  ;;  %v13727_v38 = vpop.f32.mrb[109].mxu0 }
 0x451   : > { %v9698_v29 = vpop.eup %9697  ;;  %v4784_v54 = vadd.f32 %v4783_v37, %v4445_v28  ;;  %v3504_v30 = vadd.f32 1.0, %v9696_v23  ;;  %9717 = vpow2.f32 %v13659_v7  ;;  %v13716_v47 = vadd.f32 %v16030_v58, %v12790_v25  ;;  %16032 = vst [vmem:[#allocation79_spill] sm:$0xff] %v13727_v38  ;;  %v13729_v27 = vpop.f32.mrb[69].mxu1 }
 0x452   : > { %v9700_v52 = vpop.eup %9699  ;;  %v4686_v59 = vadd.f32 %v4685_v61, %v4572_v49  ;;  %v3623_v34 = vadd.f32 1.0, %v9698_v29  ;;  %9719 = vpow2.f32 %v3026_v60  ;;  %v13720_v16 = vadd.f32 %v13291_v8, %v12689_v19  ;;  %16033 = vst [vmem:[#allocation62_spill] sm:$0xff] %v13729_v27  ;;  %v16034_v8 = vld [vmem:[#allocation46_spill] sm:$0xff]  ;;  %v13742_v58 = vpop.f32.mrb[70].mxu1 }
 0x453   : > { %v9702_v48 = vpop.eup %9701  ;;  %9721 = vrcp.f32 %v3504_v30  ;;  %v3505_v39 = vadd.f32 1.0, %v9700_v52  ;;  %v2575_v37 = vsub.f32 0.0, %v13716_v47  ;;  %v13725_v7 = vadd.f32 %v16031_v63, %v12751_v53  ;;  %v13740_v30 = vpop.f32.mrb[110].mxu0  ;;  %16036 = vst [vmem:[#allocation63_spill] sm:$0xff] %v13742_v58 }
 0x454   : > { %v9704_v61 = vpop.eup %9703  ;;  %9723 = vrcp.f32 %v3623_v34  ;;  %v3632_v60 = vadd.f32 1.0, %v9702_v48  ;;  %v2702_v51 = vsub.f32 0.0, %v13720_v16  ;;  %v13734_v46 = vadd.f32 %v16034_v8, %v12695_v33  ;;  %16035 = vst [vmem:[#allocation81_spill] sm:$0xff] %v13740_v30 }
 0x455   : > { %v9706_v28 = vpop.eup %9705  ;;  %v4454_v23 = vmul.f32 %v9704_v61, %v13498_v55  ;;  %9725 = vrcp.f32 %v3505_v39  ;;  %v13737_v49 = vmul.f32 1.442695, %v2575_v37  ;;  %v2584_v29 = vsub.f32 0.0, %v13725_v7 }
 0x456   : > { %v9708_v52 = vpop.eup %9707  ;;  %v4573_v34 = vmul.f32 %v9706_v28, %v13517_v9  ;;  %9727 = vrcp.f32 %v3632_v60  ;;  %v13745_v48 = vmul.f32 1.442695, %v2702_v51  ;;  %v2703_v63 = vsub.f32 0.0, %v13734_v46  ;;  %v13754_v9 = vpop.f32.mrb[111].mxu0 }
 0x457   : > { %v9710_v8 = vpop.eup %9709  ;;  %v4748_v27 = vadd.f32 %v4747_v1, %v4454_v23  ;;  %v4455_v55 = vmul.f32 %v9708_v52, %v13533_v0  ;;  %9729 = vpow2.f32 %v13678_v4  ;;  %v3066_v39 = vmul.f32 1.442695, %v2584_v29  ;;  %16037 = vst [vmem:[#allocation46_spill] sm:$0xff] %v13754_v9  ;;  %v16038_v1 = vld [vmem:[#allocation64_spill] sm:$0xff]  ;;  %v13760_v4 = vpop.f32.mrb[71].mxu1 }
 0x458   : > { %v9712_v37 = vpop.eup %9711  ;;  %v4723_v61 = vadd.f32 %v4722_v50, %v4573_v34  ;;  %v4582_v30 = vmul.f32 %v9710_v8, %v13539_v57  ;;  %9731 = vpow2.f32 %v13696_v56  ;;  %v13752_v58 = vmul.f32 1.442695, %v2703_v63  ;;  %16039 = vst [vmem:[#allocation64_spill] sm:$0xff] %v13760_v4  ;;  %v16040_v57 = vld [vmem:[#allocation82_spill] sm:$0xff] }
 0x459   : > { %v9714_v60 = vpop.eup %9713  ;;  %v4785_v51 = vadd.f32 %v4784_v54, %v4455_v55  ;;  %v3514_v28 = vadd.f32 1.0, %v9712_v37  ;;  %9733 = vpow2.f32 %v3282_v32  ;;  %v13758_v0 = vadd.f32 %v16038_v1, %v12790_v25  ;;  %v16041_v32 = vld [vmem:[#allocation66_spill] sm:$0xff] }
 0x45a   : > { %v9716_v23 = vpop.eup %9715  ;;  %v4687_v50 = vadd.f32 %v4686_v59, %v4582_v30  ;;  %v3633_v29 = vadd.f32 1.0, %v9714_v60  ;;  %9735 = vpow2.f32 %v3046_v21  ;;  %v13764_v56 = vadd.f32 %v16040_v57, %v12689_v19  ;;  %v16042_v21 = vld [vmem:[#allocation65_spill] sm:$0xff] }
 0x45b   : > { %v9718_v52 = vpop.eup %9717  ;;  %9737 = vrcp.f32 %v3514_v28  ;;  %v3515_v34 = vadd.f32 1.0, %v9716_v23  ;;  %v2585_v54 = vsub.f32 0.0, %v13758_v0  ;;  %v13769_v63 = vadd.f32 %v16041_v32, %v12751_v53 }
 0x45c   : > { %v9720_v8 = vpop.eup %9719  ;;  %9739 = vrcp.f32 %v3633_v29  ;;  %v3642_v55 = vadd.f32 1.0, %v9718_v52  ;;  %v2712_v59 = vsub.f32 0.0, %v13764_v56  ;;  %v13774_v30 = vadd.f32 %v16042_v21, %v12695_v33 }
 0x45d   : > { %v9722_v37 = vpop.eup %9721  ;;  %9741 = vrcp.f32 %v3515_v34  ;;  %v3524_v60 = vadd.f32 1.0, %v9720_v8  ;;  %v13776_v28 = vmul.f32 1.442695, %v2585_v54  ;;  %v2594_v1 = vsub.f32 0.0, %v13769_v63  ;;  %v16043_v34 = vld [vmem:[#allocation83_spill] sm:$0xff] }
 0x45e   : > { %v9724_v23 = vpop.eup %9723  ;;  %v4464_v57 = vmul.f32 %v9722_v37, %v13543_v6  ;;  %9743 = vrcp.f32 %v3642_v55  ;;  %v13780_v32 = vmul.f32 1.442695, %v2712_v59  ;;  %v2713_v29 = vsub.f32 0.0, %v13774_v30  ;;  %v13794_v55 = vpop.f32.mrb[72].mxu1 }
 0x45f   : > { %v9726_v52 = vpop.eup %9725  ;;  %v4583_v4 = vmul.f32 %v9724_v23, %v13578_v3  ;;  %9745 = vrcp.f32 %v3524_v60  ;;  %v13784_v21 = vmul.f32 1.442695, %v2594_v1  ;;  %v13788_v54 = vadd.f32 %v16043_v34, %v12790_v25  ;;  %16044 = vst [vmem:[#allocation82_spill] sm:$0xff] %v13794_v55  ;;  %v13796_v59 = vpop.f32.mrb[112].mxu0 }
 0x460   : > { %v9728_v8 = vpop.eup %9727  ;;  %v4749_v9 = vadd.f32 %v4748_v27, %v4464_v57  ;;  %v4465_v38 = vmul.f32 %v9726_v52, %v13583_v11  ;;  %9747 = vpow2.f32 %v13707_v62  ;;  %v13792_v6 = vmul.f32 1.442695, %v2713_v29  ;;  %16045 = vst [vmem:[#allocation66_spill] sm:$0xff] %v13796_v59  ;;  %v16046_v62 = vld [vmem:[#allocation84_spill] sm:$0xff] }
 0x461   : > { %v9730_v3 = vpop.eup %9729  ;;  %v4724_v37 = vadd.f32 %v4723_v61, %v4583_v4  ;;  %v4592_v60 = vmul.f32 %v9728_v8, %v13590_v41  ;;  %9749 = vpow2.f32 %v13737_v49  ;;  %v2595_v1 = vsub.f32 0.0, %v13788_v54 }
 0x462   : > { %v9732_v23 = vpop.eup %9731  ;;  %v4786_v27 = vadd.f32 %v4785_v51, %v4465_v38  ;;  %v3643_v57 = vadd.f32 1.0, %v9730_v3  ;;  %9751 = vpow2.f32 %v13745_v48  ;;  %v13804_v11 = vadd.f32 %v16046_v62, %v12689_v19  ;;  %v16047_v38 = vld [vmem:[#allocation45_spill] sm:$0xff]  ;;  %v13813_v48 = vpop.f32.mrb[73].mxu1 }
 0x463   : > { %v9734_v29 = vpop.eup %9733  ;;  %v4688_v52 = vadd.f32 %v4687_v50, %v4592_v60  ;;  %v3525_v34 = vadd.f32 1.0, %v9732_v23  ;;  %9753 = vpow2.f32 %v3066_v39  ;;  %v13806_v61 = vmul.f32 1.442695, %v2595_v1  ;;  %16048 = vst [vmem:[#allocation65_spill] sm:$0xff] %v13813_v48  ;;  %v16049_v50 = vld [vmem:[#allocation70_spill] sm:$0xff]  ;;  %v16050_v39 = vld [vmem:[#allocation85_spill] sm:$0xff] }
 0x464   : > { %v9736_v41 = vpop.eup %9735  ;;  %9755 = vrcp.f32 %v3643_v57  ;;  %v3652_v49 = vadd.f32 1.0, %v9734_v29  ;;  %v2722_v4 = vsub.f32 0.0, %v13804_v11  ;;  %v13811_v51 = vadd.f32 %v16047_v38, %v12751_v53  ;;  %v13823_v23 = vpop.f32.mrb[113].mxu0 }
 0x465   : > { %v9738_v8 = vpop.eup %9737  ;;  %9757 = vrcp.f32 %v3525_v34  ;;  %v3534_v3 = vadd.f32 1.0, %v9736_v41  ;;  %v13817_v60 = vadd.f32 %v16049_v50, %v12695_v33  ;;  %v13821_v1 = vadd.f32 %v16050_v39, %v12790_v25  ;;  %16051 = vst [vmem:[#allocation83_spill] sm:$0xff] %v13823_v23 }
 0x466   : > { %v9740_v57 = vpop.eup %9739  ;;  %v4474_v62 = vmul.f32 %v9738_v8, %v13595_v22  ;;  %9759 = vrcp.f32 %v3652_v49  ;;  %v13826_v29 = vmul.f32 1.442695, %v2722_v4  ;;  %v2604_v38 = vsub.f32 0.0, %v13811_v51  ;;  %v13834_v49 = vpop.f32.mrb[74].mxu1 }
 0x467   : > { %v9742_v34 = vpop.eup %9741  ;;  %v4593_v41 = vmul.f32 %v9740_v57, %v13623_v45  ;;  %9761 = vrcp.f32 %v3534_v3  ;;  %v2723_v50 = vsub.f32 0.0, %v13817_v60  ;;  %v2605_v59 = vsub.f32 0.0, %v13821_v1 }
 0x468   : > { %v9744_v39 = vpop.eup %9743  ;;  %v4750_v48 = vadd.f32 %v4749_v9, %v4474_v62  ;;  %v4475_v23 = vmul.f32 %v9742_v34, %v13627_v36  ;;  %9763 = vpow2.f32 %v13752_v58  ;;  %v3106_v22 = vmul.f32 1.442695, %v2604_v38  ;;  %v13842_v36 = vpop.f32.mrb[114].mxu0 }
 0x469   : > { %v9746_v4 = vpop.eup %9745  ;;  %v4725_v8 = vadd.f32 %v4724_v37, %v4593_v41  ;;  %v4602_v55 = vmul.f32 %v9744_v39, %v13636_v35  ;;  %9765 = vpow2.f32 %v13776_v28  ;;  %v3344_v45 = vmul.f32 1.442695, %v2723_v50  ;;  %v16052_v35 = vld [vmem:[#allocation69_spill] sm:$0xff] }
 0x46a   : > { %v9748_v3 = vpop.eup %9747  ;;  %v4787_v57 = vadd.f32 %v4786_v27, %v4475_v23  ;;  %v4484_v42 = vmul.f32 %v9746_v4, %v13645_v18  ;;  %9767 = vpow2.f32 %v13780_v32  ;;  %v13840_v9 = vmul.f32 1.442695, %v2605_v59  ;;  %v16053_v18 = vld [vmem:[#allocation86_spill] sm:$0xff]  ;;  %v13854_v59 = vpop.f32.mrb[75].mxu1 }
 0x46b   : > { %v9750_v58 = vpop.eup %9749  ;;  %v4689_v62 = vadd.f32 %v4688_v52, %v4602_v55  ;;  %v3653_v38 = vadd.f32 1.0, %v9748_v3  ;;  %9769 = vpow2.f32 %v13784_v21  ;;  %v13847_v37 = vadd.f32 %v16052_v35, %v12689_v19  ;;  %v13856_v23 = vpop.f32.mrb[115].mxu0 }
 0x46c   : > { %v9752_v28 = vpop.eup %9751  ;;  %v4751_v34 = vadd.f32 %v4750_v48, %v4484_v42  ;;  %v3535_v27 = vadd.f32 1.0, %v9750_v58  ;;  %9771 = vpow2.f32 %v13792_v6  ;;  %v13852_v32 = vadd.f32 %v16053_v18, %v12751_v53 }
 0x46d   : > { %v9754_v55 = vpop.eup %9753  ;;  %9773 = vrcp.f32 %v3653_v38  ;;  %v3662_v21 = vadd.f32 1.0, %v9752_v28  ;;  %v2732_v52 = vsub.f32 0.0, %v13847_v37  ;;  %v13861_v19 = vadd.f32 %v13373_v24, %v12695_v33 }
 0x46e   : > { %v9756_v42 = vpop.eup %9755  ;;  %9775 = vrcp.f32 %v3535_v27  ;;  %v3544_v6 = vadd.f32 1.0, %v9754_v55  ;;  %v2614_v48 = vsub.f32 0.0, %v13852_v32  ;;  %v11752_v33 = vmov 1966171168  }
 0x46f   : > { %v9758_v41 = vpop.eup %9757  ;;  %v4603_v50 = vmul.f32 %v9756_v42, %v13663_v15  ;;  %9777 = vrcp.f32 %v3662_v21  ;;  %v13865_v39 = vmul.f32 1.442695, %v2732_v52  ;;  %v2733_v4 = vsub.f32 0.0, %v13861_v19  ;;  %v13877_v52 = vpop.f32.mrb[76].mxu1 }
 0x470   : > { %v9760_v3 = vpop.eup %9759  ;;  %v4485_v58 = vmul.f32 %v9758_v41, %v13675_v40  ;;  %9779 = vrcp.f32 %v3544_v6  ;;  %v13869_v38 = vmul.f32 1.442695, %v2614_v48  ;;  %v5049_v24 = vunpack.c.l.s4 %v11752_v33  ;;  %16054 = vst [vmem:[#allocation84_spill] sm:$0xff] %v13877_v52  ;;  %v13879_v42 = vpop.f32.mrb[116].mxu0 }
 0x471   : > { %v9762_v35 = vpop.eup %9761  ;;  %v4726_v28 = vadd.f32 %v4725_v8, %v4603_v50  ;;  %v4612_v27 = vmul.f32 %v9760_v3, %v13685_v13  ;;  %9781 = vpow2.f32 %v13806_v61  ;;  %v13873_v15 = vmul.f32 1.442695, %v2733_v4  ;;  %16055 = vst [vmem:[#allocation45_spill] sm:$0xff] %v13879_v42  ;;  %v16056_v13 = vld [vmem:[#allocation87_spill] sm:$0xff]  ;;  %v13885_v41 = vpop.f32.mrb[77].mxu1  ;;  %v16059_v4 = vld [vmem:[#allocation53_spill] sm:$0xff] }
 0x472   : > { %v9764_v18 = vpop.eup %9763  ;;  %v4788_v55 = vadd.f32 %v4787_v57, %v4485_v58  ;;  %v4494_v21 = vmul.f32 %v9762_v35, %v13689_v17  ;;  %9783 = vpow2.f32 %v13826_v29  ;;  %v5050_v40 = vunpack.c.0.s8 %v5049_v24  ;;  %16057 = vst [vmem:[#allocation70_spill] sm:$0xff] %v13885_v41  ;;  %v13887_v57 = vpop.f32.mrb[117].mxu0 }
 0x473   : > { %v9766_v6 = vpop.eup %9765  ;;  %v4690_v48 = vadd.f32 %v4689_v62, %v4612_v27  ;;  %v3663_v8 = vadd.f32 1.0, %v9764_v18  ;;  %9785 = vpow2.f32 %v3106_v22  ;;  %v13883_v61 = vadd.f32 %v16056_v13, %v12790_v25  ;;  %16058 = vst [vmem:[#allocation85_spill] sm:$0xff] %v13887_v57  ;;  %v13892_v58 = vpop.f32.mrb[78].mxu1 }
 0x474   : > { %v9768_v17 = vpop.eup %9767  ;;  %v4752_v50 = vadd.f32 %v4751_v34, %v4494_v21  ;;  %v3545_v29 = vadd.f32 1.0, %v9766_v6  ;;  %9787 = vpow2.f32 %v3344_v45  ;;  %v13890_v3 = vsub.s32 %v5050_v40, %v16059_v4  ;;  %16061 = vst [vmem:[#allocation86_spill] sm:$0xff] %v13892_v58  ;;  %v13904_v18 = vpop.f32.mrb[118].mxu0 }
 0x475   : > { %v9770_v62 = vpop.eup %9769  ;;  %9789 = vrcp.f32 %v3663_v8  ;;  %v3672_v22 = vadd.f32 1.0, %v9768_v17  ;;  %v2615_v33 = vsub.f32 0.0, %v13883_v61  ;;  %v13897_v24 = vadd.f32 %v13393_v12, %v12751_v53  ;;  %16062 = vst [vmem:[#allocation87_spill] sm:$0xff] %v13904_v18  ;;  %v10691_v17 = vld [vmem:[#allocation11] sm:$0xff] }
 0x476   : > { %16060 = vst [vmem:[#allocation69_spill] sm:$0xff] %v13890_v3  ;;  %v9772_v35 = vpop.eup %9771  ;;  %9791 = vrcp.f32 %v3545_v29  ;;  %v3554_v27 = vadd.f32 1.0, %v9770_v62  ;;  %v15832_v34 = vsub.s32 4, %v16059_v4  ;;  %v13902_v45 = vadd.f32 %v13402_v5, %v12790_v25 }
 0x477   : > { %v9774_v21 = vpop.eup %9773  ;;  %9793 = vrcp.f32 %v3672_v22  ;;  %v3673_v40 = vadd.f32 1.0, %v9772_v35  ;;  %v3128_v6 = vmul.f32 1.442695, %v2615_v33  ;;  %v2624_v8 = vsub.f32 0.0, %v13897_v24 }
 0x478   : > { %v9776_v13 = vpop.eup %9775  ;;  %v4613_v12 = vmul.f32 %v9774_v21, %v13693_v43  ;;  %9795 = vrcp.f32 %v3554_v27  ;;  %v13910_v29 = vrot.slane %v10691_v17, %v15832_v34  ;;  %v2625_v5 = vsub.f32 0.0, %v13902_v45 }
 0x479   : > { %v9778_v62 = vpop.eup %9777  ;;  %v4495_v18 = vmul.f32 %v9776_v13, %v13716_v47  ;;  %9797 = vrcp.f32 %v3673_v40  ;;  %v3146_v22 = vmul.f32 1.442695, %v2624_v8  ;;  %v15833_v33 = vsub.s32 5, %v16059_v4 }
 0x47a   : > { %v9780_v35 = vpop.eup %9779  ;;  %v4727_v58 = vadd.f32 %v4726_v28, %v4613_v12  ;;  %v4622_v57 = vmul.f32 %v9778_v62, %v13720_v16  ;;  %9799 = vpow2.f32 %v13840_v9  ;;  %v13919_v43 = vadd.f32 %v13400_v20, %v13910_v29  ;;  %v13944_v62 = vpop.f32.mrb[119].mxu0 }
 0x47b   : > { %v9782_v27 = vpop.eup %9781  ;;  %v4789_v21 = vadd.f32 %v4788_v55, %v4495_v18  ;;  %v4504_v34 = vmul.f32 %v9780_v35, %v13725_v7  ;;  %9801 = vpow2.f32 %v13865_v39  ;;  %v3148_v47 = vmul.f32 1.442695, %v2625_v5 }
 0x47c   : > { %v9784_v40 = vpop.eup %9783  ;;  %v4691_v8 = vadd.f32 %v4690_v48, %v4622_v57  ;;  %v3555_v13 = vadd.f32 1.0, %v9782_v27  ;;  %9803 = vpow2.f32 %v13869_v38  ;;  %v2426_v16 = vsub.f32 0.0, %v13919_v43  ;;  %v16063_v48 = vld [vmem:[#allocation68_spill] sm:$0xff]  ;;  %v13934_v38 = vpop.f32.mrb[79].mxu1 }
 0x47d   : > { %v9786_v28 = vpop.eup %9785  ;;  %v4753_v9 = vadd.f32 %v4752_v50, %v4504_v34  ;;  %v3682_v12 = vadd.f32 1.0, %v9784_v40  ;;  %9805 = vpow2.f32 %v13873_v15  ;;  %v13928_v20 = vrot.slane %v10691_v17, %v15833_v33  ;;  %16064 = vst [vmem:[#allocation68_spill] sm:$0xff] %v13934_v38  ;;  %v16065_v34 = vld [vmem:[#allocation67_spill] sm:$0xff]  ;;  %v16066_v17 = vld [vmem:[#allocation48_spill] sm:$0xff] }
 0x47e   : > { %v9788_v7 = vpop.eup %9787  ;;  %9807 = vrcp.f32 %v3555_v13  ;;  %v3564_v39 = vadd.f32 1.0, %v9786_v28  ;;  %v2750_v55 = vmul.f32 1.442695, %v2426_v16  ;;  %v13932_v57 = vadd.f32 %v16063_v48, %v12751_v53  ;;  %16067 = vst [vmem:[#allocation67_spill] sm:$0xff] %v13944_v62  ;;  %v16068_v13 = vld [vmem:[#allocation71_spill] sm:$0xff] }
 0x47f   : > { %v9790_v18 = vpop.eup %9789  ;;  %9809 = vrcp.f32 %v3682_v12  ;;  %v3683_v50 = vadd.f32 1.0, %v9788_v7  ;;  %v13938_v15 = vadd.f32 %v16065_v34, %v13928_v20  ;;  %v13942_v5 = vadd.f32 %v16066_v17, %v13910_v29 }
 0x480   : > { %v9792_v35 = vpop.eup %9791  ;;  %v4623_v27 = vmul.f32 %v9790_v18, %v13734_v46  ;;  %9811 = vrcp.f32 %v3564_v39  ;;  %v2634_v40 = vsub.f32 0.0, %v13932_v57  ;;  %v13950_v16 = vadd.f32 %v16068_v13, %v12790_v25 }
 0x481   : > { %v9794_v28 = vpop.eup %9793  ;;  %v4505_v12 = vmul.f32 %v9792_v35, %v13758_v0  ;;  %9813 = vrcp.f32 %v3683_v50  ;;  %v2427_v7 = vsub.f32 0.0, %v13938_v15  ;;  %v2436_v48 = vsub.f32 0.0, %v13942_v5 }
 0x482   : > { %v9796_v34 = vpop.eup %9795  ;;  %v4728_v17 = vadd.f32 %v4727_v58, %v4623_v27  ;;  %v4632_v33 = vmul.f32 %v9794_v28, %v13764_v56  ;;  %9815 = vpow2.f32 %v3128_v6  ;;  %v3166_v46 = vmul.f32 1.442695, %v2634_v40 }
 0x483   : > { %v9798_v39 = vpop.eup %9797  ;;  %v4790_v18 = vadd.f32 %v4789_v21, %v4505_v12  ;;  %v4514_v62 = vmul.f32 %v9796_v34, %v13769_v63  ;;  %9817 = vpow2.f32 %v3146_v22  ;;  %v2752_v13 = vmul.f32 1.442695, %v2427_v7  ;;  %v16069_v63 = vld [vmem:[#allocation73_spill] sm:$0xff]  ;;  %v13963_v21 = vpop.f32.mrb[80].mxu1  ;;  %v16072_v12 = vld [vmem:[#allocation47_spill] sm:$0xff] }
 0x484   : > { %v9800_v38 = vpop.eup %9799  ;;  %v4692_v41 = vadd.f32 %v4691_v8, %v4632_v33  ;;  %v4633_v0 = vmul.f32 %v9798_v39, %v13774_v30  ;;  %9819 = vpow2.f32 %v2750_v55  ;;  %v2770_v50 = vmul.f32 1.442695, %v2436_v48  ;;  %v13965_v33 = vpop.f32.mrb[120].mxu0  ;;  %v16075_v39 = vld [vmem:[#allocation72_spill] sm:$0xff] }
 0x485   : > { %v9802_v35 = vpop.eup %9801  ;;  %v4754_v42 = vadd.f32 %v4753_v9, %v4514_v62  ;;  %v3565_v52 = vadd.f32 1.0, %v9800_v38  ;;  %9821 = vpow2.f32 %v3148_v47  ;;  %v2635_v56 = vsub.f32 0.0, %v13950_v16  ;;  %v13971_v55 = vpop.f32.mrb[81].mxu1 }
 0x486   : > { %v9804_v58 = vpop.eup %9803  ;;  %v4729_v6 = vadd.f32 %v4728_v17, %v4633_v0  ;;  %v3692_v27 = vadd.f32 1.0, %v9802_v35  ;;  %9823 = vpow2.f32 %v2752_v13  ;;  %v13961_v22 = vadd.f32 %v16069_v63, %v13928_v20  ;;  %16070 = vst [vmem:[#allocation48_spill] sm:$0xff] %v13971_v55  ;;  %v13973_v38 = vpop.f32.mrb[121].mxu0 }
 0x487   : > { %v9806_v30 = vpop.eup %9805  ;;  %9825 = vrcp.f32 %v3565_v52  ;;  %v3574_v8 = vadd.f32 1.0, %v9804_v58  ;;  %v3168_v9 = vmul.f32 1.442695, %v2635_v56  ;;  %v13969_v47 = vadd.f32 %v13448_v44, %v12751_v53  ;;  %16071 = vst [vmem:[#allocation71_spill] sm:$0xff] %v13973_v38  ;;  %v13980_v52 = vpop.f32.mrb[82].mxu1 }
 0x488   : > { %v9808_v62 = vpop.eup %9807  ;;  %9827 = vrcp.f32 %v3692_v27  ;;  %v3693_v40 = vadd.f32 1.0, %v9806_v30  ;;  %v2437_v28 = vsub.f32 0.0, %v13961_v22  ;;  %v13978_v7 = vadd.f32 %v16072_v12, %v13910_v29  ;;  %16073 = vst [vmem:[#allocation73_spill] sm:$0xff] %v13980_v52  ;;  %v13982_v48 = vpop.f32.mrb[122].mxu0 }
 0x489   : > { %16074 = vst [vmem:[#allocation47_spill] sm:$0xff] %v13982_v48  ;;  %v9810_v34 = vpop.eup %9809  ;;  %v4515_v44 = vmul.f32 %v9808_v62, %v13788_v54  ;;  %9829 = vrcp.f32 %v3574_v8  ;;  %v2644_v17 = vsub.f32 0.0, %v13969_v47  ;;  %v13988_v13 = vadd.f32 %v16075_v39, %v12790_v25  ;;  %v13994_v48 = vpop.f32.mrb[83].mxu1 }
 0x48a   : > { %v9812_v0 = vpop.eup %9811  ;;  %v4642_v35 = vmul.f32 %v9810_v34, %v13804_v11  ;;  %9831 = vrcp.f32 %v3693_v40  ;;  %v2772_v56 = vmul.f32 1.442695, %v2437_v28  ;;  %v2446_v58 = vsub.f32 0.0, %v13978_v7  ;;  %16076 = vst [vmem:[#allocation72_spill] sm:$0xff] %v13994_v48 }
 0x48b   : > { %v9814_v27 = vpop.eup %9813  ;;  %v4791_v63 = vadd.f32 %v4790_v18, %v4515_v44  ;;  %v4524_v30 = vmul.f32 %v9812_v0, %v13811_v51  ;;  %9833 = vpow2.f32 %v3166_v46  ;;  %v3186_v54 = vmul.f32 1.442695, %v2644_v17  ;;  %v16077_v51 = vld [vmem:[#allocation88_spill] sm:$0xff]  ;;  %v16078_v17 = vld [vmem:[#allocation89_spill] sm:$0xff] }
 0x48c   : > { %v9816_v8 = vpop.eup %9815  ;;  %v4693_v62 = vadd.f32 %v4692_v41, %v4642_v35  ;;  %v4643_v12 = vmul.f32 %v9814_v27, %v13817_v60  ;;  %9835 = vpow2.f32 %v2770_v50  ;;  %v2790_v39 = vmul.f32 1.442695, %v2446_v58 }
 0x48d   : > { %v9818_v52 = vpop.eup %9817  ;;  %v4755_v11 = vadd.f32 %v4754_v42, %v4524_v30  ;;  %v3575_v40 = vadd.f32 1.0, %v9816_v8  ;;  %9837 = vpow2.f32 %v3168_v9  ;;  %v2645_v28 = vsub.f32 0.0, %v13988_v13  ;;  %v16081_v8 = vld [vmem:[#allocation90_spill] sm:$0xff] }
 0x48e   : > { %v9820_v34 = vpop.eup %9819  ;;  %v4730_v18 = vadd.f32 %v4729_v6, %v4643_v12  ;;  %v3584_v44 = vadd.f32 1.0, %v9818_v52  ;;  %9839 = vpow2.f32 %v2772_v56  ;;  %v13999_v46 = vadd.f32 %v16077_v51, %v13928_v20  ;;  %v16079_v6 = vld [vmem:[#allocation74_spill] sm:$0xff]  ;;  %v14010_v56 = vpop.f32.mrb[123].mxu0 }
 0x48f   : > { %v9822_v41 = vpop.eup %9821  ;;  %9841 = vrcp.f32 %v3575_v40  ;;  %v3386_v60 = vadd.f32 1.0, %v9820_v34  ;;  %v3188_v50 = vmul.f32 1.442695, %v2645_v28  ;;  %v14003_v0 = vadd.f32 %v16078_v17, %v12751_v53  ;;  %16080 = vst [vmem:[#allocation88_spill] sm:$0xff] %v14010_v56 }
 0x490   : > { %v9824_v42 = vpop.eup %9823  ;;  %9843 = vrcp.f32 %v3584_v44  ;;  %v3585_v9 = vadd.f32 1.0, %v9822_v41  ;;  %v2447_v35 = vsub.f32 0.0, %v13999_v46  ;;  %v14008_v52 = vadd.f32 %v16079_v6, %v13910_v29 }
 0x491   : > { %v9826_v58 = vpop.eup %9825  ;;  %9845 = vrcp.f32 %v3386_v60  ;;  %v3387_v27 = vadd.f32 1.0, %v9824_v42  ;;  %v2654_v30 = vsub.f32 0.0, %v14003_v0  ;;  %v14015_v12 = vadd.f32 %v16081_v8, %v12790_v25 }
 0x492   : > { %v9828_v40 = vpop.eup %9827  ;;  %v4525_v28 = vmul.f32 %v9826_v58, %v13821_v1  ;;  %9847 = vrcp.f32 %v3585_v9  ;;  %v2792_v34 = vmul.f32 1.442695, %v2447_v35  ;;  %v2456_v44 = vsub.f32 0.0, %v14008_v52 }
 0x493   : > { %v9830_v51 = vpop.eup %9829  ;;  %v4652_v41 = vmul.f32 %v9828_v40, %v13847_v37  ;;  %9849 = vrcp.f32 %v3387_v27  ;;  %v3206_v17 = vmul.f32 1.442695, %v2654_v30  ;;  %v2655_v60 = vsub.f32 0.0, %v14015_v12  ;;  %v16082_v37 = vld [vmem:[#allocation91_spill] sm:$0xff] }
 0x494   : > { %v9832_v42 = vpop.eup %9831  ;;  %v4792_v6 = vadd.f32 %v4791_v63, %v4525_v28  ;;  %v4534_v56 = vmul.f32 %v9830_v51, %v13852_v32  ;;  %9851 = vpow2.f32 %v3186_v54  ;;  %v2810_v8 = vmul.f32 1.442695, %v2456_v44  ;;  %v14032_v28 = vpop.f32.mrb[84].mxu1 }
 0x495   : > { %v9834_v48 = vpop.eup %9833  ;;  %v4694_v38 = vadd.f32 %v4693_v62, %v4652_v41  ;;  %v4653_v1 = vmul.f32 %v9832_v42, %v13861_v19  ;;  %9853 = vpow2.f32 %v2790_v39  ;;  %v3208_v9 = vmul.f32 1.442695, %v2655_v60  ;;  %v14034_v44 = vpop.f32.mrb[124].mxu0 }
 0x496   : > { %v9836_v35 = vpop.eup %9835  ;;  %v4756_v58 = vadd.f32 %v4755_v11, %v4534_v56  ;;  %v3594_v55 = vadd.f32 1.0, %v9834_v48  ;;  %9855 = vpow2.f32 %v3188_v50  ;;  %v14025_v27 = vadd.f32 %v16082_v37, %v13928_v20  ;;  %v14040_v41 = vpop.f32.mrb[85].mxu1 }
 0x497   : > { %v9838_v30 = vpop.eup %9837  ;;  %v4695_v63 = vrot.slane %v4694_v38, 4  ;;  %v4731_v40 = vadd.f32 %v4730_v18, %v4653_v1  ;;  %v3396_v32 = vadd.f32 1.0, %v9836_v35  ;;  %9857 = vpow2.f32 %v2792_v34  ;;  %v14045_v35 = vpop.f32.mrb[86].mxu1 }
 0x498   : > { %v9840_v54 = vpop.eup %9839  ;;  %9859 = vrcp.f32 %v3594_v55  ;;  %v3595_v62 = vadd.f32 1.0, %v9838_v30  ;;  %v2457_v19 = vsub.f32 0.0, %v14025_v27  ;;  %v14030_v39 = vadd.f32 %v13505_v10, %v12751_v53  ;;  %v14042_v10 = vpop.f32.mrb[125].mxu0 }
 0x499   : > { %v9842_v48 = vpop.eup %9841  ;;  %v4696_v11 = vadd.f32 %v4695_v63, %v4694_v38  ;;  %v4732_v50 = vrot.slane %v4731_v40, 4  ;;  %9861 = vrcp.f32 %v3396_v32  ;;  %v3397_v56 = vadd.f32 1.0, %v9840_v54  ;;  %16083 = vst [vmem:[#allocation89_spill] sm:$0xff] %v14042_v10  ;;  %v14047_v37 = vpop.f32.mrb[126].mxu0 }
 0x49a   : > { %v9844_v18 = vpop.eup %9843  ;;  %v4535_v34 = vmul.f32 %v9842_v48, %v13883_v61  ;;  %9863 = vrcp.f32 %v3595_v62  ;;  %v14037_v55 = vmul.f32 1.442695, %v2457_v19  ;;  %v2664_v51 = vsub.f32 0.0, %v14030_v39 }
 0x49b   : > { %v9846_v38 = vpop.eup %9845  ;;  %v4697_v60 = vrot.slane %v4696_v11, 2  ;;  %v4733_v42 = vadd.f32 %v4732_v50, %v4731_v40  ;;  %v4544_v1 = vmul.f32 %v9844_v18, %v13897_v24  ;;  %9865 = vrcp.f32 %v3397_v56  ;;  %v14051_v40 = vpop.f32.mrb[87].mxu1 }
 0x49c   : > { %v9848_v61 = vpop.eup %9847  ;;  %v4793_v30 = vadd.f32 %v4792_v6, %v4535_v34  ;;  %v4346_v63 = vmul.f32 %v9846_v38, %v13919_v43  ;;  %9867 = vpow2.f32 %v3206_v17  ;;  %v3226_v32 = vmul.f32 1.442695, %v2664_v51  ;;  %16084 = vst [vmem:[#allocation74_spill] sm:$0xff] %v14051_v40  ;;  %v16085_v43 = vld [vmem:[#allocation50_spill] sm:$0xff]  ;;  %v14062_v6 = vpop.f32.mrb[127].mxu0 }
 0x49d   : > { %v9850_v54 = vpop.eup %9849  ;;  %v4698_v62 = vadd.f32 %v4697_v60, %v4696_v11  ;;  %v4734_v19 = vrot.slane %v4733_v42, 2  ;;  %v4757_v48 = vadd.f32 %v4756_v58, %v4544_v1  ;;  %v4545_v10 = vmul.f32 %v9848_v61, %v13902_v45  ;;  %16086 = vst [vmem:[#allocation90_spill] sm:$0xff] %v14062_v6 }
 0x49e   : > { %v9852_v24 = vpop.eup %9851  ;;  %v4347_v50 = vmul.f32 %v9850_v54, %v13938_v15  ;;  %9869 = vpow2.f32 %v2810_v8  ;;  %v14056_v56 = vadd.f32 %v13510_v14, %v13910_v29  ;;  %v14060_v17 = vadd.f32 %v16085_v43, %v12790_v25 }
 0x49f   : > { %v9854_v11 = vpop.eup %9853  ;;  %v4699_v58 = vrot.slane %v4698_v62, 1  ;;  %v4735_v18 = vadd.f32 %v4734_v19, %v4733_v42  ;;  %v4794_v45 = vadd.f32 %v4793_v30, %v4545_v10  ;;  %v3604_v34 = vadd.f32 1.0, %v9852_v24 }
 0x4a0   : > { %v9856_v51 = vpop.eup %9855  ;;  %v3406_v38 = vadd.f32 1.0, %v9854_v11  ;;  %9871 = vpow2.f32 %v3208_v9  ;;  %v2466_v15 = vsub.f32 0.0, %v14056_v56  ;;  %v2665_v8 = vsub.f32 0.0, %v14060_v17  ;;  %v16087_v9 = vld [vmem:[#allocation75_spill] sm:$0xff]  ;;  %v16088_v11 = vld [vmem:[#allocation92_spill] sm:$0xff] }
 0x4a1   : > { %v9858_v14 = vpop.eup %9857  ;;  %v4700_v60 = vadd.f32 %v4699_v58, %v4698_v62  ;;  %v4736_v1 = vrot.slane %v4735_v18, 1  ;;  %9873 = vrcp.f32 %v3604_v34  ;;  %v3605_v61 = vadd.f32 1.0, %v9856_v51  ;;  %v16089_v34 = vld [vmem:[#allocation93_spill] sm:$0xff] }
 0x4a2   : > { %v9860_v54 = vpop.eup %9859  ;;  %9875 = vrcp.f32 %v3406_v38  ;;  %v3407_v43 = vadd.f32 1.0, %v9858_v14  ;;  %v2830_v6 = vmul.f32 1.442695, %v2466_v15  ;;  %v3228_v40 = vmul.f32 1.442695, %v2665_v8 }
 0x4a3   : > { %v9862_v42 = vpop.eup %9861  ;;  %v4737_v10 = vadd.f32 %v4736_v1, %v4735_v18  ;;  %v4554_v30 = vmul.f32 %v9860_v54, %v13932_v57  ;;  %9877 = vrcp.f32 %v3605_v61  ;;  %v14069_v19 = vadd.f32 %v16087_v9, %v13928_v20  ;;  %v14080_v18 = vpop.f32.mrb[88].mxu1 }
 0x4a4   : > { %v9864_v24 = vpop.eup %9863  ;;  %v4356_v62 = vmul.f32 %v9862_v42, %v13942_v5  ;;  %9879 = vrcp.f32 %v3407_v43  ;;  %v14074_v58 = vadd.f32 %v16088_v11, %v12751_v53  ;;  %v14078_v51 = vadd.f32 %v16089_v34, %v13910_v29  ;;  %16090 = vst [vmem:[#allocation91_spill] sm:$0xff] %v14080_v18  ;;  %v14082_v57 = vpop.f32.mrb[128].mxu0 }
 0x4a5   : > { %16091 = vst [vmem:[#allocation50_spill] sm:$0xff] %v14082_v57  ;;  %v9866_v38 = vpop.eup %9865  ;;  %v5044_v15 = vcombine.low %v4700_v60, %v4737_v10  ;;  %v4758_v8 = vadd.f32 %v4757_v48, %v4554_v30  ;;  %v4555_v14 = vmul.f32 %v9864_v24, %v13950_v16  ;;  %9881 = vpow2.f32 %v14037_v55  ;;  %v14086_v5 = vpop.f32.mrb[89].mxu1 }
 0x4a6   : > { %16092 = vst [vmem:[#allocation75_spill] sm:$0xff] %v14086_v5  ;;  %v14088_v1 = vpop.f32.mrb[129].mxu0  ;;  %v9868_v61 = vpop.eup %9867  ;;  %v4812_v54 = vadd.f32 %v4356_v62, %v4346_v63  ;;  %v4357_v43 = vmul.f32 %v9866_v38, %v13961_v22  ;;  %9883 = vpow2.f32 %v3226_v32  ;;  %v2467_v42 = vsub.f32 0.0, %v14069_v19  ;;  %v16094_v22 = vld [vmem:[#allocation94_spill] sm:$0xff] }
 0x4a7   : > { %16093 = vst [vmem:[#allocation92_spill] sm:$0xff] %v14088_v1  ;;  %v14093_v9 = vrot.slane %v5044_v15, %v13890_v3  ;;  %v4795_v60 = vadd.f32 %v4794_v45, %v4555_v14  ;;  %v3614_v48 = vadd.f32 1.0, %v9868_v61  ;;  %9885 = vpow2.f32 %v2830_v6  ;;  %v16095_v45 = vld [vmem:[#allocation76_spill] sm:$0xff]  ;;  %v14110_v14 = vpop.f32.mrb[90].mxu1 }
 0x4a8   : > { %v9870_v16 = vpop.eup %9869  ;;  %v4849_v10 = vadd.f32 %v4357_v43, %v4347_v50  ;;  %9887 = vpow2.f32 %v3228_v40  ;;  %v2832_v55 = vmul.f32 1.442695, %v2467_v42  ;;  %v2674_v30 = vsub.f32 0.0, %v14074_v58  ;;  %16096 = vst [vmem:[#allocation93_spill] sm:$0xff] %v14110_v14 }
 0x4a9   : > { %9889 = vrcp.f32 %v3614_v48  ;;  %v3416_v24 = vadd.f32 1.0, %v9870_v16  ;;  %v2476_v63 = vsub.f32 0.0, %v14078_v51  ;;  %v14099_v32 = vadd.f32 %v16094_v22, %v12790_v25 }
 0x4aa   : > { %v9872_v62 = vpop.eup %9871  ;;  %9891 = vpow2.f32 %v2832_v55  ;;  %v3246_v11 = vmul.f32 1.442695, %v2674_v30  ;;  %v14103_v6 = vadd.f32 %v16095_v45, %v13928_v20  ;;  %v14107_v40 = vadd.f32 %v13559_v2, %v12751_v53 }
 0x4ab   : > { %v9874_v50 = vpop.eup %9873  ;;  %9893 = vrcp.f32 %v3416_v24  ;;  %v3615_v34 = vadd.f32 1.0, %v9872_v62  ;;  %v2850_v38 = vmul.f32 1.442695, %v2476_v63  ;;  %v2675_v15 = vsub.f32 0.0, %v14099_v32  ;;  %v14121_v62 = vpop.f32.mrb[130].mxu0 }
 0x4ac   : > { %v9876_v61 = vpop.eup %9875  ;;  %v4564_v43 = vmul.f32 %v9874_v50, %v13969_v47  ;;  %9895 = vpow2.f32 %v3246_v11  ;;  %v2477_v42 = vsub.f32 0.0, %v14103_v6  ;;  %v2684_v48 = vsub.f32 0.0, %v14107_v40  ;;  %16097 = vst [vmem:[#allocation94_spill] sm:$0xff] %v14121_v62 }
 0x4ad   : > { %v9878_v16 = vpop.eup %9877  ;;  %v4366_v2 = vmul.f32 %v9876_v61, %v13978_v7  ;;  %9897 = vrcp.f32 %v3615_v34  ;;  %v3248_v55 = vmul.f32 1.442695, %v2675_v15  ;;  %v14118_v30 = vadd.f32 %v13563_v26, %v13910_v29 }
 0x4ae   : > { %v9880_v24 = vpop.eup %9879  ;;  %v4759_v63 = vadd.f32 %v4758_v8, %v4564_v43  ;;  %v4565_v22 = vmul.f32 %v9878_v16, %v13988_v13  ;;  %9899 = vpow2.f32 %v2850_v38  ;;  %v2852_v47 = vmul.f32 1.442695, %v2477_v42  ;;  %v16098_v38 = vld [vmem:[#allocation49_spill] sm:$0xff]  ;;  %v16101_v16 = vld [vmem:[#allocation95_spill] sm:$0xff] }
 0x4af   : > { %v9882_v11 = vpop.eup %9881  ;;  %v4813_v45 = vadd.f32 %v4812_v54, %v4366_v2  ;;  %v4367_v50 = vmul.f32 %v9880_v24, %v13999_v46  ;;  %9901 = vpow2.f32 %v3248_v55  ;;  %v3266_v7 = vmul.f32 1.442695, %v2684_v48  ;;  %v14131_v54 = vpop.f32.mrb[91].mxu1 }
 0x4b0   : > { %v9884_v34 = vpop.eup %9883  ;;  %v4796_v15 = vadd.f32 %v4795_v60, %v4565_v22  ;;  %v3417_v61 = vadd.f32 1.0, %v9882_v11  ;;  %9903 = vpow2.f32 %v2852_v47  ;;  %v2486_v26 = vsub.f32 0.0, %v14118_v30  ;;  %16099 = vst [vmem:[#allocation76_spill] sm:$0xff] %v14131_v54  ;;  %v14133_v46 = vpop.f32.mrb[131].mxu0  ;;  %v16102_v22 = vld [vmem:[#allocation96_spill] sm:$0xff] }
 0x4b1   : > { %v9886_v14 = vpop.eup %9885  ;;  %v14125_v8 = vadd.f32 %v4849_v10, %v4367_v50  ;;  %v3624_v13 = vadd.f32 1.0, %v9884_v34  ;;  %9905 = vpow2.f32 %v3266_v7  ;;  %v14129_v43 = vadd.f32 %v16098_v38, %v12790_v25  ;;  %16100 = vst [vmem:[#allocation49_spill] sm:$0xff] %v14133_v46  ;;  %v16103_v7 = vld [vmem:[#allocation97_spill] sm:$0xff] }
 0x4b2   : > { %v9888_v42 = vpop.eup %9887  ;;  %9907 = vrcp.f32 %v3417_v61  ;;  %v3426_v60 = vadd.f32 1.0, %v9886_v14  ;;  %v2870_v48 = vmul.f32 1.442695, %v2486_v26  ;;  %v14137_v2 = vadd.f32 %v16101_v16, %v13928_v20 }
 0x4b3   : > { %v9890_v10 = vpop.eup %9889  ;;  %9909 = vrcp.f32 %v3624_v13  ;;  %v3625_v55 = vadd.f32 1.0, %v9888_v42  ;;  %v2685_v24 = vsub.f32 0.0, %v14129_v43  ;;  %v14142_v47 = vadd.f32 %v16102_v22, %v12751_v53 }
 0x4b4   : > { %v9892_v11 = vpop.eup %9891  ;;  %v4574_v50 = vmul.f32 %v9890_v10, %v14003_v0  ;;  %9911 = vrcp.f32 %v3426_v60  ;;  %v2487_v14 = vsub.f32 0.0, %v14137_v2  ;;  %v14148_v34 = vadd.f32 %v16103_v7, %v13910_v29 }
 0x4b5   : > { %v9894_v61 = vpop.eup %9893  ;;  %9913 = vrcp.f32 %v3625_v55  ;;  %v3427_v26 = vadd.f32 1.0, %v9892_v11  ;;  %v3268_v13 = vmul.f32 1.442695, %v2685_v24  ;;  %v2694_v38 = vsub.f32 0.0, %v14142_v47  ;;  %v16104_v24 = vld [vmem:[#allocation44_spill] sm:$0xff] }
 0x4b6   : > { %v9896_v42 = vpop.eup %9895  ;;  %v4760_v16 = vadd.f32 %v4759_v63, %v4574_v50  ;;  %v4376_v22 = vmul.f32 %v9894_v61, %v14008_v52  ;;  %9915 = vpow2.f32 %v2870_v48  ;;  %v2872_v46 = vmul.f32 1.442695, %v2487_v14  ;;  %v14158_v63 = vpop.f32.mrb[92].mxu1  ;;  %v16107_v61 = vld [vmem:[#allocation58_spill] sm:$0xff] }
 0x4b7   : > { %v9898_v0 = vpop.eup %9897  ;;  %9917 = vrcp.f32 %v3427_v26  ;;  %v3634_v60 = vadd.f32 1.0, %v9896_v42  ;;  %v3286_v10 = vmul.f32 1.442695, %v2694_v38  ;;  %v2496_v54 = vsub.f32 0.0, %v14148_v34  ;;  %16105 = vst [vmem:[#allocation95_spill] sm:$0xff] %v14158_v63  ;;  %v14160_v52 = vpop.f32.mrb[132].mxu0 }
 0x4b8   : > { %v9900_v7 = vpop.eup %9899  ;;  %v4814_v62 = vadd.f32 %v4813_v45, %v4376_v22  ;;  %v4575_v55 = vmul.f32 %v9898_v0, %v14015_v12  ;;  %9919 = vpow2.f32 %v3268_v13  ;;  %v14156_v11 = vadd.f32 %v16104_v24, %v12790_v25  ;;  %16106 = vst [vmem:[#allocation96_spill] sm:$0xff] %v14160_v52  ;;  %v14166_v45 = vpop.f32.mrb[93].mxu1 }
 0x4b9   : > { %v9902_v48 = vpop.eup %9901  ;;  %9921 = vrcp.f32 %v3634_v60  ;;  %v3436_v50 = vadd.f32 1.0, %v9900_v7  ;;  %v2890_v14 = vmul.f32 1.442695, %v2496_v54  ;;  %v14164_v26 = vadd.f32 %v16107_v61, %v13928_v20  ;;  %16108 = vst [vmem:[#allocation97_spill] sm:$0xff] %v14166_v45  ;;  %v14168_v12 = vpop.f32.mrb[133].mxu0  ;;  %v16112_v61 = vld [vmem:[#allocation52_spill] sm:$0xff] }
 0x4ba   : > { %16109 = vst [vmem:[#allocation44_spill] sm:$0xff] %v14168_v12  ;;  %v9904_v13 = vpop.eup %9903  ;;  %v4797_v38 = vadd.f32 %v4796_v15, %v4575_v55  ;;  %v3635_v42 = vadd.f32 1.0, %v9902_v48  ;;  %9923 = vpow2.f32 %v2872_v46  ;;  %v2695_v22 = vsub.f32 0.0, %v14156_v11  ;;  %v14171_v0 = vpop.f32.mrb[94].mxu1  ;;  %v16114_v48 = vld [vmem:[#allocation59_spill] sm:$0xff] }
 0x4bb   : > { %16110 = vst [vmem:[#allocation58_spill] sm:$0xff] %v14171_v0  ;;  %v14173_v24 = vpop.f32.mrb[134].mxu0  ;;  %v9906_v60 = vpop.eup %9905  ;;  %9925 = vrcp.f32 %v3436_v50  ;;  %v3437_v54 = vadd.f32 1.0, %v9904_v13  ;;  %v2497_v7 = vsub.f32 0.0, %v14164_v26  ;;  %v14178_v45 = vadd.f32 %v16112_v61, %v12751_v53 }
 0x4bc   : > { %16111 = vst [vmem:[#allocation98_spill] sm:$0xff] %v14173_v24  ;;  %v14180_v12 = vpop.f32.mrb[95].mxu1  ;;  %v9908_v15 = vpop.eup %9907  ;;  %9927 = vrcp.f32 %v3635_v42  ;;  %v3644_v46 = vadd.f32 1.0, %v9906_v60  ;;  %v3288_v55 = vmul.f32 1.442695, %v2695_v22  ;;  %v14184_v0 = vadd.f32 %v16114_v48, %v13910_v29  ;;  %v16116_v22 = vld [vmem:[#allocation77_spill] sm:$0xff] }
 0x4bd   : > { %16113 = vst [vmem:[#allocation52_spill] sm:$0xff] %v14180_v12  ;;  %v14186_v24 = vpop.f32.mrb[135].mxu0  ;;  %v9910_v50 = vpop.eup %9909  ;;  %v4377_v13 = vmul.f32 %v9908_v15, %v14025_v27  ;;  %9929 = vrcp.f32 %v3437_v54  ;;  %v2892_v52 = vmul.f32 1.442695, %v2497_v7  ;;  %v2704_v61 = vsub.f32 0.0, %v14178_v45 }
 0x4be   : > { %16115 = vst [vmem:[#allocation59_spill] sm:$0xff] %v14186_v24  ;;  %v9912_v63 = vpop.eup %9911  ;;  %v4584_v12 = vmul.f32 %v9910_v50, %v14030_v39  ;;  %9931 = vrcp.f32 %v3644_v46  ;;  %v2506_v42 = vsub.f32 0.0, %v14184_v0  ;;  %v14194_v60 = vadd.f32 %v16116_v22, %v12790_v25 }
 0x4bf   : > { %v9914_v48 = vpop.eup %9913  ;;  %v4851_v24 = vadd.f32 %v14125_v8, %v4377_v13  ;;  %v4386_v1 = vmul.f32 %v9912_v63, %v14056_v56  ;;  %9933 = vpow2.f32 %v3286_v10  ;;  %v3306_v27 = vmul.f32 1.442695, %v2704_v61  ;;  %v16117_v56 = vld [vmem:[#allocation61_spill] sm:$0xff]  ;;  %v16119_v61 = vld [vmem:[#allocation51_spill] sm:$0xff] }
 0x4c0   : > { %v9916_v54 = vpop.eup %9915  ;;  %v4761_v7 = vadd.f32 %v4760_v16, %v4584_v12  ;;  %v4585_v15 = vmul.f32 %v9914_v48, %v14060_v17  ;;  %9935 = vpow2.f32 %v2890_v14  ;;  %v2910_v39 = vmul.f32 1.442695, %v2506_v42  ;;  %v16118_v14 = vld [vmem:[#allocation60_spill] sm:$0xff] }
 0x4c1   : > { %v9918_v46 = vpop.eup %9917  ;;  %v4815_v50 = vadd.f32 %v4814_v62, %v4386_v1  ;;  %v3446_v5 = vadd.f32 1.0, %v9916_v54  ;;  %9937 = vpow2.f32 %v3288_v55  ;;  %v2705_v22 = vsub.f32 0.0, %v14194_v60 }
 0x4c2   : > { %v9920_v57 = vpop.eup %9919  ;;  %v4798_v18 = vadd.f32 %v4797_v38, %v4585_v15  ;;  %v4387_v8 = vmul.f32 %v9918_v46, %v14069_v19  ;;  %9939 = vpow2.f32 %v2892_v52  ;;  %v14203_v10 = vadd.f32 %v16117_v56, %v13928_v20  ;;  %v14211_v52 = vpop.f32.mrb[96].mxu1 }
 0x4c3   : > { %v9922_v16 = vpop.eup %9921  ;;  %9941 = vrcp.f32 %v3446_v5  ;;  %v3645_v17 = vadd.f32 1.0, %v9920_v57  ;;  %v3308_v63 = vmul.f32 1.442695, %v2705_v22  ;;  %v14207_v1 = vadd.f32 %v16118_v14, %v12751_v53  ;;  %v14213_v38 = vpop.f32.mrb[136].mxu0 }
 0x4c4   : > { %v9924_v62 = vpop.eup %9923  ;;  %v4852_v12 = vadd.f32 %v4851_v24, %v4387_v8  ;;  %v4594_v55 = vmul.f32 %v9922_v16, %v14074_v58  ;;  %9943 = vpow2.f32 %v3306_v27  ;;  %v2507_v19 = vsub.f32 0.0, %v14203_v10 }
 0x4c5   : > { %v9926_v13 = vpop.eup %9925  ;;  %9945 = vrcp.f32 %v3645_v17  ;;  %v3447_v5 = vadd.f32 1.0, %v9924_v62  ;;  %v2714_v57 = vsub.f32 0.0, %v14207_v1  ;;  %v14218_v42 = vadd.f32 %v16119_v61, %v13910_v29  ;;  %v16120_v17 = vld [vmem:[#allocation78_spill] sm:$0xff] }
 0x4c6   : > { %v9928_v48 = vpop.eup %9927  ;;  %v4762_v24 = vadd.f32 %v4761_v7, %v4594_v55  ;;  %v4396_v58 = vmul.f32 %v9926_v13, %v14078_v51  ;;  %9947 = vpow2.f32 %v2910_v39  ;;  %v2912_v27 = vmul.f32 1.442695, %v2507_v19 }
 0x4c7   : > { %v9930_v54 = vpop.eup %9929  ;;  %v4595_v15 = vmul.f32 %v9928_v48, %v14099_v32  ;;  %9949 = vrcp.f32 %v3447_v5  ;;  %v3326_v46 = vmul.f32 1.442695, %v2714_v57  ;;  %v2516_v22 = vsub.f32 0.0, %v14218_v42  ;;  %v14229_v32 = vpop.f32.mrb[97].mxu1 }
 0x4c8   : > { %v9932_v8 = vpop.eup %9931  ;;  %v4816_v56 = vadd.f32 %v4815_v50, %v4396_v58  ;;  %v4397_v16 = vmul.f32 %v9930_v54, %v14103_v6  ;;  %9951 = vpow2.f32 %v3308_v63  ;;  %v14226_v14 = vadd.f32 %v16120_v17, %v12790_v25  ;;  %v14232_v6 = vpop.f32.mrb[137].mxu0 }
 0x4c9   : > { %v9934_v7 = vpop.eup %9933  ;;  %v4799_v51 = vadd.f32 %v4798_v18, %v4595_v15  ;;  %v4604_v39 = vmul.f32 %v9932_v8, %v14107_v40  ;;  %9953 = vpow2.f32 %v2912_v27  ;;  %v2930_v62 = vmul.f32 1.442695, %v2516_v22  ;;  %16121 = vst [vmem:[#allocation77_spill] sm:$0xff] %v14232_v6  ;;  %v16122_v18 = vld [vmem:[#allocation43_spill] sm:$0xff]  ;;  %v14244_v27 = vpop.f32.mrb[98].mxu1 }
 0x4ca   : > { %v9936_v55 = vpop.eup %9935  ;;  %v4853_v19 = vadd.f32 %v4852_v12, %v4397_v16  ;;  %v3654_v13 = vadd.f32 1.0, %v9934_v7  ;;  %9955 = vpow2.f32 %v3326_v46  ;;  %v2715_v50 = vsub.f32 0.0, %v14226_v14  ;;  %16123 = vst [vmem:[#allocation61_spill] sm:$0xff] %v14244_v27  ;;  %v16124_v46 = vld [vmem:[#allocation80_spill] sm:$0xff]  ;;  %v14251_v8 = vpop.f32.mrb[138].mxu0  ;;  %v16126_v7 = vld [vmem:[#allocation79_spill] sm:$0xff] }
 0x4cb   : > { %v9938_v63 = vpop.eup %9937  ;;  %v14234_v5 = vadd.f32 %v4762_v24, %v4604_v39  ;;  %v3456_v57 = vadd.f32 1.0, %v9936_v55  ;;  %9957 = vpow2.f32 %v2930_v62  ;;  %v14238_v40 = vadd.f32 %v16122_v18, %v13928_v20  ;;  %16125 = vst [vmem:[#allocation60_spill] sm:$0xff] %v14251_v8 }
 0x4cc   : > { %v9940_v61 = vpop.eup %9939  ;;  %9959 = vrcp.f32 %v3654_v13  ;;  %v3655_v48 = vadd.f32 1.0, %v9938_v63  ;;  %v3328_v58 = vmul.f32 1.442695, %v2715_v50  ;;  %v14242_v12 = vadd.f32 %v13709_v31, %v12751_v53  ;;  %v14260_v63 = vpop.f32.mrb[99].mxu1 }
 0x4cd   : > { %v9942_v54 = vpop.eup %9941  ;;  %9961 = vrcp.f32 %v3456_v57  ;;  %v3457_v24 = vadd.f32 1.0, %v9940_v61  ;;  %v2517_v15 = vsub.f32 0.0, %v14238_v40  ;;  %v14249_v22 = vadd.f32 %v16124_v46, %v13910_v29  ;;  %16127 = vst [vmem:[#allocation51_spill] sm:$0xff] %v14260_v63  ;;  %v14262_v57 = vpop.f32.mrb[139].mxu0  ;;  %v16129_v63 = vld [vmem:[#allocation62_spill] sm:$0xff] }
 0x4ce   : > { %v9944_v16 = vpop.eup %9943  ;;  %v4406_v17 = vmul.f32 %v9942_v54, %v14118_v30  ;;  %9963 = vrcp.f32 %v3655_v48  ;;  %v2724_v31 = vsub.f32 0.0, %v14242_v12  ;;  %v14257_v39 = vadd.f32 %v16126_v7, %v12790_v25  ;;  %16128 = vst [vmem:[#allocation78_spill] sm:$0xff] %v14262_v57 }
 0x4cf   : > { %v9946_v62 = vpop.eup %9945  ;;  %9965 = vrcp.f32 %v3457_v24  ;;  %v3664_v55 = vadd.f32 1.0, %v9944_v16  ;;  %v2932_v13 = vmul.f32 1.442695, %v2517_v15  ;;  %v2526_v50 = vsub.f32 0.0, %v14249_v22 }
 0x4d0   : > { %v9948_v18 = vpop.eup %9947  ;;  %v4817_v61 = vadd.f32 %v4816_v56, %v4406_v17  ;;  %v4605_v30 = vmul.f32 %v9946_v62, %v14129_v43  ;;  %9967 = vpow2.f32 %v3328_v58  ;;  %v3346_v48 = vmul.f32 1.442695, %v2724_v31  ;;  %v16130_v17 = vld [vmem:[#allocation81_spill] sm:$0xff] }
 0x4d1   : > { %v9950_v54 = vpop.eup %9949  ;;  %9969 = vrcp.f32 %v3664_v55  ;;  %v3466_v46 = vadd.f32 1.0, %v9948_v18  ;;  %v2950_v7 = vmul.f32 1.442695, %v2526_v50  ;;  %v2725_v24 = vsub.f32 0.0, %v14257_v39  ;;  %v16131_v18 = vld [vmem:[#allocation63_spill] sm:$0xff] }
 0x4d2   : > { %v9952_v16 = vpop.eup %9951  ;;  %v4800_v15 = vadd.f32 %v4799_v51, %v4605_v30  ;;  %v4407_v8 = vmul.f32 %v9950_v54, %v14137_v2  ;;  %9971 = vpow2.f32 %v2932_v13  ;;  %v14269_v57 = vadd.f32 %v16129_v63, %v13928_v20  ;;  %v14281_v54 = vpop.f32.mrb[100].mxu1 }
 0x4d3   : > { %v9954_v56 = vpop.eup %9953  ;;  %9973 = vrcp.f32 %v3466_v46  ;;  %v3665_v43 = vadd.f32 1.0, %v9952_v16  ;;  %v3348_v58 = vmul.f32 1.442695, %v2725_v24  ;;  %v14273_v31 = vadd.f32 %v16130_v17, %v12751_v53  ;;  %16132 = vst [vmem:[#allocation43_spill] sm:$0xff] %v14281_v54  ;;  %v14283_v46 = vpop.f32.mrb[140].mxu0 }
 0x4d4   : > { %v9956_v62 = vpop.eup %9955  ;;  %v4854_v55 = vadd.f32 %v4853_v19, %v4407_v8  ;;  %v3467_v50 = vadd.f32 1.0, %v9954_v56  ;;  %9975 = vpow2.f32 %v3346_v48  ;;  %v2527_v51 = vsub.f32 0.0, %v14269_v57  ;;  %16133 = vst [vmem:[#allocation80_spill] sm:$0xff] %v14283_v46  ;;  %v16134_v48 = vld [vmem:[#allocation46_spill] sm:$0xff]  ;;  %v14289_v16 = vpop.f32.mrb[101].mxu1 }
 0x4d5   : > { %v9958_v2 = vpop.eup %9957  ;;  %9977 = vrcp.f32 %v3665_v43  ;;  %v3674_v13 = vadd.f32 1.0, %v9956_v62  ;;  %v2734_v63 = vsub.f32 0.0, %v14273_v31  ;;  %v14279_v30 = vadd.f32 %v16131_v18, %v13910_v29  ;;  %16135 = vst [vmem:[#allocation79_spill] sm:$0xff] %v14289_v16  ;;  %v14291_v56 = vpop.f32.mrb[141].mxu0 }
 0x4d6   : > { %v9960_v53 = vpop.eup %9959  ;;  %9979 = vrcp.f32 %v3467_v50  ;;  %v3476_v19 = vadd.f32 1.0, %v9958_v2  ;;  %v2952_v8 = vmul.f32 1.442695, %v2527_v51  ;;  %v14287_v24 = vadd.f32 %v16134_v48, %v12790_v25  ;;  %16136 = vst [vmem:[#allocation62_spill] sm:$0xff] %v14291_v56  ;;  %v14295_v46 = vpop.f32.mrb[102].mxu1  ;;  %v16138_v2 = vld [vmem:[#allocation64_spill] sm:$0xff] }
 0x4d7   : > { %v9962_v43 = vpop.eup %9961  ;;  %v4614_v17 = vmul.f32 %v9960_v53, %v14142_v47  ;;  %9981 = vrcp.f32 %v3674_v13  ;;  %v3366_v62 = vmul.f32 1.442695, %v2734_v63  ;;  %v2536_v18 = vsub.f32 0.0, %v14279_v30  ;;  %16137 = vst [vmem:[#allocation81_spill] sm:$0xff] %v14295_v46  ;;  %v14305_v63 = vpop.f32.mrb[142].mxu0 }
 0x4d8   : > { %v9964_v50 = vpop.eup %9963  ;;  %v4416_v51 = vmul.f32 %v9962_v43, %v14148_v34  ;;  %9983 = vrcp.f32 %v3476_v19  ;;  %v2735_v25 = vsub.f32 0.0, %v14287_v24  ;;  %v14301_v48 = vadd.f32 %v16138_v2, %v13928_v20 }
 0x4d9   : > { %v9966_v56 = vpop.eup %9965  ;;  %v4764_v16 = vadd.f32 %v14234_v5, %v4614_v17  ;;  %v4615_v47 = vmul.f32 %v9964_v50, %v14156_v11  ;;  %9985 = vpow2.f32 %v2950_v7  ;;  %v2970_v13 = vmul.f32 1.442695, %v2536_v18  ;;  %v16139_v7 = vld [vmem:[#allocation82_spill] sm:$0xff] }
 0x4da   : > { %v9968_v53 = vpop.eup %9967  ;;  %v4818_v46 = vadd.f32 %v4817_v61, %v4416_v51  ;;  %v4417_v34 = vmul.f32 %v9966_v56, %v14164_v26  ;;  %9987 = vpow2.f32 %v3348_v58  ;;  %v3368_v19 = vmul.f32 1.442695, %v2735_v25  ;;  %v14325_v25 = vpop.f32.mrb[103].mxu1 }
 0x4db   : > { %v9970_v43 = vpop.eup %9969  ;;  %v4801_v54 = vadd.f32 %v4800_v15, %v4615_v47  ;;  %v3675_v27 = vadd.f32 1.0, %v9968_v53  ;;  %9989 = vpow2.f32 %v2952_v8  ;;  %v2537_v2 = vsub.f32 0.0, %v14301_v48 }
 0x4dc   : > { %v9972_v6 = vpop.eup %9971  ;;  %v4855_v5 = vadd.f32 %v4854_v55, %v4417_v34  ;;  %v4624_v11 = vmul.f32 %v9970_v43, %v14178_v45  ;;  %9991 = vpow2.f32 %v3366_v62  ;;  %v14312_v17 = vadd.f32 %v16139_v7, %v13910_v29  ;;  %v10692_v62 = vld [vmem:[#allocation11] sm:$0xff]  ;;  %v16141_v43 = vld [vmem:[#allocation66_spill] sm:$0xff] }
 0x4dd   : > { %v9974_v61 = vpop.eup %9973  ;;  %9993 = vrcp.f32 %v3675_v27  ;;  %v3477_v26 = vadd.f32 1.0, %v9972_v6  ;;  %v2972_v58 = vmul.f32 1.442695, %v2537_v2  ;;  %v15834_v56 = vsub.s32 6, %v16059_v4  ;;  %v16140_v6 = vld [vmem:[#allocation65_spill] sm:$0xff] }
 0x4de   : > { %v9976_v15 = vpop.eup %9975  ;;  %v4765_v18 = vadd.f32 %v4764_v16, %v4624_v11  ;;  %v4426_v8 = vmul.f32 %v9974_v61, %v14184_v0  ;;  %9995 = vpow2.f32 %v2970_v13  ;;  %v2546_v55 = vsub.f32 0.0, %v14312_v17 }
 0x4df   : > { %v9978_v50 = vpop.eup %9977  ;;  %9997 = vrcp.f32 %v3477_v26  ;;  %v3684_v45 = vadd.f32 1.0, %v9976_v15  ;;  %v14319_v51 = vrot.slane %v10692_v62, %v15834_v56  ;;  %v14323_v27 = vadd.f32 %v16140_v6, %v13928_v20 }
 0x4e0   : > { %v9980_v16 = vpop.eup %9979  ;;  %v4819_v47 = vadd.f32 %v4818_v46, %v4426_v8  ;;  %v4625_v0 = vmul.f32 %v9978_v50, %v14194_v60  ;;  %9999 = vpow2.f32 %v3368_v19  ;;  %v2990_v13 = vmul.f32 1.442695, %v2546_v55  ;;  %v14336_v60 = vpop.f32.mrb[143].mxu0 }
 0x4e1   : > { %v9982_v53 = vpop.eup %9981  ;;  %v4427_v34 = vmul.f32 %v9980_v16, %v14203_v10  ;;  %10001 = vrcp.f32 %v3684_v45  ;;  %v14331_v2 = vadd.f32 %v16141_v43, %v14319_v51  ;;  %v2547_v11 = vsub.f32 0.0, %v14323_v27 }
 0x4e2   : > { %v9984_v7 = vpop.eup %9983  ;;  %v4802_v61 = vadd.f32 %v4801_v54, %v4625_v0  ;;  %v4634_v26 = vmul.f32 %v9982_v53, %v14207_v1  ;;  %10003 = vpow2.f32 %v2972_v58  ;;  %v15835_v46 = vsub.s32 7, %v16059_v4 }
 0x4e3   : > { %v9986_v19 = vpop.eup %9985  ;;  %v4856_v15 = vadd.f32 %v4855_v5, %v4427_v34  ;;  %v4436_v10 = vmul.f32 %v9984_v7, %v14218_v42  ;;  %10005 = vpow2.f32 %v2990_v13  ;;  %v2428_v8 = vsub.f32 0.0, %v14331_v2 }
 0x4e4   : > { %v9988_v55 = vpop.eup %9987  ;;  %v4766_v50 = vadd.f32 %v4765_v18, %v4634_v26  ;;  %v3486_v45 = vadd.f32 1.0, %v9986_v19  ;;  %v2992_v6 = vmul.f32 1.442695, %v2547_v11  ;;  %v14342_v54 = vrot.slane %v10692_v62, %v15835_v46  ;;  %v16142_v18 = vld [vmem:[#allocation83_spill] sm:$0xff] }
 0x4e5   : > { %v9990_v1 = vpop.eup %9989  ;;  %v14344_v58 = vadd.f32 %v4819_v47, %v4436_v10  ;;  %v3685_v16 = vadd.f32 1.0, %v9988_v55  ;;  %v2754_v0 = vmul.f32 1.442695, %v2428_v8  ;;  %v14348_v5 = vadd.f32 %v13834_v49, %v13910_v29  ;;  %v14367_v55 = vpop.f32.mrb[104].mxu1 }
 0x4e6   : > { %v9992_v42 = vpop.eup %9991  ;;  %10007 = vrcp.f32 %v3486_v45  ;;  %v3487_v13 = vadd.f32 1.0, %v9990_v1  ;;  %v14352_v53 = vadd.f32 %v16142_v18, %v14342_v54  ;;  %v14356_v4 = vadd.f32 %v13842_v36, %v14319_v51  ;;  %v14369_v45 = vpop.f32.mrb[144].mxu0 }
 0x4e7   : > { %v9994_v62 = vpop.eup %9993  ;;  %10009 = vrcp.f32 %v3685_v16  ;;  %v3694_v47 = vadd.f32 1.0, %v9992_v42  ;;  %v2556_v34 = vsub.f32 0.0, %v14348_v5  ;;  %v14361_v49 = vadd.f32 %v13854_v59, %v13928_v20  ;;  %16143 = vst [vmem:[#allocation63_spill] sm:$0xff] %v14369_v45  ;;  %v14372_v42 = vpop.f32.mrb[105].mxu1 }
 0x4e8   : > { %v9996_v43 = vpop.eup %9995  ;;  %v4635_v11 = vmul.f32 %v9994_v62, %v14226_v14  ;;  %10011 = vrcp.f32 %v3487_v13  ;;  %v2429_v7 = vsub.f32 0.0, %v14352_v53  ;;  %v2438_v26 = vsub.f32 0.0, %v14356_v4  ;;  %16144 = vst [vmem:[#allocation46_spill] sm:$0xff] %v14372_v42  ;;  %v14374_v13 = vpop.f32.mrb[145].mxu0 }
 0x4e9   : > { %v9998_v19 = vpop.eup %9997  ;;  %10013 = vrcp.f32 %v3694_v47  ;;  %v3496_v36 = vadd.f32 1.0, %v9996_v43  ;;  %v3010_v10 = vmul.f32 1.442695, %v2556_v34  ;;  %v2557_v8 = vsub.f32 0.0, %v14361_v49  ;;  %16145 = vst [vmem:[#allocation64_spill] sm:$0xff] %v14374_v13  ;;  %v14376_v43 = vpop.f32.mrb[106].mxu1 }
 0x4ea   : > { %v10000_v59 = vpop.eup %9999  ;;  %v4803_v1 = vadd.f32 %v4802_v61, %v4635_v11  ;;  %v4437_v16 = vmul.f32 %v9998_v19, %v14238_v40  ;;  %10015 = vpow2.f32 %v2754_v0  ;;  %v2756_v14 = vmul.f32 1.442695, %v2429_v7  ;;  %16146 = vst [vmem:[#allocation82_spill] sm:$0xff] %v14376_v43  ;;  %v14383_v61 = vpop.f32.mrb[146].mxu0  ;;  %v16148_v7 = vld [vmem:[#allocation84_spill] sm:$0xff]  ;;  %v16149_v19 = vld [vmem:[#allocation45_spill] sm:$0xff] }
 0x4eb   : > { %v10002_v18 = vpop.eup %10001  ;;  %10017 = vrcp.f32 %v3496_v36  ;;  %v3695_v62 = vadd.f32 1.0, %v10000_v59  ;;  %v2774_v47 = vmul.f32 1.442695, %v2438_v26  ;;  %v3012_v34 = vmul.f32 1.442695, %v2557_v8  ;;  %16147 = vst [vmem:[#allocation65_spill] sm:$0xff] %v14383_v61 }
 0x4ec   : > { %v10004_v56 = vpop.eup %10003  ;;  %v4857_v46 = vadd.f32 %v4856_v15, %v4437_v16  ;;  %v4644_v45 = vmul.f32 %v10002_v18, %v14242_v12  ;;  %10019 = vpow2.f32 %v2992_v6  ;;  %v14381_v40 = vadd.f32 %v13856_v23, %v14342_v54  ;;  %v14393_v15 = vpop.f32.mrb[107].mxu1  ;;  %v16152_v16 = vld [vmem:[#allocation70_spill] sm:$0xff] }
 0x4ed   : > { %v10006_v0 = vpop.eup %10005  ;;  %10021 = vrcp.f32 %v3695_v62  ;;  %v3497_v11 = vadd.f32 1.0, %v10004_v56  ;;  %v14387_v26 = vadd.f32 %v16148_v7, %v13910_v29  ;;  %v14391_v36 = vadd.f32 %v16149_v19, %v14319_v51  ;;  %16150 = vst [vmem:[#allocation66_spill] sm:$0xff] %v14393_v15  ;;  %v14395_v12 = vpop.f32.mrb[147].mxu0  ;;  %v16153_v19 = vld [vmem:[#allocation85_spill] sm:$0xff] }
 0x4ee   : > { %16151 = vst [vmem:[#allocation83_spill] sm:$0xff] %v14395_v12  ;;  %v4767_v6 = vadd.f32 %v4766_v50, %v4644_v45  ;;  %v3506_v23 = vadd.f32 1.0, %v10006_v0  ;;  %10023 = vpow2.f32 %v2756_v14  ;;  %v2439_v8 = vsub.f32 0.0, %v14381_v40  ;;  %v16154_v50 = vld [vmem:[#allocation86_spill] sm:$0xff] }
 0x4ef   : > { %10025 = vrcp.f32 %v3497_v11  ;;  %v2566_v56 = vsub.f32 0.0, %v14387_v26  ;;  %v2448_v59 = vsub.f32 0.0, %v14391_v36  ;;  %v14402_v18 = vadd.f32 %v16152_v16, %v13928_v20 }
 0x4f0   : > { %v10008_v62 = vpop.eup %10007  ;;  %10027 = vrcp.f32 %v3506_v23  ;;  %v2776_v7 = vmul.f32 1.442695, %v2439_v8  ;;  %v14406_v12 = vadd.f32 %v16153_v19, %v14342_v54  ;;  %v14410_v45 = vadd.f32 %v16154_v50, %v13910_v29 }
 0x4f1   : > { %v10010_v14 = vpop.eup %10009  ;;  %v4446_v0 = vmul.f32 %v10008_v62, %v14249_v22  ;;  %10029 = vpow2.f32 %v3010_v10  ;;  %v3030_v11 = vmul.f32 1.442695, %v2566_v56  ;;  %v2794_v15 = vmul.f32 1.442695, %v2448_v59  ;;  %v14419_v22 = vpop.f32.mrb[108].mxu1 }
 0x4f2   : > { %v10012_v61 = vpop.eup %10011  ;;  %v4645_v16 = vmul.f32 %v10010_v14, %v14257_v39  ;;  %10031 = vpow2.f32 %v2774_v47  ;;  %v2567_v23 = vsub.f32 0.0, %v14402_v18  ;;  %v2449_v8 = vsub.f32 0.0, %v14406_v12  ;;  %16155 = vst [vmem:[#allocation84_spill] sm:$0xff] %v14419_v22  ;;  %v14421_v10 = vpop.f32.mrb[148].mxu0 }
 0x4f3   : > { %v10014_v19 = vpop.eup %10013  ;;  %v4821_v43 = vadd.f32 %v14344_v58, %v4446_v0  ;;  %v4447_v50 = vmul.f32 %v10012_v61, %v14269_v57  ;;  %10033 = vpow2.f32 %v3012_v34  ;;  %v2576_v13 = vsub.f32 0.0, %v14410_v45  ;;  %16156 = vst [vmem:[#allocation45_spill] sm:$0xff] %v14421_v10  ;;  %v14424_v62 = vpop.f32.mrb[109].mxu1 }
 0x4f4   : > { %v10016_v56 = vpop.eup %10015  ;;  %v4804_v59 = vadd.f32 %v4803_v1, %v4645_v16  ;;  %v4654_v39 = vmul.f32 %v10014_v19, %v14273_v31  ;;  %10035 = vpow2.f32 %v2776_v7  ;;  %v3032_v47 = vmul.f32 1.442695, %v2567_v23  ;;  %16157 = vst [vmem:[#allocation70_spill] sm:$0xff] %v14424_v62  ;;  %v16158_v31 = vld [vmem:[#allocation87_spill] sm:$0xff]  ;;  %v16159_v16 = vld [vmem:[#allocation68_spill] sm:$0xff] }
 0x4f5   : > { %v10018_v14 = vpop.eup %10017  ;;  %v4858_v42 = vadd.f32 %v4857_v46, %v4447_v50  ;;  %v3388_v58 = vadd.f32 1.0, %v10016_v56  ;;  %10037 = vpow2.f32 %v3030_v11  ;;  %v2796_v57 = vmul.f32 1.442695, %v2449_v8 }
 0x4f6   : > { %v10020_v34 = vpop.eup %10019  ;;  %v4768_v61 = vadd.f32 %v4767_v6, %v4654_v39  ;;  %v4456_v0 = vmul.f32 %v10018_v14, %v14279_v30  ;;  %10039 = vpow2.f32 %v2794_v15  ;;  %v3050_v22 = vmul.f32 1.442695, %v2576_v13  ;;  %v14436_v30 = vpop.f32.mrb[149].mxu0 }
 0x4f7   : > { %v10022_v10 = vpop.eup %10021  ;;  %10041 = vrcp.f32 %v3388_v58  ;;  %v3507_v1 = vadd.f32 1.0, %v10020_v34  ;;  %v14429_v7 = vadd.f32 %v16158_v31, %v14319_v51  ;;  %v14433_v23 = vadd.f32 %v16159_v16, %v13928_v20  ;;  %16160 = vst [vmem:[#allocation85_spill] sm:$0xff] %v14436_v30 }
 0x4f8   : > { %v10024_v46 = vpop.eup %10023  ;;  %v4769_v11 = vrot.slane %v4768_v61, 4  ;;  %v4822_v8 = vadd.f32 %v4821_v43, %v4456_v0  ;;  %v4655_v6 = vmul.f32 %v10022_v10, %v14287_v24  ;;  %10043 = vpow2.f32 %v3032_v47 }
 0x4f9   : > { %v10026_v13 = vpop.eup %10025  ;;  %10045 = vrcp.f32 %v3507_v1  ;;  %v3389_v15 = vadd.f32 1.0, %v10024_v46  ;;  %v2458_v19 = vsub.f32 0.0, %v14429_v7  ;;  %v2577_v50 = vsub.f32 0.0, %v14433_v23 }
 0x4fa   : > { %v10028_v56 = vpop.eup %10027  ;;  %v4770_v39 = vadd.f32 %v4769_v11, %v4768_v61  ;;  %v4805_v14 = vadd.f32 %v4804_v59, %v4655_v6  ;;  %v4457_v58 = vmul.f32 %v10026_v13, %v14301_v48  ;;  %10047 = vpow2.f32 %v2796_v57  ;;  %v16161_v59 = vld [vmem:[#allocation67_spill] sm:$0xff]  ;;  %v14448_v57 = vpop.f32.mrb[110].mxu1 }
 0x4fb   : > { %v10030_v34 = vpop.eup %10029  ;;  %v4466_v43 = vmul.f32 %v10028_v56, %v14312_v17  ;;  %10049 = vrcp.f32 %v3389_v15  ;;  %v2814_v24 = vmul.f32 1.442695, %v2458_v19  ;;  %v3052_v10 = vmul.f32 1.442695, %v2577_v50  ;;  %v14450_v13 = vpop.f32.mrb[150].mxu0 }
 0x4fc   : > { %v10032_v47 = vpop.eup %10031  ;;  %v4771_v0 = vrot.slane %v4770_v39, 2  ;;  %v4806_v1 = vrot.slane %v4805_v14, 4  ;;  %v4859_v31 = vadd.f32 %v4858_v42, %v4457_v58  ;;  %v3516_v16 = vadd.f32 1.0, %v10030_v34 }
 0x4fd   : > { %v10034_v46 = vpop.eup %10033  ;;  %v14442_v30 = vadd.f32 %v4822_v8, %v4466_v43  ;;  %v3398_v62 = vadd.f32 1.0, %v10032_v47  ;;  %10051 = vpow2.f32 %v3050_v22  ;;  %v14446_v48 = vadd.f32 %v16161_v59, %v14342_v54  ;;  %v14460_v47 = vpop.f32.mrb[151].mxu0 }
 0x4fe   : > { %v10036_v17 = vpop.eup %10035  ;;  %v4772_v61 = vadd.f32 %v4771_v0, %v4770_v39  ;;  %v4807_v11 = vadd.f32 %v4806_v1, %v4805_v14  ;;  %10053 = vrcp.f32 %v3516_v16  ;;  %v3517_v6 = vadd.f32 1.0, %v10034_v46  ;;  %v14457_v39 = vpop.f32.mrb[111].mxu1 }
 0x4ff   : > { %v10038_v42 = vpop.eup %10037  ;;  %10055 = vrcp.f32 %v3398_v62  ;;  %v3399_v15 = vadd.f32 1.0, %v10036_v17  ;;  %v2459_v8 = vsub.f32 0.0, %v14446_v48  ;;  %v14455_v22 = vadd.f32 %v13963_v21, %v13910_v29 }
 0x500   : > { %v10040_v19 = vpop.eup %10039  ;;  %v4773_v50 = vrot.slane %v4772_v61, 1  ;;  %v4808_v56 = vrot.slane %v4807_v11, 2  ;;  %10057 = vrcp.f32 %v3517_v6  ;;  %v3526_v58 = vadd.f32 1.0, %v10038_v42 }
 0x501   : > { %v10042_v14 = vpop.eup %10041  ;;  %10059 = vrcp.f32 %v3399_v15  ;;  %v3408_v34 = vadd.f32 1.0, %v10040_v19  ;;  %v2816_v43 = vmul.f32 1.442695, %v2459_v8  ;;  %v2586_v62 = vsub.f32 0.0, %v14455_v22  ;;  %v16162_v19 = vld [vmem:[#allocation48_spill] sm:$0xff] }
 0x502   : > { %v10044_v0 = vpop.eup %10043  ;;  %v4774_v1 = vadd.f32 %v4773_v50, %v4772_v61  ;;  %v4809_v16 = vadd.f32 %v4808_v56, %v4807_v11  ;;  %v4348_v21 = vmul.f32 %v10042_v14, %v14331_v2  ;;  %10061 = vrcp.f32 %v3526_v58  ;;  %v16163_v56 = vld [vmem:[#allocation71_spill] sm:$0xff] }
 0x503   : > { %v10046_v46 = vpop.eup %10045  ;;  %10063 = vrcp.f32 %v3408_v34  ;;  %v3527_v59 = vadd.f32 1.0, %v10044_v0  ;;  %v3070_v17 = vmul.f32 1.442695, %v2586_v62  ;;  %v14465_v6 = vadd.f32 %v13965_v33, %v14319_v51 }
 0x504   : > { %v10048_v42 = vpop.eup %10047  ;;  %v4810_v15 = vrot.slane %v4809_v16, 1  ;;  %v4467_v8 = vmul.f32 %v10046_v46, %v14323_v27  ;;  %10065 = vpow2.f32 %v2814_v24  ;;  %v14470_v61 = vadd.f32 %v16162_v19, %v13928_v20  ;;  %v14480_v46 = vpop.f32.mrb[152].mxu0 }
 0x505   : > { %v10050_v11 = vpop.eup %10049  ;;  %10067 = vrcp.f32 %v3527_v59  ;;  %v3409_v2 = vadd.f32 1.0, %v10048_v42  ;;  %v2468_v50 = vsub.f32 0.0, %v14465_v6  ;;  %v14475_v58 = vadd.f32 %v16163_v56, %v14342_v54  ;;  %v14482_v59 = vpop.f32.mrb[112].mxu1 }
 0x506   : > { %v4811_v33 = vadd.f32 %v4810_v15, %v4809_v16  ;;  %v4860_v14 = vadd.f32 %v4859_v31, %v4467_v8  ;;  %v4349_v34 = vmul.f32 %v10050_v11, %v14352_v53  ;;  %10069 = vpow2.f32 %v3052_v10  ;;  %16164 = vst [vmem:[#allocation86_spill] sm:$0xff] %v14482_v59  ;;  %v16165_v31 = vld [vmem:[#allocation73_spill] sm:$0xff]  ;;  %v14488_v53 = vpop.f32.mrb[153].mxu0  ;;  %v14490_v10 = vpop.f32.mrb[113].mxu1 }
 0x507   : > { %v10052_v27 = vpop.eup %10051  ;;  %10071 = vrcp.f32 %v3409_v2  ;;  %v2834_v24 = vmul.f32 1.442695, %v2468_v50  ;;  %v2587_v62 = vsub.f32 0.0, %v14470_v61  ;;  %v2469_v0 = vsub.f32 0.0, %v14475_v58  ;;  %16166 = vst [vmem:[#allocation87_spill] sm:$0xff] %v14488_v53  ;;  %16167 = vst [vmem:[#allocation68_spill] sm:$0xff] %v14490_v10 }
 0x508   : > { %v10054_v42 = vpop.eup %10053  ;;  %v5045_v19 = vcombine.low %v4774_v1, %v4811_v33  ;;  %v3536_v56 = vadd.f32 1.0, %v10052_v27  ;;  %10073 = vpow2.f32 %v2816_v43  ;;  %v14486_v16 = vadd.f32 %v16165_v31, %v13910_v29  ;;  %v14493_v50 = vpop.f32.mrb[154].mxu0 }
 0x509   : > { %v10056_v15 = vpop.eup %10055  ;;  %v4476_v8 = vmul.f32 %v10054_v42, %v14348_v5  ;;  %10075 = vpow2.f32 %v3070_v17  ;;  %v3072_v11 = vmul.f32 1.442695, %v2587_v62  ;;  %v2836_v2 = vmul.f32 1.442695, %v2469_v0  ;;  %16168 = vst [vmem:[#allocation67_spill] sm:$0xff] %v14493_v50  ;;  %v14495_v59 = vpop.f32.mrb[114].mxu1 }
 0x50a   : > { %16169 = vst [vmem:[#allocation48_spill] sm:$0xff] %v14495_v59  ;;  %v10058_v1 = vpop.eup %10057  ;;  %v5061_v43 = vrot.slane %v5045_v19, %v13890_v3  ;;  %v4358_v33 = vmul.f32 %v10056_v15, %v14356_v4  ;;  %10077 = vrcp.f32 %v3536_v56  ;;  %v2596_v27 = vsub.f32 0.0, %v14486_v16  ;;  %v16170_v17 = vld [vmem:[#allocation47_spill] sm:$0xff]  ;;  %v14506_v0 = vpop.f32.mrb[155].mxu0 }
 0x50b   : > { %v10060_v31 = vpop.eup %10059  ;;  %v4824_v10 = vadd.f32 %v14442_v30, %v4476_v8  ;;  %v4477_v5 = vmul.f32 %v10058_v1, %v14361_v49  ;;  %10079 = vpow2.f32 %v2834_v24  ;;  %v14504_v62 = vadd.f32 %v16170_v17, %v14319_v51  ;;  %16171 = vst [vmem:[#allocation71_spill] sm:$0xff] %v14506_v0  ;;  %v14511_v24 = vpop.f32.mrb[115].mxu1 }
 0x50c   : > { %v10062_v42 = vpop.eup %10061  ;;  %v5076_v19 = vcombine.low %v14093_v9, %v5061_v43  ;;  %v4886_v59 = vadd.f32 %v4358_v33, %v4348_v21  ;;  %v4359_v4 = vmul.f32 %v10060_v31, %v14381_v40  ;;  %10081 = vpow2.f32 %v3072_v11  ;;  %16172 = vst [vmem:[#allocation73_spill] sm:$0xff] %v14511_v24 }
 0x50d   : > { %v10064_v56 = vpop.eup %10063  ;;  %v4861_v15 = vadd.f32 %v4860_v14, %v4477_v5  ;;  %v4486_v30 = vmul.f32 %v10062_v42, %v14387_v26  ;;  %10083 = vpow2.f32 %v2836_v2  ;;  %v3090_v49 = vmul.f32 1.442695, %v2596_v27  ;;  %v16174_v14 = vld [vmem:[#allocation72_spill] sm:$0xff] }
 0x50e   : > { %v10066_v8 = vpop.eup %10065  ;;  %v14514_v1 = vrot.slane %v5076_v19, %v13890_v3  ;;  %v4923_v17 = vadd.f32 %v4359_v4, %v4349_v34  ;;  %v4368_v0 = vmul.f32 %v10064_v56, %v14391_v36  ;;  %v2478_v9 = vsub.f32 0.0, %v14504_v62  ;;  %v16175_v34 = vld [vmem:[#allocation88_spill] sm:$0xff] }
 0x50f   : > { %v10068_v21 = vpop.eup %10067  ;;  %v4825_v40 = vadd.f32 %v4824_v10, %v4486_v30  ;;  %v3418_v11 = vadd.f32 1.0, %v10066_v8  ;;  %10085 = vpow2.f32 %v3090_v49  ;;  %v14520_v26 = vadd.f32 %v16174_v14, %v13928_v20 }
 0x510   : > { %16173 = vst [vmem:[#allocation47_spill] sm:$0xff] %v14514_v1  ;;  %v10070_v2 = vpop.eup %10069  ;;  %v14522_v43 = vadd.f32 %v4886_v59, %v4368_v0  ;;  %v4487_v33 = vmul.f32 %v10068_v21, %v14402_v18  ;;  %v2854_v27 = vmul.f32 1.442695, %v2478_v9  ;;  %v14527_v31 = vadd.f32 %v16175_v34, %v14342_v54  ;;  %v16176_v34 = vld [vmem:[#allocation89_spill] sm:$0xff] }
 0x511   : > { %v10072_v36 = vpop.eup %10071  ;;  %10087 = vrcp.f32 %v3418_v11  ;;  %v3537_v5 = vadd.f32 1.0, %v10070_v2  ;;  %v2597_v10 = vsub.f32 0.0, %v14520_v26  ;;  %v14532_v42 = vadd.f32 %v14032_v28, %v13910_v29 }
 0x512   : > { %v10074_v19 = vpop.eup %10073  ;;  %v14534_v4 = vadd.f32 %v4861_v15, %v4487_v33  ;;  %v4369_v59 = vmul.f32 %v10072_v36, %v14406_v12  ;;  %10089 = vpow2.f32 %v2854_v27  ;;  %v2479_v18 = vsub.f32 0.0, %v14527_v31 }
 0x513   : > { %v10076_v0 = vpop.eup %10075  ;;  %10091 = vrcp.f32 %v3537_v5  ;;  %v3419_v56 = vadd.f32 1.0, %v10074_v19  ;;  %v3092_v30 = vmul.f32 1.442695, %v2597_v10  ;;  %v2606_v49 = vsub.f32 0.0, %v14532_v42  ;;  %v14558_v19 = vpop.f32.mrb[156].mxu0 }
 0x514   : > { %v10078_v8 = vpop.eup %10077  ;;  %v14539_v9 = vadd.f32 %v4923_v17, %v4369_v59  ;;  %v3546_v21 = vadd.f32 1.0, %v10076_v0  ;;  %v2856_v28 = vmul.f32 1.442695, %v2479_v18  ;;  %v14543_v15 = vadd.f32 %v14034_v44, %v14319_v51  ;;  %16177 = vst [vmem:[#allocation72_spill] sm:$0xff] %v14558_v19 }
 0x515   : > { %v10080_v11 = vpop.eup %10079  ;;  %v4496_v12 = vmul.f32 %v10078_v8, %v14410_v45  ;;  %10093 = vrcp.f32 %v3419_v56  ;;  %v3110_v14 = vmul.f32 1.442695, %v2606_v49  ;;  %v14548_v2 = vadd.f32 %v14040_v41, %v13928_v20  ;;  %v14560_v41 = vpop.f32.mrb[116].mxu1 }
 0x516   : > { %v10082_v33 = vpop.eup %10081  ;;  %10095 = vrcp.f32 %v3546_v21  ;;  %v3428_v27 = vadd.f32 1.0, %v10080_v11  ;;  %v2488_v17 = vsub.f32 0.0, %v14543_v15  ;;  %v14553_v36 = vadd.f32 %v16176_v34, %v14342_v54  ;;  %16178 = vst [vmem:[#allocation88_spill] sm:$0xff] %v14560_v41  ;;  %v14571_v8 = vpop.f32.mrb[157].mxu0 }
 0x517   : > { %v10084_v44 = vpop.eup %10083  ;;  %v14555_v5 = vadd.f32 %v4825_v40, %v4496_v12  ;;  %v3547_v10 = vadd.f32 1.0, %v10082_v33  ;;  %10097 = vpow2.f32 %v3092_v30  ;;  %v2607_v45 = vsub.f32 0.0, %v14548_v2  ;;  %16179 = vst [vmem:[#allocation89_spill] sm:$0xff] %v14571_v8  ;;  %v14573_v21 = vpop.f32.mrb[117].mxu1  ;;  %v16181_v33 = vld [vmem:[#allocation74_spill] sm:$0xff] }
 0x518   : > { %10099 = vrcp.f32 %v3428_v27  ;;  %v3429_v59 = vadd.f32 1.0, %v10084_v44  ;;  %v2874_v18 = vmul.f32 1.442695, %v2488_v17  ;;  %v2489_v0 = vsub.f32 0.0, %v14553_v36  ;;  %16180 = vst [vmem:[#allocation99_spill] sm:$0xff] %v14573_v21 }
 0x519   : > { %v10086_v56 = vpop.eup %10085  ;;  %10101 = vrcp.f32 %v3547_v10  ;;  %v3112_v49 = vmul.f32 1.442695, %v2607_v45  ;;  %v14565_v40 = vadd.f32 %v14045_v35, %v13910_v29  ;;  %v14569_v30 = vadd.f32 %v14047_v37, %v14319_v51  ;;  %v16182_v37 = vld [vmem:[#allocation90_spill] sm:$0xff] }
 0x51a   : > { %10103 = vrcp.f32 %v3429_v59  ;;  %v3556_v11 = vadd.f32 1.0, %v10086_v56  ;;  %v2876_v12 = vmul.f32 1.442695, %v2489_v0  ;;  %v14577_v27 = vadd.f32 %v16181_v33, %v13928_v20  ;;  %v16183_v0 = vld [vmem:[#allocation91_spill] sm:$0xff]  ;;  %v14591_v33 = vpop.f32.mrb[158].mxu0 }
 0x51b   : > { %v10088_v17 = vpop.eup %10087  ;;  %10105 = vpow2.f32 %v2856_v28  ;;  %v2616_v35 = vsub.f32 0.0, %v14565_v40  ;;  %v2498_v34 = vsub.f32 0.0, %v14569_v30  ;;  %v14583_v44 = vadd.f32 %v16182_v37, %v14342_v54  ;;  %16184 = vst [vmem:[#allocation74_spill] sm:$0xff] %v14591_v33  ;;  %v14593_v28 = vpop.f32.mrb[118].mxu1 }
 0x51c   : > { %v10090_v10 = vpop.eup %10089  ;;  %v4378_v45 = vmul.f32 %v10088_v17, %v14429_v7  ;;  %10107 = vrcp.f32 %v3556_v11  ;;  %v2617_v59 = vsub.f32 0.0, %v14577_v27  ;;  %v14589_v56 = vadd.f32 %v16183_v0, %v13910_v29  ;;  %16185 = vst [vmem:[#allocation90_spill] sm:$0xff] %v14593_v28  ;;  %v14597_v17 = vpop.f32.mrb[159].mxu0 }
 0x51d   : > { %v10092_v1 = vpop.eup %10091  ;;  %v3438_v3 = vadd.f32 1.0, %v10090_v10  ;;  %10109 = vpow2.f32 %v3110_v14  ;;  %v3130_v21 = vmul.f32 1.442695, %v2616_v35  ;;  %v2894_v37 = vmul.f32 1.442695, %v2498_v34  ;;  %16186 = vst [vmem:[#allocation91_spill] sm:$0xff] %v14597_v17 }
 0x51e   : > { %v4888_v8 = vadd.f32 %v14522_v43, %v4378_v45  ;;  %v4497_v7 = vmul.f32 %v10092_v1, %v14433_v23  ;;  %10111 = vpow2.f32 %v2874_v18  ;;  %v3132_v11 = vmul.f32 1.442695, %v2617_v59  ;;  %v14599_v41 = vpop.f32.mrb[119].mxu1  ;;  %v16188_v14 = vld [vmem:[#allocation50_spill] sm:$0xff]  ;;  %v16189_v1 = vld [vmem:[#allocation75_spill] sm:$0xff] }
 0x51f   : > { %16187 = vst [vmem:[#allocation100_spill] sm:$0xff] %v14599_v41  ;;  %v10094_v0 = vpop.eup %10093  ;;  %10113 = vrcp.f32 %v3438_v3  ;;  %v2499_v33 = vsub.f32 0.0, %v14583_v44  ;;  %v2626_v28 = vsub.f32 0.0, %v14589_v56  ;;  %v14605_v35 = vadd.f32 %v16188_v14, %v14319_v51 }
 0x520   : > { %v10096_v34 = vpop.eup %10095  ;;  %v4863_v43 = vadd.f32 %v14534_v4, %v4497_v7  ;;  %v4379_v23 = vmul.f32 %v10094_v0, %v14446_v48  ;;  %10115 = vpow2.f32 %v3112_v49  ;;  %v14611_v18 = vadd.f32 %v16189_v1, %v13928_v20 }
 0x521   : > { %v10098_v10 = vpop.eup %10097  ;;  %v4506_v3 = vmul.f32 %v10096_v34, %v14455_v22  ;;  %10117 = vpow2.f32 %v2876_v12  ;;  %v2896_v45 = vmul.f32 1.442695, %v2499_v33  ;;  %v3150_v59 = vmul.f32 1.442695, %v2626_v28  ;;  %v16190_v33 = vld [vmem:[#allocation92_spill] sm:$0xff] }
 0x522   : > { %v10100_v41 = vpop.eup %10099  ;;  %v4925_v14 = vadd.f32 %v14539_v9, %v4379_v23  ;;  %v3557_v17 = vadd.f32 1.0, %v10098_v10  ;;  %10119 = vpow2.f32 %v3130_v21  ;;  %v2508_v4 = vsub.f32 0.0, %v14605_v35  ;;  %v14625_v23 = vpop.f32.mrb[160].mxu0 }
 0x523   : > { %v10102_v7 = vpop.eup %10101  ;;  %v4827_v48 = vadd.f32 %v14555_v5, %v4506_v3  ;;  %v4388_v49 = vmul.f32 %v10100_v41, %v14465_v6  ;;  %10121 = vpow2.f32 %v2894_v37  ;;  %v2627_v0 = vsub.f32 0.0, %v14611_v18  ;;  %16191 = vst [vmem:[#allocation50_spill] sm:$0xff] %v14625_v23  ;;  %v14627_v6 = vpop.f32.mrb[120].mxu1 }
 0x524   : > { %v10104_v1 = vpop.eup %10103  ;;  %v4507_v22 = vmul.f32 %v10102_v7, %v14470_v61  ;;  %10123 = vrcp.f32 %v3557_v17  ;;  %v2914_v12 = vmul.f32 1.442695, %v2508_v4  ;;  %v14622_v9 = vadd.f32 %v16190_v33, %v14342_v54  ;;  %16192 = vst [vmem:[#allocation75_spill] sm:$0xff] %v14627_v6  ;;  %v14630_v17 = vpop.f32.mrb[161].mxu0 }
 0x525   : > { %v10106_v21 = vpop.eup %10105  ;;  %v4889_v28 = vadd.f32 %v4888_v8, %v4388_v49  ;;  %v4389_v34 = vmul.f32 %v10104_v1, %v14475_v58  ;;  %10125 = vpow2.f32 %v3132_v11  ;;  %v3152_v5 = vmul.f32 1.442695, %v2627_v0  ;;  %16193 = vst [vmem:[#allocation92_spill] sm:$0xff] %v14630_v17  ;;  %v16194_v58 = vld [vmem:[#allocation93_spill] sm:$0xff]  ;;  %v14639_v7 = vpop.f32.mrb[121].mxu1  ;;  %v16196_v0 = vld [vmem:[#allocation94_spill] sm:$0xff] }
 0x526   : > { %v10108_v41 = vpop.eup %10107  ;;  %v4864_v37 = vadd.f32 %v4863_v43, %v4507_v22  ;;  %v3439_v10 = vadd.f32 1.0, %v10106_v21  ;;  %10127 = vpow2.f32 %v2896_v45  ;;  %v2509_v61 = vsub.f32 0.0, %v14622_v9  ;;  %16195 = vst [vmem:[#allocation93_spill] sm:$0xff] %v14639_v7 }
 0x527   : > { %v10110_v3 = vpop.eup %10109  ;;  %v14632_v4 = vadd.f32 %v4925_v14, %v4389_v34  ;;  %v4516_v8 = vmul.f32 %v10108_v41, %v14486_v16  ;;  %10129 = vpow2.f32 %v3150_v59  ;;  %v14637_v11 = vadd.f32 %v16194_v58, %v13910_v29  ;;  %v16197_v41 = vld [vmem:[#allocation76_spill] sm:$0xff] }
 0x528   : > { %v10112_v49 = vpop.eup %10111  ;;  %10131 = vrcp.f32 %v3439_v10  ;;  %v3566_v43 = vadd.f32 1.0, %v10110_v3  ;;  %v2916_v45 = vmul.f32 1.442695, %v2509_v61  ;;  %v14643_v1 = vadd.f32 %v16196_v0, %v14319_v51 }
 0x529   : > { %v10114_v22 = vpop.eup %10113  ;;  %v14645_v14 = vadd.f32 %v4827_v48, %v4516_v8  ;;  %v3448_v33 = vadd.f32 1.0, %v10112_v49  ;;  %10133 = vpow2.f32 %v2914_v12  ;;  %v2636_v16 = vsub.f32 0.0, %v14637_v11  ;;  %v16198_v48 = vld [vmem:[#allocation49_spill] sm:$0xff] }
 0x52a   : > { %v10116_v59 = vpop.eup %10115  ;;  %v4398_v21 = vmul.f32 %v10114_v22, %v14504_v62  ;;  %10135 = vrcp.f32 %v3566_v43  ;;  %v2518_v34 = vsub.f32 0.0, %v14643_v1  ;;  %v14652_v10 = vadd.f32 %v16197_v41, %v13928_v20 }
 0x52b   : > { %v10118_v61 = vpop.eup %10117  ;;  %10137 = vrcp.f32 %v3448_v33  ;;  %v3567_v3 = vadd.f32 1.0, %v10116_v59  ;;  %v3170_v58 = vmul.f32 1.442695, %v2636_v16  ;;  %v14656_v8 = vadd.f32 %v16198_v48, %v14342_v54  ;;  %v14662_v33 = vpop.f32.mrb[162].mxu0  ;;  %v16200_v48 = vld [vmem:[#allocation95_spill] sm:$0xff] }
 0x52c   : > { %v10120_v12 = vpop.eup %10119  ;;  %v14658_v49 = vadd.f32 %v4889_v28, %v4398_v21  ;;  %v3449_v0 = vadd.f32 1.0, %v10118_v61  ;;  %10139 = vpow2.f32 %v3152_v5  ;;  %v2934_v62 = vmul.f32 1.442695, %v2518_v34  ;;  %16199 = vst [vmem:[#allocation94_spill] sm:$0xff] %v14662_v33  ;;  %v16201_v28 = vld [vmem:[#allocation96_spill] sm:$0xff] }
 0x52d   : > { %v10122_v43 = vpop.eup %10121  ;;  %10141 = vrcp.f32 %v3567_v3  ;;  %v3576_v22 = vadd.f32 1.0, %v10120_v12  ;;  %v2637_v41 = vsub.f32 0.0, %v14652_v10  ;;  %v2519_v7 = vsub.f32 0.0, %v14656_v8  ;;  %v14673_v12 = vpop.f32.mrb[122].mxu1 }
 0x52e   : > { %v10124_v16 = vpop.eup %10123  ;;  %10143 = vrcp.f32 %v3449_v0  ;;  %v3458_v59 = vadd.f32 1.0, %v10122_v43  ;;  %v14666_v17 = vadd.f32 %v16200_v48, %v13910_v29  ;;  %v14670_v5 = vadd.f32 %v16201_v28, %v14319_v51  ;;  %16202 = vst [vmem:[#allocation76_spill] sm:$0xff] %v14673_v12  ;;  %v16203_v28 = vld [vmem:[#allocation97_spill] sm:$0xff] }
 0x52f   : > { %v10126_v21 = vpop.eup %10125  ;;  %v4517_v34 = vmul.f32 %v10124_v16, %v14520_v26  ;;  %10145 = vrcp.f32 %v3576_v22  ;;  %v3172_v61 = vmul.f32 1.442695, %v2637_v41  ;;  %v2936_v3 = vmul.f32 1.442695, %v2519_v7  ;;  %v14681_v26 = vpop.f32.mrb[163].mxu0 }
 0x530   : > { %v10128_v33 = vpop.eup %10127  ;;  %10147 = vrcp.f32 %v3458_v59  ;;  %v3577_v0 = vadd.f32 1.0, %v10126_v21  ;;  %v2646_v43 = vsub.f32 0.0, %v14666_v17  ;;  %v2528_v48 = vsub.f32 0.0, %v14670_v5  ;;  %16204 = vst [vmem:[#allocation49_spill] sm:$0xff] %v14681_v26  ;;  %v14683_v59 = vpop.f32.mrb[123].mxu1 }
 0x531   : > { %v10130_v6 = vpop.eup %10129  ;;  %v4865_v23 = vadd.f32 %v4864_v37, %v4517_v34  ;;  %v3459_v19 = vadd.f32 1.0, %v10128_v33  ;;  %10149 = vpow2.f32 %v2916_v45  ;;  %v14679_v24 = vadd.f32 %v16203_v28, %v13928_v20  ;;  %16205 = vst [vmem:[#allocation95_spill] sm:$0xff] %v14683_v59  ;;  %v16206_v45 = vld [vmem:[#allocation44_spill] sm:$0xff] }
 0x532   : > { %v10132_v7 = vpop.eup %10131  ;;  %10151 = vrcp.f32 %v3577_v0  ;;  %v3586_v22 = vadd.f32 1.0, %v10130_v6  ;;  %v3190_v41 = vmul.f32 1.442695, %v2646_v43  ;;  %v2954_v16 = vmul.f32 1.442695, %v2528_v48  ;;  %v16207_v0 = vld [vmem:[#allocation58_spill] sm:$0xff] }
 0x533   : > { %v10134_v21 = vpop.eup %10133  ;;  %v4399_v12 = vmul.f32 %v10132_v7, %v14527_v31  ;;  %10153 = vrcp.f32 %v3459_v19  ;;  %v2647_v37 = vsub.f32 0.0, %v14679_v24  ;;  %v14689_v33 = vadd.f32 %v16206_v45, %v14342_v54  ;;  %v16208_v43 = vld [vmem:[#allocation98_spill] sm:$0xff] }
 0x534   : > { %v10136_v34 = vpop.eup %10135  ;;  %10155 = vrcp.f32 %v3586_v22  ;;  %v3468_v28 = vadd.f32 1.0, %v10134_v21  ;;  %v14693_v6 = vadd.f32 %v16207_v0, %v13910_v29  ;;  %v14697_v48 = vadd.f32 %v16208_v43, %v14319_v51 }
 0x535   : > { %v10138_v59 = vpop.eup %10137  ;;  %v4927_v31 = vadd.f32 %v14632_v4, %v4399_v12  ;;  %v4526_v19 = vmul.f32 %v10136_v34, %v14532_v42  ;;  %10157 = vpow2.f32 %v3170_v58  ;;  %v3192_v7 = vmul.f32 1.442695, %v2647_v37 }
 0x536   : > { %v10140_v45 = vpop.eup %10139  ;;  %v4408_v26 = vmul.f32 %v10138_v59, %v14543_v15  ;;  %10159 = vrcp.f32 %v3468_v28  ;;  %v2529_v22 = vsub.f32 0.0, %v14689_v33  ;;  %v2656_v21 = vsub.f32 0.0, %v14693_v6  ;;  %v14708_v15 = vpop.f32.mrb[164].mxu0 }
 0x537   : > { %v10142_v0 = vpop.eup %10141  ;;  %v4829_v50 = vadd.f32 %v14645_v14, %v4526_v19  ;;  %v3587_v43 = vadd.f32 1.0, %v10140_v45  ;;  %10161 = vpow2.f32 %v2934_v62  ;;  %v2538_v53 = vsub.f32 0.0, %v14697_v48  ;;  %v14710_v59 = vpop.f32.mrb[124].mxu1 }
 0x538   : > { %v10144_v4 = vpop.eup %10143  ;;  %v4891_v42 = vadd.f32 %v14658_v49, %v4408_v26  ;;  %v4527_v58 = vmul.f32 %v10142_v0, %v14548_v2  ;;  %10163 = vpow2.f32 %v3172_v61  ;;  %v2956_v12 = vmul.f32 1.442695, %v2529_v22  ;;  %v14713_v62 = vpop.f32.mrb[165].mxu0  ;;  %v16210_v2 = vld [vmem:[#allocation52_spill] sm:$0xff] }
 0x539   : > { %v10146_v37 = vpop.eup %10145  ;;  %v4409_v34 = vmul.f32 %v10144_v4, %v14553_v36  ;;  %10165 = vrcp.f32 %v3587_v43  ;;  %v3210_v14 = vmul.f32 1.442695, %v2656_v21  ;;  %v2974_v28 = vmul.f32 1.442695, %v2538_v53  ;;  %16209 = vst [vmem:[#allocation96_spill] sm:$0xff] %v14713_v62  ;;  %v14720_v26 = vpop.f32.mrb[125].mxu1 }
 0x53a   : > { %v10148_v19 = vpop.eup %10147  ;;  %v4866_v45 = vadd.f32 %v4865_v23, %v4527_v58  ;;  %v4536_v49 = vmul.f32 %v10146_v37, %v14565_v40  ;;  %10167 = vpow2.f32 %v2936_v3  ;;  %v14718_v61 = vadd.f32 %v16210_v2, %v13928_v20  ;;  %16211 = vst [vmem:[#allocation97_spill] sm:$0xff] %v14720_v26  ;;  %v16212_v53 = vld [vmem:[#allocation59_spill] sm:$0xff]  ;;  %v14728_v3 = vpop.f32.mrb[166].mxu0 }
 0x53b   : > { %v10150_v22 = vpop.eup %10149  ;;  %v4928_v0 = vadd.f32 %v4927_v31, %v4409_v34  ;;  %v4418_v36 = vmul.f32 %v10148_v19, %v14569_v30  ;;  %10169 = vpow2.f32 %v3190_v41  ;;  %v14725_v21 = vadd.f32 %v16212_v53, %v14342_v54  ;;  %16213 = vst [vmem:[#allocation44_spill] sm:$0xff] %v14728_v3 }
 0x53c   : > { %v10152_v43 = vpop.eup %10151  ;;  %v4830_v23 = vadd.f32 %v4829_v50, %v4536_v49  ;;  %v3469_v4 = vadd.f32 1.0, %v10150_v22  ;;  %10171 = vpow2.f32 %v2954_v16  ;;  %v2657_v40 = vsub.f32 0.0, %v14718_v61  ;;  %v14737_v16 = vpop.f32.mrb[126].mxu1 }
 0x53d   : > { %v10154_v58 = vpop.eup %10153  ;;  %v4892_v37 = vadd.f32 %v4891_v42, %v4418_v36  ;;  %v4537_v2 = vmul.f32 %v10152_v43, %v14577_v27  ;;  %10173 = vpow2.f32 %v3192_v7  ;;  %v2539_v30 = vsub.f32 0.0, %v14725_v21  ;;  %16214 = vst [vmem:[#allocation58_spill] sm:$0xff] %v14737_v16 }
 0x53e   : > { %v10156_v41 = vpop.eup %10155  ;;  %v4419_v31 = vmul.f32 %v10154_v58, %v14583_v44  ;;  %10175 = vrcp.f32 %v3469_v4  ;;  %v3212_v34 = vmul.f32 1.442695, %v2657_v40  ;;  %v14735_v50 = vadd.f32 %v14211_v52, %v13910_v29 }
 0x53f   : > { %v10158_v19 = vpop.eup %10157  ;;  %v4867_v49 = vadd.f32 %v4866_v45, %v4537_v2  ;;  %v4546_v42 = vmul.f32 %v10156_v41, %v14589_v56  ;;  %10177 = vpow2.f32 %v2956_v12  ;;  %v2976_v27 = vmul.f32 1.442695, %v2539_v30  ;;  %v16216_v30 = vld [vmem:[#allocation77_spill] sm:$0xff] }
 0x540   : > { %v10160_v7 = vpop.eup %10159  ;;  %v4929_v22 = vadd.f32 %v4928_v0, %v4419_v31  ;;  %v3596_v36 = vadd.f32 1.0, %v10158_v19  ;;  %10179 = vpow2.f32 %v3210_v14  ;;  %v2666_v44 = vsub.f32 0.0, %v14735_v50  ;;  %v14752_v14 = vpop.f32.mrb[167].mxu0 }
 0x541   : > { %v10162_v53 = vpop.eup %10161  ;;  %v14741_v43 = vadd.f32 %v4830_v23, %v4546_v42  ;;  %v4428_v52 = vmul.f32 %v10160_v7, %v14605_v35  ;;  %10181 = vpow2.f32 %v2974_v28  ;;  %v14746_v4 = vadd.f32 %v14213_v38, %v14319_v51  ;;  %16215 = vst [vmem:[#allocation98_spill] sm:$0xff] %v14752_v14 }
 0x542   : > { %v10164_v45 = vpop.eup %10163  ;;  %10183 = vrcp.f32 %v3596_v36  ;;  %v3478_v56 = vadd.f32 1.0, %v10162_v53  ;;  %v3230_v12 = vmul.f32 1.442695, %v2666_v44  ;;  %v14750_v0 = vadd.f32 %v14229_v32, %v13928_v20  ;;  %v14763_v32 = vpop.f32.mrb[127].mxu1 }
 0x543   : > { %v10166_v40 = vpop.eup %10165  ;;  %v14754_v23 = vadd.f32 %v4892_v37, %v4428_v52  ;;  %v3597_v58 = vadd.f32 1.0, %v10164_v45  ;;  %10185 = vpow2.f32 %v3212_v34  ;;  %v2548_v35 = vsub.f32 0.0, %v14746_v4  ;;  %16217 = vst [vmem:[#allocation52_spill] sm:$0xff] %v14763_v32  ;;  %v16218_v34 = vld [vmem:[#allocation61_spill] sm:$0xff] }
 0x544   : > { %v10168_v28 = vpop.eup %10167  ;;  %v4547_v38 = vmul.f32 %v10166_v40, %v14611_v18  ;;  %10187 = vrcp.f32 %v3478_v56  ;;  %v2667_v2 = vsub.f32 0.0, %v14750_v0  ;;  %v14761_v41 = vadd.f32 %v16216_v30, %v14342_v54 }
 0x545   : > { %v10170_v31 = vpop.eup %10169  ;;  %10189 = vrcp.f32 %v3597_v58  ;;  %v3479_v37 = vadd.f32 1.0, %v10168_v28  ;;  %v2994_v19 = vmul.f32 1.442695, %v2548_v35  ;;  %v14767_v42 = vadd.f32 %v16218_v34, %v13910_v29  ;;  %v16219_v35 = vld [vmem:[#allocation60_spill] sm:$0xff] }
 0x546   : > { %v10172_v7 = vpop.eup %10171  ;;  %v14769_v36 = vadd.f32 %v4867_v49, %v4547_v38  ;;  %v3606_v18 = vadd.f32 1.0, %v10170_v31  ;;  %10191 = vpow2.f32 %v2976_v27  ;;  %v3232_v44 = vmul.f32 1.442695, %v2667_v2  ;;  %v16220_v49 = vld [vmem:[#allocation51_spill] sm:$0xff] }
 0x547   : > { %v10174_v53 = vpop.eup %10173  ;;  %10193 = vrcp.f32 %v3479_v37  ;;  %v3488_v52 = vadd.f32 1.0, %v10172_v7  ;;  %v2549_v45 = vsub.f32 0.0, %v14761_v41  ;;  %v2676_v56 = vsub.f32 0.0, %v14767_v42 }
 0x548   : > { %v10176_v40 = vpop.eup %10175  ;;  %10195 = vrcp.f32 %v3606_v18  ;;  %v3607_v58 = vadd.f32 1.0, %v10174_v53  ;;  %v14775_v28 = vadd.f32 %v16219_v35, %v14319_v51  ;;  %v14779_v38 = vadd.f32 %v16220_v49, %v13928_v20  ;;  %v14784_v53 = vpop.f32.mrb[168].mxu0 }
 0x549   : > { %v10178_v27 = vpop.eup %10177  ;;  %v4429_v2 = vmul.f32 %v10176_v40, %v14622_v9  ;;  %10197 = vrcp.f32 %v3488_v52  ;;  %v2996_v30 = vmul.f32 1.442695, %v2549_v45  ;;  %v3250_v31 = vmul.f32 1.442695, %v2676_v56  ;;  %16221 = vst [vmem:[#allocation59_spill] sm:$0xff] %v14784_v53  ;;  %v14786_v35 = vpop.f32.mrb[128].mxu1 }
 0x54a   : > { %v10180_v37 = vpop.eup %10179  ;;  %10199 = vrcp.f32 %v3607_v58  ;;  %v3489_v34 = vadd.f32 1.0, %v10178_v27  ;;  %v2558_v7 = vsub.f32 0.0, %v14775_v28  ;;  %v2677_v18 = vsub.f32 0.0, %v14779_v38  ;;  %16222 = vst [vmem:[#allocation77_spill] sm:$0xff] %v14786_v35  ;;  %v16223_v9 = vld [vmem:[#allocation78_spill] sm:$0xff]  ;;  %v14792_v45 = vpop.f32.mrb[169].mxu0 }
 0x54b   : > { %v10182_v32 = vpop.eup %10181  ;;  %v4930_v49 = vadd.f32 %v4929_v22, %v4429_v2  ;;  %v3616_v14 = vadd.f32 1.0, %v10180_v37  ;;  %10201 = vpow2.f32 %v3230_v12  ;;  %v14790_v52 = vadd.f32 %v16223_v9, %v14342_v54  ;;  %16224 = vst [vmem:[#allocation61_spill] sm:$0xff] %v14792_v45  ;;  %v14794_v56 = vpop.f32.mrb[129].mxu1  ;;  %v16226_v12 = vld [vmem:[#allocation43_spill] sm:$0xff] }
 0x54c   : > { %16225 = vst [vmem:[#allocation60_spill] sm:$0xff] %v14794_v56  ;;  %v10184_v40 = vpop.eup %10183  ;;  %10203 = vrcp.f32 %v3489_v34  ;;  %v3498_v58 = vadd.f32 1.0, %v10182_v32  ;;  %v3014_v27 = vmul.f32 1.442695, %v2558_v7  ;;  %v3252_v16 = vmul.f32 1.442695, %v2677_v18 }
 0x54d   : > { %v10186_v53 = vpop.eup %10185  ;;  %v4556_v35 = vmul.f32 %v10184_v40, %v14637_v11  ;;  %10205 = vrcp.f32 %v3616_v14  ;;  %v2559_v22 = vsub.f32 0.0, %v14790_v52  ;;  %v14800_v2 = vadd.f32 %v16226_v12, %v13910_v29  ;;  %v14802_v37 = vpop.f32.mrb[170].mxu0  ;;  %v16229_v32 = vld [vmem:[#allocation80_spill] sm:$0xff]  ;;  %v16230_v11 = vld [vmem:[#allocation79_spill] sm:$0xff] }
 0x54e   : > { %16227 = vst [vmem:[#allocation51_spill] sm:$0xff] %v14802_v37  ;;  %v14804_v9 = vpop.f32.mrb[130].mxu1  ;;  %v10188_v56 = vpop.eup %10187  ;;  %10207 = vrcp.f32 %v3498_v58  ;;  %v3617_v34 = vadd.f32 1.0, %v10186_v53  ;;  %v14808_v7 = vadd.f32 %v16229_v32, %v14319_v51  ;;  %v14812_v14 = vadd.f32 %v16230_v11, %v13928_v20 }
 0x54f   : > { %16228 = vst [vmem:[#allocation78_spill] sm:$0xff] %v14804_v9  ;;  %v10190_v18 = vpop.eup %10189  ;;  %v4832_v40 = vadd.f32 %v14741_v43, %v4556_v35  ;;  %v4438_v12 = vmul.f32 %v10188_v56, %v14643_v1  ;;  %10209 = vpow2.f32 %v2994_v19  ;;  %v3016_v37 = vmul.f32 1.442695, %v2559_v22  ;;  %v14819_v32 = vpop.f32.mrb[171].mxu0 }
 0x550   : > { %v10192_v45 = vpop.eup %10191  ;;  %v4557_v9 = vmul.f32 %v10190_v18, %v14652_v10  ;;  %10211 = vrcp.f32 %v3617_v34  ;;  %v2686_v53 = vsub.f32 0.0, %v14800_v2  ;;  %v2568_v58 = vsub.f32 0.0, %v14808_v7  ;;  %16231 = vst [vmem:[#allocation43_spill] sm:$0xff] %v14819_v32  ;;  %v14821_v3 = vpop.f32.mrb[131].mxu1 }
 0x551   : > { %16232 = vst [vmem:[#allocation80_spill] sm:$0xff] %v14821_v3  ;;  %v10194_v11 = vpop.eup %10193  ;;  %v4894_v26 = vadd.f32 %v14754_v23, %v4438_v12  ;;  %v3499_v43 = vadd.f32 1.0, %v10192_v45  ;;  %10213 = vpow2.f32 %v3232_v44  ;;  %v2687_v1 = vsub.f32 0.0, %v14812_v14  ;;  %v16233_v44 = vld [vmem:[#allocation62_spill] sm:$0xff] }
 0x552   : > { %v10196_v19 = vpop.eup %10195  ;;  %v4869_v35 = vadd.f32 %v14769_v36, %v4557_v9  ;;  %v4439_v10 = vmul.f32 %v10194_v11, %v14656_v8  ;;  %10215 = vpow2.f32 %v2996_v30  ;;  %v3270_v56 = vmul.f32 1.442695, %v2686_v53  ;;  %v16234_v30 = vld [vmem:[#allocation81_spill] sm:$0xff] }
 0x553   : > { %v10198_v22 = vpop.eup %10197  ;;  %v4566_v34 = vmul.f32 %v10196_v19, %v14666_v17  ;;  %10217 = vrcp.f32 %v3499_v43  ;;  %v3034_v18 = vmul.f32 1.442695, %v2568_v58  ;;  %v3272_v3 = vmul.f32 1.442695, %v2687_v1 }
 0x554   : > { %v10200_v32 = vpop.eup %10199  ;;  %v4931_v62 = vadd.f32 %v4930_v49, %v4439_v10  ;;  %v4448_v23 = vmul.f32 %v10198_v22, %v14670_v5  ;;  %10219 = vpow2.f32 %v3250_v31  ;;  %v14831_v45 = vadd.f32 %v16233_v44, %v14342_v54 }
 0x555   : > { %v10202_v36 = vpop.eup %10201  ;;  %v4833_v9 = vadd.f32 %v4832_v40, %v4566_v34  ;;  %v4567_v8 = vmul.f32 %v10200_v32, %v14679_v24  ;;  %10221 = vpow2.f32 %v3014_v27  ;;  %v14836_v17 = vadd.f32 %v16234_v30, %v13910_v29 }
 0x556   : > { %v10204_v12 = vpop.eup %10203  ;;  %v4895_v53 = vadd.f32 %v4894_v26, %v4448_v23  ;;  %v3626_v58 = vadd.f32 1.0, %v10202_v36  ;;  %10223 = vpow2.f32 %v3252_v16  ;;  %v2569_v5 = vsub.f32 0.0, %v14831_v45 }
 0x557   : > { %v10206_v31 = vpop.eup %10205  ;;  %v4870_v49 = vadd.f32 %v4869_v35, %v4567_v8  ;;  %v4449_v11 = vmul.f32 %v10204_v12, %v14689_v33  ;;  %10225 = vpow2.f32 %v3016_v37  ;;  %v2696_v40 = vsub.f32 0.0, %v14836_v17  ;;  %v14847_v35 = vpop.f32.mrb[172].mxu0 }
 0x558   : > { %v10208_v43 = vpop.eup %10207  ;;  %v4576_v24 = vmul.f32 %v10206_v31, %v14693_v6  ;;  %10227 = vrcp.f32 %v3626_v58  ;;  %v3036_v27 = vmul.f32 1.442695, %v2569_v5  ;;  %v14844_v32 = vadd.f32 %v14305_v63, %v14319_v51  ;;  %v14849_v33 = vpop.f32.mrb[132].mxu1 }
 0x559   : > { %v10210_v26 = vpop.eup %10209  ;;  %v4932_v16 = vadd.f32 %v4931_v62, %v4449_v11  ;;  %v4458_v1 = vmul.f32 %v10208_v43, %v14697_v48  ;;  %10229 = vpow2.f32 %v3270_v56  ;;  %v3290_v19 = vmul.f32 1.442695, %v2696_v40  ;;  %v14852_v34 = vpop.f32.mrb[173].mxu0 }
 0x55a   : > { %v10212_v37 = vpop.eup %10211  ;;  %v4834_v10 = vadd.f32 %v4833_v9, %v4576_v24  ;;  %v3508_v22 = vadd.f32 1.0, %v10210_v26  ;;  %10231 = vpow2.f32 %v3034_v18  ;;  %v2578_v6 = vsub.f32 0.0, %v14844_v32  ;;  %v14861_v56 = vpop.f32.mrb[133].mxu1 }
 0x55b   : > { %v10214_v63 = vpop.eup %10213  ;;  %v14854_v23 = vadd.f32 %v4895_v53, %v4458_v1  ;;  %v4577_v62 = vmul.f32 %v10212_v37, %v14718_v61  ;;  %10233 = vpow2.f32 %v3272_v3  ;;  %v14859_v48 = vadd.f32 %v14325_v25, %v13928_v20  ;;  %v14880_v40 = vpop.f32.mrb[174].mxu0 }
 0x55c   : > { %v10216_v44 = vpop.eup %10215  ;;  %10235 = vrcp.f32 %v3508_v22  ;;  %v3627_v36 = vadd.f32 1.0, %v10214_v63  ;;  %v3054_v18 = vmul.f32 1.442695, %v2578_v6  ;;  %v14865_v9 = vadd.f32 %v14336_v60, %v14342_v54  ;;  %v14882_v43 = vpop.f32.mrb[134].mxu1 }
 0x55d   : > { %v10218_v8 = vpop.eup %10217  ;;  %v14867_v30 = vadd.f32 %v4870_v49, %v4577_v62  ;;  %v3509_v12 = vadd.f32 1.0, %v10216_v44  ;;  %10237 = vpow2.f32 %v3036_v27  ;;  %v2697_v61 = vsub.f32 0.0, %v14859_v48  ;;  %v16235_v49 = vld [vmem:[#allocation63_spill] sm:$0xff]  ;;  %16236 = vst [vmem:[#allocation79_spill] sm:$0xff] %v14882_v43  ;;  %v14888_v6 = vpop.f32.mrb[175].mxu0  ;;  %v16238_v44 = vld [vmem:[#allocation46_spill] sm:$0xff] }
 0x55e   : > { %v10220_v3 = vpop.eup %10219  ;;  %v4459_v25 = vmul.f32 %v10218_v8, %v14725_v21  ;;  %10239 = vrcp.f32 %v3627_v36  ;;  %v2579_v53 = vsub.f32 0.0, %v14865_v9  ;;  %v14874_v58 = vadd.f32 %v14367_v55, %v13910_v29  ;;  %16237 = vst [vmem:[#allocation62_spill] sm:$0xff] %v14888_v6 }
 0x55f   : > { %v10222_v5 = vpop.eup %10221  ;;  %10241 = vrcp.f32 %v3509_v12  ;;  %v3636_v60 = vadd.f32 1.0, %v10220_v3  ;;  %v3292_v31 = vmul.f32 1.442695, %v2697_v61  ;;  %v14878_v11 = vadd.f32 %v16235_v49, %v14319_v51 }
 0x560   : > { %v10224_v21 = vpop.eup %10223  ;;  %v14884_v24 = vadd.f32 %v4932_v16, %v4459_v25  ;;  %v3518_v27 = vadd.f32 1.0, %v10222_v5  ;;  %10243 = vpow2.f32 %v3290_v19  ;;  %v3056_v26 = vmul.f32 1.442695, %v2579_v53  ;;  %v16239_v16 = vld [vmem:[#allocation64_spill] sm:$0xff]  ;;  %v14899_v25 = vpop.f32.mrb[135].mxu1 }
 0x561   : > { %v10226_v55 = vpop.eup %10225  ;;  %10245 = vrcp.f32 %v3636_v60  ;;  %v3637_v1 = vadd.f32 1.0, %v10224_v21  ;;  %v2706_v37 = vsub.f32 0.0, %v14874_v58  ;;  %v2588_v22 = vsub.f32 0.0, %v14878_v11  ;;  %16240 = vst [vmem:[#allocation81_spill] sm:$0xff] %v14899_v25  ;;  %v16242_v25 = vld [vmem:[#allocation65_spill] sm:$0xff] }
 0x562   : > { %v10228_v63 = vpop.eup %10227  ;;  %10247 = vrcp.f32 %v3518_v27  ;;  %v3519_v62 = vadd.f32 1.0, %v10226_v55  ;;  %v14892_v36 = vadd.f32 %v16238_v44, %v13928_v20  ;;  %v14896_v19 = vadd.f32 %v16239_v16, %v14342_v54  ;;  %v16241_v44 = vld [vmem:[#allocation82_spill] sm:$0xff] }
 0x563   : > { %v10230_v8 = vpop.eup %10229  ;;  %v4586_v12 = vmul.f32 %v10228_v63, %v14735_v50  ;;  %10249 = vrcp.f32 %v3637_v1  ;;  %v3310_v61 = vmul.f32 1.442695, %v2706_v37  ;;  %v3074_v3 = vmul.f32 1.442695, %v2588_v22 }
 0x564   : > { %v10232_v53 = vpop.eup %10231  ;;  %10251 = vrcp.f32 %v3519_v62  ;;  %v3646_v5 = vadd.f32 1.0, %v10230_v8  ;;  %v2707_v60 = vsub.f32 0.0, %v14892_v36  ;;  %v2589_v49 = vsub.f32 0.0, %v14896_v19 }
 0x565   : > { %v10234_v21 = vpop.eup %10233  ;;  %v4835_v27 = vadd.f32 %v4834_v10, %v4586_v12  ;;  %v3528_v55 = vadd.f32 1.0, %v10232_v53  ;;  %10253 = vpow2.f32 %v3054_v18  ;;  %v14905_v16 = vadd.f32 %v16241_v44, %v13910_v29  ;;  %v16243_v53 = vld [vmem:[#allocation66_spill] sm:$0xff] }
 0x566   : > { %v10236_v50 = vpop.eup %10235  ;;  %10255 = vrcp.f32 %v3646_v5  ;;  %v3647_v1 = vadd.f32 1.0, %v10234_v21  ;;  %v3312_v37 = vmul.f32 1.442695, %v2707_v60  ;;  %v3076_v22 = vmul.f32 1.442695, %v2589_v49  ;;  %v16244_v5 = vld [vmem:[#allocation83_spill] sm:$0xff] }
 0x567   : > { %v10238_v63 = vpop.eup %10237  ;;  %v4468_v62 = vmul.f32 %v10236_v50, %v14746_v4  ;;  %10257 = vrcp.f32 %v3528_v55  ;;  %v2716_v8 = vsub.f32 0.0, %v14905_v16  ;;  %v14911_v10 = vadd.f32 %v16242_v25, %v14319_v51  ;;  %v14923_v25 = vpop.f32.mrb[136].mxu1 }
 0x568   : > { %v10240_v18 = vpop.eup %10239  ;;  %10259 = vrcp.f32 %v3647_v1  ;;  %v3529_v12 = vadd.f32 1.0, %v10238_v63  ;;  %v14915_v44 = vadd.f32 %v16243_v53, %v13928_v20  ;;  %v14919_v60 = vadd.f32 %v16244_v5, %v14342_v54  ;;  %16245 = vst [vmem:[#allocation63_spill] sm:$0xff] %v14923_v25  ;;  %v14928_v6 = vpop.f32.mrb[137].mxu1 }
 0x569   : > { %v10242_v49 = vpop.eup %10241  ;;  %v4897_v4 = vadd.f32 %v14854_v23, %v4468_v62  ;;  %v4587_v21 = vmul.f32 %v10240_v18, %v14750_v0  ;;  %10261 = vpow2.f32 %v3292_v31  ;;  %v3330_v55 = vmul.f32 1.442695, %v2716_v8  ;;  %16246 = vst [vmem:[#allocation46_spill] sm:$0xff] %v14928_v6  ;;  %v14932_v31 = vpop.f32.mrb[138].mxu1 }
 0x56a   : > { %v10244_v50 = vpop.eup %10243  ;;  %v4469_v1 = vmul.f32 %v10242_v49, %v14761_v41  ;;  %10263 = vrcp.f32 %v3529_v12  ;;  %v2598_v63 = vsub.f32 0.0, %v14911_v10  ;;  %v2717_v53 = vsub.f32 0.0, %v14915_v44  ;;  %16247 = vst [vmem:[#allocation64_spill] sm:$0xff] %v14932_v31  ;;  %v14936_v12 = vpop.f32.mrb[139].mxu1  ;;  %v16248_v31 = vld [vmem:[#allocation84_spill] sm:$0xff] }
 0x56b   : > { %v10246_v5 = vpop.eup %10245  ;;  %v4872_v43 = vadd.f32 %v14867_v30, %v4587_v21  ;;  %v3656_v23 = vadd.f32 1.0, %v10244_v50  ;;  %10265 = vpow2.f32 %v3056_v26  ;;  %v2599_v0 = vsub.f32 0.0, %v14919_v60 }
 0x56c   : > { %v10248_v62 = vpop.eup %10247  ;;  %v4934_v8 = vadd.f32 %v14884_v24, %v4469_v1  ;;  %v4596_v41 = vmul.f32 %v10246_v5, %v14767_v42  ;;  %10267 = vpow2.f32 %v3310_v61  ;;  %v3094_v18 = vmul.f32 1.442695, %v2598_v63  ;;  %v16249_v63 = vld [vmem:[#allocation45_spill] sm:$0xff] }
 0x56d   : > { %v10250_v49 = vpop.eup %10249  ;;  %v4478_v6 = vmul.f32 %v10248_v62, %v14775_v28  ;;  %10269 = vrcp.f32 %v3656_v23  ;;  %v3332_v30 = vmul.f32 1.442695, %v2717_v53  ;;  %v3096_v21 = vmul.f32 1.442695, %v2599_v0 }
 0x56e   : > { %v10252_v26 = vpop.eup %10251  ;;  %v4836_v50 = vadd.f32 %v4835_v27, %v4596_v41  ;;  %v4597_v25 = vmul.f32 %v10250_v49, %v14779_v38  ;;  %10271 = vpow2.f32 %v3074_v3  ;;  %v14942_v24 = vadd.f32 %v16248_v31, %v13910_v29 }
 0x56f   : > { %v10254_v42 = vpop.eup %10253  ;;  %v4898_v61 = vadd.f32 %v4897_v4, %v4478_v6  ;;  %v4479_v1 = vmul.f32 %v10252_v26, %v14790_v52  ;;  %10273 = vpow2.f32 %v3312_v37  ;;  %v14947_v28 = vadd.f32 %v16249_v63, %v14319_v51  ;;  %v14952_v4 = vpop.f32.mrb[140].mxu1 }
 0x570   : > { %v10256_v53 = vpop.eup %10255  ;;  %v4873_v5 = vadd.f32 %v4872_v43, %v4597_v25  ;;  %v3538_v23 = vadd.f32 1.0, %v10254_v42  ;;  %10275 = vpow2.f32 %v3076_v22  ;;  %v2726_v38 = vsub.f32 0.0, %v14942_v24  ;;  %v16250_v43 = vld [vmem:[#allocation70_spill] sm:$0xff]  ;;  %v14959_v22 = vpop.f32.mrb[141].mxu1 }
 0x571   : > { %v10258_v3 = vpop.eup %10257  ;;  %v4935_v27 = vadd.f32 %v4934_v8, %v4479_v1  ;;  %v4606_v0 = vmul.f32 %v10256_v53, %v14800_v2  ;;  %10277 = vpow2.f32 %v3330_v55  ;;  %v2608_v6 = vsub.f32 0.0, %v14947_v28  ;;  %v14962_v41 = vpop.f32.mrb[142].mxu1 }
 0x572   : > { %v10260_v52 = vpop.eup %10259  ;;  %v4488_v37 = vmul.f32 %v10258_v3, %v14808_v7  ;;  %10279 = vrcp.f32 %v3538_v23  ;;  %v3350_v31 = vmul.f32 1.442695, %v2726_v38  ;;  %v14957_v25 = vadd.f32 %v16250_v43, %v13928_v20  ;;  %v14965_v1 = vpop.f32.mrb[143].mxu1 }
 0x573   : > { %v10262_v62 = vpop.eup %10261  ;;  %v4837_v8 = vadd.f32 %v4836_v50, %v4606_v0  ;;  %v4607_v2 = vmul.f32 %v10260_v52, %v14812_v14  ;;  %10281 = vpow2.f32 %v3094_v18  ;;  %v3114_v55 = vmul.f32 1.442695, %v2608_v6  ;;  %v16251_v14 = vld [vmem:[#allocation85_spill] sm:$0xff] }
 0x574   : > { %v10264_v49 = vpop.eup %10263  ;;  %v4899_v26 = vadd.f32 %v4898_v61, %v4488_v37  ;;  %v3657_v42 = vadd.f32 1.0, %v10262_v62  ;;  %10283 = vpow2.f32 %v3332_v30  ;;  %v2727_v7 = vsub.f32 0.0, %v14957_v25 }
 0x575   : > { %v10266_v63 = vpop.eup %10265  ;;  %v14967_v53 = vadd.f32 %v4873_v5, %v4607_v2  ;;  %v4489_v23 = vmul.f32 %v10264_v49, %v14831_v45  ;;  %10285 = vpow2.f32 %v3096_v21  ;;  %v14972_v18 = vadd.f32 %v16251_v14, %v14342_v54  ;;  %v14993_v49 = vpop.f32.mrb[144].mxu1 }
 0x576   : > { %v10268_v50 = vpop.eup %10267  ;;  %10287 = vrcp.f32 %v3657_v42  ;;  %v3539_v38 = vadd.f32 1.0, %v10266_v63  ;;  %v3352_v61 = vmul.f32 1.442695, %v2727_v7  ;;  %v14976_v30 = vadd.f32 %v14448_v57, %v13910_v29  ;;  %16252 = vst [vmem:[#allocation82_spill] sm:$0xff] %v14993_v49 }
 0x577   : > { %v10270_v3 = vpop.eup %10269  ;;  %v14978_v0 = vadd.f32 %v4935_v27, %v4489_v23  ;;  %v3666_v5 = vadd.f32 1.0, %v10268_v50  ;;  %10289 = vpow2.f32 %v3350_v31  ;;  %v2609_v45 = vsub.f32 0.0, %v14972_v18  ;;  %v14997_v23 = vpop.f32.mrb[145].mxu1 }
 0x578   : > { %v10272_v21 = vpop.eup %10271  ;;  %v4616_v6 = vmul.f32 %v10270_v3, %v14836_v17  ;;  %10291 = vrcp.f32 %v3539_v38  ;;  %v2736_v52 = vsub.f32 0.0, %v14976_v30  ;;  %v14985_v37 = vadd.f32 %v14450_v13, %v14319_v51  ;;  %16253 = vst [vmem:[#allocation65_spill] sm:$0xff] %v14997_v23  ;;  %v15007_v50 = vpop.f32.mrb[146].mxu1 }
 0x579   : > { %v10274_v43 = vpop.eup %10273  ;;  %10293 = vrcp.f32 %v3666_v5  ;;  %v3548_v29 = vadd.f32 1.0, %v10272_v21  ;;  %v3116_v57 = vmul.f32 1.442695, %v2609_v45  ;;  %v14989_v27 = vadd.f32 %v14457_v39, %v13928_v20  ;;  %16254 = vst [vmem:[#allocation66_spill] sm:$0xff] %v15007_v50  ;;  %v15010_v21 = vpop.f32.mrb[147].mxu1 }
 0x57a   : > { %v10276_v31 = vpop.eup %10275  ;;  %v14991_v62 = vadd.f32 %v4837_v8, %v4616_v6  ;;  %v3667_v2 = vadd.f32 1.0, %v10274_v43  ;;  %10295 = vpow2.f32 %v3114_v55  ;;  %v3370_v17 = vmul.f32 1.442695, %v2736_v52  ;;  %v1249_v55 = vld [vmem:[#allocation11 + $0x8] sm:$0x3]  ;;  %16255 = vst [vmem:[#allocation83_spill] sm:$0xff] %v15010_v21 }
 0x57b   : > { %v10278_v42 = vpop.eup %10277  ;;  %10297 = vrcp.f32 %v3548_v29  ;;  %v3549_v13 = vadd.f32 1.0, %v10276_v31  ;;  %v2618_v7 = vsub.f32 0.0, %v14985_v37  ;;  %v2737_v63 = vsub.f32 0.0, %v14989_v27 }
 0x57c   : > { %v10280_v14 = vpop.eup %10279  ;;  %10299 = vrcp.f32 %v3667_v2  ;;  %v3676_v20 = vadd.f32 1.0, %v10278_v42  ;;  %v15001_v39 = vadd.f32 %v14460_v47, %v14342_v54  ;;  %v15005_v8 = vadd.f32 %v14480_v46, %v14319_v51  ;;  %v16256_v2 = vld [vmem:[#allocation54_spill] sm:$0xff] }
 0x57d   : > { %v10282_v38 = vpop.eup %10281  ;;  %v4498_v3 = vmul.f32 %v10280_v14, %v14844_v32  ;;  %10301 = vrcp.f32 %v3549_v13  ;;  %v3134_v5 = vmul.f32 1.442695, %v2618_v7  ;;  %v3372_v45 = vmul.f32 1.442695, %v2737_v63 }
 0x57e   : > { %v10284_v6 = vpop.eup %10283  ;;  %10303 = vrcp.f32 %v3676_v20  ;;  %v3558_v52 = vadd.f32 1.0, %v10282_v38  ;;  %v2619_v47 = vsub.f32 0.0, %v15001_v39  ;;  %v2628_v43 = vsub.f32 0.0, %v15005_v8  ;;  %v16257_v38 = vld [vmem:[#allocation86_spill] sm:$0xff] }
 0x57f   : > { %v10286_v46 = vpop.eup %10285  ;;  %v4900_v29 = vadd.f32 %v4899_v26, %v4498_v3  ;;  %v3677_v31 = vadd.f32 1.0, %v10284_v6  ;;  %10305 = vpow2.f32 %v3352_v61  ;;  %v15015_v42 = vrot.slane %v1249_v55, %v16256_v2  ;;  %v16258_v26 = vld [vmem:[#allocation87_spill] sm:$0xff] }
 0x580   : > { %v10288_v32 = vpop.eup %10287  ;;  %10307 = vrcp.f32 %v3558_v52  ;;  %v3559_v13 = vadd.f32 1.0, %v10286_v46  ;;  %v3136_v7 = vmul.f32 1.442695, %v2619_v47  ;;  %v3154_v63 = vmul.f32 1.442695, %v2628_v43  ;;  %v16259_v2 = vld [vmem:[#allocation55_spill] sm:$0xff] }
 0x581   : > { %v10290_v14 = vpop.eup %10289  ;;  %v4617_v20 = vmul.f32 %v10288_v32, %v14859_v48  ;;  %10309 = vrcp.f32 %v3677_v31  ;;  %v15020_v21 = vadd.f32 %v16257_v38, %v15015_v42  ;;  %v15024_v3 = vadd.f32 %v16258_v26, %v14342_v54  ;;  %v16260_v47 = vld [vmem:[#allocation67_spill] sm:$0xff]  ;;  %v15033_v48 = vpop.f32.mrb[148].mxu1 }
 0x582   : > { %v10292_v61 = vpop.eup %10291  ;;  %10311 = vrcp.f32 %v3559_v13  ;;  %v3686_v6 = vadd.f32 1.0, %v10290_v14  ;;  %v15027_v52 = vrot.slane %v1249_v55, %v16259_v2  ;;  %v15031_v43 = vadd.f32 %v16260_v47, %v14319_v51  ;;  %16261 = vst [vmem:[#allocation84_spill] sm:$0xff] %v15033_v48  ;;  %v15038_v26 = vpop.f32.mrb[149].mxu1  ;;  %v16263_v2 = vld [vmem:[#allocation68_spill] sm:$0xff] }
 0x583   : > { %v10294_v46 = vpop.eup %10293  ;;  %v4875_v31 = vadd.f32 %v14967_v53, %v4617_v20  ;;  %v4499_v32 = vmul.f32 %v10292_v61, %v14865_v9  ;;  %10313 = vpow2.f32 %v3116_v57  ;;  %v2430_v38 = vsub.f32 0.0, %v15020_v21  ;;  %16262 = vst [vmem:[#allocation45_spill] sm:$0xff] %v15038_v26  ;;  %v15046_v48 = vpop.f32.mrb[150].mxu1 }
 0x584   : > { %v10296_v13 = vpop.eup %10295  ;;  %v4626_v55 = vmul.f32 %v10294_v46, %v14874_v58  ;;  %10315 = vrcp.f32 %v3686_v6  ;;  %v2629_v14 = vsub.f32 0.0, %v15024_v3  ;;  %v15044_v47 = vadd.f32 %v16263_v2, %v15027_v52  ;;  %16264 = vst [vmem:[#allocation70_spill] sm:$0xff] %v15046_v48  ;;  %v15049_v61 = vpop.f32.mrb[151].mxu1 }
 0x585   : > { %v10298_v53 = vpop.eup %10297  ;;  %v4937_v9 = vadd.f32 %v14978_v0, %v4499_v32  ;;  %v3568_v57 = vadd.f32 1.0, %v10296_v13  ;;  %10317 = vpow2.f32 %v3370_v17  ;;  %v2758_v20 = vmul.f32 1.442695, %v2430_v38  ;;  %16265 = vst [vmem:[#allocation85_spill] sm:$0xff] %v15049_v61  ;;  %v16266_v13 = vld [vmem:[#allocation48_spill] sm:$0xff] }
 0x586   : > { %v10300_v26 = vpop.eup %10299  ;;  %v4839_v58 = vadd.f32 %v14991_v62, %v4626_v55  ;;  %v4508_v6 = vmul.f32 %v10298_v53, %v14878_v11  ;;  %10319 = vpow2.f32 %v3134_v5  ;;  %v3156_v46 = vmul.f32 1.442695, %v2629_v14 }
 0x587   : > { %v10302_v50 = vpop.eup %10301  ;;  %v4627_v2 = vmul.f32 %v10300_v26, %v14892_v36  ;;  %10321 = vrcp.f32 %v3568_v57  ;;  %v2431_v48 = vsub.f32 0.0, %v15044_v47  ;;  %v2638_v0 = vsub.f32 0.0, %v15031_v43 }
 0x588   : > { %v10304_v32 = vpop.eup %10303  ;;  %v4901_v17 = vadd.f32 %v4900_v29, %v4508_v6  ;;  %v4509_v38 = vmul.f32 %v10302_v50, %v14896_v19  ;;  %10323 = vpow2.f32 %v3372_v45  ;;  %v15059_v62 = vadd.f32 %v16266_v13, %v15015_v42 }
 0x589   : > { %v10306_v11 = vpop.eup %10305  ;;  %v4876_v5 = vadd.f32 %v4875_v31, %v4627_v2  ;;  %v4636_v55 = vmul.f32 %v10304_v32, %v14905_v16  ;;  %10325 = vpow2.f32 %v3136_v7  ;;  %v2760_v36 = vmul.f32 1.442695, %v2431_v48  ;;  %v16267_v16 = vld [vmem:[#allocation71_spill] sm:$0xff]  ;;  %v16268_v48 = vld [vmem:[#allocation73_spill] sm:$0xff] }
 0x58a   : > { %v10308_v26 = vpop.eup %10307  ;;  %v4938_v14 = vadd.f32 %v4937_v9, %v4509_v38  ;;  %v3687_v53 = vadd.f32 1.0, %v10306_v11  ;;  %10327 = vpow2.f32 %v3154_v63  ;;  %v3174_v57 = vmul.f32 1.442695, %v2638_v0 }
 0x58b   : > { %v10310_v61 = vpop.eup %10309  ;;  %v4840_v29 = vadd.f32 %v4839_v58, %v4636_v55  ;;  %v4518_v19 = vmul.f32 %v10308_v26, %v14911_v10  ;;  %10329 = vpow2.f32 %v2758_v20  ;;  %v2440_v50 = vsub.f32 0.0, %v15059_v62  ;;  %v15074_v20 = vpop.f32.mrb[152].mxu1 }
 0x58c   : > { %v10312_v45 = vpop.eup %10311  ;;  %v4637_v6 = vmul.f32 %v10310_v61, %v14915_v44  ;;  %10331 = vrcp.f32 %v3687_v53  ;;  %v15067_v7 = vadd.f32 %v16267_v16, %v14342_v54  ;;  %v15071_v31 = vadd.f32 %v16268_v48, %v15027_v52  ;;  %16269 = vst [vmem:[#allocation86_spill] sm:$0xff] %v15074_v20  ;;  %v15077_v32 = vpop.f32.mrb[153].mxu1  ;;  %v16274_v16 = vld [vmem:[#allocation88_spill] sm:$0xff] }
 0x58d   : > { %v10314_v63 = vpop.eup %10313  ;;  %v4902_v9 = vadd.f32 %v4901_v17, %v4518_v19  ;;  %v4519_v58 = vmul.f32 %v10312_v45, %v14919_v60  ;;  %10333 = vpow2.f32 %v3156_v46  ;;  %v2778_v10 = vmul.f32 1.442695, %v2440_v50  ;;  %16270 = vst [vmem:[#allocation87_spill] sm:$0xff] %v15077_v32  ;;  %v15083_v46 = vpop.f32.mrb[154].mxu1 }
 0x58e   : > { %v10316_v2 = vpop.eup %10315  ;;  %v4877_v0 = vadd.f32 %v4876_v5, %v4637_v6  ;;  %v3569_v44 = vadd.f32 1.0, %v10314_v63  ;;  %10335 = vpow2.f32 %v2760_v36  ;;  %v2639_v61 = vsub.f32 0.0, %v15067_v7  ;;  %16271 = vst [vmem:[#allocation67_spill] sm:$0xff] %v15083_v46  ;;  %v16272_v36 = vld [vmem:[#allocation72_spill] sm:$0xff]  ;;  %v15089_v53 = vpop.f32.mrb[155].mxu1 }
 0x58f   : > { %v10318_v38 = vpop.eup %10317  ;;  %v15079_v13 = vadd.f32 %v4938_v14, %v4519_v58  ;;  %v4646_v11 = vmul.f32 %v10316_v2, %v14942_v24  ;;  %10337 = vpow2.f32 %v3174_v57  ;;  %v2441_v60 = vsub.f32 0.0, %v15071_v31  ;;  %16273 = vst [vmem:[#allocation68_spill] sm:$0xff] %v15089_v53  ;;  %v16275_v2 = vld [vmem:[#allocation89_spill] sm:$0xff] }
 0x590   : > { %v10320_v17 = vpop.eup %10319  ;;  %10339 = vrcp.f32 %v3569_v44  ;;  %v3696_v55 = vadd.f32 1.0, %v10318_v38  ;;  %v3176_v5 = vmul.f32 1.442695, %v2639_v61  ;;  %v15087_v26 = vadd.f32 %v16272_v36, %v14319_v51 }
 0x591   : > { %v10322_v19 = vpop.eup %10321  ;;  %v15091_v14 = vadd.f32 %v4840_v29, %v4646_v11  ;;  %v3578_v50 = vadd.f32 1.0, %v10320_v17  ;;  %10341 = vpow2.f32 %v2778_v10  ;;  %v2780_v24 = vmul.f32 1.442695, %v2441_v60  ;;  %v16276_v10 = vld [vmem:[#allocation99_spill] sm:$0xff] }
 0x592   : > { %v10324_v57 = vpop.eup %10323  ;;  %v4528_v45 = vmul.f32 %v10322_v19, %v14947_v28  ;;  %10343 = vrcp.f32 %v3696_v55  ;;  %v2648_v6 = vsub.f32 0.0, %v15087_v26  ;;  %v15097_v48 = vadd.f32 %v16274_v16, %v15015_v42  ;;  %v15111_v19 = vpop.f32.mrb[156].mxu1 }
 0x593   : > { %v10326_v63 = vpop.eup %10325  ;;  %10345 = vrcp.f32 %v3578_v50  ;;  %v3697_v58 = vadd.f32 1.0, %v10324_v57  ;;  %v15101_v29 = vadd.f32 %v16275_v2, %v14342_v54  ;;  %v15105_v44 = vadd.f32 %v16276_v10, %v15027_v52  ;;  %16277 = vst [vmem:[#allocation48_spill] sm:$0xff] %v15111_v19 }
 0x594   : > { %v10328_v61 = vpop.eup %10327  ;;  %v15107_v28 = vadd.f32 %v4902_v9, %v4528_v45  ;;  %v3579_v38 = vadd.f32 1.0, %v10326_v63  ;;  %10347 = vpow2.f32 %v3176_v5  ;;  %v3194_v11 = vmul.f32 1.442695, %v2648_v6  ;;  %v16278_v9 = vld [vmem:[#allocation74_spill] sm:$0xff]  ;;  %v15118_v5 = vpop.f32.mrb[157].mxu1 }
 0x595   : > { %v10330_v60 = vpop.eup %10329  ;;  %10349 = vrcp.f32 %v3697_v58  ;;  %v3588_v17 = vadd.f32 1.0, %v10328_v61  ;;  %v2450_v55 = vsub.f32 0.0, %v15097_v48  ;;  %v2649_v36 = vsub.f32 0.0, %v15101_v29  ;;  %16279 = vst [vmem:[#allocation71_spill] sm:$0xff] %v15118_v5  ;;  %v15121_v10 = vpop.f32.mrb[158].mxu1  ;;  %v16282_v5 = vld [vmem:[#allocation90_spill] sm:$0xff] }
 0x596   : > { %v10332_v50 = vpop.eup %10331  ;;  %10351 = vrcp.f32 %v3579_v38  ;;  %v3390_v57 = vadd.f32 1.0, %v10330_v60  ;;  %v2451_v16 = vsub.f32 0.0, %v15105_v44  ;;  %v15116_v45 = vadd.f32 %v16278_v9, %v14319_v51  ;;  %16280 = vst [vmem:[#allocation73_spill] sm:$0xff] %v15121_v10  ;;  %v15124_v53 = vpop.f32.mrb[159].mxu1 }
 0x597   : > { %v10334_v6 = vpop.eup %10333  ;;  %v4647_v63 = vmul.f32 %v10332_v50, %v14957_v25  ;;  %10353 = vrcp.f32 %v3588_v17  ;;  %v2798_v58 = vmul.f32 1.442695, %v2450_v55  ;;  %v3196_v2 = vmul.f32 1.442695, %v2649_v36  ;;  %16281 = vst [vmem:[#allocation72_spill] sm:$0xff] %v15124_v53  ;;  %v16283_v50 = vld [vmem:[#allocation91_spill] sm:$0xff] }
 0x598   : > { %v10336_v61 = vpop.eup %10335  ;;  %10355 = vrcp.f32 %v3390_v57  ;;  %v3589_v38 = vadd.f32 1.0, %v10334_v6  ;;  %v2800_v60 = vmul.f32 1.442695, %v2451_v16  ;;  %v2658_v19 = vsub.f32 0.0, %v15116_v45 }
 0x599   : > { %v10338_v9 = vpop.eup %10337  ;;  %v4878_v46 = vadd.f32 %v4877_v0, %v4647_v63  ;;  %v3391_v32 = vadd.f32 1.0, %v10336_v61  ;;  %10357 = vpow2.f32 %v2780_v24  ;;  %v15128_v25 = vadd.f32 %v16282_v5, %v15015_v42  ;;  %v16284_v24 = vld [vmem:[#allocation100_spill] sm:$0xff] }
 0x59a   : > { %v10340_v17 = vpop.eup %10339  ;;  %10359 = vrcp.f32 %v3589_v38  ;;  %v3598_v55 = vadd.f32 1.0, %v10338_v9  ;;  %v3214_v36 = vmul.f32 1.442695, %v2658_v19  ;;  %v15132_v57 = vadd.f32 %v16283_v50, %v14342_v54  ;;  %v16285_v19 = vld [vmem:[#allocation50_spill] sm:$0xff] }
 0x59b   : > { %v10342_v16 = vpop.eup %10341  ;;  %v4529_v6 = vmul.f32 %v10340_v17, %v14972_v18  ;;  %10361 = vrcp.f32 %v3391_v32  ;;  %v2460_v0 = vsub.f32 0.0, %v15128_v25  ;;  %v15138_v63 = vadd.f32 %v16284_v24, %v15027_v52  ;;  %v15147_v17 = vpop.f32.mrb[160].mxu1 }
 0x59c   : > { %v10344_v5 = vpop.eup %10343  ;;  %10363 = vrcp.f32 %v3598_v55  ;;  %v3400_v61 = vadd.f32 1.0, %v10342_v16  ;;  %v2659_v38 = vsub.f32 0.0, %v15132_v57  ;;  %v15143_v9 = vadd.f32 %v16285_v19, %v14319_v51  ;;  %v15151_v20 = vpop.f32.mrb[161].mxu1 }
 0x59d   : > { %v10346_v50 = vpop.eup %10345  ;;  %v4940_v53 = vadd.f32 %v15079_v13, %v4529_v6  ;;  %v4656_v18 = vmul.f32 %v10344_v5, %v14976_v30  ;;  %10365 = vpow2.f32 %v3194_v11  ;;  %v2818_v32 = vmul.f32 1.442695, %v2460_v0  ;;  %v15155_v13 = vpop.f32.mrb[162].mxu1 }
 0x59e   : > { %v10348_v24 = vpop.eup %10347  ;;  %v4538_v10 = vmul.f32 %v10346_v50, %v14985_v37  ;;  %10367 = vrcp.f32 %v3400_v61  ;;  %v3216_v55 = vmul.f32 1.442695, %v2659_v38  ;;  %v2461_v16 = vsub.f32 0.0, %v15138_v63  ;;  %16286 = vst [vmem:[#allocation88_spill] sm:$0xff] %v15155_v13  ;;  %v16287_v13 = vld [vmem:[#allocation75_spill] sm:$0xff] }
 0x59f   : > { %v10350_v19 = vpop.eup %10349  ;;  %v4842_v23 = vadd.f32 %v15091_v14, %v4656_v18  ;;  %v3599_v49 = vadd.f32 1.0, %v10348_v24  ;;  %10369 = vpow2.f32 %v2798_v58  ;;  %v2668_v30 = vsub.f32 0.0, %v15143_v9  ;;  %v15160_v14 = vpop.f32.mrb[163].mxu1 }
 0x5a0   : > { %v10352_v11 = vpop.eup %10351  ;;  %v4904_v6 = vadd.f32 %v15107_v28, %v4538_v10  ;;  %v4657_v37 = vmul.f32 %v10350_v19, %v14989_v27  ;;  %10371 = vpow2.f32 %v3196_v2  ;;  %v2820_v0 = vmul.f32 1.442695, %v2461_v16 }
 0x5a1   : > { %v10354_v5 = vpop.eup %10353  ;;  %v4843_v61 = vrot.slane %v4842_v23, 4  ;;  %v4539_v38 = vmul.f32 %v10352_v11, %v15001_v39  ;;  %10373 = vrcp.f32 %v3599_v49  ;;  %v3234_v50 = vmul.f32 1.442695, %v2668_v30 }
 0x5a2   : > { %v10356_v58 = vpop.eup %10355  ;;  %v4879_v18 = vadd.f32 %v4878_v46, %v4657_v37  ;;  %v4548_v24 = vmul.f32 %v10354_v5, %v15005_v8  ;;  %10375 = vpow2.f32 %v2800_v60  ;;  %v15165_v28 = vadd.f32 %v16287_v13, %v15015_v42 }
 0x5a3   : > { %v10358_v27 = vpop.eup %10357  ;;  %v4844_v2 = vadd.f32 %v4843_v61, %v4842_v23  ;;  %v4941_v10 = vadd.f32 %v4940_v53, %v4539_v38  ;;  %v4350_v16 = vmul.f32 %v10356_v58, %v15020_v21  ;;  %10377 = vpow2.f32 %v3214_v36  ;;  %v16288_v21 = vld [vmem:[#allocation92_spill] sm:$0xff] }
 0x5a4   : > { %v10360_v39 = vpop.eup %10359  ;;  %v4880_v49 = vrot.slane %v4879_v18, 4  ;;  %v4905_v19 = vadd.f32 %v4904_v6, %v4548_v24  ;;  %v3401_v30 = vadd.f32 1.0, %v10358_v27  ;;  %10379 = vpow2.f32 %v2818_v32 }
 0x5a5   : > { %v10362_v11 = vpop.eup %10361  ;;  %v4845_v46 = vrot.slane %v4844_v2, 2  ;;  %v4549_v8 = vmul.f32 %v10360_v39, %v15024_v3  ;;  %10381 = vpow2.f32 %v3216_v55  ;;  %v2470_v60 = vsub.f32 0.0, %v15165_v28  ;;  %v15178_v3 = vpop.f32.mrb[164].mxu1 }
 0x5a6   : > { %v10364_v13 = vpop.eup %10363  ;;  %v4881_v37 = vadd.f32 %v4880_v49, %v4879_v18  ;;  %v15171_v23 = vmul.f32 %v10362_v11, %v15044_v47  ;;  %10383 = vrcp.f32 %v3401_v30  ;;  %v15175_v53 = vadd.f32 %v16288_v21, %v14342_v54  ;;  %v15180_v47 = vpop.f32.mrb[165].mxu1  ;;  %v16291_v30 = vld [vmem:[#allocation93_spill] sm:$0xff] }
 0x5a7   : > { %v10366_v36 = vpop.eup %10365  ;;  %v4846_v6 = vadd.f32 %v4845_v46, %v4844_v2  ;;  %v4942_v32 = vadd.f32 %v4941_v10, %v4549_v8  ;;  %v4558_v5 = vmul.f32 %v10364_v13, %v15031_v43  ;;  %10385 = vpow2.f32 %v2820_v0  ;;  %16289 = vst [vmem:[#allocation89_spill] sm:$0xff] %v15180_v47  ;;  %v15186_v10 = vpop.f32.mrb[166].mxu1 }
 0x5a8   : > { %v10368_v55 = vpop.eup %10367  ;;  %v4882_v61 = vrot.slane %v4881_v37, 2  ;;  %v3608_v38 = vadd.f32 1.0, %v10366_v36  ;;  %10387 = vpow2.f32 %v3234_v50  ;;  %v2838_v58 = vmul.f32 1.442695, %v2470_v60  ;;  %16290 = vst [vmem:[#allocation99_spill] sm:$0xff] %v15186_v10  ;;  %v15192_v11 = vpop.f32.mrb[167].mxu1 }
 0x5a9   : > { %v10370_v18 = vpop.eup %10369  ;;  %v4847_v24 = vrot.slane %v4846_v6, 1  ;;  %v15182_v27 = vadd.f32 %v4905_v19, %v4558_v5  ;;  %v4360_v39 = vmul.f32 %v10368_v55, %v15059_v62  ;;  %v2669_v2 = vsub.f32 0.0, %v15175_v53  ;;  %16292 = vst [vmem:[#allocation74_spill] sm:$0xff] %v15192_v11 }
 0x5aa   : > { %v10372_v43 = vpop.eup %10371  ;;  %v4883_v0 = vadd.f32 %v4882_v61, %v4881_v37  ;;  %10389 = vrcp.f32 %v3608_v38  ;;  %v3410_v49 = vadd.f32 1.0, %v10370_v18  ;;  %v15190_v50 = vadd.f32 %v16291_v30, %v15027_v52  ;;  %v16293_v61 = vld [vmem:[#allocation94_spill] sm:$0xff] }
 0x5ab   : > { %v10374_v46 = vpop.eup %10373  ;;  %v4848_v8 = vadd.f32 %v4847_v24, %v4846_v6  ;;  %v15194_v19 = vadd.f32 %v4360_v39, %v4350_v16  ;;  %v3609_v60 = vadd.f32 1.0, %v10372_v43  ;;  %10391 = vpow2.f32 %v2838_v58  ;;  %v15205_v43 = vpop.f32.mrb[168].mxu1 }
 0x5ac   : > { %v10376_v62 = vpop.eup %10375  ;;  %v4884_v13 = vrot.slane %v4883_v0, 1  ;;  %v4559_v21 = vmul.f32 %v10374_v46, %v15067_v7  ;;  %10393 = vrcp.f32 %v3410_v49  ;;  %v3236_v37 = vmul.f32 1.442695, %v2669_v2  ;;  %16294 = vst [vmem:[#allocation90_spill] sm:$0xff] %v15205_v43 }
 0x5ad   : > { %v10378_v36 = vpop.eup %10377  ;;  %10395 = vrcp.f32 %v3609_v60  ;;  %v3411_v5 = vadd.f32 1.0, %v10376_v62  ;;  %v2471_v55 = vsub.f32 0.0, %v15190_v50  ;;  %v15200_v38 = vadd.f32 %v16293_v61, %v14319_v51  ;;  %v16295_v60 = vld [vmem:[#allocation76_spill] sm:$0xff] }
 0x5ae   : > { %v10380_v6 = vpop.eup %10379  ;;  %v4885_v16 = vadd.f32 %v4884_v13, %v4883_v0  ;;  %v15202_v18 = vadd.f32 %v4942_v32, %v4559_v21  ;;  %v3618_v58 = vadd.f32 1.0, %v10378_v36  ;;  %10397 = vpow2.f32 %v3236_v37  ;;  %v15211_v32 = vpop.f32.mrb[169].mxu1  ;;  %v16297_v37 = vld [vmem:[#allocation49_spill] sm:$0xff] }
 0x5af   : > { %v10382_v24 = vpop.eup %10381  ;;  %10399 = vrcp.f32 %v3411_v5  ;;  %v3420_v7 = vadd.f32 1.0, %v10380_v6  ;;  %v2840_v39 = vmul.f32 1.442695, %v2471_v55  ;;  %v2678_v2 = vsub.f32 0.0, %v15200_v38  ;;  %16296 = vst [vmem:[#allocation91_spill] sm:$0xff] %v15211_v32  ;;  %v15218_v5 = vpop.f32.mrb[170].mxu1 }
 0x5b0   : > { %v10384_v49 = vpop.eup %10383  ;;  %v5046_v30 = vcombine.low %v4848_v8, %v4885_v16  ;;  %10401 = vrcp.f32 %v3618_v58  ;;  %v3619_v46 = vadd.f32 1.0, %v10382_v24  ;;  %v15209_v62 = vadd.f32 %v16295_v60, %v15015_v42  ;;  %16298 = vst [vmem:[#allocation100_spill] sm:$0xff] %v15218_v5  ;;  %v16299_v55 = vld [vmem:[#allocation69_spill] sm:$0xff]  ;;  %v15224_v58 = vpop.f32.mrb[171].mxu1  ;;  %v16301_v60 = vld [vmem:[#allocation95_spill] sm:$0xff] }
 0x5b1   : > { %v10386_v0 = vpop.eup %10385  ;;  %v4361_v13 = vmul.f32 %v10384_v49, %v15071_v31  ;;  %10403 = vrcp.f32 %v3420_v7  ;;  %v3254_v21 = vmul.f32 1.442695, %v2678_v2  ;;  %v15216_v36 = vadd.f32 %v16297_v37, %v14342_v54  ;;  %16300 = vst [vmem:[#allocation50_spill] sm:$0xff] %v15224_v58 }
 0x5b2   : > { %v10388_v8 = vpop.eup %10387  ;;  %v15221_v61 = vrot.slane %v5046_v30, %v16299_v55  ;;  %10405 = vrcp.f32 %v3619_v46  ;;  %v3421_v6 = vadd.f32 1.0, %v10386_v0  ;;  %v2480_v16 = vsub.f32 0.0, %v15209_v62 }
 0x5b3   : > { %v4997_v31 = vadd.f32 %v4361_v13, %v15171_v23  ;;  %v3628_v24 = vadd.f32 1.0, %v10388_v8  ;;  %10407 = vpow2.f32 %v2840_v39  ;;  %v2679_v7 = vsub.f32 0.0, %v15216_v36 }
 0x5b4   : > { %v10390_v2 = vpop.eup %10389  ;;  %10409 = vrcp.f32 %v3421_v6  ;;  %v2858_v49 = vmul.f32 1.442695, %v2480_v16  ;;  %v15230_v37 = vadd.f32 %v16301_v60, %v15027_v52  ;;  %v15234_v30 = vadd.f32 %v14708_v15, %v14319_v51 }
 0x5b5   : > { %v10392_v46 = vpop.eup %10391  ;;  %v4568_v0 = vmul.f32 %v10390_v2, %v15087_v26  ;;  %10411 = vrcp.f32 %v3628_v24  ;;  %v3256_v23 = vmul.f32 1.442695, %v2679_v7  ;;  %v15239_v39 = vadd.f32 %v14710_v59, %v15015_v42  ;;  %v15246_v24 = vpop.f32.mrb[172].mxu1 }
 0x5b6   : > { %v10394_v13 = vpop.eup %10393  ;;  %v3430_v8 = vadd.f32 1.0, %v10392_v46  ;;  %10413 = vpow2.f32 %v3254_v21  ;;  %v2481_v6 = vsub.f32 0.0, %v15230_v37  ;;  %v2688_v16 = vsub.f32 0.0, %v15234_v30  ;;  %16302 = vst [vmem:[#allocation75_spill] sm:$0xff] %v15246_v24  ;;  %v15249_v46 = vpop.f32.mrb[173].mxu1 }
 0x5b7   : > { %v10396_v60 = vpop.eup %10395  ;;  %v4907_v15 = vadd.f32 %v15182_v27, %v4568_v0  ;;  %v4370_v58 = vmul.f32 %v10394_v13, %v15097_v48  ;;  %10415 = vpow2.f32 %v2858_v49  ;;  %v2490_v26 = vsub.f32 0.0, %v15239_v39  ;;  %16303 = vst [vmem:[#allocation92_spill] sm:$0xff] %v15249_v46  ;;  %v15252_v48 = vpop.f32.mrb[174].mxu1 }
 0x5b8   : > { %v10398_v7 = vpop.eup %10397  ;;  %v4569_v59 = vmul.f32 %v10396_v60, %v15101_v29  ;;  %10417 = vrcp.f32 %v3430_v8  ;;  %v2860_v2 = vmul.f32 1.442695, %v2481_v6  ;;  %v3274_v21 = vmul.f32 1.442695, %v2688_v16  ;;  %16304 = vst [vmem:[#allocation93_spill] sm:$0xff] %v15252_v48  ;;  %v16305_v29 = vld [vmem:[#allocation96_spill] sm:$0xff] }
 0x5b9   : > { %v10400_v5 = vpop.eup %10399  ;;  %v4961_v32 = vadd.f32 %v15194_v19, %v4370_v58  ;;  %v3629_v43 = vadd.f32 1.0, %v10398_v7  ;;  %10419 = vpow2.f32 %v3256_v23  ;;  %v2878_v27 = vmul.f32 1.442695, %v2490_v26  ;;  %v15260_v6 = vpop.f32.mrb[175].mxu1  ;;  %v16307_v58 = vld [vmem:[#allocation97_spill] sm:$0xff]  ;;  %v16308_v60 = vld [vmem:[#allocation44_spill] sm:$0xff] }
 0x5ba   : > { %v10402_v49 = vpop.eup %10401  ;;  %v4944_v0 = vadd.f32 %v15202_v18, %v4569_v59  ;;  %v4371_v13 = vmul.f32 %v10400_v5, %v15105_v44  ;;  %10421 = vpow2.f32 %v2860_v2  ;;  %v15258_v8 = vadd.f32 %v16305_v29, %v14342_v54  ;;  %16306 = vst [vmem:[#allocation94_spill] sm:$0xff] %v15260_v6 }
 0x5bb   : > { %v10404_v16 = vpop.eup %10403  ;;  %v4578_v19 = vmul.f32 %v10402_v49, %v15116_v45  ;;  %10423 = vrcp.f32 %v3629_v43  ;;  %v15265_v23 = vadd.f32 %v16307_v58, %v15027_v52  ;;  %v15269_v18 = vadd.f32 %v16308_v60, %v14319_v51 }
 0x5bc   : > { %v10406_v44 = vpop.eup %10405  ;;  %v4998_v5 = vadd.f32 %v4997_v31, %v4371_v13  ;;  %v4380_v26 = vmul.f32 %v10404_v16, %v15128_v25  ;;  %10425 = vpow2.f32 %v3274_v21  ;;  %v2689_v7 = vsub.f32 0.0, %v15258_v8  ;;  %v16309_v13 = vld [vmem:[#allocation58_spill] sm:$0xff] }
 0x5bd   : > { %v10408_v59 = vpop.eup %10407  ;;  %v4908_v2 = vadd.f32 %v4907_v15, %v4578_v19  ;;  %v4579_v45 = vmul.f32 %v10406_v44, %v15132_v57  ;;  %10427 = vpow2.f32 %v2878_v27  ;;  %v2491_v43 = vsub.f32 0.0, %v15265_v23 }
 0x5be   : > { %v10410_v49 = vpop.eup %10409  ;;  %v4962_v29 = vadd.f32 %v4961_v32, %v4380_v26  ;;  %v3431_v58 = vadd.f32 1.0, %v10408_v59  ;;  %v3276_v6 = vmul.f32 1.442695, %v2689_v7  ;;  %v2698_v60 = vsub.f32 0.0, %v15269_v18  ;;  %v16310_v32 = vld [vmem:[#allocation98_spill] sm:$0xff] }
 0x5bf   : > { %v10412_v48 = vpop.eup %10411  ;;  %v4945_v31 = vadd.f32 %v4944_v0, %v4579_v45  ;;  %v4381_v25 = vmul.f32 %v10410_v49, %v15138_v63  ;;  %v2880_v21 = vmul.f32 1.442695, %v2491_v43  ;;  %v15279_v16 = vadd.f32 %v16309_v13, %v15015_v42 }
 0x5c0   : > { %v10414_v15 = vpop.eup %10413  ;;  %v4588_v57 = vmul.f32 %v10412_v48, %v15143_v9  ;;  %10429 = vrcp.f32 %v3431_v58  ;;  %v3294_v27 = vmul.f32 1.442695, %v2698_v60  ;;  %v15284_v19 = vadd.f32 %v16310_v32, %v14342_v54  ;;  %v16311_v58 = vld [vmem:[#allocation52_spill] sm:$0xff] }
 0x5c1   : > { %v10416_v44 = vpop.eup %10415  ;;  %v4999_v26 = vadd.f32 %v4998_v5, %v4381_v25  ;;  %v3638_v7 = vadd.f32 1.0, %v10414_v15  ;;  %10431 = vpow2.f32 %v3276_v6  ;;  %v2500_v63 = vsub.f32 0.0, %v15279_v16 }
 0x5c2   : > { %v10418_v0 = vpop.eup %10417  ;;  %v15287_v59 = vadd.f32 %v4908_v2, %v4588_v57  ;;  %v3440_v45 = vadd.f32 1.0, %v10416_v44  ;;  %10433 = vpow2.f32 %v2880_v21  ;;  %v2699_v43 = vsub.f32 0.0, %v15284_v19  ;;  %v16312_v2 = vld [vmem:[#allocation59_spill] sm:$0xff] }
 0x5c3   : > { %v10420_v9 = vpop.eup %10419  ;;  %v4390_v48 = vmul.f32 %v10418_v0, %v15165_v28  ;;  %10435 = vrcp.f32 %v3638_v7  ;;  %v2898_v49 = vmul.f32 1.442695, %v2500_v63  ;;  %v15293_v60 = vadd.f32 %v16311_v58, %v15027_v52  ;;  %v16313_v63 = vld [vmem:[#allocation77_spill] sm:$0xff] }
 0x5c4   : > { %v10422_v5 = vpop.eup %10421  ;;  %10437 = vrcp.f32 %v3440_v45  ;;  %v3639_v6 = vadd.f32 1.0, %v10420_v9  ;;  %v3296_v25 = vmul.f32 1.442695, %v2699_v43  ;;  %v15297_v13 = vadd.f32 %v16312_v2, %v14319_v51  ;;  %v16315_v2 = vld [vmem:[#allocation60_spill] sm:$0xff] }
 0x5c5   : > { %v10424_v21 = vpop.eup %10423  ;;  %v4963_v15 = vadd.f32 %v4962_v29, %v4390_v48  ;;  %v3441_v57 = vadd.f32 1.0, %v10422_v5  ;;  %10439 = vpow2.f32 %v3294_v27  ;;  %v2501_v28 = vsub.f32 0.0, %v15293_v60  ;;  %v16314_v29 = vld [vmem:[#allocation61_spill] sm:$0xff] }
 0x5c6   : > { %v10426_v32 = vpop.eup %10425  ;;  %v4589_v44 = vmul.f32 %v10424_v21, %v15175_v53  ;;  %10441 = vrcp.f32 %v3639_v6  ;;  %v2708_v7 = vsub.f32 0.0, %v15297_v13  ;;  %v15304_v0 = vadd.f32 %v16313_v63, %v15015_v42 }
 0x5c7   : > { %v10428_v45 = vpop.eup %10427  ;;  %10443 = vrcp.f32 %v3441_v57  ;;  %v3648_v43 = vadd.f32 1.0, %v10426_v32  ;;  %v2900_v9 = vmul.f32 1.442695, %v2501_v28  ;;  %v15308_v48 = vadd.f32 %v16314_v29, %v14342_v54  ;;  %v16316_v28 = vld [vmem:[#allocation51_spill] sm:$0xff] }
 0x5c8   : > { %v4946_v27 = vadd.f32 %v4945_v31, %v4589_v44  ;;  %v3450_v58 = vadd.f32 1.0, %v10428_v45  ;;  %10445 = vpow2.f32 %v2898_v49  ;;  %v3314_v5 = vmul.f32 1.442695, %v2708_v7  ;;  %v16317_v31 = vld [vmem:[#allocation78_spill] sm:$0xff]  ;;  %v16318_v49 = vld [vmem:[#allocation43_spill] sm:$0xff] }
 0x5c9   : > { %10447 = vrcp.f32 %v3648_v43  ;;  %v2510_v53 = vsub.f32 0.0, %v15304_v0  ;;  %v2709_v6 = vsub.f32 0.0, %v15308_v48  ;;  %v15314_v21 = vadd.f32 %v16315_v2, %v15027_v52 }
 0x5ca   : > { %v10430_v57 = vpop.eup %10429  ;;  %10449 = vrcp.f32 %v3450_v58  ;;  %v15318_v32 = vadd.f32 %v16316_v28, %v14319_v51  ;;  %v15322_v44 = vadd.f32 %v16317_v31, %v15015_v42  ;;  %v15326_v7 = vadd.f32 %v16318_v49, %v14342_v54 }
 0x5cb   : > { %v10432_v63 = vpop.eup %10431  ;;  %v4391_v45 = vmul.f32 %v10430_v57, %v15190_v50  ;;  %10451 = vpow2.f32 %v3296_v25  ;;  %v2918_v43 = vmul.f32 1.442695, %v2510_v53  ;;  %v3316_v29 = vmul.f32 1.442695, %v2709_v6 }
 0x5cc   : > { %v10434_v2 = vpop.eup %10433  ;;  %v3649_v58 = vadd.f32 1.0, %v10432_v63  ;;  %10453 = vpow2.f32 %v2900_v9  ;;  %v2511_v28 = vsub.f32 0.0, %v15314_v21  ;;  %v2718_v46 = vsub.f32 0.0, %v15318_v32 }
 0x5cd   : > { %v10436_v24 = vpop.eup %10435  ;;  %v5000_v31 = vadd.f32 %v4999_v26, %v4391_v45  ;;  %v3451_v11 = vadd.f32 1.0, %v10434_v2  ;;  %10455 = vpow2.f32 %v3314_v5  ;;  %v2520_v49 = vsub.f32 0.0, %v15322_v44  ;;  %v16319_v5 = vld [vmem:[#allocation80_spill] sm:$0xff] }
 0x5ce   : > { %v10438_v10 = vpop.eup %10437  ;;  %v4598_v47 = vmul.f32 %v10436_v24, %v15200_v38  ;;  %10457 = vrcp.f32 %v3649_v58  ;;  %v2920_v50 = vmul.f32 1.442695, %v2511_v28  ;;  %v3334_v25 = vmul.f32 1.442695, %v2718_v46 }
 0x5cf   : > { %v10440_v53 = vpop.eup %10439  ;;  %v4400_v6 = vmul.f32 %v10438_v10, %v15209_v62  ;;  %10459 = vrcp.f32 %v3451_v11  ;;  %v2938_v9 = vmul.f32 1.442695, %v2520_v49  ;;  %v2719_v57 = vsub.f32 0.0, %v15326_v7 }
 0x5d0   : > { %v10442_v63 = vpop.eup %10441  ;;  %v4910_v26 = vadd.f32 %v15287_v59, %v4598_v47  ;;  %v3658_v45 = vadd.f32 1.0, %v10440_v53  ;;  %10461 = vpow2.f32 %v2918_v43  ;;  %v15338_v2 = vadd.f32 %v16319_v5, %v15027_v52 }
 0x5d1   : > { %v10444_v38 = vpop.eup %10443  ;;  %v4964_v24 = vadd.f32 %v4963_v15, %v4400_v6  ;;  %v4599_v46 = vmul.f32 %v10442_v63, %v15216_v36  ;;  %10463 = vpow2.f32 %v3316_v29  ;;  %v3336_v58 = vmul.f32 1.442695, %v2719_v57 }
 0x5d2   : > { %v10446_v10 = vpop.eup %10445  ;;  %v4401_v11 = vmul.f32 %v10444_v38, %v15230_v37  ;;  %10465 = vrcp.f32 %v3658_v45  ;;  %v2521_v62 = vsub.f32 0.0, %v15338_v2  ;;  %v15345_v47 = vadd.f32 %v14847_v35, %v14319_v51 }
 0x5d3   : > { %v10448_v59 = vpop.eup %10447  ;;  %v4947_v43 = vadd.f32 %v4946_v27, %v4599_v46  ;;  %v3460_v28 = vadd.f32 1.0, %v10446_v10  ;;  %10467 = vpow2.f32 %v2920_v50  ;;  %v15349_v15 = vadd.f32 %v14849_v33, %v15015_v42 }
 0x5d4   : > { %v10450_v36 = vpop.eup %10449  ;;  %v5001_v29 = vadd.f32 %v5000_v31, %v4401_v11  ;;  %v4608_v49 = vmul.f32 %v10448_v59, %v15234_v30  ;;  %10469 = vpow2.f32 %v3334_v25  ;;  %v2940_v37 = vmul.f32 1.442695, %v2521_v62  ;;  %v16320_v62 = vld [vmem:[#allocation79_spill] sm:$0xff] }
 0x5d5   : > { %v10452_v53 = vpop.eup %10451  ;;  %v4410_v6 = vmul.f32 %v10450_v36, %v15239_v39  ;;  %10471 = vrcp.f32 %v3460_v28  ;;  %v2728_v35 = vsub.f32 0.0, %v15345_v47  ;;  %v2530_v27 = vsub.f32 0.0, %v15349_v15 }
 0x5d6   : > { %v10454_v57 = vpop.eup %10453  ;;  %v4911_v50 = vadd.f32 %v4910_v26, %v4608_v49  ;;  %v3659_v63 = vadd.f32 1.0, %v10452_v53  ;;  %10473 = vpow2.f32 %v2938_v9  ;;  %v15357_v33 = vadd.f32 %v14852_v34, %v14342_v54 }
 0x5d7   : > { %v10456_v31 = vpop.eup %10455  ;;  %v4965_v30 = vadd.f32 %v4964_v24, %v4410_v6  ;;  %v3461_v25 = vadd.f32 1.0, %v10454_v57  ;;  %10475 = vpow2.f32 %v3336_v58  ;;  %v3354_v45 = vmul.f32 1.442695, %v2728_v35 }
 0x5d8   : > { %v10458_v5 = vpop.eup %10457  ;;  %10477 = vrcp.f32 %v3659_v63  ;;  %v3668_v39 = vadd.f32 1.0, %v10456_v31  ;;  %v2958_v38 = vmul.f32 1.442695, %v2530_v27  ;;  %v2729_v46 = vsub.f32 0.0, %v15357_v33 }
 0x5d9   : > { %v10460_v10 = vpop.eup %10459  ;;  %v4609_v26 = vmul.f32 %v10458_v5, %v15258_v8  ;;  %10479 = vrcp.f32 %v3461_v25  ;;  %v15363_v9 = vadd.f32 %v14861_v56, %v15027_v52  ;;  %v15367_v34 = vadd.f32 %v14880_v40, %v14319_v51 }
 0x5da   : > { %v10462_v24 = vpop.eup %10461  ;;  %v4411_v58 = vmul.f32 %v10460_v10, %v15265_v23  ;;  %10481 = vrcp.f32 %v3668_v39  ;;  %v3356_v11 = vmul.f32 1.442695, %v2729_v46  ;;  %v15372_v59 = vadd.f32 %v16320_v62, %v15015_v42  ;;  %v16322_v10 = vld [vmem:[#allocation81_spill] sm:$0xff] }
 0x5db   : > { %v10464_v28 = vpop.eup %10463  ;;  %v4948_v8 = vadd.f32 %v4947_v43, %v4609_v26  ;;  %v3470_v36 = vadd.f32 1.0, %v10462_v24  ;;  %10483 = vpow2.f32 %v2940_v37  ;;  %v2531_v56 = vsub.f32 0.0, %v15363_v9  ;;  %v16321_v37 = vld [vmem:[#allocation62_spill] sm:$0xff] }
 0x5dc   : > { %v10466_v49 = vpop.eup %10465  ;;  %v5002_v53 = vadd.f32 %v5001_v29, %v4411_v58  ;;  %v3669_v6 = vadd.f32 1.0, %v10464_v28  ;;  %10485 = vpow2.f32 %v3354_v45  ;;  %v2738_v51 = vsub.f32 0.0, %v15367_v34 }
 0x5dd   : > { %v10468_v40 = vpop.eup %10467  ;;  %v4618_v23 = vmul.f32 %v10466_v49, %v15269_v18  ;;  %10487 = vrcp.f32 %v3470_v36  ;;  %v2960_v35 = vmul.f32 1.442695, %v2531_v56  ;;  %v2540_v27 = vsub.f32 0.0, %v15372_v59 }
 0x5de   : > { %v10470_v57 = vpop.eup %10469  ;;  %10489 = vrcp.f32 %v3669_v6  ;;  %v3471_v43 = vadd.f32 1.0, %v10468_v40  ;;  %v3374_v63 = vmul.f32 1.442695, %v2738_v51  ;;  %v15380_v31 = vadd.f32 %v16321_v37, %v14342_v54  ;;  %v16323_v54 = vld [vmem:[#allocation63_spill] sm:$0xff] }
 0x5df   : > { %v10472_v29 = vpop.eup %10471  ;;  %v4912_v25 = vadd.f32 %v4911_v50, %v4618_v23  ;;  %v3678_v45 = vadd.f32 1.0, %v10470_v57  ;;  %10491 = vpow2.f32 %v2958_v38  ;;  %v2978_v5 = vmul.f32 1.442695, %v2540_v27  ;;  %v16324_v50 = vld [vmem:[#allocation46_spill] sm:$0xff] }
 0x5e0   : > { %v10474_v39 = vpop.eup %10473  ;;  %v4420_v18 = vmul.f32 %v10472_v29, %v15279_v16  ;;  %10493 = vrcp.f32 %v3471_v43  ;;  %v2739_v46 = vsub.f32 0.0, %v15380_v31  ;;  %v15386_v26 = vadd.f32 %v16322_v10, %v15027_v52  ;;  %v16325_v43 = vld [vmem:[#allocation64_spill] sm:$0xff] }
 0x5e1   : > { %v10476_v24 = vpop.eup %10475  ;;  %10495 = vrcp.f32 %v3678_v45  ;;  %v3480_v58 = vadd.f32 1.0, %v10474_v39  ;;  %v15390_v62 = vadd.f32 %v16323_v54, %v15015_v42  ;;  %v15394_v38 = vadd.f32 %v16324_v50, %v15027_v52 }
 0x5e2   : > { %v10478_v28 = vpop.eup %10477  ;;  %v4966_v16 = vadd.f32 %v4965_v30, %v4420_v18  ;;  %v3679_v36 = vadd.f32 1.0, %v10476_v24  ;;  %10497 = vpow2.f32 %v3356_v11  ;;  %v3376_v56 = vmul.f32 1.442695, %v2739_v46 }
 0x5e3   : > { %v10480_v49 = vpop.eup %10479  ;;  %v4619_v6 = vmul.f32 %v10478_v28, %v15284_v19  ;;  %10499 = vrcp.f32 %v3480_v58  ;;  %v2541_v51 = vsub.f32 0.0, %v15386_v26  ;;  %v2550_v40 = vsub.f32 0.0, %v15390_v62 }
 0x5e4   : > { %v10482_v23 = vpop.eup %10481  ;;  %v4421_v27 = vmul.f32 %v10480_v49, %v15293_v60  ;;  %10501 = vrcp.f32 %v3679_v36  ;;  %v2551_v57 = vsub.f32 0.0, %v15394_v38  ;;  %v15403_v30 = vadd.f32 %v16325_v43, %v15015_v42 }
 0x5e5   : > { %v10484_v11 = vpop.eup %10483  ;;  %v4949_v37 = vadd.f32 %v4948_v8, %v4619_v6  ;;  %v4628_v29 = vmul.f32 %v10482_v23, %v15297_v13  ;;  %10503 = vpow2.f32 %v2960_v35  ;;  %v2980_v19 = vmul.f32 1.442695, %v2541_v51 }
 0x5e6   : > { %v10486_v45 = vpop.eup %10485  ;;  %v5003_v39 = vadd.f32 %v5002_v53, %v4421_v27  ;;  %v3481_v18 = vadd.f32 1.0, %v10484_v11  ;;  %10505 = vpow2.f32 %v3374_v63  ;;  %v2998_v46 = vmul.f32 1.442695, %v2550_v40 }
 0x5e7   : > { %v10488_v10 = vpop.eup %10487  ;;  %v4913_v60 = vadd.f32 %v4912_v25, %v4628_v29  ;;  %v3688_v24 = vadd.f32 1.0, %v10486_v45  ;;  %10507 = vpow2.f32 %v2978_v5  ;;  %v3000_v58 = vmul.f32 1.442695, %v2551_v57 }
 0x5e8   : > { %v10490_v54 = vpop.eup %10489  ;;  %v4430_v50 = vmul.f32 %v10488_v10, %v15304_v0  ;;  %10509 = vrcp.f32 %v3481_v18  ;;  %v2560_v8 = vsub.f32 0.0, %v15403_v30  ;;  %v15410_v13 = vadd.f32 %v14936_v12, %v15027_v52 }
 0x5e9   : > { %v10492_v35 = vpop.eup %10491  ;;  %v4629_v53 = vmul.f32 %v10490_v54, %v15308_v48  ;;  %10511 = vrcp.f32 %v3688_v24  ;;  %v15415_v63 = vadd.f32 %v14952_v4, %v15015_v42  ;;  %v15419_v25 = vadd.f32 %v14959_v22, %v15027_v52  ;;  %v16326_v54 = vld [vmem:[#allocation82_spill] sm:$0xff] }
 0x5ea   : > { %v10494_v0 = vpop.eup %10493  ;;  %v4967_v5 = vadd.f32 %v4966_v16, %v4430_v50  ;;  %v3490_v28 = vadd.f32 1.0, %v10492_v35  ;;  %10513 = vpow2.f32 %v3376_v56  ;;  %v3018_v36 = vmul.f32 1.442695, %v2560_v8 }
 0x5eb   : > { %v10496_v49 = vpop.eup %10495  ;;  %v4950_v12 = vadd.f32 %v4949_v37, %v4629_v53  ;;  %v4431_v6 = vmul.f32 %v10494_v0, %v15314_v21  ;;  %10515 = vpow2.f32 %v2980_v19  ;;  %v2561_v48 = vsub.f32 0.0, %v15410_v13  ;;  %v16327_v53 = vld [vmem:[#allocation65_spill] sm:$0xff] }
 0x5ec   : > { %v10498_v51 = vpop.eup %10497  ;;  %v4638_v4 = vmul.f32 %v10496_v49, %v15318_v32  ;;  %10517 = vrcp.f32 %v3490_v28  ;;  %v2570_v40 = vsub.f32 0.0, %v15415_v63  ;;  %v2571_v22 = vsub.f32 0.0, %v15419_v25 }
 0x5ed   : > { %v10500_v23 = vpop.eup %10499  ;;  %v5004_v16 = vadd.f32 %v5003_v39, %v4431_v6  ;;  %v3689_v27 = vadd.f32 1.0, %v10498_v51  ;;  %10519 = vpow2.f32 %v2998_v46  ;;  %v3020_v56 = vmul.f32 1.442695, %v2561_v48 }
 0x5ee   : > { %v10502_v57 = vpop.eup %10501  ;;  %v4914_v43 = vadd.f32 %v4913_v60, %v4638_v4  ;;  %v4440_v21 = vmul.f32 %v10500_v23, %v15322_v44  ;;  %10521 = vpow2.f32 %v3000_v58  ;;  %v3038_v11 = vmul.f32 1.442695, %v2570_v40 }
 0x5ef   : > { %v10504_v37 = vpop.eup %10503  ;;  %v4639_v29 = vmul.f32 %v10502_v57, %v15326_v7  ;;  %10523 = vrcp.f32 %v3689_v27  ;;  %v3040_v32 = vmul.f32 1.442695, %v2571_v22  ;;  %v15430_v19 = vadd.f32 %v14962_v41, %v15015_v42 }
 0x5f0   : > { %v10506_v45 = vpop.eup %10505  ;;  %v4968_v39 = vadd.f32 %v4967_v5, %v4440_v21  ;;  %v3491_v18 = vadd.f32 1.0, %v10504_v37  ;;  %10525 = vpow2.f32 %v3018_v36  ;;  %v15434_v46 = vadd.f32 %v14965_v1, %v15027_v52 }
 0x5f1   : > { %v10508_v44 = vpop.eup %10507  ;;  %v4951_v10 = vadd.f32 %v4950_v12, %v4639_v29  ;;  %v3698_v60 = vadd.f32 1.0, %v10506_v45  ;;  %10527 = vpow2.f32 %v3020_v56  ;;  %v2580_v7 = vsub.f32 0.0, %v15430_v19  ;;  %v16328_v56 = vld [vmem:[#allocation66_spill] sm:$0xff] }
 0x5f2   : > { %v10510_v24 = vpop.eup %10509  ;;  %10529 = vrcp.f32 %v3491_v18  ;;  %v3500_v58 = vadd.f32 1.0, %v10508_v44  ;;  %v2581_v41 = vsub.f32 0.0, %v15434_v46  ;;  %v15440_v50 = vadd.f32 %v16326_v54, %v15015_v42 }
 0x5f3   : > { %v10512_v8 = vpop.eup %10511  ;;  %v4441_v35 = vmul.f32 %v10510_v24, %v15338_v2  ;;  %10531 = vrcp.f32 %v3698_v60  ;;  %v3058_v1 = vmul.f32 1.442695, %v2580_v7  ;;  %v15445_v0 = vadd.f32 %v16327_v53, %v15027_v52 }
 0x5f4   : > { %v10514_v5 = vpop.eup %10513  ;;  %v4648_v28 = vmul.f32 %v10512_v8, %v15345_v47  ;;  %10533 = vrcp.f32 %v3500_v58  ;;  %v3060_v36 = vmul.f32 1.442695, %v2581_v41  ;;  %v2590_v49 = vsub.f32 0.0, %v15440_v50  ;;  %v16331_v8 = vld [vmem:[#allocation45_spill] sm:$0xff] }
 0x5f5   : > { %v10516_v12 = vpop.eup %10515  ;;  %v5005_v6 = vadd.f32 %v5004_v16, %v4441_v35  ;;  %v3699_v48 = vadd.f32 1.0, %v10514_v5  ;;  %10535 = vpow2.f32 %v3038_v11  ;;  %v2591_v51 = vsub.f32 0.0, %v15445_v0  ;;  %v16329_v11 = vld [vmem:[#allocation83_spill] sm:$0xff] }
 0x5f6   : > { %v10518_v2 = vpop.eup %10517  ;;  %v4915_v4 = vadd.f32 %v4914_v43, %v4648_v28  ;;  %v3501_v40 = vadd.f32 1.0, %v10516_v12  ;;  %10537 = vpow2.f32 %v3040_v32  ;;  %v3078_v22 = vmul.f32 1.442695, %v2590_v49  ;;  %v16330_v43 = vld [vmem:[#allocation84_spill] sm:$0xff] }
 0x5f7   : > { %v10520_v23 = vpop.eup %10519  ;;  %v4450_v27 = vmul.f32 %v10518_v2, %v15349_v15  ;;  %10539 = vrcp.f32 %v3699_v48  ;;  %v3080_v47 = vmul.f32 1.442695, %v2591_v51  ;;  %v15453_v57 = vadd.f32 %v16328_v56, %v15015_v42  ;;  %v16332_v2 = vld [vmem:[#allocation70_spill] sm:$0xff] }
 0x5f8   : > { %v10522_v21 = vpop.eup %10521  ;;  %10541 = vrcp.f32 %v3501_v40  ;;  %v3510_v16 = vadd.f32 1.0, %v10520_v23  ;;  %v15457_v37 = vadd.f32 %v16329_v11, %v15027_v52  ;;  %v15461_v29 = vadd.f32 %v16330_v43, %v15015_v42 }
 0x5f9   : > { %v10524_v32 = vpop.eup %10523  ;;  %v4969_v45 = vadd.f32 %v4968_v39, %v4450_v27  ;;  %v3511_v15 = vadd.f32 1.0, %v10522_v21  ;;  %10543 = vpow2.f32 %v3058_v1  ;;  %v2600_v18 = vsub.f32 0.0, %v15453_v57 }
 0x5fa   : > { %v10526_v44 = vpop.eup %10525  ;;  %v4649_v60 = vmul.f32 %v10524_v32, %v15357_v33  ;;  %10545 = vrcp.f32 %v3510_v16  ;;  %v2601_v7 = vsub.f32 0.0, %v15457_v37  ;;  %v2610_v24 = vsub.f32 0.0, %v15461_v29 }
 0x5fb   : > { %v10528_v58 = vpop.eup %10527  ;;  %10547 = vrcp.f32 %v3511_v15  ;;  %v3520_v41 = vadd.f32 1.0, %v10526_v44  ;;  %v3098_v54 = vmul.f32 1.442695, %v2600_v18  ;;  %v15469_v35 = vadd.f32 %v16331_v8, %v15027_v52 }
 0x5fc   : > { %v10530_v39 = vpop.eup %10529  ;;  %v4952_v1 = vadd.f32 %v4951_v10, %v4649_v60  ;;  %v3521_v53 = vadd.f32 1.0, %v10528_v58  ;;  %10549 = vpow2.f32 %v3060_v36  ;;  %v3100_v5 = vmul.f32 1.442695, %v2601_v7  ;;  %v16333_v10 = vld [vmem:[#allocation85_spill] sm:$0xff] }
 0x5fd   : > { %v10532_v28 = vpop.eup %10531  ;;  %v4451_v33 = vmul.f32 %v10530_v39, %v15363_v9  ;;  %10551 = vrcp.f32 %v3520_v41  ;;  %v3118_v49 = vmul.f32 1.442695, %v2610_v24  ;;  %v2611_v12 = vsub.f32 0.0, %v15469_v35 }
 0x5fe   : > { %v10534_v48 = vpop.eup %10533  ;;  %v4658_v51 = vmul.f32 %v10532_v28, %v15367_v34  ;;  %10553 = vrcp.f32 %v3521_v53  ;;  %v15476_v40 = vadd.f32 %v16332_v2, %v15015_v42  ;;  %v15480_v23 = vadd.f32 %v16333_v10, %v15027_v52 }
 0x5ff   : > { %v10536_v36 = vpop.eup %10535  ;;  %v5006_v27 = vadd.f32 %v5005_v6, %v4451_v33  ;;  %v4460_v9 = vmul.f32 %v10534_v48, %v15372_v59  ;;  %10555 = vpow2.f32 %v3078_v22  ;;  %v3120_v56 = vmul.f32 1.442695, %v2611_v12 }
 0x600   : > { %v10538_v21 = vpop.eup %10537  ;;  %v4916_v16 = vadd.f32 %v4915_v4, %v4658_v51  ;;  %v3530_v11 = vadd.f32 1.0, %v10536_v36  ;;  %10557 = vpow2.f32 %v3080_v47  ;;  %v2620_v34 = vsub.f32 0.0, %v15476_v40  ;;  %v16334_v47 = vld [vmem:[#allocation86_spill] sm:$0xff] }
 0x601   : > { %v10540_v43 = vpop.eup %10539  ;;  %v4970_v32 = vadd.f32 %v4969_v45, %v4460_v9  ;;  %v3531_v15 = vadd.f32 1.0, %v10538_v21  ;;  %10559 = vpow2.f32 %v3098_v54  ;;  %v2621_v18 = vsub.f32 0.0, %v15480_v23  ;;  %v16335_v21 = vld [vmem:[#allocation87_spill] sm:$0xff] }
 0x602   : > { %v10542_v44 = vpop.eup %10541  ;;  %v4917_v60 = vrot.slane %v4916_v16, 4  ;;  %v4659_v6 = vmul.f32 %v10540_v43, %v15380_v31  ;;  %10561 = vrcp.f32 %v3530_v11  ;;  %v3138_v59 = vmul.f32 1.442695, %v2620_v34 }
 0x603   : > { %v10544_v22 = vpop.eup %10543  ;;  %v4461_v7 = vmul.f32 %v10542_v44, %v15386_v26  ;;  %10563 = vrcp.f32 %v3531_v15  ;;  %v3140_v4 = vmul.f32 1.442695, %v2621_v18  ;;  %v15489_v24 = vadd.f32 %v16334_v47, %v15015_v42 }
 0x604   : > { %v10546_v45 = vpop.eup %10545  ;;  %v4918_v58 = vadd.f32 %v4917_v60, %v4916_v16  ;;  %v4953_v41 = vadd.f32 %v4952_v1, %v4659_v6  ;;  %v3540_v54 = vadd.f32 1.0, %v10544_v22  ;;  %10565 = vpow2.f32 %v3100_v5 }
 0x605   : > { %v10548_v8 = vpop.eup %10547  ;;  %v5007_v39 = vadd.f32 %v5006_v27, %v4461_v7  ;;  %v4470_v31 = vmul.f32 %v10546_v45, %v15390_v62  ;;  %10567 = vpow2.f32 %v3118_v49  ;;  %v2630_v53 = vsub.f32 0.0, %v15489_v24 }
 0x606   : > { %v10550_v28 = vpop.eup %10549  ;;  %v4919_v26 = vrot.slane %v4918_v58, 2  ;;  %v4954_v33 = vrot.slane %v4953_v41, 4  ;;  %v4471_v12 = vmul.f32 %v10548_v8, %v15394_v38  ;;  %10569 = vrcp.f32 %v3540_v54  ;;  %v16336_v38 = vld [vmem:[#allocation67_spill] sm:$0xff] }
 0x607   : > { %v10552_v48 = vpop.eup %10551  ;;  %v4971_v51 = vadd.f32 %v4970_v32, %v4470_v31  ;;  %v3541_v2 = vadd.f32 1.0, %v10550_v28  ;;  %10571 = vpow2.f32 %v3120_v56  ;;  %v3158_v1 = vmul.f32 1.442695, %v2630_v53 }
 0x608   : > { %v10554_v10 = vpop.eup %10553  ;;  %v4920_v5 = vadd.f32 %v4919_v26, %v4918_v58  ;;  %v4955_v36 = vadd.f32 %v4954_v33, %v4953_v41  ;;  %v5008_v27 = vadd.f32 %v5007_v39, %v4471_v12  ;;  %v4480_v62 = vmul.f32 %v10552_v48, %v15403_v30 }
 0x609   : > { %v10556_v49 = vpop.eup %10555  ;;  %v4481_v9 = vmul.f32 %v10554_v10, %v15410_v13  ;;  %10573 = vrcp.f32 %v3541_v2  ;;  %v15498_v16 = vadd.f32 %v16335_v21, %v15027_v52  ;;  %v15502_v11 = vadd.f32 %v16336_v38, %v15015_v42 }
 0x60a   : > { %v10558_v56 = vpop.eup %10557  ;;  %v4921_v34 = vrot.slane %v4920_v5, 1  ;;  %v4956_v43 = vrot.slane %v4955_v36, 2  ;;  %v4972_v32 = vadd.f32 %v4971_v51, %v4480_v62  ;;  %v3550_v15 = vadd.f32 1.0, %v10556_v49 }
 0x60b   : > { %v10560_v18 = vpop.eup %10559  ;;  %v5009_v44 = vadd.f32 %v5008_v27, %v4481_v9  ;;  %v3551_v30 = vadd.f32 1.0, %v10558_v56  ;;  %10575 = vpow2.f32 %v3138_v59  ;;  %v2631_v13 = vsub.f32 0.0, %v15498_v16  ;;  %v16337_v59 = vld [vmem:[#allocation68_spill] sm:$0xff] }
 0x60c   : > { %v10562_v60 = vpop.eup %10561  ;;  %v4922_v6 = vadd.f32 %v4921_v34, %v4920_v5  ;;  %v4957_v22 = vadd.f32 %v4956_v43, %v4955_v36  ;;  %10577 = vrcp.f32 %v3550_v15  ;;  %v3560_v7 = vadd.f32 1.0, %v10560_v18  ;;  %v16338_v5 = vld [vmem:[#allocation48_spill] sm:$0xff]  ;;  %v16340_v15 = vld [vmem:[#allocation73_spill] sm:$0xff] }
 0x60d   : > { %v10564_v47 = vpop.eup %10563  ;;  %v4490_v45 = vmul.f32 %v10562_v60, %v15415_v63  ;;  %10579 = vrcp.f32 %v3551_v30  ;;  %v3160_v58 = vmul.f32 1.442695, %v2631_v13  ;;  %v2640_v41 = vsub.f32 0.0, %v15502_v11 }
 0x60e   : > { %v10566_v54 = vpop.eup %10565  ;;  %v4958_v8 = vrot.slane %v4957_v22, 1  ;;  %v4491_v39 = vmul.f32 %v10564_v47, %v15419_v25  ;;  %10581 = vrcp.f32 %v3560_v7  ;;  %v15510_v31 = vadd.f32 %v16337_v59, %v15027_v52 }
 0x60f   : > { %v10568_v53 = vpop.eup %10567  ;;  %v4973_v28 = vadd.f32 %v4972_v32, %v4490_v45  ;;  %v3561_v26 = vadd.f32 1.0, %v10566_v54  ;;  %10583 = vpow2.f32 %v3140_v4  ;;  %v3178_v33 = vmul.f32 1.442695, %v2640_v41  ;;  %v16339_v4 = vld [vmem:[#allocation71_spill] sm:$0xff] }
 0x610   : > { %v10570_v12 = vpop.eup %10569  ;;  %v4959_v63 = vadd.f32 %v4958_v8, %v4957_v22  ;;  %v5010_v48 = vadd.f32 %v5009_v44, %v4491_v39  ;;  %v3570_v51 = vadd.f32 1.0, %v10568_v53  ;;  %10585 = vpow2.f32 %v3158_v1  ;;  %v16341_v44 = vld [vmem:[#allocation72_spill] sm:$0xff] }
 0x611   : > { %v10572_v2 = vpop.eup %10571  ;;  %v4500_v10 = vmul.f32 %v10570_v12, %v15430_v19  ;;  %10587 = vrcp.f32 %v3561_v26  ;;  %v2641_v25 = vsub.f32 0.0, %v15510_v31  ;;  %v15516_v36 = vadd.f32 %v16338_v5, %v15015_v42  ;;  %v16342_v26 = vld [vmem:[#allocation47_spill] sm:$0xff] }
 0x612   : > { %v5047_v27 = vcombine.low %v4922_v6, %v4959_v63  ;;  %10589 = vrcp.f32 %v3570_v51  ;;  %v3571_v62 = vadd.f32 1.0, %v10572_v2  ;;  %v15520_v49 = vadd.f32 %v16339_v4, %v15027_v52 }
 0x613   : > { %v10574_v9 = vpop.eup %10573  ;;  %v4974_v21 = vadd.f32 %v4973_v28, %v4500_v10  ;;  %10591 = vpow2.f32 %v3160_v58  ;;  %v3180_v1 = vmul.f32 1.442695, %v2641_v25  ;;  %v2650_v19 = vsub.f32 0.0, %v15516_v36 }
 0x614   : > { %v5075_v38 = vrot.slane %v5047_v27, %v16299_v55  ;;  %v4501_v56 = vmul.f32 %v10574_v9, %v15434_v46  ;;  %10593 = vrcp.f32 %v3571_v62  ;;  %v2651_v34 = vsub.f32 0.0, %v15520_v49 }
 0x615   : > { %v10576_v43 = vpop.eup %10575  ;;  %10595 = vpow2.f32 %v3178_v33  ;;  %v3198_v32 = vmul.f32 1.442695, %v2650_v19  ;;  %v15528_v18 = vadd.f32 %v16340_v15, %v15015_v42  ;;  %v15532_v30 = vadd.f32 %v16341_v44, %v15027_v52 }
 0x616   : > { %v10578_v13 = vpop.eup %10577  ;;  %v5077_v60 = vcombine.low %v15221_v61, %v5075_v38  ;;  %v5011_v6 = vadd.f32 %v5010_v48, %v4501_v56  ;;  %v3580_v22 = vadd.f32 1.0, %v10576_v43  ;;  %10597 = vpow2.f32 %v3180_v1  ;;  %v4662_v61 = vld [vmem:[#allocation2] sm:$0xff] }
 0x617   : > { %v10580_v46 = vpop.eup %10579  ;;  %v4510_v7 = vmul.f32 %v10578_v13, %v15440_v50  ;;  %10599 = vpow2.f32 %v3198_v32  ;;  %v3200_v47 = vmul.f32 1.442695, %v2651_v34  ;;  %v2660_v45 = vsub.f32 0.0, %v15528_v18 }
 0x618   : > { %v10582_v58 = vpop.eup %10581  ;;  %v5091_v41 = vrot.slane %v5077_v60, %v16299_v55  ;;  %v4511_v54 = vmul.f32 %v10580_v46, %v15445_v0  ;;  %10601 = vrcp.f32 %v3580_v22  ;;  %v2661_v8 = vsub.f32 0.0, %v15532_v30 }
 0x619   : > { %v10584_v39 = vpop.eup %10583  ;;  %v4975_v59 = vadd.f32 %v4974_v21, %v4510_v7  ;;  %v4520_v53 = vmul.f32 %v10582_v58, %v15453_v57  ;;  %10603 = vpow2.f32 %v3200_v47  ;;  %v3218_v28 = vmul.f32 1.442695, %v2660_v45  ;;  %v16343_v21 = vld [vmem:[#allocation88_spill] sm:$0xff] }
 0x61a   : > { %v10586_v50 = vpop.eup %10585  ;;  %v5092_v33 = vcombine.low %v16342_v26, %v5091_v41  ;;  %v5012_v12 = vadd.f32 %v5011_v6, %v4511_v54  ;;  %v3581_v63 = vadd.f32 1.0, %v10584_v39  ;;  %v3220_v48 = vmul.f32 1.442695, %v2661_v8  ;;  %v16345_v8 = vld [vmem:[#allocation99_spill] sm:$0xff] }
 0x61b   : > { %v10588_v51 = vpop.eup %10587  ;;  %v4976_v2 = vadd.f32 %v4975_v59, %v4520_v53  ;;  %v3590_v10 = vadd.f32 1.0, %v10586_v50  ;;  %10605 = vpow2.f32 %v3218_v28  ;;  %v15544_v0 = vadd.f32 %v15147_v17, %v15015_v42 }
 0x61c   : > { %v10590_v25 = vpop.eup %10589  ;;  %v5110_v5 = vadd.f32 %v5092_v33, %v4662_v61  ;;  %v4521_v57 = vmul.f32 %v10588_v51, %v15457_v37  ;;  %10607 = vrcp.f32 %v3581_v63  ;;  %v15549_v27 = vadd.f32 %v15151_v20, %v15027_v52  ;;  %v16346_v63 = vld [vmem:[#allocation74_spill] sm:$0xff] }
 0x61d   : > { %v10592_v62 = vpop.eup %10591  ;;  %v4530_v4 = vmul.f32 %v10590_v25, %v15461_v29  ;;  %10609 = vrcp.f32 %v3590_v10  ;;  %v2670_v9 = vsub.f32 0.0, %v15544_v0  ;;  %v15555_v1 = vadd.f32 %v16343_v21, %v15015_v42 }
 0x61e   : > { %v10594_v17 = vpop.eup %10593  ;;  %5112 = vst [vmem:[#allocation2] sm:$0xff] %v5110_v5  ;;  %v5013_v19 = vadd.f32 %v5012_v12, %v4521_v57  ;;  %v3591_v38 = vadd.f32 1.0, %v10592_v62  ;;  %10611 = vpow2.f32 %v3220_v48  ;;  %v2671_v37 = vsub.f32 0.0, %v15549_v27 }
 0x61f   : > { %v10596_v56 = vpop.eup %10595  ;;  %v4977_v20 = vadd.f32 %v4976_v2, %v4530_v4  ;;  %v4531_v34 = vmul.f32 %v10594_v17, %v15469_v35  ;;  %v3238_v43 = vmul.f32 1.442695, %v2670_v9  ;;  %v2680_v29 = vsub.f32 0.0, %v15555_v1  ;;  %v16347_v4 = vld [vmem:[#allocation90_spill] sm:$0xff] }
 0x620   : > { %v10598_v32 = vpop.eup %10597  ;;  %10613 = vrcp.f32 %v3591_v38  ;;  %v3600_v15 = vadd.f32 1.0, %v10596_v56  ;;  %v3240_v44 = vmul.f32 1.442695, %v2671_v37  ;;  %v15562_v13 = vadd.f32 %v15160_v14, %v15027_v52  ;;  %v16344_v14 = vld [vmem:[#allocation89_spill] sm:$0xff] }
 0x621   : > { %v10600_v60 = vpop.eup %10599  ;;  %v5014_v6 = vadd.f32 %v5013_v19, %v4531_v34  ;;  %v3601_v22 = vadd.f32 1.0, %v10598_v32  ;;  %10615 = vpow2.f32 %v3238_v43  ;;  %v3258_v46 = vmul.f32 1.442695, %v2680_v29  ;;  %v16348_v19 = vld [vmem:[#allocation91_spill] sm:$0xff]  ;;  %v16349_v29 = vld [vmem:[#allocation100_spill] sm:$0xff] }
 0x622   : > { %v10602_v7 = vpop.eup %10601  ;;  %10617 = vrcp.f32 %v3600_v15  ;;  %v3610_v47 = vadd.f32 1.0, %v10600_v60  ;;  %v2681_v35 = vsub.f32 0.0, %v15562_v13  ;;  %v15567_v45 = vadd.f32 %v15178_v3, %v15015_v42 }
 0x623   : > { %v10604_v58 = vpop.eup %10603  ;;  %v4540_v41 = vmul.f32 %v10602_v7, %v15476_v40  ;;  %10619 = vrcp.f32 %v3601_v22  ;;  %v15572_v54 = vadd.f32 %v16344_v14, %v15027_v52  ;;  %v15576_v39 = vadd.f32 %v16345_v8, %v15015_v42 }
 0x624   : > { %10621 = vrcp.f32 %v3610_v47  ;;  %v3611_v61 = vadd.f32 1.0, %v10604_v58  ;;  %v3260_v59 = vmul.f32 1.442695, %v2681_v35  ;;  %v2690_v53 = vsub.f32 0.0, %v15567_v45 }
 0x625   : > { %v10606_v28 = vpop.eup %10605  ;;  %v4978_v3 = vadd.f32 %v4977_v20, %v4540_v41  ;;  %10623 = vpow2.f32 %v3240_v44  ;;  %v2691_v50 = vsub.f32 0.0, %v15572_v54  ;;  %v2700_v40 = vsub.f32 0.0, %v15576_v39 }
 0x626   : > { %v10608_v26 = vpop.eup %10607  ;;  %10625 = vrcp.f32 %v3611_v61  ;;  %v3620_v33 = vadd.f32 1.0, %v10606_v28  ;;  %v3278_v12 = vmul.f32 1.442695, %v2690_v53  ;;  %v15583_v48 = vadd.f32 %v16346_v63, %v15027_v52  ;;  %v16351_v53 = vld [vmem:[#allocation75_spill] sm:$0xff] }
 0x627   : > { %v10610_v51 = vpop.eup %10609  ;;  %v4541_v2 = vmul.f32 %v10608_v26, %v15480_v23  ;;  %10627 = vpow2.f32 %v3258_v46  ;;  %v3280_v10 = vmul.f32 1.442695, %v2691_v50  ;;  %v3298_v25 = vmul.f32 1.442695, %v2700_v40 }
 0x628   : > { %v10612_v5 = vpop.eup %10611  ;;  %v4550_v57 = vmul.f32 %v10610_v51, %v15489_v24  ;;  %10629 = vrcp.f32 %v3620_v33  ;;  %v2701_v62 = vsub.f32 0.0, %v15583_v48  ;;  %v15590_v9 = vadd.f32 %v16347_v4, %v15015_v42 }
 0x629   : > { %v5015_v21 = vadd.f32 %v5014_v6, %v4541_v2  ;;  %v3621_v17 = vadd.f32 1.0, %v10612_v5  ;;  %10631 = vpow2.f32 %v3260_v59  ;;  %v15594_v38 = vadd.f32 %v16348_v19, %v15027_v52  ;;  %v16350_v6 = vld [vmem:[#allocation50_spill] sm:$0xff]  ;;  %v16352_v2 = vld [vmem:[#allocation92_spill] sm:$0xff] }
 0x62a   : > { %v10614_v23 = vpop.eup %10613  ;;  %v4979_v37 = vadd.f32 %v4978_v3, %v4550_v57  ;;  %10633 = vpow2.f32 %v3278_v12  ;;  %v3300_v56 = vmul.f32 1.442695, %v2701_v62  ;;  %v2710_v24 = vsub.f32 0.0, %v15590_v9  ;;  %v16353_v62 = vld [vmem:[#allocation93_spill] sm:$0xff] }
 0x62b   : > { %v10616_v20 = vpop.eup %10615  ;;  %v4551_v34 = vmul.f32 %v10614_v23, %v15498_v16  ;;  %10635 = vrcp.f32 %v3621_v17  ;;  %v2711_v43 = vsub.f32 0.0, %v15594_v38  ;;  %v15601_v32 = vadd.f32 %v16349_v29, %v15015_v42 }
 0x62c   : > { %v10618_v15 = vpop.eup %10617  ;;  %v3630_v44 = vadd.f32 1.0, %v10616_v20  ;;  %10637 = vpow2.f32 %v3280_v10  ;;  %v3318_v60 = vmul.f32 1.442695, %v2710_v24  ;;  %v15605_v22 = vadd.f32 %v16350_v6, %v15027_v52 }
 0x62d   : > { %v10620_v46 = vpop.eup %10619  ;;  %v5016_v7 = vadd.f32 %v5015_v21, %v4551_v34  ;;  %v4560_v47 = vmul.f32 %v10618_v15, %v15502_v11  ;;  %10639 = vpow2.f32 %v3298_v25  ;;  %v3320_v16 = vmul.f32 1.442695, %v2711_v43 }
 0x62e   : > { %v10622_v35 = vpop.eup %10621  ;;  %v4561_v58 = vmul.f32 %v10620_v46, %v15510_v31  ;;  %10641 = vrcp.f32 %v3630_v44  ;;  %v2720_v41 = vsub.f32 0.0, %v15601_v32  ;;  %v2721_v14 = vsub.f32 0.0, %v15605_v22 }
 0x62f   : > { %v10624_v8 = vpop.eup %10623  ;;  %v4980_v61 = vadd.f32 %v4979_v37, %v4560_v47  ;;  %v4570_v59 = vmul.f32 %v10622_v35, %v15516_v36  ;;  %10643 = vpow2.f32 %v3300_v56  ;;  %v15614_v28 = vadd.f32 %v16351_v53, %v15015_v42 }
 0x630   : > { %v10626_v11 = vpop.eup %10625  ;;  %v5017_v3 = vadd.f32 %v5016_v7, %v4561_v58  ;;  %v3631_v50 = vadd.f32 1.0, %v10624_v8  ;;  %10645 = vpow2.f32 %v3318_v60  ;;  %v3338_v40 = vmul.f32 1.442695, %v2720_v41 }
 0x631   : > { %v10628_v31 = vpop.eup %10627  ;;  %v4981_v26 = vadd.f32 %v4980_v61, %v4570_v59  ;;  %v4571_v33 = vmul.f32 %v10626_v11, %v15520_v49  ;;  %10647 = vpow2.f32 %v3320_v16  ;;  %v3340_v12 = vmul.f32 1.442695, %v2721_v14 }
 0x632   : > { %v10630_v63 = vpop.eup %10629  ;;  %10649 = vrcp.f32 %v3631_v50  ;;  %v3640_v51 = vadd.f32 1.0, %v10628_v31  ;;  %v2730_v36 = vsub.f32 0.0, %v15614_v28  ;;  %v15620_v10 = vadd.f32 %v16352_v2, %v15027_v52 }
 0x633   : > { %v10632_v25 = vpop.eup %10631  ;;  %v5018_v5 = vadd.f32 %v5017_v3, %v4571_v33  ;;  %v4580_v57 = vmul.f32 %v10630_v63, %v15528_v18  ;;  %10651 = vpow2.f32 %v3338_v40  ;;  %v15625_v4 = vadd.f32 %v16353_v62, %v15015_v42  ;;  %v16354_v18 = vld [vmem:[#allocation94_spill] sm:$0xff] }
 0x634   : > { %v10634_v49 = vpop.eup %10633  ;;  %10653 = vrcp.f32 %v3640_v51  ;;  %v3641_v21 = vadd.f32 1.0, %v10632_v25  ;;  %v3358_v17 = vmul.f32 1.442695, %v2730_v36  ;;  %v2731_v19 = vsub.f32 0.0, %v15620_v10 }
 0x635   : > { %v10636_v23 = vpop.eup %10635  ;;  %v4982_v37 = vadd.f32 %v4981_v26, %v4580_v57  ;;  %v3650_v56 = vadd.f32 1.0, %v10634_v49  ;;  %10655 = vpow2.f32 %v3340_v12  ;;  %v15631_v34 = vadd.f32 %v16354_v18, %v15027_v52 }
 0x636   : > { %v10638_v24 = vpop.eup %10637  ;;  %v4581_v20 = vmul.f32 %v10636_v23, %v15532_v30  ;;  %10657 = vrcp.f32 %v3641_v21  ;;  %v3360_v29 = vmul.f32 1.442695, %v2731_v19  ;;  %v2740_v15 = vsub.f32 0.0, %v15625_v4 }
 0x637   : > { %v10640_v42 = vpop.eup %10639  ;;  %10659 = vrcp.f32 %v3650_v56  ;;  %v3651_v43 = vadd.f32 1.0, %v10638_v24  ;;  %v2741_v30 = vsub.f32 0.0, %v15631_v34 }
 0x638   : > { %v10642_v44 = vpop.eup %10641  ;;  %v5019_v60 = vadd.f32 %v5018_v5, %v4581_v20  ;;  %v3660_v6 = vadd.f32 1.0, %v10640_v42  ;;  %10661 = vpow2.f32 %v3358_v17  ;;  %v3378_v41 = vmul.f32 1.442695, %v2740_v15 }
 0x639   : > { %v10644_v46 = vpop.eup %10643  ;;  %v4590_v7 = vmul.f32 %v10642_v44, %v15544_v0  ;;  %10663 = vrcp.f32 %v3651_v43  ;;  %v3380_v53 = vmul.f32 1.442695, %v2741_v30 }
 0x63a   : > { %v10646_v47 = vpop.eup %10645  ;;  %10665 = vrcp.f32 %v3660_v6  ;;  %v3661_v52 = vadd.f32 1.0, %v10644_v46 }
 0x63b   : > { %v10648_v16 = vpop.eup %10647  ;;  %v4983_v35 = vadd.f32 %v4982_v37, %v4590_v7  ;;  %v3670_v58 = vadd.f32 1.0, %v10646_v47  ;;  %10667 = vpow2.f32 %v3360_v29 }
 0x63c   : > { %v10650_v14 = vpop.eup %10649  ;;  %10669 = vrcp.f32 %v3661_v52  ;;  %v3671_v8 = vadd.f32 1.0, %v10648_v16 }
 0x63d   : > { %v10652_v61 = vpop.eup %10651  ;;  %v4591_v59 = vmul.f32 %v10650_v14, %v15549_v27  ;;  %10671 = vrcp.f32 %v3670_v58 }
 0x63e   : > { %v10654_v0 = vpop.eup %10653  ;;  %10673 = vrcp.f32 %v3671_v8  ;;  %v3680_v11 = vadd.f32 1.0, %v10652_v61 }
 0x63f   : > { %v10656_v3 = vpop.eup %10655  ;;  %v5020_v50 = vadd.f32 %v5019_v60, %v4591_v59  ;;  %v4600_v40 = vmul.f32 %v10654_v0, %v15555_v1  ;;  %10675 = vpow2.f32 %v3378_v41 }
 0x640   : > { %v10658_v31 = vpop.eup %10657  ;;  %10677 = vrcp.f32 %v3680_v11  ;;  %v3681_v26 = vadd.f32 1.0, %v10656_v3 }
 0x641   : > { %v10660_v33 = vpop.eup %10659  ;;  %v4984_v12 = vadd.f32 %v4983_v35, %v4600_v40  ;;  %v4601_v63 = vmul.f32 %v10658_v31, %v15562_v13  ;;  %10679 = vpow2.f32 %v3380_v53 }
 0x642   : > { %v10662_v51 = vpop.eup %10661  ;;  %v4610_v27 = vmul.f32 %v10660_v33, %v15567_v45  ;;  %10681 = vrcp.f32 %v3681_v26  ;;  %v4663_v26 = vld [vmem:[#allocation2 + $0x8] sm:$0x3] }
 0x643   : > { %v10664_v36 = vpop.eup %10663  ;;  %v5021_v2 = vadd.f32 %v5020_v50, %v4601_v63  ;;  %v3690_v25 = vadd.f32 1.0, %v10662_v51  ;;  %v10693_v63 = vld [vmem:[#allocation12 + $0x4] ss:$16 sps:$4 sm:$0xff] (!%p8453_p3)   ;;  %v10695_v51 = vld [vmem:[#allocation12 + $0xc] ss:$16 sps:$4 sm:$0xff] (!%p8453_p3)  }
 0x644   : > { %v10666_v5 = vpop.eup %10665  ;;  %v4985_v57 = vadd.f32 %v4984_v12, %v4610_v27  ;;  %v4611_v1 = vmul.f32 %v10664_v36, %v15572_v54  ;;  %7130 = vmatprep.subr.bf16.mxu0 (!%p8453_p3), %v10693_v63  ;;  %v10697_v27 = vld [vmem:[#allocation12] ss:$16 sps:$4 sm:$0xff] (!%p8453_p3)   ;;  %v10698_v36 = vld [vmem:[#allocation12 + $0x8] ss:$16 sps:$4 sm:$0xff] (!%p8453_p3)   ;;  %7335 = vmatprep.subr.bf16.mxu1 (!%p8453_p3), %v10695_v51  ;;  %v10783_v51 = vld [vmem:[#allocation12 + $0x1e4] ss:$16 sps:$4 sm:$0xff] (!%p8453_p3)  }
 0x645   : > { %v10668_v62 = vpop.eup %10667  ;;  %v4620_v49 = vmul.f32 %v10666_v5, %v15576_v39  ;;  %10683 = vrcp.f32 %v3690_v25  ;;  %7131 = vmatpush1.bf16.msra.mxu0 (!%p8453_p3), %v10697_v27  ;;  %7336 = vmatpush1.bf16.msra.mxu1 (!%p8453_p3), %v10698_v36  ;;  %v10701_v25 = vld [vmem:[#allocation12 + $0x2c] ss:$16 sps:$4 sm:$0xff] (!%p8453_p3)   ;;  %v10703_v5 = vld [vmem:[#allocation12 + $0x20] ss:$16 sps:$4 sm:$0xff] (!%p8453_p3)   ;;  %v10782_v63 = vld [vmem:[#allocation12 + $0x1c8] ss:$16 sps:$4 sm:$0xff] (!%p8453_p3)  }
 0x646   : > { %v10670_v21 = vpop.eup %10669  ;;  %v5022_v17 = vadd.f32 %v5021_v2, %v4611_v1  ;;  %v3691_v19 = vadd.f32 1.0, %v10668_v62  ;;  %v10699_v2 = vld [vmem:[#allocation12 + $0x24] ss:$16 sps:$4 sm:$0xff] (!%p8453_p3)   ;;  %7337 = vmatprep.subr.bf16.mxu1 (!%p8453_p3), %v10701_v25  ;;  %v10707_v1 = vld [vmem:[#allocation12 + $0x4c] ss:$16 sps:$4 sm:$0xff] (!%p8453_p3)  }
 0x647   : > { %v10672_v13 = vpop.eup %10671  ;;  %v4986_v23 = vadd.f32 %v4985_v57, %v4620_v49  ;;  %v4621_v37 = vmul.f32 %v10670_v21, %v15583_v48  ;;  %7132 = vmatprep.subr.bf16.mxu0 (!%p8453_p3), %v10699_v2  ;;  %v10705_v57 = vld [vmem:[#allocation12 + $0x44] ss:$16 sps:$4 sm:$0xff] (!%p8453_p3)   ;;  %v10709_v62 = vld [vmem:[#allocation12 + $0x40] ss:$16 sps:$4 sm:$0xff] (!%p8453_p3)   ;;  %v10710_v49 = vld [vmem:[#allocation12 + $0x48] ss:$16 sps:$4 sm:$0xff] (!%p8453_p3)  }
 0x648   : > { %v10674_v45 = vpop.eup %10673  ;;  %v4630_v56 = vmul.f32 %v10672_v13, %v15590_v9  ;;  %10685 = vrcp.f32 %v3691_v19  ;;  %v10711_v21 = vld [vmem:[#allocation12 + $0x64] ss:$16 sps:$4 sm:$0xff] (!%p8453_p3)   ;;  %v10715_v19 = vld [vmem:[#allocation12 + $0x60] ss:$16 sps:$4 sm:$0xff] (!%p8453_p3)   ;;  %v10716_v13 = vld [vmem:[#allocation12 + $0x68] ss:$16 sps:$4 sm:$0xff] (!%p8453_p3)  }
 0x649   : > { %v10676_v24 = vpop.eup %10675  ;;  %v5023_v20 = vadd.f32 %v5022_v17, %v4621_v37  ;;  %v4631_v18 = vmul.f32 %v10674_v45, %v15594_v38  ;;  %7133 = vmatpush1.bf16.msra.mxu0 (!%p8453_p3), %v10703_v5  ;;  %v10713_v17 = vld [vmem:[#allocation12 + $0x6c] ss:$16 sps:$4 sm:$0xff] (!%p8453_p3)   ;;  %v10721_v45 = vld [vmem:[#allocation12 + $0x80] ss:$16 sps:$4 sm:$0xff] (!%p8453_p3)   ;;  %v16358_v2 = vld [vmem:[#allocation54_spill] sm:$0xff] (!%p8453_p3) }
 0x64a   : > { %v10678_v54 = vpop.eup %10677  ;;  %v4987_v42 = vadd.f32 %v4986_v23, %v4630_v56  ;;  %v3700_v43 = vadd.f32 1.0, %v10676_v24  ;;  %7134 = vmatprep.subr.bf16.mxu0 (!%p8453_p3), %v10705_v57  ;;  %v10717_v23 = vld [vmem:[#allocation12 + $0x84] ss:$16 sps:$4 sm:$0xff] (!%p8453_p3)   ;;  %v10719_v37 = vld [vmem:[#allocation12 + $0x8c] ss:$16 sps:$4 sm:$0xff] (!%p8453_p3)  }
 0x64b   : > { %v10680_v39 = vpop.eup %10679  ;;  %v5024_v29 = vadd.f32 %v5023_v20, %v4631_v18  ;;  %v4640_v15 = vmul.f32 %v10678_v54, %v15601_v32  ;;  %v10722_v56 = vld [vmem:[#allocation12 + $0x88] ss:$16 sps:$4 sm:$0xff] (!%p8453_p3)   ;;  %v10723_v24 = vld [vmem:[#allocation12 + $0xa4] ss:$16 sps:$4 sm:$0xff] (!%p8453_p3)   ;;  %v10725_v20 = vld [vmem:[#allocation12 + $0xac] ss:$16 sps:$4 sm:$0xff] (!%p8453_p3)  }
 0x64c   : > { %v10682_v44 = vpop.eup %10681  ;;  %10687 = vrcp.f32 %v3700_v43  ;;  %v3701_v60 = vadd.f32 1.0, %v10680_v39  ;;  %v10727_v18 = vld [vmem:[#allocation12 + $0xa0] ss:$16 sps:$4 sm:$0xff] (!%p8453_p3)   ;;  %v10728_v54 = vld [vmem:[#allocation12 + $0xa8] ss:$16 sps:$4 sm:$0xff] (!%p8453_p3)  }
 0x64d   : > { %v4988_v6 = vadd.f32 %v4987_v42, %v4640_v15  ;;  %v4641_v48 = vmul.f32 %v10682_v44, %v15605_v22  ;;  %7135 = vmatpush1.bf16.msra.mxu0 (!%p8453_p3), %v10709_v62  ;;  %v10729_v42 = vld [vmem:[#allocation12 + $0xc4] ss:$16 sps:$4 sm:$0xff] (!%p8453_p3)   ;;  %v10731_v43 = vld [vmem:[#allocation12 + $0xcc] ss:$16 sps:$4 sm:$0xff] (!%p8453_p3)   ;;  %v10733_v39 = vld [vmem:[#allocation12 + $0xc0] ss:$16 sps:$4 sm:$0xff] (!%p8453_p3)  }
 0x64e   : > { %10689 = vrcp.f32 %v3701_v60  ;;  %7136 = vmatprep.subr.bf16.mxu0 (!%p8453_p3), %v10711_v21  ;;  %v10735_v15 = vld [vmem:[#allocation12 + $0xe4] ss:$16 sps:$4 sm:$0xff] (!%p8453_p3)   ;;  %v10737_v44 = vld [vmem:[#allocation12 + $0xec] ss:$16 sps:$4 sm:$0xff] (!%p8453_p3)   ;;  %v10739_v60 = vld [vmem:[#allocation12 + $0xe0] ss:$16 sps:$4 sm:$0xff] (!%p8453_p3)  }
 0x64f   : > { %v10684_v9 = vpop.eup %10683  ;;  %v5025_v46 = vadd.f32 %v5024_v29, %v4641_v48  ;;  %v10734_v29 = vld [vmem:[#allocation12 + $0xc8] ss:$16 sps:$4 sm:$0xff] (!%p8453_p3)   ;;  %v10741_v48 = vld [vmem:[#allocation12 + $0x104] ss:$16 sps:$4 sm:$0xff] (!%p8453_p3)   ;;  %v10785_v27 = vld [vmem:[#allocation12 + $0x1ec] ss:$16 sps:$4 sm:$0xff] (!%p8453_p3)  }
 0x650   : > { %v4650_v7 = vmul.f32 %v10684_v9, %v15614_v28  ;;  %v10743_v9 = vld [vmem:[#allocation12 + $0x10c] ss:$16 sps:$4 sm:$0xff] (!%p8453_p3)   ;;  %v10787_v36 = vld [vmem:[#allocation12 + $0x1e0] ss:$16 sps:$4 sm:$0xff] (!%p8453_p3)   ;;  %v10788_v5 = vld [vmem:[#allocation12 + $0x1e8] ss:$16 sps:$4 sm:$0xff] (!%p8453_p3)  }
 0x651   : > { %7137 = vmatpush1.bf16.msra.mxu0 (!%p8453_p3), %v10715_v19  ;;  %v10794_v57 = vld [vmem:[#allocation12 + $0x20c] ss:$16 sps:$4 sm:$0xff] (!%p8453_p3)   ;;  %v10797_v19 = vld [vmem:[#allocation12 + $0x224] ss:$16 sps:$4 sm:$0xff] (!%p8453_p3)  }
 0x652   : > { %v10686_v30 = vpop.eup %10685  ;;  %v4989_v38 = vadd.f32 %v4988_v6, %v4650_v7  ;;  %7138 = vmatprep.subr.bf16.mxu0 (!%p8453_p3), %v10717_v23  ;;  %v10740_v6 = vld [vmem:[#allocation12 + $0xe8] ss:$16 sps:$4 sm:$0xff] (!%p8453_p3)  }
 0x653   : > { %v4651_v47 = vmul.f32 %v10686_v30, %v15620_v10  ;;  %v10746_v7 = vld [vmem:[#allocation12 + $0x108] ss:$16 sps:$4 sm:$0xff] (!%p8453_p3)   ;;  %v10747_v30 = vld [vmem:[#allocation12 + $0x124] ss:$16 sps:$4 sm:$0xff] (!%p8453_p3)  }
 0x655   : > { %v5026_v52 = vadd.f32 %v5025_v46, %v4651_v47  ;;  %7139 = vmatpush1.bf16.msra.mxu0 (!%p8453_p3), %v10721_v45  ;;  %v10745_v46 = vld [vmem:[#allocation12 + $0x100] ss:$16 sps:$4 sm:$0xff] (!%p8453_p3)   ;;  %v10798_v45 = vld [vmem:[#allocation12 + $0x228] ss:$16 sps:$4 sm:$0xff] (!%p8453_p3)  }
 0x656   : > { %v10688_v16 = vpop.eup %10687  ;;  %7140 = vmatprep.subr.bf16.mxu0 (!%p8453_p3), %v10723_v24  ;;  %v10751_v47 = vld [vmem:[#allocation12 + $0x120] ss:$16 sps:$4 sm:$0xff] (!%p8453_p3)   ;;  %v10806_v24 = vld [vmem:[#allocation12 + $0x24c] ss:$16 sps:$4 sm:$0xff] (!%p8453_p3)  }
 0x657   : > { %v4660_v35 = vmul.f32 %v10688_v16, %v15625_v4  ;;  %v10753_v16 = vld [vmem:[#allocation12 + $0x144] ss:$16 sps:$4 sm:$0xff] (!%p8453_p3)  }
 0x658   : > { %v10690_v32 = vpop.eup %10689 }
 0x659   : > { %v4990_v58 = vadd.f32 %v4989_v38, %v4660_v35  ;;  %v4661_v41 = vmul.f32 %v10690_v32, %v15631_v34  ;;  %v16355_v34 = vlaneseq  ;;  %7141 = vmatpush1.bf16.msra.mxu0 (!%p8453_p3), %v10727_v18  ;;  %v10749_v38 = vld [vmem:[#allocation12 + $0x12c] ss:$16 sps:$4 sm:$0xff] (!%p8453_p3)   ;;  %v10757_v32 = vld [vmem:[#allocation12 + $0x140] ss:$16 sps:$4 sm:$0xff] (!%p8453_p3)   ;;  %v10804_v18 = vld [vmem:[#allocation12 + $0x248] ss:$16 sps:$4 sm:$0xff] (!%p8453_p3)  }
 0x65a   : > { %7142 = vmatprep.subr.bf16.mxu0 (!%p8453_p3), %v10729_v42  ;;  %v10755_v35 = vld [vmem:[#allocation12 + $0x14c] ss:$16 sps:$4 sm:$0xff] (!%p8453_p3)  }
 0x65b   : > { %v4991_v14 = vrot.slane %v4990_v58, 4  ;;  %v5027_v8 = vadd.f32 %v5026_v52, %v4661_v41  ;;  %vm5115_vm4 = vcmp.lt.s32.totalorder %v16355_v34, 256  ;;  %v10752_v52 = vld [vmem:[#allocation12 + $0x128] ss:$16 sps:$4 sm:$0xff] (!%p8453_p3)   ;;  %v10759_v41 = vld [vmem:[#allocation12 + $0x164] ss:$16 sps:$4 sm:$0xff] (!%p8453_p3)  }
 0x65c   : > { %v10779_v34 = vld [vmem:[#allocation12 + $0x1cc] ss:$16 sps:$4 sm:$0xff] (!%p8453_p3)  }
 0x65d   : > { %v4992_v22 = vadd.f32 %v4991_v14, %v4990_v58  ;;  %v5028_v61 = vrot.slane %v5027_v8, 4  ;;  %7143 = vmatpush1.bf16.msra.mxu0 (!%p8453_p3), %v10733_v39  ;;  %v10758_v58 = vld [vmem:[#allocation12 + $0x148] ss:$16 sps:$4 sm:$0xff] (!%p8453_p3)   ;;  %v10761_v14 = vld [vmem:[#allocation12 + $0x16c] ss:$16 sps:$4 sm:$0xff] (!%p8453_p3)  }
 0x65e   : > { %7144 = vmatprep.subr.bf16.mxu0 (!%p8453_p3), %v10735_v15  ;;  %v10812_v42 = vld [vmem:[#allocation12 + $0x26c] ss:$16 sps:$4 sm:$0xff] (!%p8453_p3)   ;;  %v10810_v39 = vld [vmem:[#allocation12 + $0x268] ss:$16 sps:$4 sm:$0xff] (!%p8453_p3)  }
 0x65f   : > { %v4993_v59 = vrot.slane %v4992_v22, 2  ;;  %v5029_v53 = vadd.f32 %v5028_v61, %v5027_v8  ;;  %v5122_v8 = vld [vmem:[#allocation2] sm:$0xff] (!%p8453_p3)  ;;  %v10818_v15 = vld [vmem:[#allocation12 + $0x28c] ss:$16 sps:$4 sm:$0xff] (!%p8453_p3)  }
 0x660   : > { %v15655_v61 = vmul.f32 (!%p8453_p3), 0.0009765625, %v5122_v8  ;;  %v10840_v8 = vld [vmem:[#allocation12 + $0x308] ss:$16 sps:$4 sm:$0xff] (!%p8453_p3)  }
 0x661   : > { %v4994_v0 = vadd.f32 %v4993_v59, %v4992_v22  ;;  %v5030_v28 = vrot.slane %v5029_v53, 2  ;;  %7145 = vmatpush1.bf16.msra.mxu0 (!%p8453_p3), %v10739_v60  ;;  %v10763_v22 = vld [vmem:[#allocation12 + $0x160] ss:$16 sps:$4 sm:$0xff] (!%p8453_p3)   ;;  %v10764_v59 = vld [vmem:[#allocation12 + $0x168] ss:$16 sps:$4 sm:$0xff] (!%p8453_p3)  }
 0x662   : > { %7146 = vmatprep.subr.bf16.mxu0 (!%p8453_p3), %v10741_v48  ;;  %v5131_v25 = vrot.slane (!%p8453_p3), %v15655_v61, %v16358_v2  ;;  %v10816_v60 = vld [vmem:[#allocation12 + $0x288] ss:$16 sps:$4 sm:$0xff] (!%p8453_p3)   ;;  %v10824_v48 = vld [vmem:[#allocation12 + $0x2ac] ss:$16 sps:$4 sm:$0xff] (!%p8453_p3)  }
 0x663   : > { %v4995_v11 = vrot.slane %v4994_v0, 1  ;;  %v5031_v3 = vadd.f32 %v5030_v28, %v5029_v53  ;;  %v10765_v53 = vld [vmem:[#allocation12 + $0x184] ss:$16 sps:$4 sm:$0xff] (!%p8453_p3)   ;;  %v16357_v28 = vld [vmem:[#allocation55_spill] sm:$0xff] (!%p8453_p3) }
 0x664   : > { %v5178_v21 = vpack.c.bf16 (!%p8453_p3), %v5131_v25, %v5131_v25  ;;  %v10870_v25 = vld [vmem:[#allocation12 + $0x3a8] ss:$16 sps:$4 sm:$0xff] (!%p8453_p3)  }
 0x665   : > { %v4996_v50 = vadd.f32 %v4995_v11, %v4994_v0  ;;  %v5032_v10 = vrot.slane %v5031_v3, 1  ;;  %7147 = vmatpush1.bf16.msra.mxu0 (!%p8453_p3), %v10745_v46  ;;  %v10767_v0 = vld [vmem:[#allocation12 + $0x18c] ss:$16 sps:$4 sm:$0xff] (!%p8453_p3)   ;;  %v5135_v11 = vrot.slane (!%p8453_p3), %v15655_v61, %v16357_v28  ;;  %v10822_v46 = vld [vmem:[#allocation12 + $0x2a8] ss:$16 sps:$4 sm:$0xff] (!%p8453_p3)  }
 0x666   : > { %7148 = vmatprep.subr.bf16.mxu0 (!%p8453_p3), %v10747_v30  ;;  %v10830_v30 = vld [vmem:[#allocation12 + $0x2cc] ss:$16 sps:$4 sm:$0xff] (!%p8453_p3)  }
 0x667   : > { %v5033_v40 = vadd.f32 %v5032_v10, %v5031_v3  ;;  %v10769_v3 = vld [vmem:[#allocation12 + $0x180] ss:$16 sps:$4 sm:$0xff] (!%p8453_p3)   ;;  %v10770_v10 = vld [vmem:[#allocation12 + $0x188] ss:$16 sps:$4 sm:$0xff] (!%p8453_p3)  }
 0x669   : > { %v5093_v31 = vcombine.low %v4996_v50, %v5033_v40  ;;  %7149 = vmatpush1.bf16.msra.mxu0 (!%p8453_p3), %v10751_v47  ;;  %v5179_v50 = vpack.c.bf16 (!%p8453_p3), %v5135_v11, %v5135_v11  ;;  %v10771_v40 = vld [vmem:[#allocation12 + $0x1a4] ss:$16 sps:$4 sm:$0xff] (!%p8453_p3)   ;;  %v10828_v47 = vld [vmem:[#allocation12 + $0x2c8] ss:$16 sps:$4 sm:$0xff] (!%p8453_p3)  }
 0x66a   : > { %7150 = vmatprep.subr.bf16.mxu0 (!%p8453_p3), %v10753_v16  ;;  %v10836_v16 = vld [vmem:[#allocation12 + $0x2ec] ss:$16 sps:$4 sm:$0xff] (!%p8453_p3)   ;;  %v10851_v11 = vld [vmem:[#allocation12 + $0x344] ss:$16 sps:$4 sm:$0xff] (!%p8453_p3)  }
 0x66b   : > { %v5100_v4 = vrot.slane %v5093_v31, %v16299_v55  ;;  %5121 = sbr.rel (%p8453_p3) target bundleno = 2831 (0xb0f), region = 132  ;;  %v10773_v31 = vld [vmem:[#allocation12 + $0x1ac] ss:$16 sps:$4 sm:$0xff] (!%p8453_p3)   ;;  %7162 = vmatprep.mubr.bf16.mxu0 (!%p8453_p3), %v5179_v50  ;;  %7367 = vmatprep.mubr.bf16.mxu1 (!%p8453_p3), %v5179_v50  ;;  %v10849_v50 = vld [vmem:[#allocation12 + $0x340] ss:$16 sps:$4 sm:$0xff] (!%p8453_p3)  }
 0x66d   : > { %v5107_v33 = vrot.slane %v5100_v4, %v16299_v55  ;;  %v10704_v55 = vld [vmem:[#allocation12 + $0x28] ss:$16 sps:$4 sm:$0xff] (!%p8453_p3)   ;;  %7151 = vmatpush1.bf16.msra.mxu0 (!%p8453_p3), %v10757_v32  ;;  %v10775_v4 = vld [vmem:[#allocation12 + $0x1a0] ss:$16 sps:$4 sm:$0xff] (!%p8453_p3)  }
 0x66e   : > { %7338 = vmatpush1.bf16.msra.mxu1 (!%p8453_p3), %v10704_v55  ;;  %7152 = vmatprep.subr.bf16.mxu0 (!%p8453_p3), %v10759_v41  ;;  %v10791_v55 = vld [vmem:[#allocation12 + $0x204] ss:$16 sps:$4 sm:$0xff] (!%p8453_p3)   ;;  %v10834_v32 = vld [vmem:[#allocation12 + $0x2e8] ss:$16 sps:$4 sm:$0xff] (!%p8453_p3)   ;;  %v10842_v41 = vld [vmem:[#allocation12 + $0x30c] ss:$16 sps:$4 sm:$0xff] (!%p8453_p3)  }
 0x66f   : > { %v5111_v12 = vadd.f32 %v5107_v33, %v4663_v26  ;;  %7339 = vmatprep.subr.bf16.mxu1 (!%p8453_p3), %v10707_v1  ;;  %v10776_v26 = vld [vmem:[#allocation12 + $0x1a8] ss:$16 sps:$4 sm:$0xff] (!%p8453_p3)   ;;  %v10777_v33 = vld [vmem:[#allocation12 + $0x1c4] ss:$16 sps:$4 sm:$0xff] (!%p8453_p3)   ;;  %v16359_v1 = vld [vmem:[#allocation57_spill] sm:$0xff] (!%p8453_p3) }
 0x670   : > { %v5143_v62 = vrot.slane (!%p8453_p3), %v15655_v61, %v16359_v1 }
 0x671   : > { %5117 = vst.msk [vmem:[#allocation2 + $0x8] sm:$0x3] %vm5115_vm4, %v5111_v12  ;;  %7153 = vmatpush1.bf16.msra.mxu0 (!%p8453_p3), %v10763_v22  ;;  %v10781_v12 = vld [vmem:[#allocation12 + $0x1c0] ss:$16 sps:$4 sm:$0xff] (!%p8453_p3)   ;;  %v10845_v22 = vld [vmem:[#allocation12 + $0x324] ss:$16 sps:$4 sm:$0xff] (!%p8453_p3)  }
 0x672   : > { %7340 = vmatpush1.bf16.msra.mxu1 %v10710_v49  ;;  %7154 = vmatprep.subr.bf16.mxu0 %v10765_v53  ;;  %v10789_v49 = vld [vmem:[#allocation12 + $0x200] ss:$16 sps:$4 sm:$0xff]   ;;  %v5181_v23 = vpack.c.bf16 %v5143_v62, %v5143_v62  ;;  %v10876_v62 = vld [vmem:[#allocation12 + $0x3c8] ss:$16 sps:$4 sm:$0xff]  }
 0x673   : > { %7341 = vmatprep.subr.bf16.mxu1 %v10713_v17  ;;  %v10792_v17 = vld [vmem:[#allocation12 + $0x208] ss:$16 sps:$4 sm:$0xff]   ;;  %v10843_v53 = vld [vmem:[#allocation12 + $0x320] ss:$16 sps:$4 sm:$0xff]  }
 0x675   : > { %7155 = vmatpush1.bf16.msra.mxu0 %v10769_v3  ;;  %v10854_v3 = vld [vmem:[#allocation12 + $0x34c] ss:$16 sps:$4 sm:$0xff]  }
 0x676   : > { %7342 = vmatpush1.bf16.msra.mxu1 %v10716_v13  ;;  %7156 = vmatprep.subr.bf16.mxu0 %v10771_v40  ;;  %v10800_v13 = vld [vmem:[#allocation12 + $0x22c] ss:$16 sps:$4 sm:$0xff]   ;;  %v10857_v40 = vld [vmem:[#allocation12 + $0x364] ss:$16 sps:$4 sm:$0xff]  }
 0x677   : > { %7343 = vmatprep.subr.bf16.mxu1 %v10719_v37  ;;  %v10795_v37 = vld [vmem:[#allocation12 + $0x220] ss:$16 sps:$4 sm:$0xff]  }
 0x679   : > { %7157 = vmatpush1.bf16.msra.mxu0 %v10775_v4  ;;  %v10855_v4 = vld [vmem:[#allocation12 + $0x360] ss:$16 sps:$4 sm:$0xff]  }
 0x67a   : > { %7344 = vmatpush1.bf16.msra.mxu1 %v10722_v56  ;;  %7158 = vmatprep.subr.bf16.mxu0 %v10777_v33  ;;  %v10803_v56 = vld [vmem:[#allocation12 + $0x244] ss:$16 sps:$4 sm:$0xff]  }
 0x67b   : > { %7345 = vmatprep.subr.bf16.mxu1 %v10725_v20  ;;  %v10801_v20 = vld [vmem:[#allocation12 + $0x240] ss:$16 sps:$4 sm:$0xff]   ;;  %v10863_v33 = vld [vmem:[#allocation12 + $0x384] ss:$16 sps:$4 sm:$0xff]  }
 0x67d   : > { %7159 = vmatpush1.bf16.msra.mxu0 %v10781_v12  ;;  %v10861_v12 = vld [vmem:[#allocation12 + $0x380] ss:$16 sps:$4 sm:$0xff]  }
 0x67e   : > { %7346 = vmatpush1.bf16.msra.mxu1 %v10728_v54  ;;  %7160 = vmatprep.subr.bf16.mxu0 %v10783_v51  ;;  %v10809_v54 = vld [vmem:[#allocation12 + $0x264] ss:$16 sps:$4 sm:$0xff]  }
 0x67f   : > { %7347 = vmatprep.subr.bf16.mxu1 %v10731_v43  ;;  %v10807_v43 = vld [vmem:[#allocation12 + $0x260] ss:$16 sps:$4 sm:$0xff]   ;;  %v10869_v51 = vld [vmem:[#allocation12 + $0x3a4] ss:$16 sps:$4 sm:$0xff]  }
 0x681   : > { %7161 = vmatpush1.bf16.msra.mxu0 %v10787_v36  ;;  %v10867_v36 = vld [vmem:[#allocation12 + $0x3a0] ss:$16 sps:$4 sm:$0xff]  }
 0x682   : > { %7348 = vmatpush1.bf16.msra.mxu1 %v10734_v29  ;;  %7171 = vmatprep.subr.bf16.mxu0 %v10791_v55  ;;  %v10815_v29 = vld [vmem:[#allocation12 + $0x284] ss:$16 sps:$4 sm:$0xff]   ;;  %v10878_v55 = vld [vmem:[#allocation12 + $0x3cc] ss:$16 sps:$4 sm:$0xff]  }
 0x683   : > { %7349 = vmatprep.subr.bf16.mxu1 %v10737_v44  ;;  %v10813_v44 = vld [vmem:[#allocation12 + $0x280] ss:$16 sps:$4 sm:$0xff]  }
 0x684   : > { %7163 = vmatmul.mubr.bf16.vlgmr.msra.gmra.mrb[0].mxu0 %v5178_v21 }
 0x685   : > { %7172 = vmatpush1.bf16.msra.mxu0 %v10789_v49  ;;  %7203 = vmatprep.mubr.bf16.mxu0 %v5181_v23  ;;  %v10881_v49 = vld [vmem:[#allocation12 + $0x3e4] ss:$16 sps:$4 sm:$0xff]  }
 0x686   : > { %7350 = vmatpush1.bf16.msra.mxu1 %v10740_v6  ;;  %7173 = vmatprep.subr.bf16.mxu0 %v10797_v19  ;;  %v10821_v6 = vld [vmem:[#allocation12 + $0x2a4] ss:$16 sps:$4 sm:$0xff]  }
 0x687   : > { %7351 = vmatprep.subr.bf16.mxu1 %v10743_v9  ;;  %v10819_v9 = vld [vmem:[#allocation12 + $0x2a0] ss:$16 sps:$4 sm:$0xff]   ;;  %v16360_v19 = vld [vmem:[#allocation56_spill] sm:$0xff] }
 0x689   : > { %7174 = vmatpush1.bf16.msra.mxu0 %v10795_v37  ;;  %v10887_v37 = vld [vmem:[#allocation12 + $0x404] ss:$16 sps:$4 sm:$0xff]  }
 0x68a   : > { %7352 = vmatpush1.bf16.msra.mxu1 %v10746_v7  ;;  %7175 = vmatprep.subr.bf16.mxu0 %v10803_v56  ;;  %v10827_v7 = vld [vmem:[#allocation12 + $0x2c4] ss:$16 sps:$4 sm:$0xff]   ;;  %v16361_v56 = vld [vmem:[#allocation53_spill] sm:$0xff] }
 0x68b   : > { %7353 = vmatprep.subr.bf16.mxu1 %v10749_v38  ;;  %v10825_v38 = vld [vmem:[#allocation12 + $0x2c0] ss:$16 sps:$4 sm:$0xff]  }
 0x68d   : > { %7176 = vmatpush1.bf16.msra.mxu0 %v10801_v20 }
 0x68e   : > { %7354 = vmatpush1.bf16.msra.mxu1 %v10752_v52  ;;  %7177 = vmatprep.subr.bf16.mxu0 %v10809_v54  ;;  %v10833_v52 = vld [vmem:[#allocation12 + $0x2e4] ss:$16 sps:$4 sm:$0xff]  }
 0x68f   : > { %7355 = vmatprep.subr.bf16.mxu1 %v10755_v35  ;;  %v10831_v35 = vld [vmem:[#allocation12 + $0x2e0] ss:$16 sps:$4 sm:$0xff]  }
 0x691   : > { %7178 = vmatpush1.bf16.msra.mxu0 %v10807_v43  ;;  %v10893_v43 = vld [vmem:[#allocation12 + $0x424] ss:$16 sps:$4 sm:$0xff]  }
 0x692   : > { %7356 = vmatpush1.bf16.msra.mxu1 %v10758_v58  ;;  %7179 = vmatprep.subr.bf16.mxu0 %v10815_v29  ;;  %v10839_v58 = vld [vmem:[#allocation12 + $0x304] ss:$16 sps:$4 sm:$0xff]  }
 0x693   : > { %7357 = vmatprep.subr.bf16.mxu1 %v10761_v14  ;;  %v10837_v14 = vld [vmem:[#allocation12 + $0x300] ss:$16 sps:$4 sm:$0xff]  }
 0x695   : > { %7180 = vmatpush1.bf16.msra.mxu0 %v10813_v44  ;;  %v10894_v44 = vld [vmem:[#allocation12 + $0x428] ss:$16 sps:$4 sm:$0xff]  }
 0x696   : > { %7358 = vmatpush1.bf16.msra.mxu1 %v10764_v59  ;;  %7181 = vmatprep.subr.bf16.mxu0 %v10821_v6  ;;  %v10848_v59 = vld [vmem:[#allocation12 + $0x32c] ss:$16 sps:$4 sm:$0xff]  }
 0x697   : > { %7359 = vmatprep.subr.bf16.mxu1 %v10767_v0  ;;  %v10846_v0 = vld [vmem:[#allocation12 + $0x328] ss:$16 sps:$4 sm:$0xff]   ;;  %v10902_v6 = vld [vmem:[#allocation12 + $0x44c] ss:$16 sps:$4 sm:$0xff]  }
 0x699   : > { %7182 = vmatpush1.bf16.msra.mxu0 %v10819_v9  ;;  %v10900_v9 = vld [vmem:[#allocation12 + $0x448] ss:$16 sps:$4 sm:$0xff]  }
 0x69a   : > { %7360 = vmatpush1.bf16.msra.mxu1 %v10770_v10  ;;  %7183 = vmatprep.subr.bf16.mxu0 %v10827_v7  ;;  %v10852_v10 = vld [vmem:[#allocation12 + $0x348] ss:$16 sps:$4 sm:$0xff]   ;;  %v10908_v7 = vld [vmem:[#allocation12 + $0x46c] ss:$16 sps:$4 sm:$0xff]  }
 0x69b   : > { %7361 = vmatprep.subr.bf16.mxu1 %v10773_v31  ;;  %v10860_v31 = vld [vmem:[#allocation12 + $0x36c] ss:$16 sps:$4 sm:$0xff]  }
 0x69d   : > { %7184 = vmatpush1.bf16.msra.mxu0 %v10825_v38  ;;  %v10906_v38 = vld [vmem:[#allocation12 + $0x468] ss:$16 sps:$4 sm:$0xff]  }
 0x69e   : > { %7362 = vmatpush1.bf16.msra.mxu1 %v10776_v26  ;;  %7185 = vmatprep.subr.bf16.mxu0 %v10833_v52  ;;  %v10858_v26 = vld [vmem:[#allocation12 + $0x368] ss:$16 sps:$4 sm:$0xff]   ;;  %v10914_v52 = vld [vmem:[#allocation12 + $0x48c] ss:$16 sps:$4 sm:$0xff]  }
 0x69f   : > { %7363 = vmatprep.subr.bf16.mxu1 %v10779_v34  ;;  %v10866_v34 = vld [vmem:[#allocation12 + $0x38c] ss:$16 sps:$4 sm:$0xff]  }
 0x6a1   : > { %7186 = vmatpush1.bf16.msra.mxu0 %v10831_v35  ;;  %v10912_v35 = vld [vmem:[#allocation12 + $0x488] ss:$16 sps:$4 sm:$0xff]  }
 0x6a2   : > { %7364 = vmatpush1.bf16.msra.mxu1 %v10782_v63  ;;  %7187 = vmatprep.subr.bf16.mxu0 %v10839_v58  ;;  %v10864_v63 = vld [vmem:[#allocation12 + $0x388] ss:$16 sps:$4 sm:$0xff]   ;;  %v10920_v58 = vld [vmem:[#allocation12 + $0x4ac] ss:$16 sps:$4 sm:$0xff]  }
 0x6a3   : > { %7365 = vmatprep.subr.bf16.mxu1 %v10785_v27  ;;  %v10872_v27 = vld [vmem:[#allocation12 + $0x3ac] ss:$16 sps:$4 sm:$0xff]  }
 0x6a5   : > { %7188 = vmatpush1.bf16.msra.mxu0 %v10837_v14  ;;  %v10918_v14 = vld [vmem:[#allocation12 + $0x4a8] ss:$16 sps:$4 sm:$0xff]  }
 0x6a6   : > { %7366 = vmatpush1.bf16.msra.mxu1 %v10788_v5  ;;  %7189 = vmatprep.subr.bf16.mxu0 %v10845_v22  ;;  %v10875_v5 = vld [vmem:[#allocation12 + $0x3c4] ss:$16 sps:$4 sm:$0xff]   ;;  %v10926_v22 = vld [vmem:[#allocation12 + $0x4cc] ss:$16 sps:$4 sm:$0xff]  }
 0x6a7   : > { %7376 = vmatprep.subr.bf16.mxu1 %v10794_v57  ;;  %v10873_v57 = vld [vmem:[#allocation12 + $0x3c0] ss:$16 sps:$4 sm:$0xff]  }
 0x6a9   : > { %7368 = vmatmul.mubr.bf16.vlgmr.msra.gmra.mrb[0].mxu1 %v5178_v21  ;;  %7190 = vmatpush1.bf16.msra.mxu0 %v10843_v53  ;;  %v10884_v21 = vld [vmem:[#allocation12 + $0x3ec] ss:$16 sps:$4 sm:$0xff]   ;;  %v10924_v53 = vld [vmem:[#allocation12 + $0x4c8] ss:$16 sps:$4 sm:$0xff]  }
 0x6aa   : > { %7377 = vmatpush1.bf16.msra.mxu1 %v10792_v17  ;;  %7408 = vmatprep.mubr.bf16.mxu1 %v5181_v23  ;;  %v10879_v17 = vld [vmem:[#allocation12 + $0x3e0] ss:$16 sps:$4 sm:$0xff]   ;;  %v10882_v23 = vld [vmem:[#allocation12 + $0x3e8] ss:$16 sps:$4 sm:$0xff]  }
 0x6ab   : > { %7378 = vmatprep.subr.bf16.mxu1 %v10800_v13  ;;  %7191 = vmatprep.subr.bf16.mxu0 %v10851_v11  ;;  %v5139_v13 = vrot.slane %v15655_v61, %v16360_v19  ;;  %v10932_v11 = vld [vmem:[#allocation12 + $0x4ec] ss:$16 sps:$4 sm:$0xff]  }
 0x6ad   : > { %7192 = vmatpush1.bf16.msra.mxu0 %v10849_v50  ;;  %v5180_v54 = vpack.c.bf16 %v5139_v13, %v5139_v13  ;;  %v10930_v50 = vld [vmem:[#allocation12 + $0x4e8] ss:$16 sps:$4 sm:$0xff]   ;;  %v10965_v13 = vld [vmem:[#allocation12 + $0x5a4] ss:$16 sps:$4 sm:$0xff]  }
 0x6ae   : > { %7379 = vmatpush1.bf16.msra.mxu1 %v10798_v45  ;;  %7193 = vmatprep.subr.bf16.mxu0 %v10857_v40  ;;  %v10890_v45 = vld [vmem:[#allocation12 + $0x40c] ss:$16 sps:$4 sm:$0xff]  }
 0x6af   : > { %7380 = vmatprep.subr.bf16.mxu1 %v10806_v24  ;;  %v16362_v24 = vsub.s32 5, %v16361_v56  ;;  %v10938_v40 = vld [vmem:[#allocation12 + $0x50c] ss:$16 sps:$4 sm:$0xff]  }
 0x6b1   : > { %7194 = vmatpush1.bf16.msra.mxu0 %v10855_v4  ;;  %v5151_v20 = vrot.slane %v15655_v61, %v16362_v24  ;;  %v10936_v4 = vld [vmem:[#allocation12 + $0x508] ss:$16 sps:$4 sm:$0xff]   ;;  %v10971_v24 = vld [vmem:[#allocation12 + $0x5c4] ss:$16 sps:$4 sm:$0xff]  }
 0x6b2   : > { %7381 = vmatpush1.bf16.msra.mxu1 %v10804_v18  ;;  %7195 = vmatprep.subr.bf16.mxu0 %v10863_v33  ;;  %v10885_v18 = vld [vmem:[#allocation12 + $0x400] ss:$16 sps:$4 sm:$0xff]   ;;  %v10944_v33 = vld [vmem:[#allocation12 + $0x52c] ss:$16 sps:$4 sm:$0xff]  }
 0x6b3   : > { %7382 = vmatprep.subr.bf16.mxu1 %v10812_v42  ;;  %v10888_v42 = vld [vmem:[#allocation12 + $0x408] ss:$16 sps:$4 sm:$0xff]   ;;  %v5183_v29 = vpack.c.bf16 %v5151_v20, %v5151_v20  ;;  %v10974_v20 = vld [vmem:[#allocation12 + $0x5cc] ss:$16 sps:$4 sm:$0xff]  }
 0x6b5   : > { %7196 = vmatpush1.bf16.msra.mxu0 %v10861_v12  ;;  %v10942_v12 = vld [vmem:[#allocation12 + $0x528] ss:$16 sps:$4 sm:$0xff]  }
 0x6b6   : > { %7383 = vmatpush1.bf16.msra.mxu1 %v10810_v39  ;;  %7197 = vmatprep.subr.bf16.mxu0 %v10869_v51  ;;  %v10896_v39 = vld [vmem:[#allocation12 + $0x42c] ss:$16 sps:$4 sm:$0xff]  }
 0x6b7   : > { %7384 = vmatprep.subr.bf16.mxu1 %v10818_v15  ;;  %v10891_v15 = vld [vmem:[#allocation12 + $0x420] ss:$16 sps:$4 sm:$0xff]   ;;  %v10950_v51 = vld [vmem:[#allocation12 + $0x54c] ss:$16 sps:$4 sm:$0xff]  }
 0x6b9   : > { %7198 = vmatpush1.bf16.msra.mxu0 %v10867_v36  ;;  %v10948_v36 = vld [vmem:[#allocation12 + $0x548] ss:$16 sps:$4 sm:$0xff]  }
 0x6ba   : > { %7385 = vmatpush1.bf16.msra.mxu1 %v10816_v60  ;;  %7199 = vmatprep.subr.bf16.mxu0 %v10875_v5  ;;  %v10899_v60 = vld [vmem:[#allocation12 + $0x444] ss:$16 sps:$4 sm:$0xff]   ;;  %v10956_v5 = vld [vmem:[#allocation12 + $0x56c] ss:$16 sps:$4 sm:$0xff]  }
 0x6bb   : > { %7386 = vmatprep.subr.bf16.mxu1 %v10824_v48  ;;  %v10897_v48 = vld [vmem:[#allocation12 + $0x440] ss:$16 sps:$4 sm:$0xff]  }
 0x6bd   : > { %7200 = vmatpush1.bf16.msra.mxu0 %v10873_v57  ;;  %v10954_v57 = vld [vmem:[#allocation12 + $0x568] ss:$16 sps:$4 sm:$0xff]  }
 0x6be   : > { %7387 = vmatpush1.bf16.msra.mxu1 %v10822_v46  ;;  %7201 = vmatprep.subr.bf16.mxu0 %v10881_v49  ;;  %v10905_v46 = vld [vmem:[#allocation12 + $0x464] ss:$16 sps:$4 sm:$0xff]   ;;  %v10962_v49 = vld [vmem:[#allocation12 + $0x58c] ss:$16 sps:$4 sm:$0xff]  }
 0x6bf   : > { %7388 = vmatprep.subr.bf16.mxu1 %v10830_v30  ;;  %v10903_v30 = vld [vmem:[#allocation12 + $0x460] ss:$16 sps:$4 sm:$0xff]  }
 0x6c1   : > { %7202 = vmatpush1.bf16.msra.mxu0 %v10879_v17  ;;  %v10960_v17 = vld [vmem:[#allocation12 + $0x588] ss:$16 sps:$4 sm:$0xff]  }
 0x6c2   : > { %7389 = vmatpush1.bf16.msra.mxu1 %v10828_v47  ;;  %7212 = vmatprep.subr.bf16.mxu0 %v10887_v37  ;;  %v10911_v47 = vld [vmem:[#allocation12 + $0x484] ss:$16 sps:$4 sm:$0xff]   ;;  %v10963_v37 = vld [vmem:[#allocation12 + $0x5a0] ss:$16 sps:$4 sm:$0xff]  }
 0x6c3   : > { %7390 = vmatprep.subr.bf16.mxu1 %v10836_v16  ;;  %v10909_v16 = vld [vmem:[#allocation12 + $0x480] ss:$16 sps:$4 sm:$0xff]  }
 0x6c4   : > { %7204 = vmatmul.mubr.bf16.vlgmr.msra.gmra.mrb[0].mxu0 %v5180_v54 }
 0x6c5   : > { %7213 = vmatpush1.bf16.msra.mxu0 %v10885_v18  ;;  %7244 = vmatprep.mubr.bf16.mxu0 %v5183_v29  ;;  %v10969_v18 = vld [vmem:[#allocation12 + $0x5c0] ss:$16 sps:$4 sm:$0xff]  }
 0x6c6   : > { %7391 = vmatpush1.bf16.msra.mxu1 %v10834_v32  ;;  %7214 = vmatprep.subr.bf16.mxu0 %v10893_v43  ;;  %v10917_v32 = vld [vmem:[#allocation12 + $0x4a4] ss:$16 sps:$4 sm:$0xff]   ;;  %v10980_v43 = vld [vmem:[#allocation12 + $0x5ec] ss:$16 sps:$4 sm:$0xff]  }
 0x6c7   : > { %7392 = vmatprep.subr.bf16.mxu1 %v10842_v41  ;;  %v10915_v41 = vld [vmem:[#allocation12 + $0x4a0] ss:$16 sps:$4 sm:$0xff]  }
 0x6c9   : > { %7215 = vmatpush1.bf16.msra.mxu0 %v10891_v15 }
 0x6ca   : > { %7393 = vmatpush1.bf16.msra.mxu1 %v10840_v8  ;;  %7216 = vmatprep.subr.bf16.mxu0 %v10899_v60  ;;  %v10923_v8 = vld [vmem:[#allocation12 + $0x4c4] ss:$16 sps:$4 sm:$0xff]  }
 0x6cb   : > { %7394 = vmatprep.subr.bf16.mxu1 %v10848_v59  ;;  %v10921_v59 = vld [vmem:[#allocation12 + $0x4c0] ss:$16 sps:$4 sm:$0xff]   ;;  %v10983_v60 = vld [vmem:[#allocation12 + $0x604] ss:$16 sps:$4 sm:$0xff]  }
 0x6cd   : > { %7217 = vmatpush1.bf16.msra.mxu0 %v10897_v48  ;;  %v16364_v48 = vsub.s32 7, %v16361_v56 }
 0x6ce   : > { %7395 = vmatpush1.bf16.msra.mxu1 %v10846_v0  ;;  %7218 = vmatprep.subr.bf16.mxu0 %v10905_v46  ;;  %v10929_v0 = vld [vmem:[#allocation12 + $0x4e4] ss:$16 sps:$4 sm:$0xff]   ;;  %v10981_v46 = vld [vmem:[#allocation12 + $0x600] ss:$16 sps:$4 sm:$0xff]  }
 0x6cf   : > { %7396 = vmatprep.subr.bf16.mxu1 %v10854_v3  ;;  %v10927_v3 = vld [vmem:[#allocation12 + $0x4e0] ss:$16 sps:$4 sm:$0xff]  }
 0x6d1   : > { %7219 = vmatpush1.bf16.msra.mxu0 %v10903_v30  ;;  %v10984_v30 = vld [vmem:[#allocation12 + $0x608] ss:$16 sps:$4 sm:$0xff]  }
 0x6d2   : > { %7397 = vmatpush1.bf16.msra.mxu1 %v10852_v10  ;;  %7220 = vmatprep.subr.bf16.mxu0 %v10911_v47  ;;  %v10935_v10 = vld [vmem:[#allocation12 + $0x504] ss:$16 sps:$4 sm:$0xff]   ;;  %v10992_v47 = vld [vmem:[#allocation12 + $0x62c] ss:$16 sps:$4 sm:$0xff]  }
 0x6d3   : > { %7398 = vmatprep.subr.bf16.mxu1 %v10860_v31  ;;  %v10933_v31 = vld [vmem:[#allocation12 + $0x500] ss:$16 sps:$4 sm:$0xff]  }
 0x6d5   : > { %7221 = vmatpush1.bf16.msra.mxu0 %v10909_v16  ;;  %v10987_v16 = vld [vmem:[#allocation12 + $0x620] ss:$16 sps:$4 sm:$0xff]  }
 0x6d6   : > { %7399 = vmatpush1.bf16.msra.mxu1 %v10858_v26  ;;  %7222 = vmatprep.subr.bf16.mxu0 %v10917_v32  ;;  %v10941_v26 = vld [vmem:[#allocation12 + $0x524] ss:$16 sps:$4 sm:$0xff]  }
 0x6d7   : > { %7400 = vmatprep.subr.bf16.mxu1 %v10866_v34  ;;  %v10939_v34 = vld [vmem:[#allocation12 + $0x520] ss:$16 sps:$4 sm:$0xff]   ;;  %v10995_v32 = vld [vmem:[#allocation12 + $0x644] ss:$16 sps:$4 sm:$0xff]  }
 0x6d9   : > { %7223 = vmatpush1.bf16.msra.mxu0 %v10915_v41  ;;  %v10993_v41 = vld [vmem:[#allocation12 + $0x640] ss:$16 sps:$4 sm:$0xff]  }
 0x6da   : > { %7401 = vmatpush1.bf16.msra.mxu1 %v10864_v63  ;;  %7224 = vmatprep.subr.bf16.mxu0 %v10923_v8  ;;  %v10947_v63 = vld [vmem:[#allocation12 + $0x544] ss:$16 sps:$4 sm:$0xff]  }
 0x6db   : > { %7402 = vmatprep.subr.bf16.mxu1 %v10872_v27  ;;  %v10945_v27 = vld [vmem:[#allocation12 + $0x540] ss:$16 sps:$4 sm:$0xff]   ;;  %v11001_v8 = vld [vmem:[#allocation12 + $0x664] ss:$16 sps:$4 sm:$0xff]  }
 0x6dd   : > { %7225 = vmatpush1.bf16.msra.mxu0 %v10921_v59  ;;  %v10999_v59 = vld [vmem:[#allocation12 + $0x660] ss:$16 sps:$4 sm:$0xff]  }
 0x6de   : > { %7403 = vmatpush1.bf16.msra.mxu1 %v10870_v25  ;;  %7226 = vmatprep.subr.bf16.mxu0 %v10929_v0  ;;  %v10953_v25 = vld [vmem:[#allocation12 + $0x564] ss:$16 sps:$4 sm:$0xff]  }
 0x6df   : > { %7404 = vmatprep.subr.bf16.mxu1 %v10878_v55  ;;  %v10951_v55 = vld [vmem:[#allocation12 + $0x560] ss:$16 sps:$4 sm:$0xff]   ;;  %v11007_v0 = vld [vmem:[#allocation12 + $0x684] ss:$16 sps:$4 sm:$0xff]  }
 0x6e1   : > { %7227 = vmatpush1.bf16.msra.mxu0 %v10927_v3  ;;  %v11005_v3 = vld [vmem:[#allocation12 + $0x680] ss:$16 sps:$4 sm:$0xff]  }
 0x6e2   : > { %7405 = vmatpush1.bf16.msra.mxu1 %v10876_v62  ;;  %7228 = vmatprep.subr.bf16.mxu0 %v10935_v10  ;;  %v10959_v62 = vld [vmem:[#allocation12 + $0x584] ss:$16 sps:$4 sm:$0xff]  }
 0x6e3   : > { %7406 = vmatprep.subr.bf16.mxu1 %v10884_v21  ;;  %v10957_v21 = vld [vmem:[#allocation12 + $0x580] ss:$16 sps:$4 sm:$0xff]   ;;  %v11013_v10 = vld [vmem:[#allocation12 + $0x6a4] ss:$16 sps:$4 sm:$0xff]  }
 0x6e5   : > { %7229 = vmatpush1.bf16.msra.mxu0 %v10933_v31  ;;  %v11011_v31 = vld [vmem:[#allocation12 + $0x6a0] ss:$16 sps:$4 sm:$0xff]  }
 0x6e6   : > { %7407 = vmatpush1.bf16.msra.mxu1 %v10882_v23  ;;  %7230 = vmatprep.subr.bf16.mxu0 %v10941_v26  ;;  %v10968_v23 = vld [vmem:[#allocation12 + $0x5ac] ss:$16 sps:$4 sm:$0xff]   ;;  %v11019_v26 = vld [vmem:[#allocation12 + $0x6c4] ss:$16 sps:$4 sm:$0xff]  }
 0x6e7   : > { %7417 = vmatprep.subr.bf16.mxu1 %v10890_v45  ;;  %v10966_v45 = vld [vmem:[#allocation12 + $0x5a8] ss:$16 sps:$4 sm:$0xff]  }
 0x6e9   : > { %7409 = vmatmul.mubr.bf16.vlgmr.msra.gmra.mrb[0].mxu1 %v5180_v54  ;;  %7231 = vmatpush1.bf16.msra.mxu0 %v10939_v34  ;;  %v10972_v54 = vld [vmem:[#allocation12 + $0x5c8] ss:$16 sps:$4 sm:$0xff]   ;;  %v11017_v34 = vld [vmem:[#allocation12 + $0x6c0] ss:$16 sps:$4 sm:$0xff]  }
 0x6ea   : > { %7418 = vmatpush1.bf16.msra.mxu1 %v10888_v42  ;;  %7449 = vmatprep.mubr.bf16.mxu1 %v5183_v29  ;;  %v10977_v42 = vld [vmem:[#allocation12 + $0x5e4] ss:$16 sps:$4 sm:$0xff]   ;;  %v16363_v29 = vsub.s32 4, %v16361_v56 }
 0x6eb   : > { %7419 = vmatprep.subr.bf16.mxu1 %v10896_v39  ;;  %7232 = vmatprep.subr.bf16.mxu0 %v10947_v63  ;;  %v10975_v39 = vld [vmem:[#allocation12 + $0x5e0] ss:$16 sps:$4 sm:$0xff]   ;;  %v11025_v63 = vld [vmem:[#allocation12 + $0x6e4] ss:$16 sps:$4 sm:$0xff]  }
 0x6ec   : > { %v5147_v15 = vrot.slane %v15655_v61, %v16363_v29  ;;  %v11053_v29 = vld [vmem:[#allocation12 + $0x780] ss:$16 sps:$4 sm:$0xff]  }
 0x6ed   : > { %7233 = vmatpush1.bf16.msra.mxu0 %v10945_v27  ;;  %v11023_v27 = vld [vmem:[#allocation12 + $0x6e0] ss:$16 sps:$4 sm:$0xff]  }
 0x6ee   : > { %7420 = vmatpush1.bf16.msra.mxu1 %v10894_v44  ;;  %7234 = vmatprep.subr.bf16.mxu0 %v10953_v25  ;;  %v10978_v44 = vld [vmem:[#allocation12 + $0x5e8] ss:$16 sps:$4 sm:$0xff]   ;;  %v11031_v25 = vld [vmem:[#allocation12 + $0x704] ss:$16 sps:$4 sm:$0xff]  }
 0x6ef   : > { %7421 = vmatprep.subr.bf16.mxu1 %v10902_v6  ;;  %v10986_v6 = vld [vmem:[#allocation12 + $0x60c] ss:$16 sps:$4 sm:$0xff]  }
 0x6f1   : > { %7235 = vmatpush1.bf16.msra.mxu0 %v10951_v55  ;;  %v11029_v55 = vld [vmem:[#allocation12 + $0x700] ss:$16 sps:$4 sm:$0xff]  }
 0x6f2   : > { %7422 = vmatpush1.bf16.msra.mxu1 %v10900_v9  ;;  %7236 = vmatprep.subr.bf16.mxu0 %v10959_v62  ;;  %v5159_v9 = vrot.slane %v15655_v61, %v16364_v48  ;;  %v11037_v62 = vld [vmem:[#allocation12 + $0x724] ss:$16 sps:$4 sm:$0xff]   ;;  %v11059_v48 = vld [vmem:[#allocation12 + $0x7a0] ss:$16 sps:$4 sm:$0xff]  }
 0x6f3   : > { %7423 = vmatprep.subr.bf16.mxu1 %v10908_v7  ;;  %v5182_v7 = vpack.c.bf16 %v5147_v15, %v5147_v15  ;;  %v11056_v15 = vld [vmem:[#allocation12 + $0x788] ss:$16 sps:$4 sm:$0xff]  }
 0x6f5   : > { %7237 = vmatpush1.bf16.msra.mxu0 %v10957_v21  ;;  %v11035_v21 = vld [vmem:[#allocation12 + $0x720] ss:$16 sps:$4 sm:$0xff]  }
 0x6f6   : > { %7424 = vmatpush1.bf16.msra.mxu1 %v10906_v38  ;;  %7238 = vmatprep.subr.bf16.mxu0 %v10965_v13  ;;  %v10989_v38 = vld [vmem:[#allocation12 + $0x624] ss:$16 sps:$4 sm:$0xff]  }
 0x6f7   : > { %7425 = vmatprep.subr.bf16.mxu1 %v10914_v52  ;;  %v5185_v52 = vpack.c.bf16 %v5159_v9, %v5159_v9  ;;  %v11043_v13 = vld [vmem:[#allocation12 + $0x744] ss:$16 sps:$4 sm:$0xff]   ;;  %v11062_v9 = vld [vmem:[#allocation12 + $0x7a8] ss:$16 sps:$4 sm:$0xff]  }
 0x6f9   : > { %7239 = vmatpush1.bf16.msra.mxu0 %v10963_v37  ;;  %v11041_v37 = vld [vmem:[#allocation12 + $0x740] ss:$16 sps:$4 sm:$0xff]  }
 0x6fa   : > { %7426 = vmatpush1.bf16.msra.mxu1 %v10912_v35  ;;  %7240 = vmatprep.subr.bf16.mxu0 %v10971_v24  ;;  %v10990_v35 = vld [vmem:[#allocation12 + $0x628] ss:$16 sps:$4 sm:$0xff]   ;;  %v11049_v24 = vld [vmem:[#allocation12 + $0x764] ss:$16 sps:$4 sm:$0xff]  }
 0x6fb   : > { %7427 = vmatprep.subr.bf16.mxu1 %v10920_v58  ;;  %v10998_v58 = vld [vmem:[#allocation12 + $0x64c] ss:$16 sps:$4 sm:$0xff]  }
 0x6fd   : > { %7241 = vmatpush1.bf16.msra.mxu0 %v10969_v18  ;;  %v11047_v18 = vld [vmem:[#allocation12 + $0x760] ss:$16 sps:$4 sm:$0xff]  }
 0x6fe   : > { %7428 = vmatpush1.bf16.msra.mxu1 %v10918_v14  ;;  %7242 = vmatprep.subr.bf16.mxu0 %v10977_v42  ;;  %v10996_v14 = vld [vmem:[#allocation12 + $0x648] ss:$16 sps:$4 sm:$0xff]  }
 0x6ff   : > { %7429 = vmatprep.subr.bf16.mxu1 %v10926_v22  ;;  %v11004_v22 = vld [vmem:[#allocation12 + $0x66c] ss:$16 sps:$4 sm:$0xff]   ;;  %v5123_v42 = vld [vmem:[#allocation2 + $0x8] sm:$0x3] }
 0x701   : > { %7243 = vmatpush1.bf16.msra.mxu0 %v10975_v39  ;;  %v11058_v39 = vld [vmem:[#allocation12 + $0x78c] ss:$16 sps:$4 sm:$0xff]  }
 0x702   : > { %7430 = vmatpush1.bf16.msra.mxu1 %v10924_v53  ;;  %7253 = vmatprep.subr.bf16.mxu0 %v10983_v60  ;;  %v11002_v53 = vld [vmem:[#allocation12 + $0x668] ss:$16 sps:$4 sm:$0xff]   ;;  %v11061_v60 = vld [vmem:[#allocation12 + $0x7a4] ss:$16 sps:$4 sm:$0xff]  }
 0x703   : > { %7431 = vmatprep.subr.bf16.mxu1 %v10932_v11  ;;  %v11010_v11 = vld [vmem:[#allocation12 + $0x68c] ss:$16 sps:$4 sm:$0xff]  }
 0x704   : > { %7245 = vmatmul.mubr.bf16.vlgmr.msra.gmra.mrb[0].mxu0 %v5182_v7 }
 0x705   : > { %7254 = vmatpush1.bf16.msra.mxu0 %v10981_v46  ;;  %7285 = vmatprep.mubr.bf16.mxu0 %v5185_v52  ;;  %v11067_v46 = vld [vmem:[#allocation12 + $0x7c4] ss:$16 sps:$4 sm:$0xff]  }
 0x706   : > { %7432 = vmatpush1.bf16.msra.mxu1 %v10930_v50  ;;  %7255 = vmatprep.subr.bf16.mxu0 %v10989_v38  ;;  %v11008_v50 = vld [vmem:[#allocation12 + $0x688] ss:$16 sps:$4 sm:$0xff]  }
 0x707   : > { %7433 = vmatprep.subr.bf16.mxu1 %v10938_v40  ;;  %v11016_v40 = vld [vmem:[#allocation12 + $0x6ac] ss:$16 sps:$4 sm:$0xff]   ;;  %v11068_v38 = vld [vmem:[#allocation12 + $0x7c8] ss:$16 sps:$4 sm:$0xff]  }
 0x709   : > { %7256 = vmatpush1.bf16.msra.mxu0 %v10987_v16  ;;  %v16365_v16 = vsub.s32 6, %v16361_v56  ;;  %v11085_v56 = vld [vmem:[#allocation12 + $0x824] ss:$16 sps:$4 sm:$0xff]  }
 0x70a   : > { %7434 = vmatpush1.bf16.msra.mxu1 %v10936_v4  ;;  %7257 = vmatprep.subr.bf16.mxu0 %v10995_v32  ;;  %v11014_v4 = vld [vmem:[#allocation12 + $0x6a8] ss:$16 sps:$4 sm:$0xff]   ;;  %v11071_v32 = vld [vmem:[#allocation12 + $0x7e0] ss:$16 sps:$4 sm:$0xff]  }
 0x70b   : > { %7435 = vmatprep.subr.bf16.mxu1 %v10944_v33  ;;  %v11022_v33 = vld [vmem:[#allocation12 + $0x6cc] ss:$16 sps:$4 sm:$0xff]  }
 0x70d   : > { %7258 = vmatpush1.bf16.msra.mxu0 %v10993_v41  ;;  %v11079_v41 = vld [vmem:[#allocation12 + $0x804] ss:$16 sps:$4 sm:$0xff]  }
 0x70e   : > { %7436 = vmatpush1.bf16.msra.mxu1 %v10942_v12  ;;  %7259 = vmatprep.subr.bf16.mxu0 %v11001_v8  ;;  %v11020_v12 = vld [vmem:[#allocation12 + $0x6c8] ss:$16 sps:$4 sm:$0xff]  }
 0x70f   : > { %7437 = vmatprep.subr.bf16.mxu1 %v10950_v51  ;;  %v11028_v51 = vld [vmem:[#allocation12 + $0x6ec] ss:$16 sps:$4 sm:$0xff]  }
 0x711   : > { %7260 = vmatpush1.bf16.msra.mxu0 %v10999_v59  ;;  %v11077_v59 = vld [vmem:[#allocation12 + $0x800] ss:$16 sps:$4 sm:$0xff]  }
 0x712   : > { %7438 = vmatpush1.bf16.msra.mxu1 %v10948_v36  ;;  %7261 = vmatprep.subr.bf16.mxu0 %v11007_v0  ;;  %v11026_v36 = vld [vmem:[#allocation12 + $0x6e8] ss:$16 sps:$4 sm:$0xff]  }
 0x713   : > { %7439 = vmatprep.subr.bf16.mxu1 %v10956_v5  ;;  %v11034_v5 = vld [vmem:[#allocation12 + $0x70c] ss:$16 sps:$4 sm:$0xff]  }
 0x715   : > { %7262 = vmatpush1.bf16.msra.mxu0 %v11005_v3  ;;  %v11086_v3 = vld [vmem:[#allocation12 + $0x828] ss:$16 sps:$4 sm:$0xff]  }
 0x716   : > { %7440 = vmatpush1.bf16.msra.mxu1 %v10954_v57  ;;  %7263 = vmatprep.subr.bf16.mxu0 %v11013_v10  ;;  %v11032_v57 = vld [vmem:[#allocation12 + $0x708] ss:$16 sps:$4 sm:$0xff]   ;;  %v11094_v10 = vld [vmem:[#allocation12 + $0x84c] ss:$16 sps:$4 sm:$0xff]  }
 0x717   : > { %7441 = vmatprep.subr.bf16.mxu1 %v10962_v49  ;;  %v11040_v49 = vld [vmem:[#allocation12 + $0x72c] ss:$16 sps:$4 sm:$0xff]  }
 0x719   : > { %7264 = vmatpush1.bf16.msra.mxu0 %v11011_v31  ;;  %v11092_v31 = vld [vmem:[#allocation12 + $0x848] ss:$16 sps:$4 sm:$0xff]  }
 0x71a   : > { %7442 = vmatpush1.bf16.msra.mxu1 %v10960_v17  ;;  %7265 = vmatprep.subr.bf16.mxu0 %v11019_v26  ;;  %v11038_v17 = vld [vmem:[#allocation12 + $0x728] ss:$16 sps:$4 sm:$0xff]   ;;  %v11100_v26 = vld [vmem:[#allocation12 + $0x86c] ss:$16 sps:$4 sm:$0xff]  }
 0x71b   : > { %7443 = vmatprep.subr.bf16.mxu1 %v10968_v23  ;;  %v11046_v23 = vld [vmem:[#allocation12 + $0x74c] ss:$16 sps:$4 sm:$0xff]  }
 0x71d   : > { %7266 = vmatpush1.bf16.msra.mxu0 %v11017_v34  ;;  %v11098_v34 = vld [vmem:[#allocation12 + $0x868] ss:$16 sps:$4 sm:$0xff]  }
 0x71e   : > { %7444 = vmatpush1.bf16.msra.mxu1 %v10966_v45  ;;  %7267 = vmatprep.subr.bf16.mxu0 %v11025_v63  ;;  %v11044_v45 = vld [vmem:[#allocation12 + $0x748] ss:$16 sps:$4 sm:$0xff]   ;;  %v11106_v63 = vld [vmem:[#allocation12 + $0x88c] ss:$16 sps:$4 sm:$0xff]  }
 0x71f   : > { %7445 = vmatprep.subr.bf16.mxu1 %v10974_v20  ;;  %v11052_v20 = vld [vmem:[#allocation12 + $0x76c] ss:$16 sps:$4 sm:$0xff]  }
 0x721   : > { %7268 = vmatpush1.bf16.msra.mxu0 %v11023_v27  ;;  %v11104_v27 = vld [vmem:[#allocation12 + $0x888] ss:$16 sps:$4 sm:$0xff]  }
 0x722   : > { %7446 = vmatpush1.bf16.msra.mxu1 %v10972_v54  ;;  %7269 = vmatprep.subr.bf16.mxu0 %v11031_v25  ;;  %v11050_v54 = vld [vmem:[#allocation12 + $0x768] ss:$16 sps:$4 sm:$0xff]   ;;  %v11112_v25 = vld [vmem:[#allocation12 + $0x8ac] ss:$16 sps:$4 sm:$0xff]  }
 0x723   : > { %7447 = vmatprep.subr.bf16.mxu1 %v10980_v43  ;;  %v11055_v43 = vld [vmem:[#allocation12 + $0x784] ss:$16 sps:$4 sm:$0xff]  }
 0x725   : > { %7270 = vmatpush1.bf16.msra.mxu0 %v11029_v55  ;;  %v11110_v55 = vld [vmem:[#allocation12 + $0x8a8] ss:$16 sps:$4 sm:$0xff]  }
 0x726   : > { %7448 = vmatpush1.bf16.msra.mxu1 %v10978_v44  ;;  %7271 = vmatprep.subr.bf16.mxu0 %v11037_v62  ;;  %v15674_v44 = vmul.f32 0.0009765625, %v5123_v42  ;;  %v11118_v62 = vld [vmem:[#allocation12 + $0x8cc] ss:$16 sps:$4 sm:$0xff]  }
 0x727   : > { %7458 = vmatprep.subr.bf16.mxu1 %v10986_v6  ;;  %v11064_v6 = vld [vmem:[#allocation12 + $0x7ac] ss:$16 sps:$4 sm:$0xff]  }
 0x728   : > { %v5167_v8 = vrot.slane %v15674_v44, %v16357_v28  ;;  %v11136_v42 = vld [vmem:[#allocation12 + $0x92c] ss:$16 sps:$4 sm:$0xff]  }
 0x729   : > { %7450 = vmatmul.mubr.bf16.vlgmr.msra.gmra.mrb[0].mxu1 %v5182_v7  ;;  %7272 = vmatpush1.bf16.msra.mxu0 %v11035_v21  ;;  %v11070_v7 = vld [vmem:[#allocation12 + $0x7cc] ss:$16 sps:$4 sm:$0xff]   ;;  %v11116_v21 = vld [vmem:[#allocation12 + $0x8c8] ss:$16 sps:$4 sm:$0xff]  }
 0x72a   : > { %7459 = vmatpush1.bf16.msra.mxu1 %v10984_v30  ;;  %7490 = vmatprep.mubr.bf16.mxu1 %v5185_v52  ;;  %v11065_v30 = vld [vmem:[#allocation12 + $0x7c0] ss:$16 sps:$4 sm:$0xff]   ;;  %v11076_v52 = vld [vmem:[#allocation12 + $0x7ec] ss:$16 sps:$4 sm:$0xff]   ;;  %v5187_v0 = vpack.c.bf16 %v5167_v8, %v5167_v8 }
 0x72b   : > { %7460 = vmatprep.subr.bf16.mxu1 %v10992_v47  ;;  %7273 = vmatprep.subr.bf16.mxu0 %v11043_v13  ;;  %v11073_v47 = vld [vmem:[#allocation12 + $0x7e4] ss:$16 sps:$4 sm:$0xff]   ;;  %v11124_v13 = vld [vmem:[#allocation12 + $0x8ec] ss:$16 sps:$4 sm:$0xff]   ;;  %v11161_v8 = vld [vmem:[#allocation12 + $0x9c0] ss:$16 sps:$4 sm:$0xff]  }
 0x72d   : > { %7274 = vmatpush1.bf16.msra.mxu0 %v11041_v37  ;;  %v11122_v37 = vld [vmem:[#allocation12 + $0x8e8] ss:$16 sps:$4 sm:$0xff]  }
 0x72e   : > { %7461 = vmatpush1.bf16.msra.mxu1 %v10990_v35  ;;  %7275 = vmatprep.subr.bf16.mxu0 %v11049_v24  ;;  %v5155_v35 = vrot.slane %v15655_v61, %v16365_v16  ;;  %v11088_v61 = vld [vmem:[#allocation12 + $0x82c] ss:$16 sps:$4 sm:$0xff]   ;;  %v11157_v16 = vld [vmem:[#allocation12 + $0x9a4] ss:$16 sps:$4 sm:$0xff]  }
 0x72f   : > { %7462 = vmatprep.subr.bf16.mxu1 %v10998_v58  ;;  %v11074_v58 = vld [vmem:[#allocation12 + $0x7e8] ss:$16 sps:$4 sm:$0xff]   ;;  %v11130_v24 = vld [vmem:[#allocation12 + $0x90c] ss:$16 sps:$4 sm:$0xff]  }
 0x731   : > { %7276 = vmatpush1.bf16.msra.mxu0 %v11047_v18  ;;  %v11128_v18 = vld [vmem:[#allocation12 + $0x908] ss:$16 sps:$4 sm:$0xff]  }
 0x732   : > { %7463 = vmatpush1.bf16.msra.mxu1 %v10996_v14  ;;  %7277 = vmatprep.subr.bf16.mxu0 %v11055_v43  ;;  %v11082_v14 = vld [vmem:[#allocation12 + $0x80c] ss:$16 sps:$4 sm:$0xff]   ;;  %v11131_v43 = vld [vmem:[#allocation12 + $0x920] ss:$16 sps:$4 sm:$0xff]  }
 0x733   : > { %7464 = vmatprep.subr.bf16.mxu1 %v11004_v22  ;;  %v5184_v22 = vpack.c.bf16 %v5155_v35, %v5155_v35  ;;  %v11160_v35 = vld [vmem:[#allocation12 + $0x9ac] ss:$16 sps:$4 sm:$0xff]  }
 0x735   : > { %7278 = vmatpush1.bf16.msra.mxu0 %v11053_v29  ;;  %v11139_v29 = vld [vmem:[#allocation12 + $0x944] ss:$16 sps:$4 sm:$0xff]  }
 0x736   : > { %7465 = vmatpush1.bf16.msra.mxu1 %v11002_v53  ;;  %7279 = vmatprep.subr.bf16.mxu0 %v11061_v60  ;;  %v11080_v53 = vld [vmem:[#allocation12 + $0x808] ss:$16 sps:$4 sm:$0xff]   ;;  %v11137_v60 = vld [vmem:[#allocation12 + $0x940] ss:$16 sps:$4 sm:$0xff]  }
 0x737   : > { %7466 = vmatprep.subr.bf16.mxu1 %v11010_v11  ;;  %v11083_v11 = vld [vmem:[#allocation12 + $0x820] ss:$16 sps:$4 sm:$0xff]  }
 0x739   : > { %7280 = vmatpush1.bf16.msra.mxu0 %v11059_v48  ;;  %v11145_v48 = vld [vmem:[#allocation12 + $0x964] ss:$16 sps:$4 sm:$0xff]  }
 0x73a   : > { %7467 = vmatpush1.bf16.msra.mxu1 %v11008_v50  ;;  %7281 = vmatprep.subr.bf16.mxu0 %v11067_v46  ;;  %v11091_v50 = vld [vmem:[#allocation12 + $0x844] ss:$16 sps:$4 sm:$0xff]   ;;  %v11143_v46 = vld [vmem:[#allocation12 + $0x960] ss:$16 sps:$4 sm:$0xff]  }
 0x73b   : > { %7468 = vmatprep.subr.bf16.mxu1 %v11016_v40  ;;  %v11089_v40 = vld [vmem:[#allocation12 + $0x840] ss:$16 sps:$4 sm:$0xff]  }
 0x73d   : > { %7282 = vmatpush1.bf16.msra.mxu0 %v11065_v30  ;;  %v11151_v30 = vld [vmem:[#allocation12 + $0x984] ss:$16 sps:$4 sm:$0xff]  }
 0x73e   : > { %7469 = vmatpush1.bf16.msra.mxu1 %v11014_v4  ;;  %7283 = vmatprep.subr.bf16.mxu0 %v11073_v47  ;;  %v11097_v4 = vld [vmem:[#allocation12 + $0x864] ss:$16 sps:$4 sm:$0xff]   ;;  %v11149_v47 = vld [vmem:[#allocation12 + $0x980] ss:$16 sps:$4 sm:$0xff]  }
 0x73f   : > { %7470 = vmatprep.subr.bf16.mxu1 %v11022_v33  ;;  %v11095_v33 = vld [vmem:[#allocation12 + $0x860] ss:$16 sps:$4 sm:$0xff]  }
 0x741   : > { %7284 = vmatpush1.bf16.msra.mxu0 %v11071_v32  ;;  %v11155_v32 = vld [vmem:[#allocation12 + $0x9a0] ss:$16 sps:$4 sm:$0xff]  }
 0x742   : > { %7471 = vmatpush1.bf16.msra.mxu1 %v11020_v12  ;;  %7294 = vmatprep.subr.bf16.mxu0 %v11079_v41  ;;  %v11103_v12 = vld [vmem:[#allocation12 + $0x884] ss:$16 sps:$4 sm:$0xff]  }
 0x743   : > { %7472 = vmatprep.subr.bf16.mxu1 %v11028_v51  ;;  %v11101_v51 = vld [vmem:[#allocation12 + $0x880] ss:$16 sps:$4 sm:$0xff]   ;;  %v11163_v41 = vld [vmem:[#allocation12 + $0x9c4] ss:$16 sps:$4 sm:$0xff]  }
 0x744   : > { %7286 = vmatmul.mubr.bf16.vlgmr.msra.gmra.mrb[0].mxu0 %v5184_v22 }
 0x745   : > { %7295 = vmatpush1.bf16.msra.mxu0 %v11077_v59  ;;  %7326 = vmatprep.mubr.bf16.mxu0 %v5187_v0  ;;  %v11169_v59 = vld [vmem:[#allocation12 + $0x9e4] ss:$16 sps:$4 sm:$0xff]  }
 0x746   : > { %7473 = vmatpush1.bf16.msra.mxu1 %v11026_v36  ;;  %7296 = vmatprep.subr.bf16.mxu0 %v11085_v56  ;;  %v11109_v36 = vld [vmem:[#allocation12 + $0x8a4] ss:$16 sps:$4 sm:$0xff]   ;;  %v5163_v56 = vrot.slane %v15674_v44, %v16358_v2  ;;  %v11179_v44 = vld [vmem:[#allocation15 + $0x8] sm:$0xff]  }
 0x747   : > { %7474 = vmatprep.subr.bf16.mxu1 %v11034_v5  ;;  %v11107_v5 = vld [vmem:[#allocation12 + $0x8a0] ss:$16 sps:$4 sm:$0xff]  }
 0x749   : > { %7297 = vmatpush1.bf16.msra.mxu0 %v11083_v11  ;;  %v11173_v11 = vld [vmem:[#allocation15 + $0x40] sm:$0xff]  }
 0x74a   : > { %7475 = vmatpush1.bf16.msra.mxu1 %v11032_v57  ;;  %7298 = vmatprep.subr.bf16.mxu0 %v11091_v50  ;;  %v11115_v57 = vld [vmem:[#allocation12 + $0x8c4] ss:$16 sps:$4 sm:$0xff]   ;;  %v5186_v50 = vpack.c.bf16 %v5163_v56, %v5163_v56 }
 0x74b   : > { %7476 = vmatprep.subr.bf16.mxu1 %v11040_v49  ;;  %v11113_v49 = vld [vmem:[#allocation12 + $0x8c0] ss:$16 sps:$4 sm:$0xff]   ;;  %v11207_v56 = vld [vmem:[#allocation18 + $0x10] sm:$0xff]  }
 0x74d   : > { %7299 = vmatpush1.bf16.msra.mxu0 %v11089_v40  ;;  %v11176_v40 = vld [vmem:[#allocation15 + $0x80] sm:$0xff]  }
 0x74e   : > { %7477 = vmatpush1.bf16.msra.mxu1 %v11038_v17  ;;  %7300 = vmatprep.subr.bf16.mxu0 %v11097_v4  ;;  %v11121_v17 = vld [vmem:[#allocation12 + $0x8e4] ss:$16 sps:$4 sm:$0xff]   ;;  %v11178_v4 = vld [vmem:[#allocation15 + $0xc8] sm:$0xff]  }
 0x74f   : > { %7478 = vmatprep.subr.bf16.mxu1 %v11046_v23  ;;  %v11119_v23 = vld [vmem:[#allocation12 + $0x8e0] ss:$16 sps:$4 sm:$0xff]  }
 0x751   : > { %7301 = vmatpush1.bf16.msra.mxu0 %v11095_v33  ;;  %v11181_v33 = vld [vmem:[#allocation15 + $0x50] sm:$0xff]  }
 0x752   : > { %7479 = vmatpush1.bf16.msra.mxu1 %v11044_v45  ;;  %7302 = vmatprep.subr.bf16.mxu0 %v11103_v12  ;;  %v11127_v45 = vld [vmem:[#allocation12 + $0x904] ss:$16 sps:$4 sm:$0xff]  }
 0x753   : > { %7480 = vmatprep.subr.bf16.mxu1 %v11052_v20  ;;  %v11125_v20 = vld [vmem:[#allocation12 + $0x900] ss:$16 sps:$4 sm:$0xff]   ;;  %v11183_v12 = vld [vmem:[#allocation15 + $0x10] sm:$0xff]  }
 0x755   : > { %7303 = vmatpush1.bf16.msra.mxu0 %v11101_v51  ;;  %v11185_v51 = vld [vmem:[#allocation15 + $0x58] sm:$0xff]  }
 0x756   : > { %7481 = vmatpush1.bf16.msra.mxu1 %v11050_v54  ;;  %7304 = vmatprep.subr.bf16.mxu0 %v11109_v36  ;;  %v11133_v54 = vld [vmem:[#allocation12 + $0x924] ss:$16 sps:$4 sm:$0xff]   ;;  %v11187_v36 = vld [vmem:[#allocation15 + $0x18] sm:$0xff]  }
 0x757   : > { %7482 = vmatprep.subr.bf16.mxu1 %v11058_v39  ;;  %v11134_v39 = vld [vmem:[#allocation12 + $0x928] ss:$16 sps:$4 sm:$0xff]  }
 0x759   : > { %7305 = vmatpush1.bf16.msra.mxu0 %v11107_v5  ;;  %v11189_v5 = vld [vmem:[#allocation15 + $0x60] sm:$0xff]  }
 0x75a   : > { %7483 = vmatpush1.bf16.msra.mxu1 %v11056_v15  ;;  %7306 = vmatprep.subr.bf16.mxu0 %v11115_v57  ;;  %v11142_v15 = vld [vmem:[#allocation12 + $0x94c] ss:$16 sps:$4 sm:$0xff]   ;;  %v11191_v57 = vld [vmem:[#allocation15 + $0x20] sm:$0xff]  }
 0x75b   : > { %7484 = vmatprep.subr.bf16.mxu1 %v11064_v6  ;;  %v11140_v6 = vld [vmem:[#allocation12 + $0x948] ss:$16 sps:$4 sm:$0xff]  }
 0x75d   : > { %7307 = vmatpush1.bf16.msra.mxu0 %v11113_v49  ;;  %v11193_v49 = vld [vmem:[#allocation15 + $0x68] sm:$0xff]  }
 0x75e   : > { %7485 = vmatpush1.bf16.msra.mxu1 %v11062_v9  ;;  %7308 = vmatprep.subr.bf16.mxu0 %v11121_v17  ;;  %v11148_v9 = vld [vmem:[#allocation12 + $0x96c] ss:$16 sps:$4 sm:$0xff]  }
 0x75f   : > { %7486 = vmatprep.subr.bf16.mxu1 %v11070_v7  ;;  %v11146_v7 = vld [vmem:[#allocation12 + $0x968] ss:$16 sps:$4 sm:$0xff]   ;;  %v11195_v17 = vld [vmem:[#allocation15 + $0x28] sm:$0xff]  }
 0x761   : > { %7309 = vmatpush1.bf16.msra.mxu0 %v11119_v23  ;;  %v11197_v23 = vld [vmem:[#allocation15 + $0x70] sm:$0xff]  }
 0x762   : > { %7487 = vmatpush1.bf16.msra.mxu1 %v11068_v38  ;;  %7310 = vmatprep.subr.bf16.mxu0 %v11127_v45  ;;  %v11154_v38 = vld [vmem:[#allocation12 + $0x98c] ss:$16 sps:$4 sm:$0xff]   ;;  %v11199_v45 = vld [vmem:[#allocation15 + $0x30] sm:$0xff]  }
 0x763   : > { %7488 = vmatprep.subr.bf16.mxu1 %v11076_v52  ;;  %v11152_v52 = vld [vmem:[#allocation12 + $0x988] ss:$16 sps:$4 sm:$0xff]  }
 0x765   : > { %7311 = vmatpush1.bf16.msra.mxu0 %v11125_v20  ;;  %v11201_v20 = vld [vmem:[#allocation15 + $0x78] sm:$0xff]  }
 0x766   : > { %7489 = vmatpush1.bf16.msra.mxu1 %v11074_v58  ;;  %7312 = vmatprep.subr.bf16.mxu0 %v11133_v54  ;;  %v11158_v58 = vld [vmem:[#allocation12 + $0x9a8] ss:$16 sps:$4 sm:$0xff]   ;;  %v11203_v54 = vld [vmem:[#allocation15 + $0x38] sm:$0xff]  }
 0x767   : > { %7499 = vmatprep.subr.bf16.mxu1 %v11082_v14  ;;  %v11166_v14 = vld [vmem:[#allocation12 + $0x9cc] ss:$16 sps:$4 sm:$0xff]  }
 0x769   : > { %7491 = vmatmul.mubr.bf16.vlgmr.msra.gmra.mrb[0].mxu1 %v5184_v22  ;;  %7313 = vmatpush1.bf16.msra.mxu0 %v11131_v43  ;;  %v11164_v22 = vld [vmem:[#allocation12 + $0x9c8] ss:$16 sps:$4 sm:$0xff]   ;;  %v11753_v43 = vmov 0.0  }
 0x76a   : > { %7500 = vmatpush1.bf16.msra.mxu1 %v11080_v53  ;;  %7531 = vmatprep.mubr.bf16.mxu1 %v5187_v0  ;;  %v11172_v53 = vld [vmem:[#allocation12 + $0x9ec] ss:$16 sps:$4 sm:$0xff]   ;;  %v11170_v0 = vld [vmem:[#allocation12 + $0x9e8] ss:$16 sps:$4 sm:$0xff]  }
 0x76b   : > { %7501 = vmatprep.subr.bf16.mxu1 %v11088_v61  ;;  %7314 = vmatprep.subr.bf16.mxu0 %v11139_v29  ;;  %v11167_v61 = vld [vmem:[#allocation12 + $0x9e0] ss:$16 sps:$4 sm:$0xff]  }
 0x76d   : > { %7315 = vmatpush1.bf16.msra.mxu0 %v11137_v60 }
 0x76e   : > { %7502 = vmatpush1.bf16.msra.mxu1 %v11086_v3  ;;  %7316 = vmatprep.subr.bf16.mxu0 %v11145_v48  ;;  %v11174_v3 = vld [vmem:[#allocation15 + $0xc0] sm:$0xff]  }
 0x76f   : > { %7503 = vmatprep.subr.bf16.mxu1 %v11094_v10  ;;  %v11175_v10 = vld [vmem:[#allocation15] sm:$0xff]  }
 0x771   : > { %7317 = vmatpush1.bf16.msra.mxu0 %v11143_v46 }
 0x772   : > { %7504 = vmatpush1.bf16.msra.mxu1 %v11092_v31  ;;  %7318 = vmatprep.subr.bf16.mxu0 %v11151_v30  ;;  %v11177_v31 = vld [vmem:[#allocation15 + $0x48] sm:$0xff]  }
 0x773   : > { %7505 = vmatprep.subr.bf16.mxu1 %v11100_v26  ;;  %v11180_v26 = vld [vmem:[#allocation15 + $0x88] sm:$0xff]  }
 0x775   : > { %7319 = vmatpush1.bf16.msra.mxu0 %v11149_v47 }
 0x776   : > { %7506 = vmatpush1.bf16.msra.mxu1 %v11098_v34  ;;  %7320 = vmatprep.subr.bf16.mxu0 %v11157_v16  ;;  %v11182_v34 = vld [vmem:[#allocation15 + $0xd0] sm:$0xff]  }
 0x777   : > { %7507 = vmatprep.subr.bf16.mxu1 %v11106_v63  ;;  %v11184_v63 = vld [vmem:[#allocation15 + $0x90] sm:$0xff]  }
 0x779   : > { %7321 = vmatpush1.bf16.msra.mxu0 %v11155_v32 }
 0x77a   : > { %7508 = vmatpush1.bf16.msra.mxu1 %v11104_v27  ;;  %7322 = vmatprep.subr.bf16.mxu0 %v11163_v41  ;;  %v11186_v27 = vld [vmem:[#allocation15 + $0xd8] sm:$0xff]  }
 0x77b   : > { %7509 = vmatprep.subr.bf16.mxu1 %v11112_v25  ;;  %v11188_v25 = vld [vmem:[#allocation15 + $0x98] sm:$0xff]  }
 0x77d   : > { %7323 = vmatpush1.bf16.msra.mxu0 %v11161_v8 }
 0x77e   : > { %7510 = vmatpush1.bf16.msra.mxu1 %v11110_v55  ;;  %7324 = vmatprep.subr.bf16.mxu0 %v11169_v59  ;;  %v11190_v55 = vld [vmem:[#allocation15 + $0xe0] sm:$0xff]  }
 0x77f   : > { %7511 = vmatprep.subr.bf16.mxu1 %v11118_v62  ;;  %v11192_v62 = vld [vmem:[#allocation15 + $0xa0] sm:$0xff]  }
 0x781   : > { %7325 = vmatpush1.bf16.msra.mxu0 %v11167_v61  ;;  %v11208_v61 = vld [vmem:[#allocation18 + $0x18] sm:$0xff]  }
 0x782   : > { %7512 = vmatpush1.bf16.msra.mxu1 %v11116_v21  ;;  %8840 = vmatprep.subr.bf16.mxu0 %v11173_v11  ;;  %v11194_v21 = vld [vmem:[#allocation15 + $0xe8] sm:$0xff]  }
 0x783   : > { %7513 = vmatprep.subr.bf16.mxu1 %v11124_v13  ;;  %v11196_v13 = vld [vmem:[#allocation15 + $0xa8] sm:$0xff]  }
 0x784   : > { %7327 = vmatmul.mubr.bf16.vlgmr.msra.gmra.mrb[0].mxu0 %v5186_v50  ;;  %v11210_v11 = vld [vmem:[#allocation18 + $0x28] sm:$0xff]  }
 0x785   : > { %8841 = vmatpush3.bf16.msra.mxu0 %v11175_v10  ;;  %v11213_v10 = vld [vmem:[#allocation21] sm:$0xff]  }
 0x786   : > { %7514 = vmatpush1.bf16.msra.mxu1 %v11122_v37  ;;  %8842 = vmatprep.subr.bf16.mxu0 %v11177_v31  ;;  %v11198_v37 = vld [vmem:[#allocation15 + $0xf0] sm:$0xff]  }
 0x787   : > { %7515 = vmatprep.subr.bf16.mxu1 %v11130_v24  ;;  %v11200_v24 = vld [vmem:[#allocation15 + $0xb0] sm:$0xff]  }
 0x788   : > { %v11215_v31 = vld [vmem:[#allocation21 + $0x10] sm:$0xff]  }
 0x789   : > { %8843 = vmatpush3.bf16.msra.mxu0 %v11179_v44 }
 0x78a   : > { %7516 = vmatpush1.bf16.msra.mxu1 %v11128_v18  ;;  %8844 = vmatprep.subr.bf16.mxu0 %v11181_v33  ;;  %v11202_v18 = vld [vmem:[#allocation15 + $0xf8] sm:$0xff]  }
 0x78b   : > { %7517 = vmatprep.subr.bf16.mxu1 %v11136_v42  ;;  %v11204_v42 = vld [vmem:[#allocation15 + $0xb8] sm:$0xff]  }
 0x78d   : > { %8845 = vmatpush3.bf16.msra.mxu0 %v11183_v12 }
 0x78e   : > { %7518 = vmatpush1.bf16.msra.mxu1 %v11134_v39  ;;  %8846 = vmatprep.subr.bf16.mxu0 %v11185_v51  ;;  %v5508_v39 = vld [vmem:[#allocation14] sm:$0xf] }
 0x78f   : > { %7519 = vmatprep.subr.bf16.mxu1 %v11142_v15  ;;  %v7113_v29 = vrot.slane %v5508_v39, %v16358_v2  ;;  %v7121_v15 = vrot.slane %v5508_v39, %v16360_v19  ;;  %v7117_v60 = vrot.slane %v5508_v39, %v16357_v28 }
 0x791   : > { %8847 = vmatpush3.bf16.msra.mxu0 %v11187_v36 }
 0x792   : > { %7520 = vmatpush1.bf16.msra.mxu1 %v11140_v6  ;;  %8848 = vmatprep.subr.bf16.mxu0 %v11189_v5  ;;  %v7125_v6 = vrot.slane %v5508_v39, %v16359_v1 }
 0x793   : > { %7521 = vmatprep.subr.bf16.mxu1 %v11148_v9 }
 0x795   : > { %8849 = vmatpush3.bf16.msra.mxu0 %v11191_v57 }
 0x796   : > { %7522 = vmatpush1.bf16.msra.mxu1 %v11146_v7  ;;  %8850 = vmatprep.subr.bf16.mxu0 %v11193_v49  ;;  %v7902_v49 = vld [vmem:[#allocation20] sm:$0x1] }
 0x797   : > { %7523 = vmatprep.subr.bf16.mxu1 %v11154_v38 }
 0x799   : > { %8851 = vmatpush3.bf16.msra.mxu0 %v11195_v17 }
 0x79a   : > { %7524 = vmatpush1.bf16.msra.mxu1 %v11152_v52  ;;  %8852 = vmatprep.subr.bf16.mxu0 %v11197_v23 }
 0x79b   : > { %7525 = vmatprep.subr.bf16.mxu1 %v11160_v35 }
 0x79d   : > { %8853 = vmatpush3.bf16.msra.mxu0 %v11199_v45 }
 0x79e   : > { %7526 = vmatpush1.bf16.msra.mxu1 %v11158_v58  ;;  %8854 = vmatprep.subr.bf16.mxu0 %v11201_v20 }
 0x79f   : > { %7527 = vmatprep.subr.bf16.mxu1 %v11166_v14 }
 0x7a1   : > { %8855 = vmatpush3.bf16.msra.mxu0 %v11203_v54 }
 0x7a2   : > { %7528 = vmatpush1.bf16.msra.mxu1 %v11164_v22  ;;  %8934 = vmatprep.subr.bf16.mxu0 %v11753_v43  ;;  %v11205_v22 = vld [vmem:[#allocation18] sm:$0xff]  }
 0x7a3   : > { %7529 = vmatprep.subr.bf16.mxu1 %v11172_v53  ;;  %v11206_v53 = vld [vmem:[#allocation18 + $0x8] sm:$0xff]  }
 0x7a6   : > { %7530 = vmatpush1.bf16.msra.mxu1 %v11170_v0  ;;  %v11209_v0 = vld [vmem:[#allocation18 + $0x20] sm:$0xff]  }
 0x7a7   : > { %8862 = vmatprep.subr.bf16.mxu1 %v11174_v3  ;;  %v11211_v3 = vld [vmem:[#allocation18 + $0x30] sm:$0xff]  }
 0x7a9   : > { %7532 = vmatmul.mubr.bf16.vlgmr.msra.gmra.mrb[0].mxu1 %v5186_v50  ;;  %v11212_v50 = vld [vmem:[#allocation18 + $0x38] sm:$0xff]  }
 0x7aa   : > { %8863 = vmatpush3.bf16.msra.mxu1 %v11176_v40  ;;  %v11214_v40 = vld [vmem:[#allocation21 + $0x8] sm:$0xff]  }
 0x7ab   : > { %8864 = vmatprep.subr.bf16.mxu1 %v11178_v4 }
 0x7ae   : > { %8865 = vmatpush3.bf16.msra.mxu1 %v11180_v26  ;;  %v7612_v26 = vld [vmem:[#allocation17] sm:$0x1] }
 0x7af   : > { %8866 = vmatprep.subr.bf16.mxu1 %v11182_v34 }
 0x7b2   : > { %8867 = vmatpush3.bf16.msra.mxu1 %v11184_v63 }
 0x7b3   : > { %8868 = vmatprep.subr.bf16.mxu1 %v11186_v27 }
 0x7b6   : > { %8869 = vmatpush3.bf16.msra.mxu1 %v11188_v25 }
 0x7b7   : > { %8870 = vmatprep.subr.bf16.mxu1 %v11190_v55 }
 0x7ba   : > { %8871 = vmatpush3.bf16.msra.mxu1 %v11192_v62  ;;  %v11216_v62 = vld [vmem:[#allocation21 + $0x18] sm:$0xff]  }
 0x7bb   : > { %8872 = vmatprep.subr.bf16.mxu1 %v11194_v21 }
 0x7be   : > { %8873 = vmatpush3.bf16.msra.mxu1 %v11196_v13 }
 0x7bf   : > { %8874 = vmatprep.subr.bf16.mxu1 %v11198_v37 }
 0x7c2   : > { %8875 = vmatpush3.bf16.msra.mxu1 %v11200_v24  ;;  %v8000_v24 = vld [vmem:[#allocation23] sm:$0x1] }
 0x7c3   : > { %8876 = vmatprep.subr.bf16.mxu1 %v11202_v18 }
 0x7c6   : > { %8877 = vmatpush3.bf16.msra.mxu1 %v11204_v42 }
 0x7c7   : > { %8954 = vmatprep.subr.bf16.mxu1 %v11753_v43 }
 0x857   : > { %v7328_v48 = vpop.f32.mrb[0].mxu0 }
 0x858   : > { %v8970_v46 = vadd.f32 %v7328_v48, %v7113_v29  ;;  %v7330_v30 = vpop.f32.mrb[1].mxu0 }
 0x859   : > { %v8971_v47 = vadd.f32 %v7330_v30, %v7117_v60  ;;  %v7332_v16 = vpop.f32.mrb[2].mxu0 }
 0x85a   : > { %v7540_v32 = vmax.f32 %v8970_v46, 0.0  ;;  %v7333_v41 = vpop.f32.mrb[3].mxu0 }
 0x85b   : > { %v7541_v14 = vmax.f32 %v8971_v47, 0.0 }
 0x85c   : > { %v7544_v1 = vpack.c.bf16 %v7540_v32, %v7540_v32 }
 0x85d   : > { %v7545_v8 = vpack.c.bf16 %v7541_v14, %v7541_v14 }
 0x85f   : > { %7837 = vmatprep.mubr.bf16.mxu0 %v7545_v8 }
 0x860   : > { %7838 = vmatmul.mubr.bf16.vlgmr.msra.gmra.mrb[4].mxu0 %v7544_v1 }
 0x861   : > { %8935 = vmatpush3.bf16.msra.mxu0 %v11205_v22  ;;  %8950 = vmatprep.mubr.msk.bf16.mxu0 %vm11754_vm5, %v11753_v43 }
 0x862   : > { %8936 = vmatprep.subr.bf16.mxu0 %v11753_v43 }
 0x865   : > { %8937 = vmatpush3.bf16.msra.mxu0 %v11206_v53 }
 0x866   : > { %8938 = vmatprep.subr.bf16.mxu0 %v11753_v43 }
 0x869   : > { %8939 = vmatpush3.bf16.msra.mxu0 %v11207_v56 }
 0x86a   : > { %8940 = vmatprep.subr.bf16.mxu0 %v11753_v43 }
 0x86d   : > { %8941 = vmatpush3.bf16.msra.mxu0 %v11208_v61 }
 0x86e   : > { %8942 = vmatprep.subr.bf16.mxu0 %v11753_v43 }
 0x871   : > { %8943 = vmatpush3.bf16.msra.mxu0 %v11209_v0 }
 0x872   : > { %8944 = vmatprep.subr.bf16.mxu0 %v11753_v43 }
 0x875   : > { %8945 = vmatpush3.bf16.msra.mxu0 %v11210_v11 }
 0x876   : > { %8946 = vmatprep.subr.bf16.mxu0 %v11753_v43 }
 0x879   : > { %8947 = vmatpush3.bf16.msra.mxu0 %v11211_v3 }
 0x87a   : > { %8948 = vmatprep.subr.bf16.mxu0 %v11753_v43 }
 0x87c   : > { %v7533_v9 = vpop.f32.mrb[0].mxu1 }
 0x87d   : > { %v8972_v7 = vadd.f32 %v7533_v9, %v7121_v15  ;;  %v7535_v38 = vpop.f32.mrb[1].mxu1  ;;  %8949 = vmatpush3.bf16.msra.mxu0 %v11212_v50 }
 0x87e   : > { %v8973_v52 = vadd.f32 %v7535_v38, %v7125_v6  ;;  %v7537_v35 = vpop.f32.mrb[2].mxu1 }
 0x87f   : > { %v7542_v58 = vmax.f32 %v8972_v7, 0.0  ;;  %v7538_v2 = vpop.f32.mrb[3].mxu1 }
 0x880   : > { %v7543_v19 = vmax.f32 %v8973_v52, 0.0 }
 0x881   : > { %v7546_v59 = vpack.c.bf16 %v7542_v58, %v7542_v58 }
 0x882   : > { %v7547_v28 = vpack.c.bf16 %v7543_v19, %v7543_v19 }
 0x884   : > { %7877 = vmatprep.mubr.bf16.mxu1 %v7547_v28 }
 0x885   : > { %7878 = vmatmul.mubr.bf16.vlgmr.msra.gmra.mrb[4].mxu1 %v7546_v59 }
 0x886   : > { %8962 = vmatprep.mubr.msk.bf16.mxu1 %vm11754_vm5, %v11753_v43  ;;  %8955 = vmatpush3.bf16.msra.mxu1 %v11213_v10 }
 0x887   : > { %8956 = vmatprep.subr.bf16.mxu1 %v11753_v43 }
 0x88a   : > { %8957 = vmatpush3.bf16.msra.mxu1 %v11214_v40 }
 0x88b   : > { %8958 = vmatprep.subr.bf16.mxu1 %v11753_v43 }
 0x88e   : > { %8959 = vmatpush3.bf16.msra.mxu1 %v11215_v31 }
 0x88f   : > { %8960 = vmatprep.subr.bf16.mxu1 %v11753_v43 }
 0x892   : > { %8961 = vmatpush3.bf16.msra.mxu1 %v11216_v62 }
 0x933   : > { %v8856_v4 = vpop.f32.mrb[4].mxu0 }
 0x934   : > { %v8857_v33 = vpop.f32.mrb[5].mxu0 }
 0x935   : > { %v8858_v12 = vadd.f32 %v8857_v33, %v8856_v4  ;;  %v8859_v51 = vpop.f32.mrb[6].mxu0 }
 0x936   : > { %v8860_v36 = vpop.f32.mrb[7].mxu0 }
 0x937   : > { %v7840_v5 = vadd.f32 %v8858_v12, %v7612_v26 }
 0x958   : > { %v8878_v44 = vpop.f32.mrb[4].mxu1 }
 0x959   : > { %v8879_v34 = vpop.f32.mrb[5].mxu1 }
 0x95a   : > { %v8880_v63 = vadd.f32 %v8879_v34, %v8878_v44  ;;  %v8881_v27 = vpop.f32.mrb[6].mxu1 }
 0x95b   : > { %v8882_v25 = vpop.f32.mrb[7].mxu1 }
 0x95c   : > { %v7880_v55 = vadd.f32 %v8880_v63, %v7840_v5 }
 0x95e   : > { %v7885_v57 = vpack.c.bf16 %v7880_v55, %v7880_v55 }
 0x960   : > { %8951 = vmatmul.mubr.bf16.vlgmr.msra.gmra.mrb[8].mxu0 %v7885_v57 }
 0xa33   : > { %v7985_v21 = vpop.f32.mrb[8].mxu0 }
 0xa34   : > { %v7986_v17 = vadd.f32 %v7985_v21, %v7902_v49  ;;  %v8952_v13 = vpop.f32.mrb[9].mxu0 }
 0xa35   : > { %v7988_v23 = vpop.f32.mrb[10].mxu0 }
 0xa36   : > { %v7991_v37 = vpack.c.bf16 %v7986_v17, %v7986_v17  ;;  %v8953_v45 = vpop.f32.mrb[11].mxu0 }
 0xa38   : > { %8963 = vmatmul.mubr.msk.bf16.vlgmr.msra.gmra.mrb[8].mxu1 %vm8025_vm6, %v7991_v37 }
 0xb0b   : > { %v8063_v20 = vpop.f32.mrb[8].mxu1 }
 0xb0c   : > { %v8064_v18 = vadd.f32 %v8063_v20, %v8000_v24  ;;  %v8964_v54 = vpop.f32.mrb[9].mxu1 }
 0xb0d   : > { %v8066_v42 = vpop.f32.mrb[10].mxu1 }
 0xb0e   : > { %8070 = vst.msk [vmem:[%s12276_s27] sm:$0x1] %vm8069_vm7, %v8064_v18  ;;  %v8965_v43 = vpop.f32.mrb[11].mxu1 }
 0xb0f PF: > { %s16366_s6 = sld [smem:[#allocation40_spill]]  ;;  %s8084_s8 = sshll.u32 %s12276_s27, 4  ;;  %s8085_s8 = int_to_ptr.vmem [resolvable:$true] %s8084_s8 }
 0xb10   : > { %s16368_s14 = sld [smem:[#allocation111_spill]]  ;;  %s8072_s1 = scalar_lea.sflag [#allocation5], %s634_s25 }
 0xb11   : > { %s11583_s29 = scalar_lea.vmem %s8085_s8, 16  ;;  %p16370_p12 = scmp.ne.s32.totalorder %s15885_s2, 0 }
 0xb12   : > { %p11584_p5 = scmp.ne.s32.totalorder %s8085_s8, %s11583_s29  ;;  %s11755_s19 = smov [#allocation24]  }
 0xb13   : > { %s11587_s13 = sshll.u32 %s11755_s19, 4  ;;  %s11588_s13 = int_to_ptr.vmem [resolvable:$false] %s11587_s13 }
 0xb14   : > { %p11585_p4 = pnand %p11584_p5, %p16370_p12  ;;  %s11589_s7 = scalar_lea.vmem %s11588_s13, 32 }
 0xb15   : > { %s8819_s4 = sshll.u32 %s16366_s6, 4  ;;  %p11590_p1 = scmp.lt.s32.totalorder %s8085_s8, %s11588_s13 }
 0xb16   : > { %s16369_s21 = smov %s16368_s14  ;;  %s15706_s26 = scalar_lea.hbm %s16368_s14, %s8819_s4 }
 0xb17   : > { %p11586_p7 = pneg %p11585_p4  ;;  %p11591_p6 = scmp.lt.s32.totalorder %s11589_s7, %s11583_s29 }
 0xb19   : > { %p11592_p11 = por %p11591_p6, %p11590_p1 }
 0xb1b   : > { %p11593_p8 = pnand %p11592_p11, %p11586_p7 }
 0xb1d   : > { %11596 = shalt.err (!%p11593_p8)
}
 0xb1e   : > { %s11597_s25 = scalar_lea.hbm %s15706_s26, 16  ;;  %s11601_s28 = scalar_lea.hbm %s16369_s21, 32 }
 0xb1f   : > { %p11598_p13 = scmp.ne.s32.totalorder %s15706_s26, %s11597_s25  ;;  %p11602_p2 = scmp.lt.u32.totalorder %s15706_s26, %s16369_s21 }
 0xb20   : > { %p11603_p10 = scmp.lt.u32.totalorder %s11601_s28, %s11597_s25  ;;  %p11605_p5 = scmp.lt.u32.totalorder %s11597_s25, %s15706_s26 }
 0xb21   : > { %p11599_p0 = pnand %p11598_p13, %p16370_p12 }
 0xb22   : > { %p11604_p3 = por %p11603_p10, %p11602_p2 }
 0xb23   : > { %p11600_p9 = pneg %p11599_p0 }
 0xb24   : > { %p11606_p4 = por %p11605_p5, %p11604_p3 }
 0xb26   : > { %p11607_p7 = pnand %p11606_p4, %p11600_p9 }
 0xb28   : > { %11610 = shalt.err (!%p11607_p7)
}
 0xb29   : > { %9056 = dma.vmem_to_hbm [thread:$0]  (%p16370_p12), %s8085_s8, 16, %s15706_s26, %s8072_s1  }
 0xb2a PF: > { %s16371_s4 = sld [smem:[#allocation33_spill]]  ;;  %p9128_p1 = scmp.ge.s32.totalorder %s11729_s18, 2 }
 0xb2b   : > { %p16372_p6 = scmp.ne.s32.totalorder %s15886_s5, 0 }
 0xb2d   : > { %p9100_p11 = pnand %p9128_p1, %p16372_p6 }
 0xb30   : > { %s8096_s3 = sand.u32 1, %s16371_s4  }
 0xb31   : > { %s8097_s22 = scalar_lea.sflag [#allocation5], %s8096_s3 }
 0xb32   : > { %11684 = dma.done.wait (!%p9100_p11), %s8097_s22, 16  }
 0xb33   : > { %11686 = vsyncadd (!%p9100_p11), %s8097_s22, 4294967280  ;;  %s35_s18 = sadd.s32 1, %s11729_s18   ;;  %s16373_s25 = sld [smem:[#allocation34_spill]] }
 0xb34   : > { %p32_p8 = scmp.ge.s32.totalorder %s35_s18, 10   ;;  %s16374_s26 = sld [smem:[#allocation35_spill]] }
 0xb35   : > { %s16375_s28 = sld [smem:[#allocation37_spill]]  ;;  %s16376_s29 = sld [smem:[#allocation38_spill]] }
 0xb36   : > { %s16377_s27 = smov %s16390_s0  ;;  %s16378_s30 = smov %s12184_s15 }
 0xb37   : > { %s16379_s14 = smov %s11721_s16  ;;  %s16380_s15 = smov %s11725_s17 }
 0xb38   : > { %s16381_s16 = smov %s16384_s24  ;;  %s16382_s17 = smov %s16388_s20 }
 0xb39   :  { %34 = sbr.rel (!%p32_p8) target bundleno = 27 (0x1b), region = 173 }
 0xb40   :  { %8101 = vsyncpa [#allocation4], 1 }
 0xb41   :  { %8103 = vsyncpa [#allocation4 + $0x1], 1 }
 0xb42   :  { %8104 = vsyncpa [#allocation7], 1 }
 0xb43   :  { %8105 = vsyncpa [#allocation10], 1 }
 0xb44   :  { %8106 = vsyncpa [#allocation13], 1 }
 0xb45   :  { %8107 = vsyncpa [#allocation16], 1 }
 0xb46   :  { %8108 = vsyncpa [#allocation19], 1 }
 0xb47   :  { %8109 = vsyncpa [#allocation22], 1 }
 0xb48   :  { %8110 = vsyncpa [#allocation5], 1 }
 0xb49   :  { %8112 = vsyncpa [#allocation5 + $0x1], 1 }

</bundles_post_ra>
